<compile_context>
chip_gen: v5e
topology: v5e:2x2
jax: 0.10.0
libtpu: 0.0.40
codegen_flags: <defaults>
</compile_context>

<pallas_src>
import functools

import jax
import jax.numpy as jnp
from jax.experimental import pallas as pl
from jax.experimental.pallas import tpu as pltpu


# ----------------------------------------------------------------------------
# Fully fused kernel: one batch element per grid step.
# ----------------------------------------------------------------------------

def _palnet_kernel(x_ref,
                   c1w1, c1b1, c1w2, c1b2, a1w, a1b,
                   c2w1, c2b1, c2w2, c2b2, a2w, a2b,
                   c3w1, c3b1, c3w2, c3b2, a3w, a3b,
                   fc1w_hbm, fc1b, fc2w_hbm, fc2b, fc3w_hbm, fc3b,
                   out_ref,
                   y1_s, y2_s, y3_s, w1v, w2v, w3v, dma_sem,
                   *, out_dim):
    bf16 = jnp.bfloat16

    # ---- prefetch FC weights HBM -> VMEM; overlap with the 3 stages --------
    cp1 = pltpu.make_async_copy(fc1w_hbm, w1v, dma_sem.at[0])
    cp2 = pltpu.make_async_copy(fc2w_hbm, w2v, dma_sem.at[1])
    cp3 = pltpu.make_async_copy(fc3w_hbm, w3v, dma_sem.at[2])
    cp1.start()
    cp2.start()
    cp3.start()

    def stage(x, w1r, b1r, w2r, b2r, awr, abr, y_s, pool_k, small_k):
        """conv1x1 -> ReLU -> conv1x1 -> ReLU -> {attention, (1,k) max-pool}."""
        if small_k:
            # Tiny contraction (K=3): VPU broadcast-FMAs, skip the MXU.
            wm = w1r[...]                                    # (Cin, F1) f32
            h = x[:, 0:1] * wm[0:1, :]
            for ci in range(1, wm.shape[0]):
                h = h + x[:, ci:ci + 1] * wm[ci:ci + 1, :]
        else:
            h = jnp.dot(x.astype(bf16), w1r[...],
                        preferred_element_type=jnp.float32)
        h = jnp.maximum(h + b1r[...], 0.0)                   # (T, F1) f32

        y = jnp.dot(h.astype(bf16), w2r[...],
                    preferred_element_type=jnp.float32)
        y = jnp.maximum(y + b2r[...], 0.0)                   # (T, F2) f32
        y_s[...] = y

        # Attention over all T time steps (exact softmax).
        e = jnp.tanh(jnp.sum(y * awr[...], axis=1, keepdims=True) + abr[...])
        e = e - jnp.max(e, axis=0, keepdims=True)
        p = jnp.exp(e)
        a = p / jnp.sum(p, axis=0, keepdims=True)
        att = jnp.sum(y * a, axis=0, keepdims=True)          # (1, F2)

        # Max-pool over W: rows are (h, w) h-major and W % pool_k == 0, so
        # each pooling window is pool_k consecutive rows.
        tp = y.shape[0] // pool_k
        acc = y_s[pl.ds(0, tp, stride=pool_k), :]
        for j in range(1, pool_k):
            acc = jnp.maximum(acc, y_s[pl.ds(j, tp, stride=pool_k), :])
        return att, acc                                      # (1,F2), (tp,F2)

    x = x_ref[0]                                             # (T1, Cin) f32
    att1, x2 = stage(x,  c1w1, c1b1, c1w2, c1b2, a1w, a1b, y1_s, 5, True)
    att2, x3 = stage(x2, c2w1, c2b1, c2w2, c2b2, a2w, a2b, y2_s, 5, False)
    att3, x4 = stage(x3, c3w1, c3b1, c3w2, c3b2, a3w, a3b, y3_s, 4, False)

    # ---- FC head (weights now resident in VMEM scratch) --------------------
    cp1.wait()
    cp2.wait()
    cp3.wait()

    # fc1 as a sum of partial matmuls against static row-slices of fc1w —
    # avoids any in-kernel concatenate/flatten relayout.
    h = jnp.dot(att1.astype(bf16), w1v[pl.ds(0, 32), :],
                preferred_element_type=jnp.float32)
    h = h + jnp.dot(att2.astype(bf16), w1v[pl.ds(32, 64), :],
                    preferred_element_type=jnp.float32)
    h = h + jnp.dot(att3.astype(bf16), w1v[pl.ds(96, 128), :],
                    preferred_element_type=jnp.float32)
    # x4: (R, 128) pooled stage-3 output in (h, w) row order; fc1w's flat rows
    # were permuted to (h, w, c) order at init, so row r maps to fc1w rows
    # [224 + r*128, 224 + (r+1)*128).
    for r in range(x4.shape[0]):
        h = h + jnp.dot(x4[r:r + 1, :].astype(bf16),
                        w1v[pl.ds(224 + r * 128, 128), :],
                        preferred_element_type=jnp.float32)
    h = jnp.maximum(h + fc1b[...], 0.0)                      # (1, 1024)

    h = jnp.dot(h.astype(bf16), w2v[...],
                preferred_element_type=jnp.float32) + fc2b[...]
    # TODO(synk): dropout(p=0.1) treated as identity (inference mode).
    o = jnp.dot(h.astype(bf16), w3v[...],
                preferred_element_type=jnp.float32) + fc3b[...]
    out_ref[0] = o[:, :out_dim]                              # (1, out_dim)


def palnet_forward(params, x, *, input_shape, output_shape):
    """x: (B, H, W, C) f32 -> (B, *output_shape) f32, single fused kernel."""
    bsz = x.shape[0]
    hh, ww, cc = input_shape
    t1 = hh * ww
    assert ww % (5 * 5 * 4) == 0, "W must be divisible by 5*5*4"
    t2, t3 = t1 // 5, t1 // 25
    out_dim = output_shape[0] * output_shape[1]
    flat_dim = params["fc1w"].shape[0]
    n_pad = params["fc3w"].shape[1]

    x_btc = x.reshape(bsz, t1, cc)

    def full(arr):
        nd = arr.ndim
        return pl.BlockSpec(arr.shape, lambda b, _nd=nd: (0,) * _nd)

    out = pl.pallas_call(
        functools.partial(_palnet_kernel, out_dim=out_dim),
        grid=(bsz,),
        in_specs=[
            pl.BlockSpec((1, t1, cc), lambda b: (b, 0, 0)),
            full(params["c1w1"]), full(params["c1b1"]),
            full(params["c1w2"]), full(params["c1b2"]),
            full(params["a1w"]), full(params["a1b"]),
            full(params["c2w1"]), full(params["c2b1"]),
            full(params["c2w2"]), full(params["c2b2"]),
            full(params["a2w"]), full(params["a2b"]),
            full(params["c3w1"]), full(params["c3b1"]),
            full(params["c3w2"]), full(params["c3b2"]),
            full(params["a3w"]), full(params["a3b"]),
            pl.BlockSpec(memory_space=pl.ANY),   # fc1w: manual DMA (prefetch)
            full(params["fc1b"]),
            pl.BlockSpec(memory_space=pl.ANY),   # fc2w
            full(params["fc2b"]),
            pl.BlockSpec(memory_space=pl.ANY),   # fc3w (lane-padded)
            full(params["fc3b"]),
        ],
        out_specs=pl.BlockSpec((1, 1, out_dim), lambda b: (b, 0, 0)),
        out_shape=jax.ShapeDtypeStruct((bsz, 1, out_dim), jnp.float32),
        scratch_shapes=[
            pltpu.VMEM((t1, 32), jnp.float32),            # stage-1 activation
            pltpu.VMEM((t2, 64), jnp.float32),            # stage-2 activation
            pltpu.VMEM((t3, 128), jnp.float32),           # stage-3 activation
            pltpu.VMEM((flat_dim, 1024), jnp.bfloat16),   # fc1w (single buf)
            pltpu.VMEM((1024, 1024), jnp.bfloat16),       # fc2w
            pltpu.VMEM((1024, n_pad), jnp.bfloat16),      # fc3w
            pltpu.SemaphoreType.DMA((3,)),
        ],
        compiler_params=pltpu.CompilerParams(dimension_semantics=("parallel",)),
    )(x_btc,
      params["c1w1"], params["c1b1"], params["c1w2"], params["c1b2"],
      params["a1w"], params["a1b"],
      params["c2w1"], params["c2b1"], params["c2w2"], params["c2b2"],
      params["a2w"], params["a2b"],
      params["c3w1"], params["c3b1"], params["c3w2"], params["c3b2"],
      params["a3w"], params["a3b"],
      params["fc1w"], params["fc1b"], params["fc2w"], params["fc2b"],
      params["fc3w"], params["fc3b"])
    return out.reshape(bsz, *output_shape)


# ----------------------------------------------------------------------------
# Parameters (deterministic xavier-normal init, biases zero)
# ----------------------------------------------------------------------------

def _xavier(key, fan_in, fan_out, shape, dtype=jnp.float32):
    std = (2.0 / (fan_in + fan_out)) ** 0.5
    return (std * jax.random.normal(key, shape, dtype=jnp.float32)).astype(dtype)


def init_params(input_shape, output_shape, key):
    h, w, c = input_shape
    assert w % (5 * 5 * 4) == 0, "W must be divisible by 5*5*4"
    t1, t2, t3 = h * w, h * (w // 5), h * (w // 25)
    w3 = w // (5 * 5 * 4)
    flat_dim = 128 * h * w3 + 32 + 64 + 128
    out_dim = output_shape[0] * output_shape[1]
    n_pad = max(128, ((out_dim + 127) // 128) * 128)   # lane-dense fc3
    keys = jax.random.split(key, 12)
    bf16 = jnp.bfloat16

    # fc1 weight: generated in torch (NCHW-flatten) row order, then the rows of
    # the flattened-feature block are permuted to NHWC (h,w,c) order so the
    # forward pass needs no transpose before the FC stack.
    fc1w = _xavier(keys[9], flat_dim, 1024, (flat_dim, 1024))
    prefix = 32 + 64 + 128
    hh, ww, cc = jnp.meshgrid(jnp.arange(h), jnp.arange(w3), jnp.arange(128),
                              indexing="ij")
    src = (cc * (h * w3) + hh * w3 + ww).reshape(-1)
    fc1w = jnp.concatenate([fc1w[:prefix], fc1w[prefix:][src]], axis=0).astype(bf16)

    fc3w = _xavier(keys[11], 1024, out_dim, (1024, out_dim))
    fc3w = jnp.pad(fc3w, ((0, 0), (0, n_pad - out_dim))).astype(bf16)

    p = {
        # conv block 1 (first conv stays f32: VPU FMA path, K=3)
        "c1w1": _xavier(keys[0], c, 32, (c, 32)),
        "c1b1": jnp.zeros((1, 32), jnp.float32),
        "c1w2": _xavier(keys[1], 32, 32, (32, 32), bf16),
        "c1b2": jnp.zeros((1, 32), jnp.float32),
        # attention 1 (torch W is (32,1); stored transposed as (1,32))
        "a1w": _xavier(keys[2], 1, 32, (1, 32)),
        "a1b": jnp.zeros((t1, 1), jnp.float32),
        # conv block 2
        "c2w1": _xavier(keys[3], 32, 64, (32, 64), bf16),
        "c2b1": jnp.zeros((1, 64), jnp.float32),
        "c2w2": _xavier(keys[4], 64, 64, (64, 64), bf16),
        "c2b2": jnp.zeros((1, 64), jnp.float32),
        "a2w": _xavier(keys[5], 1, 64, (1, 64)),
        "a2b": jnp.zeros((t2, 1), jnp.float32),
        # conv block 3
        "c3w1": _xavier(keys[6], 64, 128, (64, 128), bf16),
        "c3b1": jnp.zeros((1, 128), jnp.float32),
        "c3w2": _xavier(keys[7], 128, 128, (128, 128), bf16),
        "c3b2": jnp.zeros((1, 128), jnp.float32),
        "a3w": _xavier(keys[8], 1, 128, (1, 128)),
        "a3b": jnp.zeros((t3, 1), jnp.float32),
        # fully connected
        "fc1w": fc1w,
        "fc1b": jnp.zeros((1, 1024), jnp.float32),
        "fc2w": _xavier(keys[10], 1024, 1024, (1024, 1024), bf16),
        "fc2b": jnp.zeros((1, 1024), jnp.float32),
        "fc3w": fc3w,
        "fc3b": jnp.zeros((1, n_pad), jnp.float32),
    }
    return p


# ----------------------------------------------------------------------------
# Pure-JAX reference (mirrors the kernel's bf16 matmul-operand precision)
# ----------------------------------------------------------------------------

def _ref_stage(x, w1, b1, w2, b2, aw, ab, *, pool_k, small_k):
    bsz, t, cin = x.shape
    xf = x.reshape(bsz * t, cin)
    if small_k:
        hh = xf @ w1 + b1
    else:
        hh = jnp.dot(xf.astype(jnp.bfloat16), w1,
                     preferred_element_type=jnp.float32) + b1
    hh = jnp.maximum(hh, 0.0)
    y = jnp.dot(hh.astype(jnp.bfloat16), w2,
                preferred_element_type=jnp.float32) + b2
    y = jnp.maximum(y, 0.0)
    f2 = y.shape[-1]
    y = y.reshape(bsz, t, f2)
    e = jnp.tanh(jnp.sum(y * aw[None], axis=-1, keepdims=True) + ab[None])
    a = jax.nn.softmax(e, axis=1)
    att = jnp.sum(y * a, axis=1)
    pooled = y.reshape(bsz, t // pool_k, pool_k, f2).max(axis=2)
    return att, pooled


def _ref_fc(x, w1, b1, w2, b2, w3, b3, out_dim):
    hh = jnp.maximum(jnp.dot(x.astype(jnp.bfloat16), w1,
                             preferred_element_type=jnp.float32) + b1, 0.0)
    hh = jnp.dot(hh.astype(jnp.bfloat16), w2,
                 preferred_element_type=jnp.float32) + b2
    o = jnp.dot(hh.astype(jnp.bfloat16), w3,
                preferred_element_type=jnp.float32) + b3
    return o[:, :out_dim]


def palnet_reference(params, x, *, input_shape, output_shape):
    b = x.shape[0]
    h, w, c = input_shape
    out_dim = output_shape[0] * output_shape[1]
    att1, x1 = _ref_stage(x.reshape(b, h * w, c), params["c1w1"], params["c1b1"],
                          params["c1w2"], params["c1b2"], params["a1w"],
                          params["a1b"], pool_k=5, small_k=True)
    att2, x2 = _ref_stage(x1, params["c2w1"], params["c2b1"], params["c2w2"],
                          params["c2b2"], params["a2w"], params["a2b"],
                          pool_k=5, small_k=False)
    att3, x3 = _ref_stage(x2, params["c3w1"], params["c3b1"], params["c3w2"],
                          params["c3b2"], params["a3w"], params["a3b"],
                          pool_k=4, small_k=False)
    feats = jnp.concatenate([att1, att2, att3, x3.reshape(b, -1)], axis=1)
    out = _ref_fc(feats, params["fc1w"], params["fc1b"], params["fc2w"],
                  params["fc2b"], params["fc3w"], params["fc3b"], out_dim)
    return out.reshape(b, *output_shape)


# ----------------------------------------------------------------------------
# Main
# ----------------------------------------------------------------------------

if __name__ == "__main__":
    input_shape = (2, 100, 3)      # (H, W, C) — W divisible by 5*5*4
    output_shape = (4, 4)
    batch = 2

    key = jax.random.PRNGKey(0)
    pkey, xkey = jax.random.split(key)
    params = init_params(input_shape, output_shape, pkey)
    x = jax.random.normal(xkey, (batch,) + input_shape, dtype=jnp.float32)

    fwd = jax.jit(functools.partial(palnet_forward,
                                    input_shape=input_shape,
                                    output_shape=output_shape))
    y = fwd(params, x)
    jax.block_until_ready(y)

    y_ref = palnet_reference(params, x,
                             input_shape=input_shape, output_shape=output_shape)
    assert y.shape == (batch,) + output_shape, y.shape
    assert jnp.allclose(y, y_ref, rtol=2e-2, atol=2e-2), "mismatch vs reference"

    print("KERNEL_OK")
</pallas_src>

<mosaic_0001>
module attributes {stable_mosaic.version = 11 : i64} {
  func.func @_palnet_kernel(%arg0: i32, %arg1: memref<1x200x3xf32, #tpu.memory_space<vmem>>, %arg2: memref<3x32xf32, #tpu.memory_space<vmem>>, %arg3: memref<1x32xf32, #tpu.memory_space<vmem>>, %arg4: memref<32x32xbf16, #tpu.memory_space<vmem>>, %arg5: memref<1x32xf32, #tpu.memory_space<vmem>>, %arg6: memref<1x32xf32, #tpu.memory_space<vmem>>, %arg7: memref<200x1xf32, #tpu.memory_space<vmem>>, %arg8: memref<32x64xbf16, #tpu.memory_space<vmem>>, %arg9: memref<1x64xf32, #tpu.memory_space<vmem>>, %arg10: memref<64x64xbf16, #tpu.memory_space<vmem>>, %arg11: memref<1x64xf32, #tpu.memory_space<vmem>>, %arg12: memref<1x64xf32, #tpu.memory_space<vmem>>, %arg13: memref<40x1xf32, #tpu.memory_space<vmem>>, %arg14: memref<64x128xbf16, #tpu.memory_space<vmem>>, %arg15: memref<1x128xf32, #tpu.memory_space<vmem>>, %arg16: memref<128x128xbf16, #tpu.memory_space<vmem>>, %arg17: memref<1x128xf32, #tpu.memory_space<vmem>>, %arg18: memref<1x128xf32, #tpu.memory_space<vmem>>, %arg19: memref<8x1xf32, #tpu.memory_space<vmem>>, %arg20: memref<480x1024xbf16, #tpu.memory_space<any>>, %arg21: memref<1x1024xf32, #tpu.memory_space<vmem>>, %arg22: memref<1024x1024xbf16, #tpu.memory_space<any>>, %arg23: memref<1x1024xf32, #tpu.memory_space<vmem>>, %arg24: memref<1024x128xbf16, #tpu.memory_space<any>>, %arg25: memref<1x128xf32, #tpu.memory_space<vmem>>, %arg26: memref<1x1x16xf32, #tpu.memory_space<vmem>>, %arg27: memref<200x32xf32, #tpu.memory_space<vmem>>, %arg28: memref<40x64xf32, #tpu.memory_space<vmem>>, %arg29: memref<8x128xf32, #tpu.memory_space<vmem>>, %arg30: memref<480x1024xbf16, #tpu.memory_space<vmem>>, %arg31: memref<1024x1024xbf16, #tpu.memory_space<vmem>>, %arg32: memref<1024x128xbf16, #tpu.memory_space<vmem>>, %arg33: memref<3x!tpu.dma_semaphore, #tpu.memory_space<semaphore_mem>>) attributes {dimension_semantics = [#tpu.dimension_semantics<parallel>], iteration_bounds = array<i64: 2>, scalar_prefetch = 0 : i64, scratch_operands = 7 : i64, tpu.core_type = #tpu.core_type<tc>, window_params = [{transform_indices = @transform_0, window_bounds = array<i64: 1, 200, 3>}, {pipeline_mode = #tpu.pipeline_mode<synchronous>, transform_indices = @transform_1, window_bounds = array<i64: 3, 32>}, {pipeline_mode = #tpu.pipeline_mode<synchronous>, transform_indices = @transform_2, window_bounds = array<i64: 1, 32>}, {pipeline_mode = #tpu.pipeline_mode<synchronous>, transform_indices = @transform_3, window_bounds = array<i64: 32, 32>}, {pipeline_mode = #tpu.pipeline_mode<synchronous>, transform_indices = @transform_4, window_bounds = array<i64: 1, 32>}, {pipeline_mode = #tpu.pipeline_mode<synchronous>, transform_indices = @transform_5, window_bounds = array<i64: 1, 32>}, {pipeline_mode = #tpu.pipeline_mode<synchronous>, transform_indices = @transform_6, window_bounds = array<i64: 200, 1>}, {pipeline_mode = #tpu.pipeline_mode<synchronous>, transform_indices = @transform_7, window_bounds = array<i64: 32, 64>}, {pipeline_mode = #tpu.pipeline_mode<synchronous>, transform_indices = @transform_8, window_bounds = array<i64: 1, 64>}, {pipeline_mode = #tpu.pipeline_mode<synchronous>, transform_indices = @transform_9, window_bounds = array<i64: 64, 64>}, {pipeline_mode = #tpu.pipeline_mode<synchronous>, transform_indices = @transform_10, window_bounds = array<i64: 1, 64>}, {pipeline_mode = #tpu.pipeline_mode<synchronous>, transform_indices = @transform_11, window_bounds = array<i64: 1, 64>}, {pipeline_mode = #tpu.pipeline_mode<synchronous>, transform_indices = @transform_12, window_bounds = array<i64: 40, 1>}, {pipeline_mode = #tpu.pipeline_mode<synchronous>, transform_indices = @transform_13, window_bounds = array<i64: 64, 128>}, {pipeline_mode = #tpu.pipeline_mode<synchronous>, transform_indices = @transform_14, window_bounds = array<i64: 1, 128>}, {pipeline_mode = #tpu.pipeline_mode<synchronous>, transform_indices = @transform_15, window_bounds = array<i64: 128, 128>}, {pipeline_mode = #tpu.pipeline_mode<synchronous>, transform_indices = @transform_16, window_bounds = array<i64: 1, 128>}, {pipeline_mode = #tpu.pipeline_mode<synchronous>, transform_indices = @transform_17, window_bounds = array<i64: 1, 128>}, {pipeline_mode = #tpu.pipeline_mode<synchronous>, transform_indices = @transform_18, window_bounds = array<i64: 8, 1>}, {}, {pipeline_mode = #tpu.pipeline_mode<synchronous>, transform_indices = @transform_20, window_bounds = array<i64: 1, 1024>}, {}, {pipeline_mode = #tpu.pipeline_mode<synchronous>, transform_indices = @transform_22, window_bounds = array<i64: 1, 1024>}, {}, {pipeline_mode = #tpu.pipeline_mode<synchronous>, transform_indices = @transform_24, window_bounds = array<i64: 1, 128>}, {transform_indices = @transform_25, window_bounds = array<i64: 1, 1, 16>}]} {
    %c0_i32 = arith.constant 0 : i32
    %0 = tpu.memref_slice %arg33[%c0_i32] : memref<3x!tpu.dma_semaphore, #tpu.memory_space<semaphore_mem>> -> memref<1x!tpu.dma_semaphore, #tpu.memory_space<semaphore_mem>>
    %1 = tpu.memref_squeeze %0 : memref<1x!tpu.dma_semaphore, #tpu.memory_space<semaphore_mem>> -> memref<!tpu.dma_semaphore, #tpu.memory_space<semaphore_mem>>
    tpu.enqueue_dma source(%arg20 : memref<480x1024xbf16, #tpu.memory_space<any>>) target(%arg30 : memref<480x1024xbf16, #tpu.memory_space<vmem>>) target_semaphore(%1 : memref<!tpu.dma_semaphore, #tpu.memory_space<semaphore_mem>>)
    %c1_i32 = arith.constant 1 : i32
    %2 = tpu.memref_slice %arg33[%c1_i32] : memref<3x!tpu.dma_semaphore, #tpu.memory_space<semaphore_mem>> -> memref<1x!tpu.dma_semaphore, #tpu.memory_space<semaphore_mem>>
    %3 = tpu.memref_squeeze %2 : memref<1x!tpu.dma_semaphore, #tpu.memory_space<semaphore_mem>> -> memref<!tpu.dma_semaphore, #tpu.memory_space<semaphore_mem>>
    tpu.enqueue_dma source(%arg22 : memref<1024x1024xbf16, #tpu.memory_space<any>>) target(%arg31 : memref<1024x1024xbf16, #tpu.memory_space<vmem>>) target_semaphore(%3 : memref<!tpu.dma_semaphore, #tpu.memory_space<semaphore_mem>>)
    %c2_i32 = arith.constant 2 : i32
    %4 = tpu.memref_slice %arg33[%c2_i32] : memref<3x!tpu.dma_semaphore, #tpu.memory_space<semaphore_mem>> -> memref<1x!tpu.dma_semaphore, #tpu.memory_space<semaphore_mem>>
    %5 = tpu.memref_squeeze %4 : memref<1x!tpu.dma_semaphore, #tpu.memory_space<semaphore_mem>> -> memref<!tpu.dma_semaphore, #tpu.memory_space<semaphore_mem>>
    tpu.enqueue_dma source(%arg24 : memref<1024x128xbf16, #tpu.memory_space<any>>) target(%arg32 : memref<1024x128xbf16, #tpu.memory_space<vmem>>) target_semaphore(%5 : memref<!tpu.dma_semaphore, #tpu.memory_space<semaphore_mem>>)
    %c0 = arith.constant 0 : index
    %c0_0 = arith.constant 0 : index
    %c0_1 = arith.constant 0 : index
    %6 = vector.load %arg1[%c0, %c0_0, %c0_1] : memref<1x200x3xf32, #tpu.memory_space<vmem>>, vector<1x200x3xf32>
    %7 = vector.shape_cast %6 : vector<1x200x3xf32> to vector<200x3xf32>
    %c0_2 = arith.constant 0 : index
    %c0_3 = arith.constant 0 : index
    %8 = vector.load %arg2[%c0_2, %c0_3] : memref<3x32xf32, #tpu.memory_space<vmem>>, vector<3x32xf32>
    %9 = vector.extract_strided_slice %7 {offsets = [0, 0], sizes = [200, 1], strides = [1, 1]} : vector<200x3xf32> to vector<200x1xf32>
    %10 = vector.extract_strided_slice %8 {offsets = [0, 0], sizes = [1, 32], strides = [1, 1]} : vector<3x32xf32> to vector<1x32xf32>
    %11 = vector.broadcast %9 : vector<200x1xf32> to vector<200x32xf32>
    %12 = vector.broadcast %10 : vector<1x32xf32> to vector<200x32xf32>
    %13 = arith.mulf %11, %12 : vector<200x32xf32>
    %14 = vector.extract_strided_slice %7 {offsets = [0, 1], sizes = [200, 1], strides = [1, 1]} : vector<200x3xf32> to vector<200x1xf32>
    %15 = vector.extract_strided_slice %8 {offsets = [1, 0], sizes = [1, 32], strides = [1, 1]} : vector<3x32xf32> to vector<1x32xf32>
    %16 = vector.broadcast %14 : vector<200x1xf32> to vector<200x32xf32>
    %17 = vector.broadcast %15 : vector<1x32xf32> to vector<200x32xf32>
    %18 = arith.mulf %16, %17 : vector<200x32xf32>
    %19 = arith.addf %13, %18 : vector<200x32xf32>
    %20 = vector.extract_strided_slice %7 {offsets = [0, 2], sizes = [200, 1], strides = [1, 1]} : vector<200x3xf32> to vector<200x1xf32>
    %21 = vector.extract_strided_slice %8 {offsets = [2, 0], sizes = [1, 32], strides = [1, 1]} : vector<3x32xf32> to vector<1x32xf32>
    %22 = vector.broadcast %20 : vector<200x1xf32> to vector<200x32xf32>
    %23 = vector.broadcast %21 : vector<1x32xf32> to vector<200x32xf32>
    %24 = arith.mulf %22, %23 : vector<200x32xf32>
    %25 = arith.addf %19, %24 : vector<200x32xf32>
    %c0_4 = arith.constant 0 : index
    %c0_5 = arith.constant 0 : index
    %26 = vector.load %arg3[%c0_4, %c0_5] : memref<1x32xf32, #tpu.memory_space<vmem>>, vector<1x32xf32>
    %27 = vector.broadcast %26 : vector<1x32xf32> to vector<200x32xf32>
    %28 = arith.addf %25, %27 : vector<200x32xf32>
    %cst = arith.constant 0.000000e+00 : f32
    %29 = vector.broadcast %cst : f32 to vector<200x32xf32>
    %30 = arith.maximumf %28, %29 : vector<200x32xf32>
    %31 = arith.truncf %30 : vector<200x32xf32> to vector<200x32xbf16>
    %c0_6 = arith.constant 0 : index
    %c0_7 = arith.constant 0 : index
    %32 = vector.load %arg4[%c0_6, %c0_7] : memref<32x32xbf16, #tpu.memory_space<vmem>>, vector<32x32xbf16>
    %cst_8 = arith.constant dense<0.000000e+00> : vector<200x32xf32>
    %33 = tpu.matmul %31, %32, %cst_8 {dimension_numbers = #tpu.dot_dimension_numbers<[1], [0], [0], [1], [0, 0, 1, 1], [], []>} : vector<200x32xbf16>, vector<32x32xbf16>, vector<200x32xf32> -> vector<200x32xf32>
    %c0_9 = arith.constant 0 : index
    %c0_10 = arith.constant 0 : index
    %34 = vector.load %arg5[%c0_9, %c0_10] : memref<1x32xf32, #tpu.memory_space<vmem>>, vector<1x32xf32>
    %35 = vector.broadcast %34 : vector<1x32xf32> to vector<200x32xf32>
    %36 = arith.addf %33, %35 : vector<200x32xf32>
    %cst_11 = arith.constant 0.000000e+00 : f32
    %37 = vector.broadcast %cst_11 : f32 to vector<200x32xf32>
    %38 = arith.maximumf %36, %37 : vector<200x32xf32>
    %c0_12 = arith.constant 0 : index
    %c0_13 = arith.constant 0 : index
    %39 = vector.load %arg27[%c0_12, %c0_13] : memref<200x32xf32, #tpu.memory_space<vmem>>, vector<200x32xf32>
    tpu.vector_store %arg27[%c0_12, %c0_13], %38 {strides = array<i32>} : memref<200x32xf32, #tpu.memory_space<vmem>>, vector<200x32xf32>,
    %c0_14 = arith.constant 0 : index
    %c0_15 = arith.constant 0 : index
    %40 = vector.load %arg6[%c0_14, %c0_15] : memref<1x32xf32, #tpu.memory_space<vmem>>, vector<1x32xf32>
    %41 = vector.broadcast %40 : vector<1x32xf32> to vector<200x32xf32>
    %42 = arith.mulf %38, %41 : vector<200x32xf32>
    %cst_16 = arith.constant dense<0.000000e+00> : vector<200xf32>
    %43 = vector.multi_reduction <add>, %42, %cst_16 [1] : vector<200x32xf32> to vector<200xf32>
    %44 = vector.shape_cast %43 : vector<200xf32> to vector<200x1xf32>
    %c0_17 = arith.constant 0 : index
    %c0_18 = arith.constant 0 : index
    %45 = vector.load %arg7[%c0_17, %c0_18] : memref<200x1xf32, #tpu.memory_space<vmem>>, vector<200x1xf32>
    %46 = arith.addf %44, %45 : vector<200x1xf32>
    %47 = math.tanh %46 : vector<200x1xf32>
    %cst_19 = arith.constant dense<0xFF800000> : vector<1xf32>
    %48 = vector.multi_reduction <maximumf>, %47, %cst_19 [0] : vector<200x1xf32> to vector<1xf32>
    %49 = vector.shape_cast %48 : vector<1xf32> to vector<1x1xf32>
    %50 = vector.broadcast %49 : vector<1x1xf32> to vector<200x1xf32>
    %51 = arith.subf %47, %50 : vector<200x1xf32>
    %52 = math.exp %51 : vector<200x1xf32>
    %cst_20 = arith.constant dense<0.000000e+00> : vector<1xf32>
    %53 = vector.multi_reduction <add>, %52, %cst_20 [0] : vector<200x1xf32> to vector<1xf32>
    %54 = vector.shape_cast %53 : vector<1xf32> to vector<1x1xf32>
    %55 = vector.broadcast %54 : vector<1x1xf32> to vector<200x1xf32>
    %56 = arith.divf %52, %55 : vector<200x1xf32>
    %57 = vector.broadcast %56 : vector<200x1xf32> to vector<200x32xf32>
    %58 = arith.mulf %38, %57 : vector<200x32xf32>
    %cst_21 = arith.constant dense<0.000000e+00> : vector<32xf32>
    %59 = vector.multi_reduction <add>, %58, %cst_21 [0] : vector<200x32xf32> to vector<32xf32>
    %60 = vector.shape_cast %59 : vector<32xf32> to vector<1x32xf32>
    %c0_22 = arith.constant 0 : index
    %c0_23 = arith.constant 0 : index
    %61 = tpu.strided_load %arg27[%c0_22, %c0_23] {strides = array<i32: 5, 1>} : memref<200x32xf32, #tpu.memory_space<vmem>>, vector<40x32xf32>
    %c1 = arith.constant 1 : index
    %c0_24 = arith.constant 0 : index
    %62 = tpu.strided_load %arg27[%c1, %c0_24] {strides = array<i32: 5, 1>} : memref<200x32xf32, #tpu.memory_space<vmem>>, vector<40x32xf32>
    %63 = arith.maximumf %61, %62 : vector<40x32xf32>
    %c2 = arith.constant 2 : index
    %c0_25 = arith.constant 0 : index
    %64 = tpu.strided_load %arg27[%c2, %c0_25] {strides = array<i32: 5, 1>} : memref<200x32xf32, #tpu.memory_space<vmem>>, vector<40x32xf32>
    %65 = arith.maximumf %63, %64 : vector<40x32xf32>
    %c3 = arith.constant 3 : index
    %c0_26 = arith.constant 0 : index
    %66 = tpu.strided_load %arg27[%c3, %c0_26] {strides = array<i32: 5, 1>} : memref<200x32xf32, #tpu.memory_space<vmem>>, vector<40x32xf32>
    %67 = arith.maximumf %65, %66 : vector<40x32xf32>
    %c4 = arith.constant 4 : index
    %c0_27 = arith.constant 0 : index
    %68 = tpu.strided_load %arg27[%c4, %c0_27] {strides = array<i32: 5, 1>} : memref<200x32xf32, #tpu.memory_space<vmem>>, vector<40x32xf32>
    %69 = arith.maximumf %67, %68 : vector<40x32xf32>
    %70 = arith.truncf %69 : vector<40x32xf32> to vector<40x32xbf16>
    %c0_28 = arith.constant 0 : index
    %c0_29 = arith.constant 0 : index
    %71 = vector.load %arg8[%c0_28, %c0_29] : memref<32x64xbf16, #tpu.memory_space<vmem>>, vector<32x64xbf16>
    %cst_30 = arith.constant dense<0.000000e+00> : vector<40x64xf32>
    %72 = tpu.matmul %70, %71, %cst_30 {dimension_numbers = #tpu.dot_dimension_numbers<[1], [0], [0], [1], [0, 0, 1, 1], [], []>} : vector<40x32xbf16>, vector<32x64xbf16>, vector<40x64xf32> -> vector<40x64xf32>
    %c0_31 = arith.constant 0 : index
    %c0_32 = arith.constant 0 : index
    %73 = vector.load %arg9[%c0_31, %c0_32] : memref<1x64xf32, #tpu.memory_space<vmem>>, vector<1x64xf32>
    %74 = vector.broadcast %73 : vector<1x64xf32> to vector<40x64xf32>
    %75 = arith.addf %72, %74 : vector<40x64xf32>
    %cst_33 = arith.constant 0.000000e+00 : f32
    %76 = vector.broadcast %cst_33 : f32 to vector<40x64xf32>
    %77 = arith.maximumf %75, %76 : vector<40x64xf32>
    %78 = arith.truncf %77 : vector<40x64xf32> to vector<40x64xbf16>
    %c0_34 = arith.constant 0 : index
    %c0_35 = arith.constant 0 : index
    %79 = vector.load %arg10[%c0_34, %c0_35] : memref<64x64xbf16, #tpu.memory_space<vmem>>, vector<64x64xbf16>
    %cst_36 = arith.constant dense<0.000000e+00> : vector<40x64xf32>
    %80 = tpu.matmul %78, %79, %cst_36 {dimension_numbers = #tpu.dot_dimension_numbers<[1], [0], [0], [1], [0, 0, 1, 1], [], []>} : vector<40x64xbf16>, vector<64x64xbf16>, vector<40x64xf32> -> vector<40x64xf32>
    %c0_37 = arith.constant 0 : index
    %c0_38 = arith.constant 0 : index
    %81 = vector.load %arg11[%c0_37, %c0_38] : memref<1x64xf32, #tpu.memory_space<vmem>>, vector<1x64xf32>
    %82 = vector.broadcast %81 : vector<1x64xf32> to vector<40x64xf32>
    %83 = arith.addf %80, %82 : vector<40x64xf32>
    %cst_39 = arith.constant 0.000000e+00 : f32
    %84 = vector.broadcast %cst_39 : f32 to vector<40x64xf32>
    %85 = arith.maximumf %83, %84 : vector<40x64xf32>
    %c0_40 = arith.constant 0 : index
    %c0_41 = arith.constant 0 : index
    %86 = vector.load %arg28[%c0_40, %c0_41] : memref<40x64xf32, #tpu.memory_space<vmem>>, vector<40x64xf32>
    tpu.vector_store %arg28[%c0_40, %c0_41], %85 {strides = array<i32>} : memref<40x64xf32, #tpu.memory_space<vmem>>, vector<40x64xf32>,
    %c0_42 = arith.constant 0 : index
    %c0_43 = arith.constant 0 : index
    %87 = vector.load %arg12[%c0_42, %c0_43] : memref<1x64xf32, #tpu.memory_space<vmem>>, vector<1x64xf32>
    %88 = vector.broadcast %87 : vector<1x64xf32> to vector<40x64xf32>
    %89 = arith.mulf %85, %88 : vector<40x64xf32>
    %cst_44 = arith.constant dense<0.000000e+00> : vector<40xf32>
    %90 = vector.multi_reduction <add>, %89, %cst_44 [1] : vector<40x64xf32> to vector<40xf32>
    %91 = vector.shape_cast %90 : vector<40xf32> to vector<40x1xf32>
    %c0_45 = arith.constant 0 : index
    %c0_46 = arith.constant 0 : index
    %92 = vector.load %arg13[%c0_45, %c0_46] : memref<40x1xf32, #tpu.memory_space<vmem>>, vector<40x1xf32>
    %93 = arith.addf %91, %92 : vector<40x1xf32>
    %94 = math.tanh %93 : vector<40x1xf32>
    %cst_47 = arith.constant dense<0xFF800000> : vector<1xf32>
    %95 = vector.multi_reduction <maximumf>, %94, %cst_47 [0] : vector<40x1xf32> to vector<1xf32>
    %96 = vector.shape_cast %95 : vector<1xf32> to vector<1x1xf32>
    %97 = vector.broadcast %96 : vector<1x1xf32> to vector<40x1xf32>
    %98 = arith.subf %94, %97 : vector<40x1xf32>
    %99 = math.exp %98 : vector<40x1xf32>
    %cst_48 = arith.constant dense<0.000000e+00> : vector<1xf32>
    %100 = vector.multi_reduction <add>, %99, %cst_48 [0] : vector<40x1xf32> to vector<1xf32>
    %101 = vector.shape_cast %100 : vector<1xf32> to vector<1x1xf32>
    %102 = vector.broadcast %101 : vector<1x1xf32> to vector<40x1xf32>
    %103 = arith.divf %99, %102 : vector<40x1xf32>
    %104 = vector.broadcast %103 : vector<40x1xf32> to vector<40x64xf32>
    %105 = arith.mulf %85, %104 : vector<40x64xf32>
    %cst_49 = arith.constant dense<0.000000e+00> : vector<64xf32>
    %106 = vector.multi_reduction <add>, %105, %cst_49 [0] : vector<40x64xf32> to vector<64xf32>
    %107 = vector.shape_cast %106 : vector<64xf32> to vector<1x64xf32>
    %c0_50 = arith.constant 0 : index
    %c0_51 = arith.constant 0 : index
    %108 = tpu.strided_load %arg28[%c0_50, %c0_51] {strides = array<i32: 5, 1>} : memref<40x64xf32, #tpu.memory_space<vmem>>, vector<8x64xf32>
    %c1_52 = arith.constant 1 : index
    %c0_53 = arith.constant 0 : index
    %109 = tpu.strided_load %arg28[%c1_52, %c0_53] {strides = array<i32: 5, 1>} : memref<40x64xf32, #tpu.memory_space<vmem>>, vector<8x64xf32>
    %110 = arith.maximumf %108, %109 : vector<8x64xf32>
    %c2_54 = arith.constant 2 : index
    %c0_55 = arith.constant 0 : index
    %111 = tpu.strided_load %arg28[%c2_54, %c0_55] {strides = array<i32: 5, 1>} : memref<40x64xf32, #tpu.memory_space<vmem>>, vector<8x64xf32>
    %112 = arith.maximumf %110, %111 : vector<8x64xf32>
    %c3_56 = arith.constant 3 : index
    %c0_57 = arith.constant 0 : index
    %113 = tpu.strided_load %arg28[%c3_56, %c0_57] {strides = array<i32: 5, 1>} : memref<40x64xf32, #tpu.memory_space<vmem>>, vector<8x64xf32>
    %114 = arith.maximumf %112, %113 : vector<8x64xf32>
    %c4_58 = arith.constant 4 : index
    %c0_59 = arith.constant 0 : index
    %115 = tpu.strided_load %arg28[%c4_58, %c0_59] {strides = array<i32: 5, 1>} : memref<40x64xf32, #tpu.memory_space<vmem>>, vector<8x64xf32>
    %116 = arith.maximumf %114, %115 : vector<8x64xf32>
    %117 = arith.truncf %116 : vector<8x64xf32> to vector<8x64xbf16>
    %c0_60 = arith.constant 0 : index
    %c0_61 = arith.constant 0 : index
    %118 = vector.load %arg14[%c0_60, %c0_61] : memref<64x128xbf16, #tpu.memory_space<vmem>>, vector<64x128xbf16>
    %cst_62 = arith.constant dense<0.000000e+00> : vector<8x128xf32>
    %119 = tpu.matmul %117, %118, %cst_62 {dimension_numbers = #tpu.dot_dimension_numbers<[1], [0], [0], [1], [0, 0, 1, 1], [], []>} : vector<8x64xbf16>, vector<64x128xbf16>, vector<8x128xf32> -> vector<8x128xf32>
    %c0_63 = arith.constant 0 : index
    %c0_64 = arith.constant 0 : index
    %120 = vector.load %arg15[%c0_63, %c0_64] : memref<1x128xf32, #tpu.memory_space<vmem>>, vector<1x128xf32>
    %121 = vector.broadcast %120 : vector<1x128xf32> to vector<8x128xf32>
    %122 = arith.addf %119, %121 : vector<8x128xf32>
    %cst_65 = arith.constant 0.000000e+00 : f32
    %123 = vector.broadcast %cst_65 : f32 to vector<8x128xf32>
    %124 = arith.maximumf %122, %123 : vector<8x128xf32>
    %125 = arith.truncf %124 : vector<8x128xf32> to vector<8x128xbf16>
    %c0_66 = arith.constant 0 : index
    %c0_67 = arith.constant 0 : index
    %126 = vector.load %arg16[%c0_66, %c0_67] : memref<128x128xbf16, #tpu.memory_space<vmem>>, vector<128x128xbf16>
    %cst_68 = arith.constant dense<0.000000e+00> : vector<8x128xf32>
    %127 = tpu.matmul %125, %126, %cst_68 {dimension_numbers = #tpu.dot_dimension_numbers<[1], [0], [0], [1], [0, 0, 1, 1], [], []>} : vector<8x128xbf16>, vector<128x128xbf16>, vector<8x128xf32> -> vector<8x128xf32>
    %c0_69 = arith.constant 0 : index
    %c0_70 = arith.constant 0 : index
    %128 = vector.load %arg17[%c0_69, %c0_70] : memref<1x128xf32, #tpu.memory_space<vmem>>, vector<1x128xf32>
    %129 = vector.broadcast %128 : vector<1x128xf32> to vector<8x128xf32>
    %130 = arith.addf %127, %129 : vector<8x128xf32>
    %cst_71 = arith.constant 0.000000e+00 : f32
    %131 = vector.broadcast %cst_71 : f32 to vector<8x128xf32>
    %132 = arith.maximumf %130, %131 : vector<8x128xf32>
    %c0_72 = arith.constant 0 : index
    %c0_73 = arith.constant 0 : index
    %133 = vector.load %arg29[%c0_72, %c0_73] : memref<8x128xf32, #tpu.memory_space<vmem>>, vector<8x128xf32>
    tpu.vector_store %arg29[%c0_72, %c0_73], %132 {strides = array<i32>} : memref<8x128xf32, #tpu.memory_space<vmem>>, vector<8x128xf32>,
    %c0_74 = arith.constant 0 : index
    %c0_75 = arith.constant 0 : index
    %134 = vector.load %arg18[%c0_74, %c0_75] : memref<1x128xf32, #tpu.memory_space<vmem>>, vector<1x128xf32>
    %135 = vector.broadcast %134 : vector<1x128xf32> to vector<8x128xf32>
    %136 = arith.mulf %132, %135 : vector<8x128xf32>
    %cst_76 = arith.constant dense<0.000000e+00> : vector<8xf32>
    %137 = vector.multi_reduction <add>, %136, %cst_76 [1] : vector<8x128xf32> to vector<8xf32>
    %138 = vector.shape_cast %137 : vector<8xf32> to vector<8x1xf32>
    %c0_77 = arith.constant 0 : index
    %c0_78 = arith.constant 0 : index
    %139 = vector.load %arg19[%c0_77, %c0_78] : memref<8x1xf32, #tpu.memory_space<vmem>>, vector<8x1xf32>
    %140 = arith.addf %138, %139 : vector<8x1xf32>
    %141 = math.tanh %140 : vector<8x1xf32>
    %cst_79 = arith.constant dense<0xFF800000> : vector<1xf32>
    %142 = vector.multi_reduction <maximumf>, %141, %cst_79 [0] : vector<8x1xf32> to vector<1xf32>
    %143 = vector.shape_cast %142 : vector<1xf32> to vector<1x1xf32>
    %144 = vector.broadcast %143 : vector<1x1xf32> to vector<8x1xf32>
    %145 = arith.subf %141, %144 : vector<8x1xf32>
    %146 = math.exp %145 : vector<8x1xf32>
    %cst_80 = arith.constant dense<0.000000e+00> : vector<1xf32>
    %147 = vector.multi_reduction <add>, %146, %cst_80 [0] : vector<8x1xf32> to vector<1xf32>
    %148 = vector.shape_cast %147 : vector<1xf32> to vector<1x1xf32>
    %149 = vector.broadcast %148 : vector<1x1xf32> to vector<8x1xf32>
    %150 = arith.divf %146, %149 : vector<8x1xf32>
    %151 = vector.broadcast %150 : vector<8x1xf32> to vector<8x128xf32>
    %152 = arith.mulf %132, %151 : vector<8x128xf32>
    %cst_81 = arith.constant dense<0.000000e+00> : vector<128xf32>
    %153 = vector.multi_reduction <add>, %152, %cst_81 [0] : vector<8x128xf32> to vector<128xf32>
    %154 = vector.shape_cast %153 : vector<128xf32> to vector<1x128xf32>
    %c0_82 = arith.constant 0 : index
    %c0_83 = arith.constant 0 : index
    %155 = tpu.strided_load %arg29[%c0_82, %c0_83] {strides = array<i32: 4, 1>} : memref<8x128xf32, #tpu.memory_space<vmem>>, vector<2x128xf32>
    %c1_84 = arith.constant 1 : index
    %c0_85 = arith.constant 0 : index
    %156 = tpu.strided_load %arg29[%c1_84, %c0_85] {strides = array<i32: 4, 1>} : memref<8x128xf32, #tpu.memory_space<vmem>>, vector<2x128xf32>
    %157 = arith.maximumf %155, %156 : vector<2x128xf32>
    %c2_86 = arith.constant 2 : index
    %c0_87 = arith.constant 0 : index
    %158 = tpu.strided_load %arg29[%c2_86, %c0_87] {strides = array<i32: 4, 1>} : memref<8x128xf32, #tpu.memory_space<vmem>>, vector<2x128xf32>
    %159 = arith.maximumf %157, %158 : vector<2x128xf32>
    %c3_88 = arith.constant 3 : index
    %c0_89 = arith.constant 0 : index
    %160 = tpu.strided_load %arg29[%c3_88, %c0_89] {strides = array<i32: 4, 1>} : memref<8x128xf32, #tpu.memory_space<vmem>>, vector<2x128xf32>
    %161 = arith.maximumf %159, %160 : vector<2x128xf32>
    %c0_i32_90 = arith.constant 0 : i32
    %162 = tpu.memref_slice %arg33[%c0_i32_90] : memref<3x!tpu.dma_semaphore, #tpu.memory_space<semaphore_mem>> -> memref<1x!tpu.dma_semaphore, #tpu.memory_space<semaphore_mem>>
    %163 = tpu.memref_squeeze %162 : memref<1x!tpu.dma_semaphore, #tpu.memory_space<semaphore_mem>> -> memref<!tpu.dma_semaphore, #tpu.memory_space<semaphore_mem>>
    tpu.wait_dma2 semaphore(%163 : memref<!tpu.dma_semaphore, #tpu.memory_space<semaphore_mem>>) src(%arg20 : memref<480x1024xbf16, #tpu.memory_space<any>>) dst(%arg30 : memref<480x1024xbf16, #tpu.memory_space<vmem>>)
    %c1_i32_91 = arith.constant 1 : i32
    %164 = tpu.memref_slice %arg33[%c1_i32_91] : memref<3x!tpu.dma_semaphore, #tpu.memory_space<semaphore_mem>> -> memref<1x!tpu.dma_semaphore, #tpu.memory_space<semaphore_mem>>
    %165 = tpu.memref_squeeze %164 : memref<1x!tpu.dma_semaphore, #tpu.memory_space<semaphore_mem>> -> memref<!tpu.dma_semaphore, #tpu.memory_space<semaphore_mem>>
    tpu.wait_dma2 semaphore(%165 : memref<!tpu.dma_semaphore, #tpu.memory_space<semaphore_mem>>) src(%arg22 : memref<1024x1024xbf16, #tpu.memory_space<any>>) dst(%arg31 : memref<1024x1024xbf16, #tpu.memory_space<vmem>>)
    %c2_i32_92 = arith.constant 2 : i32
    %166 = tpu.memref_slice %arg33[%c2_i32_92] : memref<3x!tpu.dma_semaphore, #tpu.memory_space<semaphore_mem>> -> memref<1x!tpu.dma_semaphore, #tpu.memory_space<semaphore_mem>>
    %167 = tpu.memref_squeeze %166 : memref<1x!tpu.dma_semaphore, #tpu.memory_space<semaphore_mem>> -> memref<!tpu.dma_semaphore, #tpu.memory_space<semaphore_mem>>
    tpu.wait_dma2 semaphore(%167 : memref<!tpu.dma_semaphore, #tpu.memory_space<semaphore_mem>>) src(%arg24 : memref<1024x128xbf16, #tpu.memory_space<any>>) dst(%arg32 : memref<1024x128xbf16, #tpu.memory_space<vmem>>)
    %168 = arith.truncf %60 : vector<1x32xf32> to vector<1x32xbf16>
    %c0_93 = arith.constant 0 : index
    %c0_94 = arith.constant 0 : index
    %169 = vector.load %arg30[%c0_93, %c0_94] : memref<480x1024xbf16, #tpu.memory_space<vmem>>, vector<32x1024xbf16>
    %cst_95 = arith.constant dense<0.000000e+00> : vector<1x1024xf32>
    %170 = tpu.matmul %168, %169, %cst_95 {dimension_numbers = #tpu.dot_dimension_numbers<[1], [0], [0], [1], [0, 0, 1, 1], [], []>} : vector<1x32xbf16>, vector<32x1024xbf16>, vector<1x1024xf32> -> vector<1x1024xf32>
    %171 = arith.truncf %107 : vector<1x64xf32> to vector<1x64xbf16>
    %c32 = arith.constant 32 : index
    %c0_96 = arith.constant 0 : index
    %172 = vector.load %arg30[%c32, %c0_96] : memref<480x1024xbf16, #tpu.memory_space<vmem>>, vector<64x1024xbf16>
    %cst_97 = arith.constant dense<0.000000e+00> : vector<1x1024xf32>
    %173 = tpu.matmul %171, %172, %cst_97 {dimension_numbers = #tpu.dot_dimension_numbers<[1], [0], [0], [1], [0, 0, 1, 1], [], []>} : vector<1x64xbf16>, vector<64x1024xbf16>, vector<1x1024xf32> -> vector<1x1024xf32>
    %174 = arith.addf %170, %173 : vector<1x1024xf32>
    %175 = arith.truncf %154 : vector<1x128xf32> to vector<1x128xbf16>
    %c96 = arith.constant 96 : index
    %c0_98 = arith.constant 0 : index
    %176 = vector.load %arg30[%c96, %c0_98] : memref<480x1024xbf16, #tpu.memory_space<vmem>>, vector<128x1024xbf16>
    %cst_99 = arith.constant dense<0.000000e+00> : vector<1x1024xf32>
    %177 = tpu.matmul %175, %176, %cst_99 {dimension_numbers = #tpu.dot_dimension_numbers<[1], [0], [0], [1], [0, 0, 1, 1], [], []>} : vector<1x128xbf16>, vector<128x1024xbf16>, vector<1x1024xf32> -> vector<1x1024xf32>
    %178 = arith.addf %174, %177 : vector<1x1024xf32>
    %179 = vector.extract_strided_slice %161 {offsets = [0, 0], sizes = [1, 128], strides = [1, 1]} : vector<2x128xf32> to vector<1x128xf32>
    %180 = arith.truncf %179 : vector<1x128xf32> to vector<1x128xbf16>
    %c224 = arith.constant 224 : index
    %c0_100 = arith.constant 0 : index
    %181 = vector.load %arg30[%c224, %c0_100] : memref<480x1024xbf16, #tpu.memory_space<vmem>>, vector<128x1024xbf16>
    %cst_101 = arith.constant dense<0.000000e+00> : vector<1x1024xf32>
    %182 = tpu.matmul %180, %181, %cst_101 {dimension_numbers = #tpu.dot_dimension_numbers<[1], [0], [0], [1], [0, 0, 1, 1], [], []>} : vector<1x128xbf16>, vector<128x1024xbf16>, vector<1x1024xf32> -> vector<1x1024xf32>
    %183 = arith.addf %178, %182 : vector<1x1024xf32>
    %184 = vector.extract_strided_slice %161 {offsets = [1, 0], sizes = [1, 128], strides = [1, 1]} : vector<2x128xf32> to vector<1x128xf32>
    %185 = arith.truncf %184 : vector<1x128xf32> to vector<1x128xbf16>
    %c352 = arith.constant 352 : index
    %c0_102 = arith.constant 0 : index
    %186 = vector.load %arg30[%c352, %c0_102] : memref<480x1024xbf16, #tpu.memory_space<vmem>>, vector<128x1024xbf16>
    %cst_103 = arith.constant dense<0.000000e+00> : vector<1x1024xf32>
    %187 = tpu.matmul %185, %186, %cst_103 {dimension_numbers = #tpu.dot_dimension_numbers<[1], [0], [0], [1], [0, 0, 1, 1], [], []>} : vector<1x128xbf16>, vector<128x1024xbf16>, vector<1x1024xf32> -> vector<1x1024xf32>
    %188 = arith.addf %183, %187 : vector<1x1024xf32>
    %c0_104 = arith.constant 0 : index
    %c0_105 = arith.constant 0 : index
    %189 = vector.load %arg21[%c0_104, %c0_105] : memref<1x1024xf32, #tpu.memory_space<vmem>>, vector<1x1024xf32>
    %190 = arith.addf %188, %189 : vector<1x1024xf32>
    %cst_106 = arith.constant 0.000000e+00 : f32
    %191 = vector.broadcast %cst_106 : f32 to vector<1x1024xf32>
    %192 = arith.maximumf %190, %191 : vector<1x1024xf32>
    %193 = arith.truncf %192 : vector<1x1024xf32> to vector<1x1024xbf16>
    %c0_107 = arith.constant 0 : index
    %c0_108 = arith.constant 0 : index
    %194 = vector.load %arg31[%c0_107, %c0_108] : memref<1024x1024xbf16, #tpu.memory_space<vmem>>, vector<1024x1024xbf16>
    %cst_109 = arith.constant dense<0.000000e+00> : vector<1x1024xf32>
    %195 = tpu.matmul %193, %194, %cst_109 {dimension_numbers = #tpu.dot_dimension_numbers<[1], [0], [0], [1], [0, 0, 1, 1], [], []>} : vector<1x1024xbf16>, vector<1024x1024xbf16>, vector<1x1024xf32> -> vector<1x1024xf32>
    %c0_110 = arith.constant 0 : index
    %c0_111 = arith.constant 0 : index
    %196 = vector.load %arg23[%c0_110, %c0_111] : memref<1x1024xf32, #tpu.memory_space<vmem>>, vector<1x1024xf32>
    %197 = arith.addf %195, %196 : vector<1x1024xf32>
    %198 = arith.truncf %197 : vector<1x1024xf32> to vector<1x1024xbf16>
    %c0_112 = arith.constant 0 : index
    %c0_113 = arith.constant 0 : index
    %199 = vector.load %arg32[%c0_112, %c0_113] : memref<1024x128xbf16, #tpu.memory_space<vmem>>, vector<1024x128xbf16>
    %cst_114 = arith.constant dense<0.000000e+00> : vector<1x128xf32>
    %200 = tpu.matmul %198, %199, %cst_114 {dimension_numbers = #tpu.dot_dimension_numbers<[1], [0], [0], [1], [0, 0, 1, 1], [], []>} : vector<1x1024xbf16>, vector<1024x128xbf16>, vector<1x128xf32> -> vector<1x128xf32>
    %c0_115 = arith.constant 0 : index
    %c0_116 = arith.constant 0 : index
    %201 = vector.load %arg25[%c0_115, %c0_116] : memref<1x128xf32, #tpu.memory_space<vmem>>, vector<1x128xf32>
    %202 = arith.addf %200, %201 : vector<1x128xf32>
    %203 = vector.extract_strided_slice %202 {offsets = [0, 0], sizes = [1, 16], strides = [1, 1]} : vector<1x128xf32> to vector<1x16xf32>
    %c0_117 = arith.constant 0 : index
    %c0_118 = arith.constant 0 : index
    %c0_119 = arith.constant 0 : index
    %204 = vector.load %arg26[%c0_117, %c0_118, %c0_119] : memref<1x1x16xf32, #tpu.memory_space<vmem>>, vector<1x1x16xf32>
    %205 = vector.shape_cast %204 : vector<1x1x16xf32> to vector<1x16xf32>
    %206 = vector.shape_cast %203 : vector<1x16xf32> to vector<1x1x16xf32>
    tpu.vector_store %arg26[%c0_117, %c0_118, %c0_119], %206 {strides = array<i32>} : memref<1x1x16xf32, #tpu.memory_space<vmem>>, vector<1x1x16xf32>,
    return
  }
  func.func @transform_0(%arg0: i32) -> (i32, i32, i32) {
    %c0_i32 = arith.constant 0 : i32
    %c0_i32_0 = arith.constant 0 : i32
    %c0_i32_1 = arith.constant 0 : i32
    return %arg0, %c0_i32, %c0_i32_0 : i32, i32, i32
  }
  func.func @transform_1(%arg0: i32) -> (i32, i32) {
    %c0_i32 = arith.constant 0 : i32
    %c0_i32_0 = arith.constant 0 : i32
    %c0_i32_1 = arith.constant 0 : i32
    return %c0_i32, %c0_i32_0 : i32, i32
  }
  func.func @transform_2(%arg0: i32) -> (i32, i32) {
    %c0_i32 = arith.constant 0 : i32
    %c0_i32_0 = arith.constant 0 : i32
    %c0_i32_1 = arith.constant 0 : i32
    return %c0_i32, %c0_i32_0 : i32, i32
  }
  func.func @transform_3(%arg0: i32) -> (i32, i32) {
    %c0_i32 = arith.constant 0 : i32
    %c0_i32_0 = arith.constant 0 : i32
    %c0_i32_1 = arith.constant 0 : i32
    return %c0_i32, %c0_i32_0 : i32, i32
  }
  func.func @transform_4(%arg0: i32) -> (i32, i32) {
    %c0_i32 = arith.constant 0 : i32
    %c0_i32_0 = arith.constant 0 : i32
    %c0_i32_1 = arith.constant 0 : i32
    return %c0_i32, %c0_i32_0 : i32, i32
  }
  func.func @transform_5(%arg0: i32) -> (i32, i32) {
    %c0_i32 = arith.constant 0 : i32
    %c0_i32_0 = arith.constant 0 : i32
    %c0_i32_1 = arith.constant 0 : i32
    return %c0_i32, %c0_i32_0 : i32, i32
  }
  func.func @transform_6(%arg0: i32) -> (i32, i32) {
    %c0_i32 = arith.constant 0 : i32
    %c0_i32_0 = arith.constant 0 : i32
    %c0_i32_1 = arith.constant 0 : i32
    return %c0_i32, %c0_i32_0 : i32, i32
  }
  func.func @transform_7(%arg0: i32) -> (i32, i32) {
    %c0_i32 = arith.constant 0 : i32
    %c0_i32_0 = arith.constant 0 : i32
    %c0_i32_1 = arith.constant 0 : i32
    return %c0_i32, %c0_i32_0 : i32, i32
  }
  func.func @transform_8(%arg0: i32) -> (i32, i32) {
    %c0_i32 = arith.constant 0 : i32
    %c0_i32_0 = arith.constant 0 : i32
    %c0_i32_1 = arith.constant 0 : i32
    return %c0_i32, %c0_i32_0 : i32, i32
  }
  func.func @transform_9(%arg0: i32) -> (i32, i32) {
    %c0_i32 = arith.constant 0 : i32
    %c0_i32_0 = arith.constant 0 : i32
    %c0_i32_1 = arith.constant 0 : i32
    return %c0_i32, %c0_i32_0 : i32, i32
  }
  func.func @transform_10(%arg0: i32) -> (i32, i32) {
    %c0_i32 = arith.constant 0 : i32
    %c0_i32_0 = arith.constant 0 : i32
    %c0_i32_1 = arith.constant 0 : i32
    return %c0_i32, %c0_i32_0 : i32, i32
  }
  func.func @transform_11(%arg0: i32) -> (i32, i32) {
    %c0_i32 = arith.constant 0 : i32
    %c0_i32_0 = arith.constant 0 : i32
    %c0_i32_1 = arith.constant 0 : i32
    return %c0_i32, %c0_i32_0 : i32, i32
  }
  func.func @transform_12(%arg0: i32) -> (i32, i32) {
    %c0_i32 = arith.constant 0 : i32
    %c0_i32_0 = arith.constant 0 : i32
    %c0_i32_1 = arith.constant 0 : i32
    return %c0_i32, %c0_i32_0 : i32, i32
  }
  func.func @transform_13(%arg0: i32) -> (i32, i32) {
    %c0_i32 = arith.constant 0 : i32
    %c0_i32_0 = arith.constant 0 : i32
    %c0_i32_1 = arith.constant 0 : i32
    return %c0_i32, %c0_i32_0 : i32, i32
  }
  func.func @transform_14(%arg0: i32) -> (i32, i32) {
    %c0_i32 = arith.constant 0 : i32
    %c0_i32_0 = arith.constant 0 : i32
    %c0_i32_1 = arith.constant 0 : i32
    return %c0_i32, %c0_i32_0 : i32, i32
  }
  func.func @transform_15(%arg0: i32) -> (i32, i32) {
    %c0_i32 = arith.constant 0 : i32
    %c0_i32_0 = arith.constant 0 : i32
    %c0_i32_1 = arith.constant 0 : i32
    return %c0_i32, %c0_i32_0 : i32, i32
  }
  func.func @transform_16(%arg0: i32) -> (i32, i32) {
    %c0_i32 = arith.constant 0 : i32
    %c0_i32_0 = arith.constant 0 : i32
    %c0_i32_1 = arith.constant 0 : i32
    return %c0_i32, %c0_i32_0 : i32, i32
  }
  func.func @transform_17(%arg0: i32) -> (i32, i32) {
    %c0_i32 = arith.constant 0 : i32
    %c0_i32_0 = arith.constant 0 : i32
    %c0_i32_1 = arith.constant 0 : i32
    return %c0_i32, %c0_i32_0 : i32, i32
  }
  func.func @transform_18(%arg0: i32) -> (i32, i32) {
    %c0_i32 = arith.constant 0 : i32
    %c0_i32_0 = arith.constant 0 : i32
    %c0_i32_1 = arith.constant 0 : i32
    return %c0_i32, %c0_i32_0 : i32, i32
  }
  func.func @transform_20(%arg0: i32) -> (i32, i32) {
    %c0_i32 = arith.constant 0 : i32
    %c0_i32_0 = arith.constant 0 : i32
    %c0_i32_1 = arith.constant 0 : i32
    return %c0_i32, %c0_i32_0 : i32, i32
  }
  func.func @transform_22(%arg0: i32) -> (i32, i32) {
    %c0_i32 = arith.constant 0 : i32
    %c0_i32_0 = arith.constant 0 : i32
    %c0_i32_1 = arith.constant 0 : i32
    return %c0_i32, %c0_i32_0 : i32, i32
  }
  func.func @transform_24(%arg0: i32) -> (i32, i32) {
    %c0_i32 = arith.constant 0 : i32
    %c0_i32_0 = arith.constant 0 : i32
    %c0_i32_1 = arith.constant 0 : i32
    return %c0_i32, %c0_i32_0 : i32, i32
  }
  func.func @transform_25(%arg0: i32) -> (i32, i32, i32) {
    %c0_i32 = arith.constant 0 : i32
    %c0_i32_0 = arith.constant 0 : i32
    %c0_i32_1 = arith.constant 0 : i32
    return %arg0, %c0_i32, %c0_i32_0 : i32, i32, i32
  }
}

</mosaic_0001>

<bundles_post_ra>
// kernel: palnet_forward.1
= control target key start
LH: loop header
LB: loop body
LE: loop exit
PB: predicated region body
PF: predicated region fallthrough
CT: control target
= control target key end

     0   :  { %s16812_s0 = inlined_call_operand.vmem [shape: f32[2,200,3], index: 0, kind: input, shape index: {}]   ;;  %s16813_s1 = inlined_call_operand.hbm [shape: f32[3,32], index: 1, kind: input, shape index: {}]   ;;  %s16814_s2 = inlined_call_operand.hbm [shape: f32[1,32], index: 2, kind: input, shape index: {}]   ;;  %s16815_s3 = inlined_call_operand.hbm [shape: bf16[32,32], index: 3, kind: input, shape index: {}]   ;;  %s16816_s4 = inlined_call_operand.hbm [shape: f32[1,32], index: 4, kind: input, shape index: {}]   ;;  %s16817_s5 = inlined_call_operand.hbm [shape: f32[1,32], index: 5, kind: input, shape index: {}]   ;;  %s16818_s6 = inlined_call_operand.vmem [shape: f32[200,1], index: 6, kind: input, shape index: {}]   ;;  %s16819_s7 = inlined_call_operand.hbm [shape: bf16[32,64], index: 7, kind: input, shape index: {}]   ;;  %s16820_s8 = inlined_call_operand.hbm [shape: f32[1,64], index: 8, kind: input, shape index: {}]   ;;  %s16821_s9 = inlined_call_operand.hbm [shape: bf16[64,64], index: 9, kind: input, shape index: {}]   ;;  %s16822_s10 = inlined_call_operand.hbm [shape: f32[1,64], index: 10, kind: input, shape index: {}]   ;;  %s16823_s11 = inlined_call_operand.hbm [shape: f32[1,64], index: 11, kind: input, shape index: {}]   ;;  %s16824_s12 = inlined_call_operand.vmem [shape: f32[40,1], index: 12, kind: input, shape index: {}]   ;;  %s16825_s13 = inlined_call_operand.hbm [shape: bf16[64,128], index: 13, kind: input, shape index: {}]   ;;  %s16826_s14 = inlined_call_operand.hbm [shape: f32[1,128], index: 14, kind: input, shape index: {}]   ;;  %s16827_s15 = inlined_call_operand.hbm [shape: bf16[128,128], index: 15, kind: input, shape index: {}]   ;;  %s16828_s16 = inlined_call_operand.hbm [shape: f32[1,128], index: 16, kind: input, shape index: {}]   ;;  %s16829_s17 = inlined_call_operand.hbm [shape: f32[1,128], index: 17, kind: input, shape index: {}]   ;;  %s16830_s18 = inlined_call_operand.vmem [shape: f32[8,1], index: 18, kind: input, shape index: {}]   ;;  %s16831_s19 = inlined_call_operand.hbm [shape: bf16[480,1024], index: 19, kind: input, shape index: {}]   ;;  %s16832_s20 = inlined_call_operand.hbm [shape: f32[1,1024], index: 20, kind: input, shape index: {}]   ;;  %s16833_s21 = inlined_call_operand.hbm [shape: bf16[1024,1024], index: 21, kind: input, shape index: {}]   ;;  %s16834_s22 = inlined_call_operand.hbm [shape: f32[1,1024], index: 22, kind: input, shape index: {}]   ;;  %s16835_s23 = inlined_call_operand.hbm [shape: bf16[1024,128], index: 23, kind: input, shape index: {}]   ;;  %s16836_s24 = inlined_call_operand.hbm [shape: f32[1,128], index: 24, kind: input, shape index: {}]   ;;  %s16837_s25 = inlined_call_operand.vmem [shape: f32[2,1,16], index: 25, kind: output, shape index: {}]  }
   0x1   :  { %16855 = sst [smem:[#allocation72_spill]] %s16812_s0 }
   0x2   :  { %16856 = sst [smem:[#allocation73_spill]] %s16813_s1 }
   0x3   :  { %16857 = sst [smem:[#allocation74_spill]] %s16814_s2 }
   0x4   :  { %16858 = sst [smem:[#allocation75_spill]] %s16815_s3 }
   0x5   :  { %16859 = sst [smem:[#allocation76_spill]] %s16816_s4 }
   0x6   :  { %16860 = sst [smem:[#allocation77_spill]] %s16817_s5 }
   0x7   :  { %16861 = sst [smem:[#allocation78_spill]] %s16818_s6 }
   0x8   :  { %16862 = sst [smem:[#allocation79_spill]] %s16819_s7 }
   0x9   :  { %16863 = sst [smem:[#allocation80_spill]] %s16820_s8 }
   0xa   :  { %16864 = sst [smem:[#allocation81_spill]] %s16821_s9 }
   0xb   :  { %16865 = sst [smem:[#allocation82_spill]] %s16830_s18 }
   0xc   :  { %16866 = sst [smem:[#allocation83_spill]] %s16831_s19 }
   0xd   :  { %16867 = sst [smem:[#allocation84_spill]] %s16833_s21 }
   0xe   :  { %16868 = sst [smem:[#allocation85_spill]] %s16835_s23 }
   0xf   :  { %30 = vsyncpa [#allocation10], 0 }
  0x10   :  { %31 = vsyncpa [#allocation12], 0 }
  0x11   :  { %32 = vsyncpa [#allocation15], 0 }
  0x12   :  { %33 = vsyncpa [#allocation18], 0 }
  0x13   :  { %34 = vsyncpa [#allocation21], 0 }
  0x14   :  { %35 = vsyncpa [#allocation24], 0 }
  0x15   :  { %36 = vsyncpa [#allocation27], 0 }
  0x16   :  { %37 = vsyncpa [#allocation30], 0 }
  0x17   :  { %38 = vsyncpa [#allocation33], 0 }
  0x18   :  { %39 = vsyncpa [#allocation36], 0  ;;  %s15243_s29 = smov 0  }
  0x19 LB: > { %16869 = sst [smem:[#allocation58_spill]] %s15085_s29  ;;  %s15252_s3 = sadd.s32 4294967295, %s15085_s29   ;;  %s15085_s29 = sphi %s15243_s29, %s45_s29  }
  0x1a   : > { %s16870_s30 = sld [smem:[#allocation74_spill]]  ;;  %p9752_p0 = scmp.ge.s32.totalorder %s15085_s29, 1 }
  0x1b   : > { %p543_p1 = scmp.lt.s32.totalorder %s15085_s29, 3  ;;  %p14145_p2 = scmp.eq.s32.totalorder %s15252_s3, 0 }
  0x1c   : > { %s15087_s1 = smov [#allocation11]   ;;  %s16872_s28 = sld [smem:[#allocation76_spill]] }
  0x1d   : > { %p15257_p3 = pnand %p9752_p0, %p543_p1  ;;  %s569_s8 = sshll.u32 %s15087_s1, 4  ;;  %s570_s8 = int_to_ptr.vmem [resolvable:$true] %s569_s8 }
  0x1e   : > { %s15088_s0 = smov [#allocation14]   ;;  %s16874_s1 = sld [smem:[#allocation79_spill]] }
  0x1f   : > { %p14090_p4 = pneg %p15257_p3  ;;  %s595_s2 = sshll.u32 %s15088_s0, 4  ;;  %s596_s2 = int_to_ptr.vmem [resolvable:$true] %s595_s2 }
  0x20   : > { %s567_s7 = sshll.u32 %s16870_s30, 4  ;;  %s15089_s27 = smov [#allocation17]   ;;  %s568_s7 = int_to_ptr.hbm [resolvable:$true] %s567_s7 }
  0x21   : > { %p15268_p5 = pnand %p14145_p2, %p14090_p4  ;;  %s621_s4 = sshll.u32 %s15089_s27, 4  ;;  %s622_s4 = int_to_ptr.vmem [resolvable:$true] %s621_s4 }
  0x22   : > { %s593_s9 = sshll.u32 %s16872_s28, 4  ;;  %s16875_s21 = sld [smem:[#allocation81_spill]]  ;;  %s594_s9 = int_to_ptr.hbm [resolvable:$true] %s593_s9 }
  0x23   : > { %14096 = dma.hbm_to_vmem [thread:$0]  (!%p15268_p5), %s568_s7, 16, %s570_s8, [#allocation12]  }
  0x24   : > { %s619_s29 = sshll.u32 %s16874_s1, 4  ;;  %s16840_s0 = smov 64   ;;  %s620_s29 = int_to_ptr.hbm [resolvable:$true] %s619_s29 }
  0x25   : > { %14102 = dma.hbm_to_vmem [thread:$0]  (!%p15268_p5), %s594_s9, 16, %s596_s2, [#allocation15]  }
  0x26   : > { %s15091_s18 = smov 4   ;;  %s672_s9 = sshll.u32 %s16823_s11, 4  ;;  %s673_s9 = int_to_ptr.hbm [resolvable:$true] %s672_s9 }
  0x27   : > { %14108 = dma.hbm_to_vmem [thread:$0]  (!%p15268_p5), %s620_s29, 256, %s622_s4, [#allocation18], %s16840_s0, %s16840_s0, %s15091_s18  }
  0x28   : > { %s645_s19 = sshll.u32 %s16875_s21, 4  ;;  %s15092_s2 = smov [#allocation20]   ;;  %s646_s19 = int_to_ptr.hbm [resolvable:$true] %s645_s19 }
  0x29   : > { %s647_s6 = sshll.u32 %s15092_s2, 4  ;;  %s15093_s21 = smov [#allocation23]   ;;  %s648_s6 = int_to_ptr.vmem [resolvable:$true] %s647_s6 }
  0x2a   : > { %14114 = dma.hbm_to_vmem [thread:$0]  (!%p15268_p5), %s646_s19, 512, %s648_s6, [#allocation21], %s16840_s0, %s16840_s0, %s15091_s18  }
  0x2b   : > { %s674_s23 = sshll.u32 %s15093_s21, 4  ;;  %s701_s29 = sshll.u32 %s16826_s14, 4  ;;  %s675_s23 = int_to_ptr.vmem [resolvable:$true] %s674_s23  ;;  %s702_s29 = int_to_ptr.hbm [resolvable:$true] %s701_s29 }
  0x2c   : > { %14120 = dma.hbm_to_vmem [thread:$0]  (!%p15268_p5), %s673_s9, 16, %s675_s23, [#allocation24]  }
  0x2d   : > { %s727_s28 = sshll.u32 %s16828_s16, 4  ;;  %s15094_s7 = smov [#allocation26]   ;;  %s728_s28 = int_to_ptr.hbm [resolvable:$true] %s727_s28 }
  0x2e   : > { %s703_s8 = sshll.u32 %s15094_s7, 4  ;;  %s15095_s19 = smov [#allocation29]   ;;  %s704_s8 = int_to_ptr.vmem [resolvable:$true] %s703_s8 }
  0x2f   : > { %14126 = dma.hbm_to_vmem [thread:$0]  (!%p15268_p5), %s702_s29, 16, %s704_s8, [#allocation27]  }
  0x30   : > { %s729_s2 = sshll.u32 %s15095_s19, 4  ;;  %s754_s30 = sshll.u32 %s16832_s20, 4  ;;  %s730_s2 = int_to_ptr.vmem [resolvable:$true] %s729_s2  ;;  %s755_s30 = int_to_ptr.hbm [resolvable:$true] %s754_s30 }
  0x31   : > { %14132 = dma.hbm_to_vmem [thread:$0]  (!%p15268_p5), %s728_s28, 16, %s730_s2, [#allocation30]  }
  0x32   : > { %s16876_s1 = sld [smem:[#allocation73_spill]]  ;;  %s15096_s4 = smov [#allocation32]  }
  0x33   : > { %s756_s7 = sshll.u32 %s15096_s4, 4  ;;  %s15097_s29 = smov [#allocation9]   ;;  %s757_s7 = int_to_ptr.vmem [resolvable:$true] %s756_s7 }
  0x34   : > { %14138 = dma.hbm_to_vmem [thread:$0]  (!%p15268_p5), %s755_s30, 128, %s757_s7, [#allocation33]  }
  0x35   : > { %s557_s8 = sshll.u32 %s15097_s29, 4  ;;  %s16877_s21 = sld [smem:[#allocation75_spill]]  ;;  %s558_s8 = int_to_ptr.vmem [resolvable:$true] %s557_s8 }
  0x36   : > { %s16878_s9 = sld [smem:[#allocation77_spill]]  ;;  %s16879_s30 = smov 64  }
  0x37   : > { %s15099_s7 = smov [#allocation16]   ;;  %s660_s2 = sshll.u32 %s16822_s10, 4  ;;  %s661_s2 = int_to_ptr.hbm [resolvable:$true] %s660_s2 }
  0x38   : > { %s555_s27 = sshll.u32 %s16876_s1, 4  ;;  %s15098_s1 = smov [#allocation13]   ;;  %s556_s27 = int_to_ptr.hbm [resolvable:$true] %s555_s27 }
  0x39   : > { %14093 = dma.hbm_to_vmem [thread:$0]  (!%p15268_p5), %s556_s27, 64, %s558_s8, [#allocation10]  }
  0x3a   : > { %s580_s4 = sshll.u32 %s15098_s1, 4  ;;  %s607_s29 = sshll.u32 %s15099_s7, 4  ;;  %s581_s4 = int_to_ptr.vmem [resolvable:$true] %s580_s4  ;;  %s608_s29 = int_to_ptr.vmem [resolvable:$true] %s607_s29 }
  0x3b   : > { %s578_s0 = sshll.u32 %s16877_s21, 4  ;;  %s16880_s21 = sld [smem:[#allocation80_spill]]  ;;  %s579_s0 = int_to_ptr.hbm [resolvable:$true] %s578_s0 }
  0x3c   : > { %s605_s23 = sshll.u32 %s16878_s9, 4  ;;  %s15100_s9 = smov [#allocation19]   ;;  %s606_s23 = int_to_ptr.hbm [resolvable:$true] %s605_s23 }
  0x3d   : > { %14099 = dma.hbm_to_vmem [thread:$0]  (!%p15268_p5), %s579_s0, 256, %s581_s4, [#allocation12], %s16879_s30, %s16879_s30, %s15091_s18  }
  0x3e   : > { %14105 = dma.hbm_to_vmem [thread:$0]  (!%p15268_p5), %s606_s23, 16, %s608_s29, [#allocation15]  }
  0x3f   : > { %s636_s1 = sshll.u32 %s15100_s9, 4  ;;  %s15101_s0 = smov [#allocation22]   ;;  %s637_s1 = int_to_ptr.vmem [resolvable:$true] %s636_s1 }
  0x40   : > { %s662_s4 = sshll.u32 %s15101_s0, 4  ;;  %s686_s6 = sshll.u32 %s16825_s13, 4  ;;  %s663_s4 = int_to_ptr.vmem [resolvable:$true] %s662_s4  ;;  %s687_s6 = int_to_ptr.hbm [resolvable:$true] %s686_s6 }
  0x41   : > { %s634_s27 = sshll.u32 %s16880_s21, 4  ;;  %s712_s21 = sshll.u32 %s16827_s15, 4  ;;  %s635_s27 = int_to_ptr.hbm [resolvable:$true] %s634_s27  ;;  %s713_s21 = int_to_ptr.hbm [resolvable:$true] %s712_s21 }
  0x42   : > { %14111 = dma.hbm_to_vmem [thread:$0]  (!%p15268_p5), %s635_s27, 16, %s637_s1, [#allocation18]  }
  0x43   : > { %14117 = dma.hbm_to_vmem [thread:$0]  (!%p15268_p5), %s661_s2, 16, %s663_s4, [#allocation21]  }
  0x44   : > { %s15102_s8 = smov [#allocation25]   ;;  %s15103_s27 = smov [#allocation28]  }
  0x45   : > { %s688_s28 = sshll.u32 %s15102_s8, 4  ;;  %s714_s9 = sshll.u32 %s15103_s27, 4  ;;  %s689_s28 = int_to_ptr.vmem [resolvable:$true] %s688_s28  ;;  %s715_s9 = int_to_ptr.vmem [resolvable:$true] %s714_s9 }
  0x46   : > { %14123 = dma.hbm_to_vmem [thread:$0]  (!%p15268_p5), %s687_s6, 512, %s689_s28, [#allocation24], %s16879_s30, %s16879_s30, %s15091_s18  }
  0x47   : > { %s739_s2 = sshll.u32 %s16829_s17, 4  ;;  %s766_s19 = sshll.u32 %s16834_s22, 4  ;;  %s740_s2 = int_to_ptr.hbm [resolvable:$true] %s739_s2  ;;  %s767_s19 = int_to_ptr.hbm [resolvable:$true] %s766_s19 }
  0x48   : > { %14129 = dma.hbm_to_vmem [thread:$0]  (!%p15268_p5), %s713_s21, 1024, %s715_s9, [#allocation27], %s16879_s30, %s16879_s30, %s15091_s18  }
  0x49   : > { %s15104_s6 = smov [#allocation31]   ;;  %s15105_s29 = smov [#allocation34]  }
  0x4a   : > { %s741_s23 = sshll.u32 %s15104_s6, 4  ;;  %s768_s8 = sshll.u32 %s15105_s29, 4  ;;  %s742_s23 = int_to_ptr.vmem [resolvable:$true] %s741_s23  ;;  %s769_s8 = int_to_ptr.vmem [resolvable:$true] %s768_s8 }
  0x4b   : > { %14135 = dma.hbm_to_vmem [thread:$0]  (!%p15268_p5), %s740_s2, 16, %s742_s23, [#allocation30]  }
  0x4c   : > { %s778_s1 = sshll.u32 %s16836_s24, 4  ;;  %s15106_s18 = smov [#allocation35]   ;;  %s779_s1 = int_to_ptr.hbm [resolvable:$true] %s778_s1 }
  0x4d   : > { %14141 = dma.hbm_to_vmem [thread:$0]  (!%p15268_p5), %s767_s19, 128, %s769_s8, [#allocation33]  }
  0x4e   : > { %s780_s30 = sshll.u32 %s15106_s18, 4  ;;  %801 = sbr.rel (%p15257_p3) target bundleno = 2642 (0xa52), region = 108  ;;  %s781_s30 = int_to_ptr.vmem [resolvable:$true] %s780_s30 }
  0x4f   : > { %14144 = dma.hbm_to_vmem [thread:$0]  (!%p15268_p5), %s779_s1, 16, %s781_s30, [#allocation36]  }
  0x53   : > { %15038 = dma.done.wait (%p14145_p2), [#allocation10], 64  }
  0x54   : > { %15040 = vsyncadd (%p14145_p2), [#allocation10], 4294967232 }
  0x55   : > { %15042 = dma.done.wait (%p14145_p2), [#allocation12], 272  }
  0x56   : > { %15044 = vsyncadd (%p14145_p2), [#allocation12], 4294967024 }
  0x57   : > { %15046 = dma.done.wait (%p14145_p2), [#allocation15], 32  }
  0x58   : > { %15048 = vsyncadd (%p14145_p2), [#allocation15], 4294967264 }
  0x59   : > { %15050 = dma.done.wait (%p14145_p2), [#allocation18], 272  }
  0x5a   : > { %15052 = vsyncadd (%p14145_p2), [#allocation18], 4294967024 }
  0x5b   : > { %15054 = dma.done.wait (%p14145_p2), [#allocation21], 528  }
  0x5c   : > { %15056 = vsyncadd (%p14145_p2), [#allocation21], 4294966768 }
  0x5d   : > { %15058 = dma.done.wait (%p14145_p2), [#allocation24], 528  }
  0x5e   : > { %15060 = vsyncadd (%p14145_p2), [#allocation24], 4294966768 }
  0x5f   : > { %15062 = dma.done.wait (%p14145_p2), [#allocation27], 1040  }
  0x60   : > { %15064 = vsyncadd (%p14145_p2), [#allocation27], 4294966256 }
  0x61   : > { %15066 = dma.done.wait (%p14145_p2), [#allocation30], 32  }
  0x62   : > { %15068 = vsyncadd (%p14145_p2), [#allocation30], 4294967264 }
  0x63   : > { %15070 = dma.done.wait (%p14145_p2), [#allocation33], 256  }
  0x64   : > { %15072 = vsyncadd (%p14145_p2), [#allocation33], 4294967040 }
  0x65   : > { %15074 = dma.done.wait (%p14145_p2), [#allocation36], 16  }
  0x66   : > { %15076 = vsyncadd (%p14145_p2), [#allocation36], 4294967280  ;;  %p947_p6 = scmp.lt.s32.totalorder %s15252_s3, 1  ;;  %v15107_v0 = vmov 2   ;;  %v15108_v1 = vmov 1   ;;  %v15109_v2 = vmov 0  }
  0x67   : > { %14217 = vset.pattern.permute.xlu2 %v15107_v0  ;;  %14216 = vset.pattern.permute.xlu1 %v15108_v1  ;;  %s16881_s4 = sld [smem:[#allocation72_spill]]  ;;  %v13178_v18 = vld [vmem:[#allocation13 + $0x8] sm:$0xff]  ;;  %v13177_v19 = vld [vmem:[#allocation13] sm:$0xff]  ;;  %v1022_v22 = vld [vmem:[#allocation9] sm:$0x7]  ;;  %vm1563_vm0 = vcmask 261120  }
  0x68   : > { %14215 = vset.pattern.permute.xlu0 %v15109_v2  ;;  %s16915_s3 = smov (!%p947_p6, %s15252_s3), 1  ;;  %1609 = vmatpush.bf16.msra.mxu0 %v13178_v18  ;;  %v15476_v24 = vperm.slane %v1022_v22, 1  ;;  %v15478_v25 = vperm.slane %v1022_v22, 0  ;;  %v15480_v28 = vperm.slane %v1022_v22, 2  ;;  %v15489_v39 = vld [vmem:[#allocation11] ss:$0 sm:$0xff] }
  0x69   : > { %s14017_s26 = smul.u32 200, %s16915_s3  ;;  %s954_s9 = scalar_lea.vmem %s16837_s25, %s16915_s3  ;;  %vm2503_vm1 = vcmask 523264   ;;  %vm1905_vm2 = vcmask 7168  }
  0x6a   : > { %s16895_s23 = sld [smem:[#allocation78_spill]]  ;;  %s15110_s8 = smov [#allocation5]  }
  0x6b   : > { %s16909_s6 = sld [smem:[#allocation83_spill]]  ;;  %s965_s28 = sshll.u32 %s15110_s8, 4  ;;  %s966_s28 = int_to_ptr.vmem [resolvable:$true] %s965_s28 }
  0x6c   : > { %1610 = vmatpush.bf16.msra.mxu0 %v13177_v19  ;;  %s16910_s18 = sld [smem:[#allocation84_spill]] }
  0x6d   : > { %s15428_s7 = scalar_lea.vmem %s16881_s4, %s14017_s26  ;;  %s16896_s4 = sld [smem:[#allocation82_spill]] }
  0x6e   : > { %v997_v3 = vld [vmem:[%s15428_s7] sm:$0xff]  ;;  %v998_v4 = vld [vmem:[%s15428_s7 + $0x8] sm:$0xff]  ;;  %v999_v5 = vld [vmem:[%s15428_s7 + $0x10] sm:$0xff]  ;;  %s15111_s26 = smov [#allocation6]   ;;  %s16912_s2 = sld [smem:[#allocation85_spill]] }
  0x6f   : > { %1326 = vperm.xlu2 %14217, %v997_v3   ;;  %1175 = vperm.xlu1 %14216, %v997_v3   ;;  %v1000_v6 = vld [vmem:[%s15428_s7 + $0x18] sm:$0xff]  ;;  %v1001_v7 = vld [vmem:[%s15428_s7 + $0x20] sm:$0xff]  ;;  %v1002_v8 = vld [vmem:[%s15428_s7 + $0x28] sm:$0xff]  ;;  %s979_s5 = sshll.u32 %s15111_s26, 4  ;;  %s980_s5 = int_to_ptr.vmem [resolvable:$true] %s979_s5 }
  0x70   : > { %1025 = vperm.xlu0 %14215, %v997_v3   ;;  %v1003_v9 = vld [vmem:[%s15428_s7 + $0x30] sm:$0xff]  ;;  %v1004_v10 = vld [vmem:[%s15428_s7 + $0x38] sm:$0xff]  ;;  %v1006_v11 = vld [vmem:[%s15428_s7 + $0x48] sm:$0xff] }
  0x71   : > { %v1007_v12 = vld [vmem:[%s15428_s7 + $0x50] sm:$0xff]  ;;  %v1005_v13 = vld [vmem:[%s15428_s7 + $0x40] sm:$0xff]  ;;  %v1008_v14 = vld [vmem:[%s15428_s7 + $0x58] sm:$0xff]  ;;  %s963_s29 = sshll.u32 %s16909_s6, 4  ;;  %s964_s29 = int_to_ptr.hbm [resolvable:$true] %s963_s29 }
  0x72   : > { %v1009_v15 = vld [vmem:[%s15428_s7 + $0x60] sm:$0xff]  ;;  %v1010_v17 = vld [vmem:[%s15428_s7 + $0x68] sm:$0xff]  ;;  %v15470_v21 = vld [vmem:[%s15428_s7 + $0x70] sm:$0xff]  ;;  %s977_s30 = sshll.u32 %s16910_s18, 4  ;;  %s978_s30 = int_to_ptr.hbm [resolvable:$true] %s977_s30 }
  0x73   : > { %v15497_v45 = vld [vmem:[%s15428_s7 + $0x88] sm:$0xff]  ;;  %v1012_v49 = vld [vmem:[%s15428_s7 + $0x78] sm:$0xff]  ;;  %v15508_v55 = vld [vmem:[%s15428_s7 + $0x90] sm:$0xff]  ;;  %968 = dma.hbm_to_vmem [thread:$0]  %s964_s29, 30720, %s966_s28, [#allocation8] }
  0x74   : > { %982 = dma.hbm_to_vmem [thread:$0]  %s978_s30, 65536, %s980_s5, [#allocation8 + $0x1] }
  0x77   : > { %1330 = vperm.xlu2 %14217, %v998_v4   ;;  %1179 = vperm.xlu1 %14216, %v998_v4  }
  0x78   : > { %1030 = vperm.xlu0 %14215, %v998_v4  }
  0x7f   : > { %14219 = vset.pattern.permute.xlu2 %v15108_v1  ;;  %14218 = vset.pattern.permute.xlu1 %v15109_v2 }
  0x80   : > { %1035 = vperm.xlu0 %14215, %v999_v5   ;;  %1183 = vperm.xlu2 %14219, %v999_v5  }
  0x81   : > { %1040 = vperm.xlu1 %14218, %v1000_v6  }
  0x88   : > { %14220 = vset.pattern.permute.xlu0 %v15108_v1  ;;  %14222 = vset.pattern.permute.xlu2 %v15107_v0 }
  0x89   : > { %14221 = vset.pattern.permute.xlu1 %v15107_v0  ;;  %1187 = vperm.xlu0 %14220, %v1000_v6  }
  0x8a   : > { %1338 = vperm.xlu2 %14222, %v1000_v6   ;;  %1334 = vperm.xlu1 %14221, %v999_v5  }
  0x91   : > { %1191 = vperm.xlu0 %14220, %v1001_v7  }
  0x92   : > { %14224 = vset.pattern.permute.xlu2 %v15109_v2  ;;  %14223 = vset.pattern.permute.xlu1 %v15109_v2 }
  0x93   : > { %1050 = vperm.xlu2 %14224, %v1002_v8   ;;  %1045 = vperm.xlu1 %14223, %v1001_v7  }
  0x99   : > { %14227 = vset.pattern.permute.xlu0 %v15107_v0 }
  0x9a   : > { %1346 = vperm.xlu0 %14227, %v1002_v8  }
  0x9b   : > { %14226 = vset.pattern.permute.xlu2 %v15107_v0  ;;  %14225 = vset.pattern.permute.xlu1 %v15108_v1 }
  0x9c   : > { %1342 = vperm.xlu2 %14226, %v1001_v7   ;;  %1195 = vperm.xlu1 %14225, %v1002_v8  }
  0xa2   : > { %1350 = vperm.xlu0 %14227, %v1003_v9  }
  0xa4   : > { %14229 = vset.pattern.permute.xlu2 %v15109_v2  ;;  %14228 = vset.pattern.permute.xlu1 %v15109_v2 }
  0xa5   : > { %1060 = vperm.xlu2 %14229, %v1004_v10   ;;  %1055 = vperm.xlu1 %14228, %v1003_v9  }
  0xaa   : > { %14234 = vset.pattern.permute.xlu0 %v15109_v2 }
  0xab   : > { %1070 = vperm.xlu0 %14234, %v1006_v11  }
  0xad   : > { %14231 = vset.pattern.permute.xlu2 %v15108_v1  ;;  %14230 = vset.pattern.permute.xlu1 %v15108_v1 }
  0xae   : > { %1203 = vperm.xlu2 %14231, %v1004_v10   ;;  %1199 = vperm.xlu1 %14230, %v1003_v9   ;;  %v15522_v9 = vld [vmem:[%s15428_s7 + $0x98] sm:$0xff] }
  0xb3   : > { %1075 = vperm.xlu0 %14234, %v1007_v12  }
  0xb6   : > { %14233 = vset.pattern.permute.xlu2 %v15109_v2  ;;  %14232 = vset.pattern.permute.xlu1 %v15107_v0 }
  0xb7   : > { %1065 = vperm.xlu2 %14233, %v1005_v13   ;;  %1354 = vperm.xlu1 %14232, %v1004_v10  }
  0xbb   : > { %14241 = vset.pattern.permute.xlu0 %v15108_v1 }
  0xbc   : > { %1219 = vperm.xlu0 %14241, %v1008_v14  }
  0xbf   : > { %14236 = vset.pattern.permute.xlu2 %v15108_v1  ;;  %14235 = vset.pattern.permute.xlu1 %v15108_v1 }
  0xc0   : > { %1211 = vperm.xlu2 %14236, %v1006_v11   ;;  %1207 = vperm.xlu1 %14235, %v1005_v13  }
  0xc4   : > { %1223 = vperm.xlu0 %14241, %v1009_v15  }
  0xc8   : > { %14238 = vset.pattern.permute.xlu2 %v15107_v0  ;;  %14237 = vset.pattern.permute.xlu1 %v15107_v0 }
  0xc9   : > { %1362 = vperm.xlu2 %14238, %v1006_v11   ;;  %1358 = vperm.xlu1 %14237, %v1005_v13   ;;  %v1327_v16 = vpop.permute.xlu2 %1326 }
  0xca   : > { %v1426_v31 = vmul.f32 %v15480_v28, %v1327_v16 }
  0xcc   : > { %14248 = vset.pattern.permute.xlu0 %v15107_v0 }
  0xcd   : > { %1378 = vperm.xlu0 %14248, %v1010_v17  }
  0xd1   : > { %14240 = vset.pattern.permute.xlu2 %v15108_v1  ;;  %14239 = vset.pattern.permute.xlu1 %v15109_v2  ;;  %v1331_v20 = vpop.permute.xlu2 %1330 }
  0xd2   : > { %1215 = vperm.xlu2 %14240, %v1007_v12   ;;  %1080 = vperm.xlu1 %14239, %v1008_v14   ;;  %v1427_v40 = vmul.f32 %v15480_v28, %v1331_v20 }
  0xd5   : > { %1382 = vperm.xlu0 %14248, %v15470_v21  }
  0xda   : > { %14243 = vset.pattern.permute.xlu2 %v15107_v0  ;;  %14242 = vset.pattern.permute.xlu1 %v15107_v0  ;;  %v1184_v23 = vpop.permute.xlu2 %1183 }
  0xdb   : > { %1370 = vperm.xlu2 %14243, %v1008_v14   ;;  %1366 = vperm.xlu1 %14242, %v1007_v12   ;;  %v1277_v53 = vmul.f32 %v15476_v24, %v1184_v23  ;;  %v1013_v14 = vld [vmem:[%s15428_s7 + $0x80] sm:$0xff] }
  0xdd   : > { %14255 = vset.pattern.permute.xlu0 %v15109_v2 }
  0xde   : > { %1110 = vperm.xlu0 %14255, %v15497_v45  }
  0xe1   : > { %v1176_v26 = vpop.permute.xlu1 %1175 }
  0xe2   : > { %v1026_v27 = vpop.permute.xlu0 %1025  ;;  %v1275_v29 = vmul.f32 %v15476_v24, %v1176_v26 }
  0xe3   : > { %v1149_v30 = vmul.f32 %v15478_v25, %v1026_v27  ;;  %14245 = vset.pattern.permute.xlu2 %v15109_v2  ;;  %14244 = vset.pattern.permute.xlu1 %v15109_v2 }
  0xe4   : > { %1090 = vperm.xlu2 %14245, %v1010_v17   ;;  %1085 = vperm.xlu1 %14244, %v1009_v15   ;;  %v1339_v33 = vpop.permute.xlu2 %1338 }
  0xe5   : > { %v1300_v32 = vadd.f32 %v1275_v29, %v1149_v30  ;;  %v1429_v59 = vmul.f32 %v15480_v28, %v1339_v33 }
  0xe6   : > { %1115 = vperm.xlu0 %14255, %v15508_v55  }
  0xe7   : > { %v1451_v37 = vadd.f32 %v1426_v31, %v1300_v32 }
  0xe9   : > { %v1180_v34 = vpop.permute.xlu1 %1179  ;;  %v1480_v43 = vadd.f32 %v15489_v39, %v1451_v37 }
  0xea   : > { %v1276_v35 = vmul.f32 %v15476_v24, %v1180_v34  ;;  %v1031_v36 = vpop.permute.xlu0 %1030  ;;  %v15541_v34 = vld [vmem:[%s15428_s7 + $0xa0] sm:$0xff] }
  0xeb   : > { %v1150_v38 = vmul.f32 %v15478_v25, %v1031_v36  ;;  %v1505_v50 = vmax.f32 %v1480_v43, 0.0 }
  0xec   : > { %14247 = vset.pattern.permute.xlu2 %v15107_v0  ;;  %14246 = vset.pattern.permute.xlu1 %v15108_v1 }
  0xed   : > { %v1301_v41 = vadd.f32 %v1276_v35, %v1150_v38  ;;  %1374 = vperm.xlu2 %14247, %v1009_v15   ;;  %1227 = vperm.xlu1 %14246, %v1010_v17   ;;  %v1051_v47 = vpop.permute.xlu2 %1050 }
  0xee   : > { %14262 = vset.pattern.permute.xlu0 %v15108_v1  ;;  %v1154_v23 = vmul.f32 %v15478_v25, %v1051_v47 }
  0xef   : > { %v1452_v42 = vadd.f32 %v1427_v40, %v1301_v41  ;;  %1251 = vperm.xlu0 %14262, %v15522_v9   ;;  %v1018_v41 = vld [vmem:[%s15428_s7 + $0xa8] sm:$0xff] }
  0xf1   : > { %v1481_v44 = vadd.f32 %v15489_v39, %v1452_v42 }
  0xf2   : > { %v1036_v46 = vpop.permute.xlu0 %1035 }
  0xf3   : > { %v1041_v48 = vpop.permute.xlu1 %1040  ;;  %v1506_v51 = vmax.f32 %v1481_v44, 0.0  ;;  %v1151_v54 = vmul.f32 %v15478_v25, %v1036_v46 }
  0xf4   : > { %v1152_v58 = vmul.f32 %v15478_v25, %v1041_v48 }
  0xf5   : > { %14250 = vset.pattern.permute.xlu2 %v15109_v2  ;;  %14249 = vset.pattern.permute.xlu1 %v15109_v2  ;;  %v1530_v52 = vpack.c.bf16 %v1506_v51, %v1505_v50  ;;  %v1302_v56 = vadd.f32 %v1277_v53, %v1151_v54  ;;  %v15560_v51 = vld [vmem:[%s15428_s7 + $0xb0] sm:$0xff] }
  0xf6   : > { %1100 = vperm.xlu2 %14250, %v1012_v49   ;;  %1095 = vperm.xlu1 %14249, %v15470_v21   ;;  %v1343_v62 = vpop.permute.xlu2 %1342 }
  0xf7   : > { %9800 = vmatmul.msk.bf16.vlgmr.msra.gmra.mxu0 %vm1563_vm0, %v1530_v52  ;;  %v1430_v19 = vmul.f32 %v15480_v28, %v1343_v62  ;;  %1255 = vperm.xlu0 %14262, %v15541_v34  }
  0xfb   : > { %v1188_v57 = vpop.permute.xlu0 %1187 }
  0xfc   : > { %v1278_v60 = vmul.f32 %v15476_v24, %v1188_v57  ;;  %v1335_v61 = vpop.permute.xlu1 %1334 }
  0xfd   : > { %v1428_v63 = vmul.f32 %v15480_v28, %v1335_v61 }
  0xfe   : > { %v1303_v3 = vadd.f32 %v1278_v60, %v1152_v58  ;;  %14252 = vset.pattern.permute.xlu2 %v15108_v1  ;;  %14251 = vset.pattern.permute.xlu1 %v15108_v1 }
  0xff   : > { %v1453_v4 = vadd.f32 %v1428_v63, %v1302_v56  ;;  %1235 = vperm.xlu2 %14252, %v1012_v49   ;;  %1231 = vperm.xlu1 %14251, %v15470_v21   ;;  %v1061_v12 = vpop.permute.xlu2 %1060 }
 0x100   : > { %v1454_v5 = vadd.f32 %v1429_v59, %v1303_v3  ;;  %14269 = vset.pattern.permute.xlu0 %v15107_v0 }
 0x101   : > { %v1482_v6 = vadd.f32 %v15489_v39, %v1453_v4  ;;  %1410 = vperm.xlu0 %14269, %v1018_v41  }
 0x102   : > { %v1483_v7 = vadd.f32 %v15489_v39, %v1454_v5 }
 0x103   : > { %v1507_v8 = vmax.f32 %v1482_v6, 0.0  ;;  %v1192_v10 = vpop.permute.xlu0 %1191 }
 0x104   : > { %v1508_v11 = vmax.f32 %v1483_v7, 0.0  ;;  %v1279_v17 = vmul.f32 %v15476_v24, %v1192_v10 }
 0x105   : > { %v1046_v13 = vpop.permute.xlu1 %1045 }
 0x106   : > { %v1531_v15 = vpack.c.bf16 %v1508_v11, %v1507_v8  ;;  %v1153_v16 = vmul.f32 %v15478_v25, %v1046_v13 }
 0x107   : > { %14254 = vset.pattern.permute.xlu2 %v15109_v2  ;;  %14253 = vset.pattern.permute.xlu1 %v15107_v0 }
 0x108   : > { %1105 = vperm.xlu2 %14254, %v1013_v14   ;;  %1386 = vperm.xlu1 %14253, %v1012_v49   ;;  %v1304_v18 = vadd.f32 %v1279_v17, %v1153_v16  ;;  %v1204_v22 = vpop.permute.xlu2 %1203  ;;  %v1156_v49 = vmul.f32 %v15478_v25, %v1061_v12  ;;  %v15580_v12 = vld [vmem:[%s15428_s7 + $0xc0] sm:$0xff] }
 0x109   : > { %9801 = vmatmul.msk.bf16.gmra.mxu0 %vm1563_vm0, %v1531_v15  ;;  %v1282_v50 = vmul.f32 %v15476_v24, %v1204_v22  ;;  %1414 = vperm.xlu0 %14269, %v15560_v51  }
 0x10a   : > { %v1455_v26 = vadd.f32 %v1430_v19, %v1304_v18 }
 0x10b   : > { %v1307_v54 = vadd.f32 %v1282_v50, %v1156_v49 }
 0x10c   : > { %v1347_v20 = vpop.permute.xlu0 %1346  ;;  %v1484_v31 = vadd.f32 %v15489_v39, %v1455_v26 }
 0x10d   : > { %v1431_v29 = vmul.f32 %v15480_v28, %v1347_v20 }
 0x10e   : > { %v1196_v21 = vpop.permute.xlu1 %1195  ;;  %v1509_v35 = vmax.f32 %v1484_v31, 0.0 }
 0x10f   : > { %v1280_v27 = vmul.f32 %v15476_v24, %v1196_v21 }
 0x110   : > { %14257 = vset.pattern.permute.xlu2 %v15108_v1  ;;  %14256 = vset.pattern.permute.xlu1 %v15108_v1 }
 0x111   : > { %v1305_v30 = vadd.f32 %v1280_v27, %v1154_v23  ;;  %1243 = vperm.xlu2 %14257, %v15497_v45   ;;  %1239 = vperm.xlu1 %14256, %v1013_v14   ;;  %v1066_v38 = vpop.permute.xlu2 %1065 }
 0x112   : > { %14276 = vset.pattern.permute.xlu0 %v15108_v1  ;;  %v1157_v13 = vmul.f32 %v15478_v25, %v1066_v38 }
 0x113   : > { %v1456_v32 = vadd.f32 %v1431_v29, %v1305_v30  ;;  %1271 = vperm.xlu0 %14276, %v15580_v12   ;;  %v1020_v30 = vld [vmem:[%s15428_s7 + $0xb8] sm:$0xff]  ;;  %s15112_s7 = smov [#allocation7]  }
 0x114   : > { %v1351_v44 = vpop.permute.xlu0 %1350  ;;  %s993_s19 = sshll.u32 %s15112_s7, 4  ;;  %s994_s19 = int_to_ptr.vmem [resolvable:$true] %s993_s19 }
 0x115   : > { %v1485_v33 = vadd.f32 %v15489_v39, %v1456_v32  ;;  %v1432_v48 = vmul.f32 %v15480_v28, %v1351_v44 }
 0x117   : > { %v1510_v36 = vmax.f32 %v1485_v33, 0.0  ;;  %v1056_v37 = vpop.permute.xlu1 %1055 }
 0x118   : > { %v1155_v46 = vmul.f32 %v15478_v25, %v1056_v37 }
 0x119   : > { %14259 = vset.pattern.permute.xlu2 %v15107_v0  ;;  %14258 = vset.pattern.permute.xlu1 %v15107_v0  ;;  %v1532_v40 = vpack.c.bf16 %v1510_v36, %v1509_v35 }
 0x11a   : > { %1394 = vperm.xlu2 %14259, %v15497_v45   ;;  %1390 = vperm.xlu1 %14258, %v1013_v14   ;;  %v1212_v47 = vpop.permute.xlu2 %1211 }
 0x11b   : > { %9802 = vmatmul.msk.bf16.gmra.mxu0 %vm1563_vm0, %v1532_v40  ;;  %v1284_v3 = vmul.f32 %v15476_v24, %v1212_v47  ;;  %14277 = vset.pattern.permute.xlu0 %v15109_v2 }
 0x11d   : > { %v1071_v60 = vpop.permute.xlu0 %1070 }
 0x11e   : > { %v1158_v4 = vmul.f32 %v15478_v25, %v1071_v60 }
 0x120   : > { %v1200_v42 = vpop.permute.xlu1 %1199 }
 0x121   : > { %v1281_v43 = vmul.f32 %v15476_v24, %v1200_v42 }
 0x122   : > { %14261 = vset.pattern.permute.xlu2 %v15108_v1  ;;  %14260 = vset.pattern.permute.xlu1 %v15109_v2 }
 0x123   : > { %1247 = vperm.xlu2 %14261, %v15508_v55   ;;  %1120 = vperm.xlu1 %14260, %v15522_v9   ;;  %v1306_v45 = vadd.f32 %v1281_v43, %v1155_v46  ;;  %v1363_v59 = vpop.permute.xlu2 %1362 }
 0x124   : > { %v1435_v7 = vmul.f32 %v15480_v28, %v1363_v59 }
 0x125   : > { %v1457_v52 = vadd.f32 %v1432_v48, %v1306_v45 }
 0x127   : > { %v1486_v57 = vadd.f32 %v15489_v39, %v1457_v52 }
 0x129   : > { %v1355_v53 = vpop.permute.xlu1 %1354  ;;  %v1511_v62 = vmax.f32 %v1486_v57, 0.0 }
 0x12a   : > { %v1433_v56 = vmul.f32 %v15480_v28, %v1355_v53 }
 0x12b   : > { %14264 = vset.pattern.permute.xlu2 %v15107_v0  ;;  %14263 = vset.pattern.permute.xlu1 %v15107_v0 }
 0x12c   : > { %v1458_v58 = vadd.f32 %v1433_v56, %v1307_v54  ;;  %1402 = vperm.xlu2 %14264, %v15522_v9   ;;  %1398 = vperm.xlu1 %14263, %v15508_v55   ;;  %v1309_v55 = vadd.f32 %v1284_v3, %v1158_v4  ;;  %v1216_v8 = vpop.permute.xlu2 %1215  ;;  %v1076_v9 = vpop.permute.xlu0 %1075 }
 0x12d   : > { %v1159_v32 = vmul.f32 %v15478_v25, %v1076_v9  ;;  %v1285_v33 = vmul.f32 %v15476_v24, %v1216_v8 }
 0x12e   : > { %v1487_v61 = vadd.f32 %v15489_v39, %v1458_v58  ;;  %v1460_v11 = vadd.f32 %v1435_v7, %v1309_v55 }
 0x12f   : > { %v1310_v37 = vadd.f32 %v1285_v33, %v1159_v32 }
 0x130   : > { %v1512_v63 = vmax.f32 %v1487_v61, 0.0  ;;  %v1489_v16 = vadd.f32 %v15489_v39, %v1460_v11 }
 0x132   : > { %v1208_v5 = vpop.permute.xlu1 %1207  ;;  %v1533_v6 = vpack.c.bf16 %v1512_v63, %v1511_v62  ;;  %v1514_v19 = vmax.f32 %v1489_v16, 0.0 }
 0x133   : > { %v1283_v10 = vmul.f32 %v15476_v24, %v1208_v5 }
 0x134   : > { %14266 = vset.pattern.permute.xlu2 %v15109_v2  ;;  %14265 = vset.pattern.permute.xlu1 %v15109_v2  ;;  %v1220_v22 = vpop.permute.xlu0 %1219 }
 0x135   : > { %9803 = vmatmul.msk.bf16.gmra.mxu0 %vm1563_vm0, %v1533_v6  ;;  %1130 = vperm.xlu2 %14266, %v1018_v41   ;;  %v1308_v15 = vadd.f32 %v1283_v10, %v1157_v13  ;;  %v1371_v21 = vpop.permute.xlu2 %1370  ;;  %v1286_v27 = vmul.f32 %v15476_v24, %v1220_v22  ;;  %v15622_v10 = vld [vmem:[#allocation14] ss:$0 sm:$0xff]  ;;  %v15634_v22 = vld [vmem:[#allocation16] ss:$0 sm:$0xff] }
 0x136   : > { %1125 = vperm.xlu1 %14265, %v15541_v34   ;;  %v1437_v35 = vmul.f32 %v15480_v28, %v1371_v21 }
 0x13b   : > { %v1359_v14 = vpop.permute.xlu1 %1358 }
 0x13c   : > { %v1434_v17 = vmul.f32 %v15480_v28, %v1359_v14  ;;  %v1224_v48 = vpop.permute.xlu0 %1223 }
 0x13d   : > { %14268 = vset.pattern.permute.xlu2 %v15107_v0  ;;  %v1287_v53 = vmul.f32 %v15476_v24, %v1224_v48 }
 0x13e   : > { %v1459_v18 = vadd.f32 %v1434_v17, %v1308_v15  ;;  %14267 = vset.pattern.permute.xlu1 %v15108_v1  ;;  %1406 = vperm.xlu2 %14268, %v15541_v34   ;;  %v1091_v36 = vpop.permute.xlu2 %1090 }
 0x13f   : > { %1259 = vperm.xlu1 %14267, %v1018_v41   ;;  %v1162_v58 = vmul.f32 %v15478_v25, %v1091_v36 }
 0x140   : > { %v1488_v20 = vadd.f32 %v15489_v39, %v1459_v18 }
 0x142   : > { %v1513_v23 = vmax.f32 %v1488_v20, 0.0 }
 0x144   : > { %v1081_v26 = vpop.permute.xlu1 %1080  ;;  %v1534_v29 = vpack.c.bf16 %v1514_v19, %v1513_v23  ;;  %v1379_v56 = vpop.permute.xlu0 %1378 }
 0x145   : > { %v1160_v31 = vmul.f32 %v15478_v25, %v1081_v26  ;;  %v1439_v61 = vmul.f32 %v15480_v28, %v1379_v56 }
 0x146   : > { %14271 = vset.pattern.permute.xlu2 %v15109_v2  ;;  %9804 = vmatmul.msk.bf16.gmra.mxu0 %vm1563_vm0, %v1534_v29 }
 0x147   : > { %14270 = vset.pattern.permute.xlu1 %v15109_v2  ;;  %1140 = vperm.xlu2 %14271, %v1020_v30   ;;  %v1311_v34 = vadd.f32 %v1286_v27, %v1160_v31  ;;  %v1375_v46 = vpop.permute.xlu2 %1374 }
 0x148   : > { %1135 = vperm.xlu1 %14270, %v15560_v51   ;;  %v1438_v54 = vmul.f32 %v15480_v28, %v1375_v46 }
 0x149   : > { %v1462_v38 = vadd.f32 %v1437_v35, %v1311_v34 }
 0x14b   : > { %v1491_v42 = vadd.f32 %v15489_v39, %v1462_v38 }
 0x14d   : > { %v1367_v40 = vpop.permute.xlu1 %1366  ;;  %v1516_v47 = vmax.f32 %v1491_v42, 0.0 }
 0x14e   : > { %v1436_v41 = vmul.f32 %v15480_v28, %v1367_v40 }
 0x14f   : > { %14273 = vset.pattern.permute.xlu2 %v15108_v1 }
 0x150   : > { %v1461_v43 = vadd.f32 %v1436_v41, %v1310_v37  ;;  %14272 = vset.pattern.permute.xlu1 %v15108_v1  ;;  %1267 = vperm.xlu2 %14273, %v1020_v30   ;;  %v1101_v1 = vpop.permute.xlu2 %1100 }
 0x151   : > { %1263 = vperm.xlu1 %14272, %v15560_v51   ;;  %v1164_v18 = vmul.f32 %v15478_v25, %v1101_v1 }
 0x152   : > { %v1490_v44 = vadd.f32 %v15489_v39, %v1461_v43 }
 0x154   : > { %v1515_v45 = vmax.f32 %v1490_v44, 0.0 }
 0x156   : > { %v1086_v49 = vpop.permute.xlu1 %1085  ;;  %v1535_v50 = vpack.c.bf16 %v1516_v47, %v1515_v45 }
 0x157   : > { %v1161_v52 = vmul.f32 %v15478_v25, %v1086_v49 }
 0x158   : > { %14275 = vset.pattern.permute.xlu2 %v15109_v2  ;;  %9805 = vmatmul.msk.bf16.gmra.mxu0 %vm1563_vm0, %v1535_v50 }
 0x159   : > { %14274 = vset.pattern.permute.xlu1 %v15107_v0  ;;  %1145 = vperm.xlu2 %14275, %v15580_v12   ;;  %v1312_v51 = vadd.f32 %v1287_v53, %v1161_v52  ;;  %v1236_v3 = vpop.permute.xlu2 %1235 }
 0x15a   : > { %1418 = vperm.xlu1 %14274, %v1020_v30  }
 0x15b   : > { %v1463_v59 = vadd.f32 %v1438_v54, %v1312_v51 }
 0x15d   : > { %v1492_v0 = vadd.f32 %v15489_v39, %v1463_v59 }
 0x15f   : > { %v1228_v57 = vpop.permute.xlu1 %1227  ;;  %v1517_v5 = vmax.f32 %v1492_v0, 0.0 }
 0x160   : > { %v1288_v60 = vmul.f32 %v15476_v24, %v1228_v57 }
 0x162   : > { %v1313_v62 = vadd.f32 %v1288_v60, %v1162_v58  ;;  %1422 = vperm.xlu1 %14274, %v15580_v12   ;;  %v1106_v8 = vpop.permute.xlu2 %1105  ;;  %v1383_v12 = vpop.permute.xlu0 %1382 }
 0x163   : > { %v1440_v16 = vmul.f32 %v15480_v28, %v1383_v12  ;;  %v1165_v54 = vmul.f32 %v15478_v25, %v1106_v8 }
 0x164   : > { %v1464_v63 = vadd.f32 %v1439_v61, %v1313_v62 }
 0x166   : > { %v1493_v4 = vadd.f32 %v15489_v39, %v1464_v63 }
 0x168   : > { %v1518_v6 = vmax.f32 %v1493_v4, 0.0  ;;  %v1096_v55 = vpop.permute.xlu1 %1095 }
 0x169   : > { %v1163_v13 = vmul.f32 %v15478_v25, %v1096_v55 }
 0x16a   : > { %v1536_v7 = vpack.c.bf16 %v1518_v6, %v1517_v5  ;;  %14278 = vset.pattern.permute.xlu1 %v15109_v2  ;;  %v1290_v2 = vmul.f32 %v15476_v24, %v1236_v3  ;;  %v1111_v34 = vpop.permute.xlu0 %1110 }
 0x16b   : > { %v1244_v20 = vpop.permute.xlu2 %1243  ;;  %v1166_v37 = vmul.f32 %v15478_v25, %v1111_v34 }
 0x16c   : > { %9806 = vmatmul.msk.bf16.gmra.mxu0 %vm1563_vm0, %v1536_v7  ;;  %v1315_v26 = vadd.f32 %v1290_v2, %v1164_v18  ;;  %v1292_v41 = vmul.f32 %v15476_v24, %v1244_v20 }
 0x16e   : > { %v1317_v47 = vadd.f32 %v1292_v41, %v1166_v37 }
 0x171   : > { %v1232_v9 = vpop.permute.xlu1 %1231 }
 0x172   : > { %v1289_v11 = vmul.f32 %v15476_v24, %v1232_v9  ;;  %v1116_v52 = vpop.permute.xlu0 %1115 }
 0x174   : > { %v1612_v14 = vpop.f32.mrf.mxu0  ;;  %v1314_v15 = vadd.f32 %v1289_v11, %v1163_v13  ;;  %v1395_v43 = vpop.permute.xlu2 %1394 }
 0x175   : > { %v1613_v17 = vadd.f32 %v15622_v10, %v1612_v14  ;;  %v1443_v45 = vmul.f32 %v15480_v28, %v1395_v43 }
 0x176   : > { %v1465_v21 = vadd.f32 %v1440_v16, %v1314_v15 }
 0x177   : > { %v15630_v19 = vmax.f32 %v1613_v17, 0.0  ;;  %v1468_v51 = vadd.f32 %v1443_v45, %v1317_v47 }
 0x178   : > { %v1494_v30 = vadd.f32 %v15489_v39, %v1465_v21  ;;  %v1167_v21 = vmul.f32 %v15478_v25, %v1116_v52 }
 0x179   : > { %1701 = vst.msk [vmem:[#allocation2] sm:$0xff] %vm1563_vm0, %v15630_v19  ;;  %v1730_v33 = vmul.f32 %v15634_v22, %v15630_v19  ;;  %v1497_v61 = vadd.f32 %v15489_v39, %v1468_v51 }
 0x17a   : > { %v1387_v23 = vpop.permute.xlu1 %1386  ;;  %v1519_v38 = vmax.f32 %v1494_v30, 0.0  ;;  %v1252_v7 = vpop.permute.xlu0 %1251 }
 0x17b   : > { %v1441_v27 = vmul.f32 %v15480_v28, %v1387_v23  ;;  %v1755_v42 = vsel %vm1563_vm0, %v1730_v33, 0.0  ;;  %v1522_v5 = vmax.f32 %v1497_v61, 0.0  ;;  %v1294_v13 = vmul.f32 %v15476_v24, %v1252_v7 }
 0x17c   : > { %v1614_v29 = vpop.f32.mrf.mxu0 }
 0x17d   : > { %v1466_v31 = vadd.f32 %v1441_v27, %v1315_v26  ;;  %v1615_v32 = vadd.f32 %v15622_v10, %v1614_v29  ;;  %v1248_v59 = vpop.permute.xlu2 %1247 }
 0x17e   : > { %v1293_v23 = vmul.f32 %v15476_v24, %v1248_v59 }
 0x17f   : > { %v1495_v35 = vadd.f32 %v15489_v39, %v1466_v31  ;;  %v15642_v36 = vmax.f32 %v1615_v32, 0.0 }
 0x180   : > { %v1318_v31 = vadd.f32 %v1293_v23, %v1167_v21 }
 0x181   : > { %v1520_v40 = vmax.f32 %v1495_v35, 0.0  ;;  %1702 = vst.msk [vmem:[#allocation2 + $0x8] sm:$0xff] %vm1563_vm0, %v15642_v36  ;;  %v1731_v50 = vmul.f32 %v15634_v22, %v15642_v36 }
 0x182   : > { %1756 = vadd.xlane.f32.xlu2 %v1755_v42  ;;  %v1256_v47 = vpop.permute.xlu0 %1255 }
 0x183   : > { %v1240_v44 = vpop.permute.xlu1 %1239  ;;  %v1537_v46 = vpack.c.bf16 %v1520_v40, %v1519_v38  ;;  %v1758_v56 = vsel %vm1563_vm0, %v1731_v50, 0.0  ;;  %v1295_v52 = vmul.f32 %v15476_v24, %v1256_v47 }
 0x184   : > { %v1291_v53 = vmul.f32 %v15476_v24, %v1240_v44 }
 0x185   : > { %9807 = vmatmul.msk.bf16.gmra.mxu0 %vm1563_vm0, %v1537_v46 }
 0x186   : > { %v1617_v48 = vpop.f32.mrf.mxu0  ;;  %v1316_v60 = vadd.f32 %v1291_v53, %v1165_v54  ;;  %v1403_v16 = vpop.permute.xlu2 %1402 }
 0x187   : > { %v1618_v49 = vadd.f32 %v15622_v10, %v1617_v48  ;;  %v1445_v2 = vmul.f32 %v15480_v28, %v1403_v16 }
 0x189   : > { %v15655_v1 = vmax.f32 %v1618_v49, 0.0 }
 0x18b   : > { %1703 = vst.msk [vmem:[#allocation2 + $0x10] sm:$0xff] %vm1563_vm0, %v15655_v1  ;;  %v1732_v57 = vmul.f32 %v15634_v22, %v15655_v1 }
 0x18c   : > { %1759 = vadd.xlane.f32.xlu1 %v1758_v56  ;;  %v1391_v58 = vpop.permute.xlu1 %1390  ;;  %v1411_v56 = vpop.permute.xlu0 %1410 }
 0x18d   : > { %v1442_v62 = vmul.f32 %v15480_v28, %v1391_v58  ;;  %v1761_v0 = vsel %vm1563_vm0, %v1732_v57, 0.0 }
 0x18e   : > { %v1619_v63 = vpop.f32.mrf.mxu0  ;;  %1762 = vadd.xlane.f32.xlu0 %v1761_v0 }
 0x18f   : > { %v1467_v3 = vadd.f32 %v1442_v62, %v1316_v60  ;;  %v1620_v4 = vadd.f32 %v15622_v10, %v1619_v63  ;;  %v1131_v40 = vpop.permute.xlu2 %1130  ;;  %v1447_v62 = vmul.f32 %v15480_v28, %v1411_v56 }
 0x190   : > { %v1170_v58 = vmul.f32 %v15478_v25, %v1131_v40 }
 0x191   : > { %v1496_v6 = vadd.f32 %v15489_v39, %v1467_v3  ;;  %v15668_v55 = vmax.f32 %v1620_v4, 0.0 }
 0x193   : > { %v1521_v8 = vmax.f32 %v1496_v6, 0.0  ;;  %1704 = vst.msk [vmem:[#allocation2 + $0x18] sm:$0xff] %vm1563_vm0, %v15668_v55  ;;  %v1733_v9 = vmul.f32 %v15634_v22, %v15668_v55 }
 0x195   : > { %v1121_v11 = vpop.permute.xlu1 %1120  ;;  %v1764_v12 = vsel %vm1563_vm0, %v1733_v9, 0.0  ;;  %v1538_v14 = vpack.c.bf16 %v1522_v5, %v1521_v8 }
 0x196   : > { %v1168_v15 = vmul.f32 %v15478_v25, %v1121_v11  ;;  %1765 = vadd.xlane.f32.xlu2 %v1764_v12 }
 0x197   : > { %9808 = vmatmul.msk.bf16.gmra.mxu0 %vm1563_vm0, %v1538_v14  ;;  %v13180_v14 = vld [vmem:[#allocation17 + $0x8] sm:$0xff] }
 0x198   : > { %v1622_v17 = vpop.f32.mrf.mxu0  ;;  %v1319_v18 = vadd.f32 %v1294_v13, %v1168_v15  ;;  %v1407_v53 = vpop.permute.xlu2 %1406  ;;  %2442 = vmatpush.bf16.msra.mxu1 %v13180_v14 }
 0x199   : > { %v1623_v20 = vadd.f32 %v15622_v10, %v1622_v17  ;;  %v1446_v54 = vmul.f32 %v15480_v28, %v1407_v53 }
 0x19a   : > { %v1470_v27 = vadd.f32 %v1445_v2, %v1319_v18  ;;  %v13179_v2 = vld [vmem:[#allocation17] sm:$0xff] }
 0x19b   : > { %v15682_v26 = vmax.f32 %v1623_v20, 0.0 }
 0x19c   : > { %v1499_v35 = vadd.f32 %v15489_v39, %v1470_v27  ;;  %2443 = vmatpush.bf16.msra.mxu1 %v13179_v2 }
 0x19d   : > { %1705 = vst.msk [vmem:[#allocation2 + $0x20] sm:$0xff] %vm1563_vm0, %v15682_v26  ;;  %v1734_v29 = vmul.f32 %v15634_v22, %v15682_v26 }
 0x19e   : > { %v1399_v30 = vpop.permute.xlu1 %1398  ;;  %v1524_v43 = vmax.f32 %v1499_v35, 0.0 }
 0x19f   : > { %v1444_v32 = vmul.f32 %v15480_v28, %v1399_v30  ;;  %v1767_v33 = vsel %vm1563_vm0, %v1734_v29, 0.0 }
 0x1a0   : > { %v1624_v34 = vpop.f32.mrf.mxu0  ;;  %1768 = vadd.xlane.f32.xlu2 %v1767_v33 }
 0x1a1   : > { %v1469_v37 = vadd.f32 %v1444_v32, %v1318_v31  ;;  %v1625_v38 = vadd.f32 %v15622_v10, %v1624_v34  ;;  %v1141_v16 = vpop.permute.xlu2 %1140  ;;  %v1415_v32 = vpop.permute.xlu0 %1414 }
 0x1a2   : > { %v1448_v40 = vmul.f32 %v15480_v28, %v1415_v32 }
 0x1a3   : > { %v1498_v41 = vadd.f32 %v15489_v39, %v1469_v37  ;;  %v15693_v42 = vmax.f32 %v1625_v38, 0.0  ;;  %v1172_v38 = vmul.f32 %v15478_v25, %v1141_v16 }
 0x1a4   : > { %v2335_v56 = vld [vmem:[#allocation2] ss:$5 sm:$0xff]  ;;  %v2390_v32 = vld [vmem:[#allocation2 + $0x4] ss:$5 sm:$0xff] }
 0x1a5   : > { %v1523_v44 = vmax.f32 %v1498_v41, 0.0  ;;  %1706 = vst.msk [vmem:[#allocation2 + $0x28] sm:$0xff] %vm1563_vm0, %v15693_v42  ;;  %v1735_v46 = vmul.f32 %v15634_v22, %v15693_v42  ;;  %v2375_v2 = vld [vmem:[#allocation2 + $0x3] ss:$5 sm:$0xff] }
 0x1a7   : > { %v1770_v45 = vsel %vm1563_vm0, %v1735_v46, 0.0  ;;  %v1539_v48 = vpack.c.bf16 %v1524_v43, %v1523_v44 }
 0x1a8   : > { %v1126_v49 = vpop.permute.xlu1 %1125  ;;  %1771 = vadd.xlane.f32.xlu1 %v1770_v45 }
 0x1a9   : > { %9809 = vmatmul.msk.bf16.gmra.mxu0 %vm1563_vm0, %v1539_v48  ;;  %v1169_v50 = vmul.f32 %v15478_v25, %v1126_v49  ;;  %v1272_v53 = vpop.permute.xlu0 %1271 }
 0x1aa   : > { %v1268_v33 = vpop.permute.xlu2 %1267 }
 0x1ab   : > { %v1320_v51 = vadd.f32 %v1295_v52, %v1169_v50  ;;  %v1298_v41 = vmul.f32 %v15476_v24, %v1268_v33 }
 0x1ad   : > { %v1471_v59 = vadd.f32 %v1446_v54, %v1320_v51  ;;  %v1323_v48 = vadd.f32 %v1298_v41, %v1172_v38 }
 0x1af   : > { %v1500_v4 = vadd.f32 %v15489_v39, %v1471_v59 }
 0x1b1   : > { %v1260_v57 = vpop.permute.xlu1 %1259  ;;  %v1525_v9 = vmax.f32 %v1500_v4, 0.0 }
 0x1b2   : > { %v1296_v60 = vmul.f32 %v15476_v24, %v1260_v57  ;;  %v1627_v61 = vpop.f32.mrf.mxu0  ;;  %v2345_v57 = vld [vmem:[#allocation2 + $0x1] ss:$5 sm:$0xff] }
 0x1b3   : > { %v1628_v0 = vadd.f32 %v15622_v10, %v1627_v61  ;;  %v1146_v52 = vpop.permute.xlu2 %1145  ;;  %v1299_v61 = vmul.f32 %v15476_v24, %v1272_v53 }
 0x1b4   : > { %v1321_v63 = vadd.f32 %v1296_v60, %v1170_v58  ;;  %v1173_v60 = vmul.f32 %v15478_v25, %v1146_v52 }
 0x1b5   : > { %v15708_v3 = vmax.f32 %v1628_v0, 0.0  ;;  %v2354_v0 = vmax.f32 %v2335_v56, %v2345_v57 }
 0x1b6   : > { %v1472_v5 = vadd.f32 %v1447_v62, %v1321_v63 }
 0x1b7   : > { %1707 = vst.msk [vmem:[#allocation2 + $0x30] sm:$0xff] %vm1563_vm0, %v15708_v3  ;;  %v1736_v6 = vmul.f32 %v15634_v22, %v15708_v3 }
 0x1b8   : > { %v1501_v7 = vadd.f32 %v15489_v39, %v1472_v5 }
 0x1b9   : > { %v1773_v8 = vsel %vm1563_vm0, %v1736_v6, 0.0  ;;  %v1324_v6 = vadd.f32 %v1299_v61, %v1173_v60 }
 0x1ba   : > { %v1526_v11 = vmax.f32 %v1501_v7, 0.0  ;;  %v1136_v12 = vpop.permute.xlu1 %1135  ;;  %v1629_v13 = vpop.f32.mrf.mxu0  ;;  %1774 = vadd.xlane.f32.xlu2 %v1773_v8 }
 0x1bb   : > { %v1630_v15 = vadd.f32 %v15622_v10, %v1629_v13  ;;  %v1171_v31 = vmul.f32 %v15478_v25, %v1136_v12 }
 0x1bc   : > { %v1540_v17 = vpack.c.bf16 %v1526_v11, %v1525_v9  ;;  %v2360_v11 = vld [vmem:[#allocation2 + $0x2] ss:$5 sm:$0xff] }
 0x1bd   : > { %v15718_v18 = vmax.f32 %v1630_v15, 0.0  ;;  %v2369_v13 = vmax.f32 %v2354_v0, %v2360_v11 }
 0x1be   : > { %9810 = vmatmul.msk.bf16.gmra.mxu0 %vm1563_vm0, %v1540_v17 }
 0x1bf   : > { %1708 = vst.msk [vmem:[#allocation2 + $0x38] sm:$0xff] %vm1563_vm0, %v15718_v18  ;;  %v1737_v20 = vmul.f32 %v15634_v22, %v15718_v18 }
 0x1c1   : > { %v1776_v21 = vsel %vm1563_vm0, %v1737_v20, 0.0 }
 0x1c2   : > { %1777 = vadd.xlane.f32.xlu0 %v1776_v21  ;;  %v2384_v21 = vmax.f32 %v2369_v13, %v2375_v2 }
 0x1c3   : > { %v1264_v23 = vpop.permute.xlu1 %1263  ;;  %v1632_v27 = vpop.f32.mrf.mxu0 }
 0x1c4   : > { %v1297_v29 = vmul.f32 %v15476_v24, %v1264_v23  ;;  %v1633_v30 = vadd.f32 %v15622_v10, %v1632_v27 }
 0x1c6   : > { %v15729_v34 = vmax.f32 %v1633_v30, 0.0  ;;  %v1322_v35 = vadd.f32 %v1297_v29, %v1171_v31 }
 0x1c8   : > { %1709 = vst.msk [vmem:[#allocation2 + $0x40] sm:$0xff] %vm1563_vm0, %v15729_v34  ;;  %v1738_v37 = vmul.f32 %v15634_v22, %v15729_v34  ;;  %v1473_v44 = vadd.f32 %v1448_v40, %v1322_v35 }
 0x1ca   : > { %v1779_v43 = vsel %vm1563_vm0, %v1738_v37, 0.0  ;;  %v1502_v54 = vadd.f32 %v15489_v39, %v1473_v44  ;;  %v2399_v37 = vmax.f32 %v2384_v21, %v2390_v32 }
 0x1cb   : > { %v1634_v46 = vpop.f32.mrf.mxu0  ;;  %1780 = vadd.xlane.f32.xlu1 %v1779_v43 }
 0x1cc   : > { %v1419_v47 = vpop.permute.xlu1 %1418  ;;  %v1635_v45 = vadd.f32 %v15622_v10, %v1634_v46  ;;  %v1527_v4 = vmax.f32 %v1502_v54, 0.0 }
 0x1cd   : > { %v1449_v49 = vmul.f32 %v15480_v28, %v1419_v47 }
 0x1ce   : > { %v15741_v50 = vmax.f32 %v1635_v45, 0.0 }
 0x1cf   : > { %v1474_v51 = vadd.f32 %v1449_v49, %v1323_v48 }
 0x1d0   : > { %1710 = vst.msk [vmem:[#allocation2 + $0x48] sm:$0xff] %vm1563_vm0, %v15741_v50  ;;  %v1739_v58 = vmul.f32 %v15634_v22, %v15741_v50 }
 0x1d1   : > { %v1503_v59 = vadd.f32 %v15489_v39, %v1474_v51 }
 0x1d2   : > { %v1782_v62 = vsel %vm1563_vm0, %v1739_v58, 0.0 }
 0x1d3   : > { %v1528_v63 = vmax.f32 %v1503_v59, 0.0  ;;  %1783 = vadd.xlane.f32.xlu2 %v1782_v62 }
 0x1d4   : > { %v1423_v5 = vpop.permute.xlu1 %1422 }
 0x1d5   : > { %v1450_v7 = vmul.f32 %v15480_v28, %v1423_v5  ;;  %v1637_v8 = vpop.f32.mrf.mxu0  ;;  %v1541_v9 = vpack.c.bf16 %v1528_v63, %v1527_v4 }
 0x1d6   : > { %v1638_v12 = vadd.f32 %v15622_v10, %v1637_v8 }
 0x1d7   : > { %9811 = vmatmul.msk.bf16.gmra.mxu0 %vm1563_vm0, %v1541_v9  ;;  %v2337_v25 = vld [vmem:[#allocation2 + $0x28] ss:$5 sm:$0xff]  ;;  %v2347_v24 = vld [vmem:[#allocation2 + $0x29] ss:$5 sm:$0xff]  ;;  %v1475_v16 = vadd.f32 %v1450_v7, %v1324_v6 }
 0x1d8   : > { %v15755_v14 = vmax.f32 %v1638_v12, 0.0  ;;  %v2355_v15 = vmax.f32 %v2337_v25, %v2347_v24  ;;  %v2362_v17 = vld [vmem:[#allocation2 + $0x2a] ss:$5 sm:$0xff]  ;;  %v2377_v23 = vld [vmem:[#allocation2 + $0x2b] ss:$5 sm:$0xff] }
 0x1d9   : > { %v1504_v30 = vadd.f32 %v15489_v39, %v1475_v16  ;;  %v2392_v33 = vld [vmem:[#allocation2 + $0x2c] ss:$5 sm:$0xff] }
 0x1da   : > { %1711 = vst.msk [vmem:[#allocation2 + $0x50] sm:$0xff] %vm1563_vm0, %v15755_v14  ;;  %v1740_v28 = vmul.f32 %v15634_v22, %v15755_v14  ;;  %v2370_v20 = vmax.f32 %v2355_v15, %v2362_v17 }
 0x1db   : > { %v1529_v43 = vmax.f32 %v1504_v30, 0.0 }
 0x1dc   : > { %v1785_v27 = vsel %vm1563_vm0, %v1740_v28, 0.0  ;;  %v2385_v29 = vmax.f32 %v2370_v20, %v2377_v23 }
 0x1dd   : > { %v1639_v31 = vpop.f32.mrf.mxu0  ;;  %1786 = vadd.xlane.f32.xlu0 %v1785_v27  ;;  %v1542_v46 = vpack.c.bf16 %v1529_v43, %v1529_v43 }
 0x1de   : > { %v1640_v35 = vadd.f32 %v15622_v10, %v1639_v31  ;;  %v2400_v38 = vmax.f32 %v2385_v29, %v2392_v33 }
 0x1e0   : > { %v15764_v40 = vmax.f32 %v1640_v35, 0.0  ;;  %v2404_v41 = vpack.c.bf16 %v2400_v38, %v2399_v37 }
 0x1e2   : > { %1712 = vst.msk [vmem:[#allocation2 + $0x58] sm:$0xff] %vm1563_vm0, %v15764_v40  ;;  %9821 = vmatmul.msk.bf16.vlgmr.msra.gmra.mxu1 %vm1563_vm0, %v2404_v41  ;;  %v1741_v39 = vmul.f32 %v15634_v22, %v15764_v40 }
 0x1e4   : > { %v1788_v44 = vsel %vm1563_vm0, %v1741_v39, 0.0 }
 0x1e5   : > { %1789 = vadd.xlane.f32.xlu1 %v1788_v44 }
 0x1e7   : > { %9812 = vmatmul.msk.bf16.gmra.mxu0 %vm1563_vm0, %v1542_v46 }
 0x1e9   : > { %v1642_v47 = vpop.f32.mrf.mxu0 }
 0x1ea   : > { %v1643_v45 = vadd.f32 %v15622_v10, %v1642_v47 }
 0x1ec   : > { %v15774_v48 = vmax.f32 %v1643_v45, 0.0 }
 0x1ee   : > { %16882 = vst [vmem:[#allocation59_spill] sm:$0xff] %v15774_v48  ;;  %v1742_v49 = vmul.f32 %v15634_v22, %v15774_v48 }
 0x1ef   : > { %1713 = vst.msk [vmem:[#allocation2 + $0x60] sm:$0xff] %vm1563_vm0, %v15774_v48 }
 0x1f0   : > { %v1791_v52 = vsel %vm1563_vm0, %v1742_v49, 0.0 }
 0x1f1   : > { %v1644_v53 = vpop.f32.mrf.mxu0  ;;  %1792 = vadd.xlane.f32.xlu2 %v1791_v52 }
 0x1f2   : > { %v1645_v51 = vadd.f32 %v15622_v10, %v1644_v53 }
 0x1f4   : > { %v15782_v54 = vmax.f32 %v1645_v51, 0.0 }
 0x1f6   : > { %16883 = vst [vmem:[#allocation60_spill] sm:$0xff] %v15782_v54  ;;  %v1743_v56 = vmul.f32 %v15634_v22, %v15782_v54 }
 0x1f7   : > { %1714 = vst.msk [vmem:[#allocation2 + $0x68] sm:$0xff] %vm1563_vm0, %v15782_v54 }
 0x1f8   : > { %v1794_v57 = vsel %vm1563_vm0, %v1743_v56, 0.0  ;;  %v13184_v56 = vld [vmem:[#allocation20 + $0x18] sm:$0xff] }
 0x1f9   : > { %1795 = vadd.xlane.f32.xlu0 %v1794_v57  ;;  %2517 = vmatpush.bf16.msra.mxu2 %v13184_v56 }
 0x1fa   : > { %14013 = vmatpush.bf16.msra.mxu3 %v13184_v56 }
 0x202   : > { %v1647_v58 = vpop.f32.mrf.mxu0 }
 0x203   : > { %v1648_v59 = vadd.f32 %v15622_v10, %v1647_v58 }
 0x205   : > { %v15790_v60 = vmax.f32 %v1648_v59, 0.0 }
 0x207   : > { %16884 = vst [vmem:[#allocation61_spill] sm:$0xff] %v15790_v60  ;;  %v1744_v61 = vmul.f32 %v15634_v22, %v15790_v60 }
 0x208   : > { %1715 = vst.msk [vmem:[#allocation2 + $0x70] sm:$0xff] %vm1563_vm0, %v15790_v60 }
 0x209   : > { %v1797_v62 = vsel %vm1563_vm0, %v1744_v61, 0.0 }
 0x20a   : > { %v1649_v0 = vpop.f32.mrf.mxu0  ;;  %1798 = vadd.xlane.f32.xlu1 %v1797_v62 }
 0x20b   : > { %v1650_v63 = vadd.f32 %v15622_v10, %v1649_v0 }
 0x20d   : > { %v15798_v4 = vmax.f32 %v1650_v63, 0.0 }
 0x20f   : > { %16885 = vst [vmem:[#allocation62_spill] sm:$0xff] %v15798_v4  ;;  %v1745_v5 = vmul.f32 %v15634_v22, %v15798_v4  ;;  %v2339_v30 = vld [vmem:[#allocation2 + $0x50] ss:$5 sm:$0xff]  ;;  %v2349_v31 = vld [vmem:[#allocation2 + $0x51] ss:$5 sm:$0xff] }
 0x210   : > { %1716 = vst.msk [vmem:[#allocation2 + $0x78] sm:$0xff] %vm1563_vm0, %v15798_v4  ;;  %v2356_v35 = vmax.f32 %v2339_v30, %v2349_v31  ;;  %v2364_v37 = vld [vmem:[#allocation2 + $0x52] ss:$5 sm:$0xff]  ;;  %v2379_v45 = vld [vmem:[#allocation2 + $0x53] ss:$5 sm:$0xff] }
 0x211   : > { %v1800_v6 = vsel %vm1563_vm0, %v1745_v5, 0.0  ;;  %v2394_v59 = vld [vmem:[#allocation2 + $0x54] ss:$5 sm:$0xff] }
 0x212   : > { %1801 = vadd.xlane.f32.xlu2 %v1800_v6  ;;  %v2371_v38 = vmax.f32 %v2356_v35, %v2364_v37  ;;  %v13183_v5 = vld [vmem:[#allocation20 + $0x10] sm:$0xff] }
 0x213   : > { %2518 = vmatpush.bf16.msra.mxu2 %v13183_v5  ;;  %14014 = vmatpush.bf16.msra.mxu3 %v13183_v5  ;;  %v1757_v5 = vpop.xlane.xlu2 %1756 }
 0x214   : > { %v1652_v7 = vpop.f32.mrf.mxu0  ;;  %v2386_v52 = vmax.f32 %v2371_v38, %v2379_v45 }
 0x215   : > { %v1653_v8 = vadd.f32 %v15622_v10, %v1652_v7 }
 0x216   : > { %v2401_v62 = vmax.f32 %v2386_v52, %v2394_v59 }
 0x217   : > { %v15806_v9 = vmax.f32 %v1653_v8, 0.0 }
 0x219   : > { %16886 = vst [vmem:[#allocation63_spill] sm:$0xff] %v15806_v9  ;;  %v1746_v11 = vmul.f32 %v15634_v22, %v15806_v9 }
 0x21a   : > { %1717 = vst.msk [vmem:[#allocation2 + $0x80] sm:$0xff] %vm1563_vm0, %v15806_v9 }
 0x21b   : > { %v1803_v12 = vsel %vm1563_vm0, %v1746_v11, 0.0 }
 0x21c   : > { %v1654_v13 = vpop.f32.mrf.mxu0  ;;  %1804 = vadd.xlane.f32.xlu0 %v1803_v12  ;;  %v13182_v12 = vld [vmem:[#allocation20 + $0x8] sm:$0xff] }
 0x21d   : > { %v1655_v25 = vadd.f32 %v15622_v10, %v1654_v13  ;;  %2519 = vmatpush.bf16.msra.mxu2 %v13182_v12  ;;  %14015 = vmatpush.bf16.msra.mxu3 %v13182_v12  ;;  %v1763_v12 = vpop.xlane.xlu0 %1762 }
 0x21f   : > { %v15814_v24 = vmax.f32 %v1655_v25, 0.0 }
 0x221   : > { %16887 = vst [vmem:[#allocation64_spill] sm:$0xff] %v15814_v24  ;;  %v1747_v15 = vmul.f32 %v15634_v22, %v15814_v24 }
 0x222   : > { %1718 = vst.msk [vmem:[#allocation2 + $0x88] sm:$0xff] %vm1563_vm0, %v15814_v24 }
 0x223   : > { %v1806_v16 = vsel %vm1563_vm0, %v1747_v15, 0.0  ;;  %v13181_v15 = vld [vmem:[#allocation20] sm:$0xff] }
 0x224   : > { %1807 = vadd.xlane.f32.xlu1 %v1806_v16  ;;  %2520 = vmatpush.bf16.msra.mxu2 %v13181_v15 }
 0x225   : > { %14016 = vmatpush.bf16.msra.mxu3 %v13181_v15 }
 0x226   : > { %v1657_v17 = vpop.f32.mrf.mxu0 }
 0x227   : > { %v1658_v2 = vadd.f32 %v15622_v10, %v1657_v17 }
 0x229   : > { %v15822_v28 = vmax.f32 %v1658_v2, 0.0 }
 0x22b   : > { %16888 = vst [vmem:[#allocation65_spill] sm:$0xff] %v15822_v28  ;;  %v1748_v20 = vmul.f32 %v15634_v22, %v15822_v28 }
 0x22c   : > { %1719 = vst.msk [vmem:[#allocation2 + $0x90] sm:$0xff] %vm1563_vm0, %v15822_v28 }
 0x22d   : > { %v1809_v21 = vsel %vm1563_vm0, %v1748_v20, 0.0 }
 0x22e   : > { %v1659_v23 = vpop.f32.mrf.mxu0  ;;  %1810 = vadd.xlane.f32.xlu2 %v1809_v21 }
 0x22f   : > { %v1660_v27 = vadd.f32 %v15622_v10, %v1659_v23 }
 0x231   : > { %v15830_v29 = vmax.f32 %v1660_v27, 0.0 }
 0x233   : > { %16889 = vst [vmem:[#allocation66_spill] sm:$0xff] %v15830_v29  ;;  %v1749_v32 = vmul.f32 %v15634_v22, %v15830_v29 }
 0x234   : > { %1720 = vst.msk [vmem:[#allocation2 + $0x98] sm:$0xff] %vm1563_vm0, %v15830_v29 }
 0x235   : > { %v1812_v33 = vsel %vm1563_vm0, %v1749_v32, 0.0  ;;  %v1778_v15 = vpop.xlane.xlu0 %1777 }
 0x236   : > { %1813 = vadd.xlane.f32.xlu0 %v1812_v33  ;;  %v15869_v33 = vld [vmem:[#allocation19] ss:$0 sm:$0xff] }
 0x23b   : > { %v2341_v41 = vld [vmem:[#allocation2 + $0x78] ss:$5 sm:$0xff]  ;;  %v2351_v43 = vld [vmem:[#allocation2 + $0x79] ss:$5 sm:$0xff]  ;;  %v1662_v39 = vpop.f32.mrf.mxu0 }
 0x23c   : > { %v2357_v44 = vmax.f32 %v2341_v41, %v2351_v43  ;;  %v1663_v46 = vadd.f32 %v15622_v10, %v1662_v39  ;;  %v2366_v47 = vld [vmem:[#allocation2 + $0x7a] ss:$5 sm:$0xff]  ;;  %v2381_v51 = vld [vmem:[#allocation2 + $0x7b] ss:$5 sm:$0xff] }
 0x23d   : > { %v2396_v61 = vld [vmem:[#allocation2 + $0x7c] ss:$5 sm:$0xff] }
 0x23e   : > { %v2372_v49 = vmax.f32 %v2357_v44, %v2366_v47  ;;  %v15838_v53 = vmax.f32 %v1663_v46, 0.0 }
 0x240   : > { %16890 = vst [vmem:[#allocation67_spill] sm:$0xff] %v15838_v53  ;;  %v2387_v57 = vmax.f32 %v2372_v49, %v2381_v51  ;;  %v1750_v58 = vmul.f32 %v15634_v22, %v15838_v53 }
 0x241   : > { %1721 = vst.msk [vmem:[#allocation2 + $0xa0] sm:$0xff] %vm1563_vm0, %v15838_v53 }
 0x242   : > { %v2402_v0 = vmax.f32 %v2387_v57, %v2396_v61  ;;  %v1815_v63 = vsel %vm1563_vm0, %v1750_v58, 0.0 }
 0x243   : > { %v1664_v6 = vpop.f32.mrf.mxu0  ;;  %1816 = vadd.xlane.f32.xlu1 %v1815_v63 }
 0x244   : > { %v2405_v7 = vpack.c.bf16 %v2402_v0, %v2401_v62  ;;  %v1665_v8 = vadd.f32 %v15622_v10, %v1664_v6  ;;  %v1766_v6 = vpop.xlane.xlu2 %1765 }
 0x246   : > { %9822 = vmatmul.msk.bf16.gmra.mxu1 %vm1563_vm0, %v2405_v7  ;;  %v15847_v11 = vmax.f32 %v1665_v8, 0.0  ;;  %v1760_v7 = vpop.xlane.xlu1 %1759 }
 0x248   : > { %16891 = vst [vmem:[#allocation68_spill] sm:$0xff] %v15847_v11  ;;  %v1751_v13 = vmul.f32 %v15634_v22, %v15847_v11 }
 0x249   : > { %1722 = vst.msk [vmem:[#allocation2 + $0xa8] sm:$0xff] %vm1563_vm0, %v15847_v11 }
 0x24a   : > { %v1818_v25 = vsel %vm1563_vm0, %v1751_v13, 0.0 }
 0x24b   : > { %1819 = vadd.xlane.f32.xlu2 %v1818_v25 }
 0x24c   : > { %v1769_v8 = vpop.xlane.xlu2 %1768 }
 0x24e   : > { %v1772_v13 = vpop.xlane.xlu1 %1771 }
 0x254   : > { %v1667_v16 = vpop.f32.mrf.mxu0  ;;  %v1775_v25 = vpop.xlane.xlu2 %1774 }
 0x255   : > { %v1668_v17 = vadd.f32 %v15622_v10, %v1667_v16 }
 0x256   : > { %v1781_v16 = vpop.xlane.xlu1 %1780 }
 0x257   : > { %v15855_v2 = vmax.f32 %v1668_v17, 0.0 }
 0x259   : > { %16892 = vst [vmem:[#allocation69_spill] sm:$0xff] %v15855_v2  ;;  %v1752_v20 = vmul.f32 %v15634_v22, %v15855_v2 }
 0x25a   : > { %1723 = vst.msk [vmem:[#allocation2 + $0xb0] sm:$0xff] %vm1563_vm0, %v15855_v2 }
 0x25b   : > { %v1821_v21 = vsel %vm1563_vm0, %v1752_v20, 0.0  ;;  %v1787_v20 = vpop.xlane.xlu0 %1786 }
 0x25c   : > { %v1669_v23 = vpop.f32.mrf.mxu0  ;;  %1822 = vadd.xlane.f32.xlu0 %v1821_v21  ;;  %v1784_v17 = vpop.xlane.xlu2 %1783 }
 0x25d   : > { %v1670_v27 = vadd.f32 %v15622_v10, %v1669_v23 }
 0x25e   : > { %v1790_v21 = vpop.xlane.xlu1 %1789 }
 0x25f   : > { %v15863_v30 = vmax.f32 %v1670_v27, 0.0  ;;  %v2445_v31 = vpop.f32.mrf.mxu1 }
 0x260   : > { %v2446_v41 = vadd.f32 %v15869_v33, %v2445_v31 }
 0x261   : > { %16893 = vst [vmem:[#allocation70_spill] sm:$0xff] %v15863_v30  ;;  %v1753_v32 = vmul.f32 %v15634_v22, %v15863_v30 }
 0x262   : > { %1724 = vst.msk [vmem:[#allocation2 + $0xb8] sm:$0xff] %vm1563_vm0, %v15863_v30  ;;  %v2459_v47 = vmax.f32 %v2446_v41, 0.0 }
 0x263   : > { %v1824_v35 = vsel %vm1563_vm0, %v1753_v32, 0.0  ;;  %v1830_v32 = vld [vmem:[%s16895_s23] sm:$0xff] }
 0x264   : > { %1825 = vadd.xlane.f32.xlu1 %v1824_v35  ;;  %v1672_v37 = vpop.f32.mrf.mxu0  ;;  %v1793_v23 = vpop.xlane.xlu2 %1792  ;;  %v1831_v35 = vld [vmem:[%s16895_s23 + $0x8] sm:$0xff]  ;;  %v1855_v41 = vadd.f32 %v1830_v32, %v1757_v5  ;;  %v1840_v5 = vld [vmem:[%s16895_s23 + $0x50] sm:$0xff] }
 0x265   : > { %v1673_v38 = vadd.f32 %v15622_v10, %v1672_v37  ;;  %v1832_v37 = vld [vmem:[%s16895_s23 + $0x10] sm:$0xff]  ;;  %v1865_v32 = vadd.f32 %v1840_v5, %v1787_v20  ;;  %v1845_v20 = vld [vmem:[%s16895_s23 + $0x78] sm:$0xff] }
 0x266   : > { %14288 = vtanh.f32 %v1855_v41 }
 0x267   : > { %v15874_v43 = vmax.f32 %v1673_v38, 0.0  ;;  %v2447_v39 = vpop.f32.mrf.mxu1 }
 0x268   : > { %v2448_v44 = vadd.f32 %v15869_v33, %v2447_v39  ;;  %v1833_v39 = vld [vmem:[%s16895_s23 + $0x18] sm:$0xff] }
 0x269   : > { %16894 = vst [vmem:[#allocation71_spill] sm:$0xff] %v15874_v43  ;;  %v1754_v46 = vmul.f32 %v15634_v22, %v15874_v43 }
 0x26a   : > { %1725 = vst.msk [vmem:[#allocation2 + $0xc0] sm:$0xff] %vm1563_vm0, %v15874_v43  ;;  %v2460_v45 = vmax.f32 %v2448_v44, 0.0  ;;  %v1856_v44 = vadd.f32 %v1831_v35, %v1760_v7 }
 0x26b   : > { %v1827_v49 = vsel %vm1563_vm0, %v1754_v46, 0.0  ;;  %v1834_v46 = vld [vmem:[%s16895_s23 + $0x20] sm:$0xff] }
 0x26c   : > { %v2464_v52 = vpack.c.bf16 %v2460_v45, %v2459_v47  ;;  %v1674_v10 = vpop.f32.mrf.mxu0  ;;  %1828 = vadd.xlane.f32.xlu2 %v1827_v49  ;;  %v1796_v27 = vpop.xlane.xlu0 %1795  ;;  %v1857_v47 = vadd.f32 %v1832_v37, %v1763_v12  ;;  %v1835_v45 = vld [vmem:[%s16895_s23 + $0x28] sm:$0xff]  ;;  %v1858_v49 = vadd.f32 %v1833_v39, %v1766_v6  ;;  %14290 = vtanh.f32 %v1856_v44 }
 0x26e   : > { %9840 = vmatmul.msk.bf16.vlgmr.msra.gmra.mxu2 %vm2503_vm1, %v2464_v52  ;;  %v1836_v52 = vld [vmem:[%s16895_s23 + $0x30] sm:$0xff]  ;;  %14292 = vtanh.f32 %v1857_v47 }
 0x26f   : > { %14294 = vtanh.f32 %v1858_v49 }
 0x271   : > { %v2343_v51 = vld [vmem:[#allocation2 + $0xa0] ss:$5 sm:$0xff]  ;;  %v2353_v56 = vld [vmem:[#allocation2 + $0xa1] ss:$5 sm:$0xff] }
 0x272   : > { %v2358_v57 = vmax.f32 %v2343_v51, %v2353_v56  ;;  %v2368_v58 = vld [vmem:[#allocation2 + $0xa2] ss:$5 sm:$0xff]  ;;  %v2383_v61 = vld [vmem:[#allocation2 + $0xa3] ss:$5 sm:$0xff]  ;;  %v1859_v51 = vadd.f32 %v1834_v46, %v1769_v8 }
 0x273   : > { %v2398_v0 = vld [vmem:[#allocation2 + $0xa4] ss:$5 sm:$0xff] }
 0x274   : > { %v2373_v59 = vmax.f32 %v2358_v57, %v2368_v58  ;;  %v1837_v56 = vld [vmem:[%s16895_s23 + $0x38] sm:$0xff]  ;;  %14296 = vtanh.f32 %v1859_v51  ;;  %v1846_v51 = vld [vmem:[%s16895_s23 + $0x80] sm:$0xff] }
 0x275   : > { %v1841_v8 = vld [vmem:[%s16895_s23 + $0x58] sm:$0xff] }
 0x276   : > { %v2388_v62 = vmax.f32 %v2373_v59, %v2383_v61  ;;  %v1860_v59 = vadd.f32 %v1835_v45, %v1772_v13  ;;  %v1838_v61 = vld [vmem:[%s16895_s23 + $0x40] sm:$0xff]  ;;  %v1866_v41 = vadd.f32 %v1841_v8, %v1790_v21 }
 0x277   : > { %v1863_v7 = vadd.f32 %v1838_v61, %v1781_v16  ;;  %v1843_v16 = vld [vmem:[%s16895_s23 + $0x68] sm:$0xff] }
 0x278   : > { %v2403_v63 = vmax.f32 %v2388_v62, %v2398_v0  ;;  %v1861_v62 = vadd.f32 %v1836_v52, %v1775_v25  ;;  %v1839_v0 = vld [vmem:[%s16895_s23 + $0x48] sm:$0xff]  ;;  %14298 = vtanh.f32 %v1860_v59  ;;  %v1842_v25 = vld [vmem:[%s16895_s23 + $0x60] sm:$0xff]  ;;  %v1868_v21 = vadd.f32 %v1843_v16, %v1796_v27  ;;  %v1848_v27 = vld [vmem:[%s16895_s23 + $0x90] sm:$0xff] }
 0x279   : > { %v1864_v13 = vadd.f32 %v1839_v0, %v1784_v17  ;;  %v1844_v17 = vld [vmem:[%s16895_s23 + $0x70] sm:$0xff]  ;;  %v1867_v46 = vadd.f32 %v1842_v25, %v1793_v23  ;;  %v1847_v23 = vld [vmem:[%s16895_s23 + $0x88] sm:$0xff] }
 0x27a   : > { %v2406_v22 = vpack.c.bf16 %v2403_v63, %v2403_v63  ;;  %14300 = vtanh.f32 %v1861_v62  ;;  %v1852_v16 = vld [vmem:[%s16895_s23 + $0xb0] sm:$0xff] }
 0x27c   : > { %9823 = vmatmul.msk.bf16.gmra.mxu1 %vm1563_vm0, %v2406_v22  ;;  %v1862_v22 = vadd.f32 %v1837_v56, %v1778_v15  ;;  %v15925_v15 = vpop.eup %14288 }
 0x27d   : > { %v1799_v31 = vpop.xlane.xlu1 %1798 }
 0x27e   : > { %14302 = vtanh.f32 %v1862_v22  ;;  %v1869_v59 = vadd.f32 %v1844_v17, %v1799_v31  ;;  %v1849_v31 = vld [vmem:[%s16895_s23 + $0x98] sm:$0xff] }
 0x27f   : > { %14304 = vtanh.f32 %v1863_v7 }
 0x280   : > { %14306 = vtanh.f32 %v1864_v13 }
 0x281   : > { %14308 = vtanh.f32 %v1865_v32 }
 0x282   : > { %14310 = vtanh.f32 %v1866_v41 }
 0x283   : > { %14312 = vtanh.f32 %v1867_v46 }
 0x284   : > { %14314 = vtanh.f32 %v1868_v21 }
 0x285   : > { %v1802_v10 = vpop.xlane.xlu2 %1801  ;;  %14316 = vtanh.f32 %v1869_v59 }
 0x286   : > { %v1870_v62 = vadd.f32 %v1845_v20, %v1802_v10  ;;  %v1850_v10 = vld [vmem:[%s16895_s23 + $0xa0] sm:$0xff] }
 0x288   : > { %14318 = vtanh.f32 %v1870_v62  ;;  %v1854_v62 = vld [vmem:[%s16895_s23 + $0xc0] sm:$0xff] }
 0x28f   : > { %v1805_v57 = vpop.xlane.xlu0 %1804 }
 0x297   : > { %v1808_v58 = vpop.xlane.xlu1 %1807 }
 0x298   : > { %v1872_v5 = vadd.f32 %v1847_v23, %v1808_v58  ;;  %v1851_v58 = vld [vmem:[%s16895_s23 + $0xa8] sm:$0xff] }
 0x2a1   : > { %v1811_v39 = vpop.xlane.xlu2 %1810 }
 0x2a2   : > { %v1873_v7 = vadd.f32 %v1848_v27, %v1811_v39 }
 0x2a9   : > { %v1814_v47 = vpop.xlane.xlu0 %1813 }
 0x2b6   : > { %v1817_v45 = vpop.xlane.xlu1 %1816 }
 0x2b7   : > { %v1875_v32 = vadd.f32 %v1850_v10, %v1817_v45 }
 0x2be   : > { %v1820_v13 = vpop.xlane.xlu2 %1819 }
 0x2bf   : > { %v1876_v46 = vadd.f32 %v1851_v58, %v1820_v13 }
 0x2c3   : > { %v2450_v38 = vpop.f32.mrf.mxu1 }
 0x2c4   : > { %v2451_v63 = vadd.f32 %v15869_v33, %v2450_v38  ;;  %v15930_v38 = vpop.eup %14290 }
 0x2c5   : > { %v15935_v44 = vpop.eup %14292 }
 0x2c6   : > { %v2461_v35 = vmax.f32 %v2451_v63, 0.0  ;;  %v15940_v52 = vpop.eup %14294  ;;  %v1871_v63 = vadd.f32 %v1846_v51, %v1805_v57  ;;  %v1853_v57 = vld [vmem:[%s16895_s23 + $0xb8] sm:$0xff] }
 0x2c7   : > { %v15945_v56 = vpop.eup %14296 }
 0x2c8   : > { %v15951_v61 = vpop.eup %14298  ;;  %14320 = vtanh.f32 %v1871_v63  ;;  %v1910_v51 = vsel %vm1905_vm2, %v15945_v56, -inf  ;;  %v1906_v63 = vsel %vm1905_vm2, %v15925_v15, -inf }
 0x2c9   : > { %v15956_v0 = vpop.eup %14300  ;;  %14322 = vtanh.f32 %v1872_v5  ;;  %v1912_v59 = vsel %vm1905_vm2, %v15951_v61, -inf  ;;  %v1908_v5 = vsel %vm1905_vm2, %v15935_v44, -inf }
 0x2ca   : > { %v15961_v22 = vpop.eup %14302  ;;  %14324 = vtanh.f32 %v1873_v7  ;;  %v1909_v7 = vsel %vm1905_vm2, %v15940_v52, -inf }
 0x2cb   : > { %v2452_v6 = vpop.f32.mrf.mxu1  ;;  %v1916_v23 = vsel %vm1905_vm2, %v15961_v22, -inf }
 0x2cc   : > { %v2453_v12 = vadd.f32 %v15869_v33, %v2452_v6  ;;  %v15966_v6 = vpop.eup %14304 }
 0x2cd   : > { %v15971_v8 = vpop.eup %14306 }
 0x2ce   : > { %v2462_v37 = vmax.f32 %v2453_v12, 0.0  ;;  %v1874_v12 = vadd.f32 %v1849_v31, %v1814_v47  ;;  %v15976_v25 = vpop.eup %14308  ;;  %v1907_v31 = vsel %vm1905_vm2, %v15930_v38, -inf }
 0x2cf   : > { %v15981_v41 = vpop.eup %14310  ;;  %v1922_v43 = vsel %vm1905_vm2, %v15976_v25, -inf }
 0x2d0   : > { %v2465_v49 = vpack.c.bf16 %v2462_v37, %v2461_v35  ;;  %v1823_v35 = vpop.xlane.xlu0 %1822  ;;  %v15983_v39 = vpop.eup %14312  ;;  %14326 = vtanh.f32 %v1874_v12  ;;  %v1918_v12 = vsel %vm1905_vm2, %v15966_v6, -inf  ;;  %v1924_v58 = vsel %vm1905_vm2, %v15981_v41, -inf }
 0x2d1   : > { %v15985_v20 = vpop.eup %14314  ;;  %v1877_v47 = vadd.f32 %v1852_v16, %v1823_v35  ;;  %14328 = vtanh.f32 %v1875_v32  ;;  %v1911_v16 = vmax.f32 %v1906_v63, %v1910_v51  ;;  %v1913_v35 = vmax.f32 %v1907_v31, %v1912_v59 }
 0x2d2   : > { %9841 = vmatmul.msk.bf16.gmra.mxu2 %vm2503_vm1, %v2465_v49  ;;  %v15987_v49 = vpop.eup %14316  ;;  %v1926_v30 = vsel %vm1905_vm2, %v15983_v39, -inf  ;;  %v1928_v63 = vsel %vm1905_vm2, %v15985_v20, -inf }
 0x2d3   : > { %v15989_v45 = vpop.eup %14318  ;;  %v1919_v59 = vmax.f32 %v1911_v16, %v1918_v12  ;;  %v1930_v31 = vsel %vm1905_vm2, %v15987_v49, -inf }
 0x2d4   : > { %v15991_v21 = vpop.eup %14320  ;;  %v1932_v11 = vsel %vm1905_vm2, %v15989_v45, -inf }
 0x2d5   : > { %v16002_v27 = vpop.eup %14322  ;;  %v1927_v12 = vmax.f32 %v1919_v59, %v1926_v30 }
 0x2d6   : > { %v16010_v10 = vpop.eup %14324  ;;  %v1936_v16 = vsel %vm1905_vm2, %v16002_v27, -inf }
 0x2d7   : > { %v1826_v37 = vpop.xlane.xlu1 %1825  ;;  %v16020_v32 = vpop.eup %14326 }
 0x2d8   : > { %v1878_v17 = vadd.f32 %v1853_v57, %v1826_v37  ;;  %v1914_v57 = vsel %vm1905_vm2, %v15956_v0, -inf  ;;  %v1917_v37 = vmax.f32 %v1909_v7, %v1916_v23  ;;  %v1934_v7 = vsel %vm1905_vm2, %v15991_v21, -inf }
 0x2d9   : > { %v1915_v51 = vmax.f32 %v1908_v5, %v1914_v57  ;;  %v1935_v4 = vmax.f32 %v1927_v12, %v1934_v7 }
 0x2da   : > { %14330 = vtanh.f32 %v1878_v17  ;;  %v1925_v23 = vmax.f32 %v1917_v37, %v1924_v58  ;;  %v1938_v37 = vsel %vm1905_vm2, %v16010_v10, -inf }
 0x2db   : > { %14332 = vtanh.f32 %v1876_v46  ;;  %v16022_v46 = vpop.eup %14328  ;;  %v1923_v57 = vmax.f32 %v1915_v51, %v1922_v43 }
 0x2dc   : > { %14334 = vtanh.f32 %v1877_v47  ;;  %v1920_v47 = vsel %vm1905_vm2, %v15971_v8, -inf  ;;  %v1933_v58 = vmax.f32 %v1925_v23, %v1932_v11 }
 0x2dd   : > { %v1921_v5 = vmax.f32 %v1913_v35, %v1920_v47  ;;  %v1931_v24 = vmax.f32 %v1923_v57, %v1930_v31  ;;  %v16062_v57 = vld [vmem:[#allocation22] ss:$0 sm:$0xff] }
 0x2df   : > { %v1829_v13 = vpop.xlane.xlu2 %1828  ;;  %v1929_v29 = vmax.f32 %v1921_v5, %v1928_v63  ;;  %v1939_v47 = vmax.f32 %v1931_v24, %v1938_v37 }
 0x2e0   : > { %v1879_v17 = vadd.f32 %v1854_v62, %v1829_v13  ;;  %v16032_v2 = vpop.eup %14330  ;;  %v1940_v13 = vsel %vm1905_vm2, %v16020_v32, -inf }
 0x2e1   : > { %v16034_v62 = vpop.eup %14332  ;;  %v1948_v28 = vsel %vm1905_vm2, %v16032_v2, -inf  ;;  %v1941_v9 = vmax.f32 %v1933_v58, %v1940_v13  ;;  %v1937_v35 = vmax.f32 %v1929_v29, %v1936_v16  ;;  %v16065_v29 = vld [vmem:[#allocation23] ss:$0 sm:$0xff] }
 0x2e2   : > { %14336 = vtanh.f32 %v1879_v17  ;;  %v16044_v53 = vpop.eup %14334  ;;  %v1942_v17 = vsel %vm1905_vm2, %v16022_v46, -inf  ;;  %v1944_v30 = vsel %vm1905_vm2, %v16034_v62, -inf }
 0x2e3   : > { %v1946_v11 = vsel %vm1905_vm2, %v16044_v53, -inf  ;;  %v1943_v51 = vmax.f32 %v1935_v4, %v1942_v17  ;;  %v1949_v59 = vmax.f32 %v1941_v9, %v1948_v28  ;;  %v1945_v60 = vmax.f32 %v1937_v35, %v1944_v30 }
 0x2e4   : > { %v1947_v63 = vmax.f32 %v1939_v47, %v1946_v11 }
 0x2e6   : > { %v1953_v7 = vmax.f32 %v1947_v63, %v1949_v59 }
 0x2e8   : > { %v16058_v43 = vpop.eup %14336 }
 0x2e9   : > { %v1950_v23 = vsel %vm1905_vm2, %v16058_v43, -inf }
 0x2ea   : > { %v1951_v31 = vmax.f32 %v1943_v51, %v1950_v23 }
 0x2ec   : > { %v1952_v13 = vmax.f32 %v1951_v31, %v1945_v60 }
 0x2ee   : > { %v1954_v5 = vmax.f32 %v1952_v13, %v1953_v7 }
 0x2f0   : > { %v1955_v12 = vrot.slane %v1954_v5, 4 }
 0x2f1   : > { %v2522_v58 = vpop.f32.mrf.mxu2 }
 0x2f2   : > { %v1956_v54 = vmax.f32 %v1954_v5, %v1955_v12  ;;  %v2523_v48 = vadd.f32 %v16062_v57, %v2522_v58 }
 0x2f4   : > { %v1957_v4 = vrot.slane %v1956_v54, 2  ;;  %v16067_v9 = vmax.f32 %v2523_v48, 0.0 }
 0x2f6   : > { %v1958_v24 = vmax.f32 %v1956_v54, %v1957_v4  ;;  %2541 = vst.msk [vmem:[#allocation3] sm:$0xff] %vm2503_vm1, %v16067_v9  ;;  %v2550_v60 = vmul.f32 %v16065_v29, %v16067_v9 }
 0x2f8   : > { %v1959_v28 = vrot.slane %v1958_v24, 1  ;;  %v2555_v37 = vsel %vm2503_vm1, %v2550_v60, 0.0 }
 0x2f9   : > { %v2455_v16 = vpop.f32.mrf.mxu1  ;;  %v2524_v30 = vpop.f32.mrf.mxu2  ;;  %2556 = vadd.xlane.f32.xlu1 %v2555_v37 }
 0x2fa   : > { %v2456_v17 = vadd.f32 %v15869_v33, %v2455_v16  ;;  %v2525_v11 = vadd.f32 %v16062_v57, %v2524_v30  ;;  %v16076_v35 = vmax.f32 %v1958_v24, %v1959_v28 }
 0x2fc   : > { %v2463_v48 = vmax.f32 %v2456_v17, 0.0  ;;  %v16078_v54 = vmax.f32 %v2525_v11, 0.0  ;;  %v1961_v33 = vsub.f32 %v15925_v15, %v16076_v35  ;;  %v1962_v63 = vsub.f32 %v15930_v38, %v16076_v35 }
 0x2fd   : > { %v1963_v31 = vsub.f32 %v15935_v44, %v16076_v35  ;;  %v1964_v7 = vsub.f32 %v15940_v52, %v16076_v35  ;;  %v1965_v13 = vsub.f32 %v15945_v56, %v16076_v35  ;;  %v1966_v15 = vsub.f32 %v15951_v61, %v16076_v35 }
 0x2fe   : > { %v2466_v47 = vpack.c.bf16 %v2463_v48, %v2463_v48  ;;  %2542 = vst.msk [vmem:[#allocation3 + $0x8] sm:$0xff] %vm2503_vm1, %v16078_v54  ;;  %v2551_v51 = vmul.f32 %v16065_v29, %v16078_v54  ;;  %v1986_v5 = vmul.f32 1.442695, %v1961_v33  ;;  %v1988_v12 = vmul.f32 1.442695, %v1962_v63 }
 0x2ff   : > { %v1990_v58 = vmul.f32 1.442695, %v1963_v31  ;;  %v1992_v4 = vmul.f32 1.442695, %v1964_v7  ;;  %v1967_v38 = vsub.f32 %v15956_v0, %v16076_v35  ;;  %v1994_v44 = vmul.f32 1.442695, %v1965_v13 }
 0x300   : > { %9842 = vmatmul.msk.bf16.vlgmr.msra.gmra.mxu3 %vm2503_vm1, %v2466_v47  ;;  %v2558_v23 = vsel %vm2503_vm1, %v2551_v51, 0.0  ;;  %14338 = vpow2.f32 %v1986_v5  ;;  %v1968_v52 = vsub.f32 %v15961_v22, %v16076_v35  ;;  %v1996_v24 = vmul.f32 1.442695, %v1966_v15 }
 0x301   : > { %v2457_v59 = vpop.f32.mrf.mxu1  ;;  %2559 = vadd.xlane.f32.xlu0 %v2558_v23  ;;  %14340 = vpow2.f32 %v1988_v12  ;;  %v1969_v56 = vsub.f32 %v15966_v6, %v16076_v35  ;;  %v1998_v61 = vmul.f32 1.442695, %v1967_v38  ;;  %v1970_v0 = vsub.f32 %v15971_v8, %v16076_v35 }
 0x302   : > { %14342 = vpow2.f32 %v1990_v58  ;;  %v2000_v16 = vmul.f32 1.442695, %v1968_v52  ;;  %v1971_v30 = vsub.f32 %v15976_v25, %v16076_v35  ;;  %v1972_v51 = vsub.f32 %v15981_v41, %v16076_v35 }
 0x303   : > { %14344 = vpow2.f32 %v1992_v4  ;;  %v2002_v11 = vmul.f32 1.442695, %v1969_v56  ;;  %v2004_v33 = vmul.f32 1.442695, %v1970_v0  ;;  %v1973_v25 = vsub.f32 %v15983_v39, %v16076_v35 }
 0x304   : > { %14346 = vpow2.f32 %v1994_v44  ;;  %v2006_v31 = vmul.f32 1.442695, %v1971_v30  ;;  %v1974_v41 = vsub.f32 %v15985_v20, %v16076_v35  ;;  %v2008_v15 = vmul.f32 1.442695, %v1972_v51 }
 0x305   : > { %14348 = vpow2.f32 %v1996_v24  ;;  %v1975_v39 = vsub.f32 %v15987_v49, %v16076_v35  ;;  %v2010_v38 = vmul.f32 1.442695, %v1973_v25  ;;  %v1976_v20 = vsub.f32 %v15989_v45, %v16076_v35 }
 0x306   : > { %v16104_v60 = vpop.eup %14338  ;;  %14350 = vpow2.f32 %v1998_v61  ;;  %v2012_v56 = vmul.f32 1.442695, %v1974_v41  ;;  %v1977_v49 = vsub.f32 %v15991_v21, %v16076_v35  ;;  %v1978_v45 = vsub.f32 %v16002_v27, %v16076_v35 }
 0x307   : > { %v16106_v28 = vpop.eup %14340  ;;  %v2036_v37 = vsel %vm1905_vm2, %v16104_v60, 0.0  ;;  %14352 = vpow2.f32 %v2000_v16  ;;  %v1979_v21 = vsub.f32 %v16010_v10, %v16076_v35  ;;  %v1980_v27 = vsub.f32 %v16020_v32, %v16076_v35 }
 0x308   : > { %v16112_v22 = vpop.eup %14342  ;;  %v2037_v17 = vsel %vm1905_vm2, %v16106_v28, 0.0  ;;  %14354 = vpow2.f32 %v2002_v11  ;;  %v1981_v10 = vsub.f32 %v16022_v46, %v16076_v35  ;;  %v1982_v32 = vsub.f32 %v16034_v62, %v16076_v35 }
 0x309   : > { %v16116_v6 = vpop.eup %14344  ;;  %v2038_v48 = vadd.f32 %v2037_v17, %v2036_v37  ;;  %v2039_v8 = vsel %vm1905_vm2, %v16112_v22, 0.0  ;;  %14356 = vpow2.f32 %v2004_v33  ;;  %v2014_v37 = vmul.f32 1.442695, %v1975_v39 }
 0x30a   : > { %v16122_v47 = vpop.eup %14346  ;;  %v2041_v23 = vsel %vm1905_vm2, %v16116_v6, 0.0  ;;  %14358 = vpow2.f32 %v2006_v31  ;;  %v1983_v46 = vsub.f32 %v16044_v53, %v16076_v35  ;;  %v1984_v62 = vsub.f32 %v16032_v2, %v16076_v35 }
 0x30b   : > { %v2040_v59 = vadd.f32 %v2039_v8, %v2038_v48  ;;  %v16128_v63 = vpop.eup %14348  ;;  %v2043_v13 = vsel %vm1905_vm2, %v16122_v47, 0.0  ;;  %14360 = vpow2.f32 %v2008_v15  ;;  %v2016_v48 = vmul.f32 1.442695, %v1976_v20 }
 0x30c   : > { %v16134_v5 = vpop.eup %14350  ;;  %v2045_v58 = vsel %vm1905_vm2, %v16128_v63, 0.0  ;;  %14362 = vpow2.f32 %v2010_v38  ;;  %v1985_v53 = vsub.f32 %v16058_v43, %v16076_v35  ;;  %v2032_v2 = vmul.f32 1.442695, %v1984_v62 }
 0x30d   : > { %v2042_v7 = vadd.f32 %v2041_v23, %v2040_v59  ;;  %v16140_v4 = vpop.eup %14352  ;;  %v2047_v52 = vsel %vm1905_vm2, %v16134_v5, 0.0  ;;  %14364 = vpow2.f32 %v2012_v56  ;;  %v2018_v59 = vmul.f32 1.442695, %v1977_v49 }
 0x30e   : > { %v16146_v24 = vpop.eup %14354  ;;  %v2049_v0 = vsel %vm1905_vm2, %v16140_v4, 0.0  ;;  %14366 = vpow2.f32 %v2014_v37 }
 0x30f   : > { %v2044_v12 = vadd.f32 %v2043_v13, %v2042_v7  ;;  %v16152_v16 = vpop.eup %14356  ;;  %v2051_v30 = vsel %vm1905_vm2, %v16146_v24, 0.0  ;;  %14368 = vpow2.f32 %v2016_v48  ;;  %v2020_v7 = vmul.f32 1.442695, %v1978_v45 }
 0x310   : > { %v16158_v11 = vpop.eup %14358  ;;  %v2053_v51 = vsel %vm1905_vm2, %v16152_v16, 0.0  ;;  %14370 = vpow2.f32 %v2018_v59 }
 0x311   : > { %v2046_v44 = vadd.f32 %v2045_v58, %v2044_v12  ;;  %v16164_v33 = vpop.eup %14360  ;;  %v2055_v25 = vsel %vm1905_vm2, %v16158_v11, 0.0  ;;  %v2022_v12 = vmul.f32 1.442695, %v1979_v21  ;;  %14372 = vpow2.f32 %v2020_v7 }
 0x312   : > { %v16170_v31 = vpop.eup %14362  ;;  %v2057_v41 = vsel %vm1905_vm2, %v16164_v33, 0.0  ;;  %v2034_v7 = vmul.f32 1.442695, %v1985_v53 }
 0x313   : > { %v2048_v61 = vadd.f32 %v2047_v52, %v2046_v44  ;;  %v16176_v15 = vpop.eup %14364  ;;  %v2059_v39 = vsel %vm1905_vm2, %v16170_v31, 0.0  ;;  %v2024_v44 = vmul.f32 1.442695, %v1980_v27  ;;  %14374 = vpow2.f32 %v2022_v12 }
 0x314   : > { %v16182_v38 = vpop.eup %14366  ;;  %v2061_v20 = vsel %vm1905_vm2, %v16176_v15, 0.0 }
 0x315   : > { %v2050_v17 = vadd.f32 %v2049_v0, %v2048_v61  ;;  %v16188_v56 = vpop.eup %14368  ;;  %v2026_v61 = vmul.f32 1.442695, %v1981_v10  ;;  %v2063_v49 = vsel %vm1905_vm2, %v16182_v38, 0.0  ;;  %14376 = vpow2.f32 %v2024_v44 }
 0x316   : > { %v16194_v37 = vpop.eup %14370  ;;  %v2065_v45 = vsel %vm1905_vm2, %v16188_v56, 0.0 }
 0x317   : > { %v2052_v8 = vadd.f32 %v2051_v30, %v2050_v17  ;;  %v2028_v17 = vmul.f32 1.442695, %v1982_v32  ;;  %v16200_v48 = vpop.eup %14372  ;;  %14378 = vpow2.f32 %v2026_v61  ;;  %v2067_v21 = vsel %vm1905_vm2, %v16194_v37, 0.0 }
 0x319   : > { %v2054_v23 = vadd.f32 %v2053_v51, %v2052_v8  ;;  %v2030_v8 = vmul.f32 1.442695, %v1983_v46  ;;  %v16206_v59 = vpop.eup %14374  ;;  %14380 = vpow2.f32 %v2028_v17 }
 0x31a   : > { %v2071_v43 = vsel %vm1905_vm2, %v16206_v59, 0.0 }
 0x31b   : > { %v2056_v13 = vadd.f32 %v2055_v25, %v2054_v23  ;;  %v2069_v25 = vsel %vm1905_vm2, %v16200_v48, 0.0  ;;  %v14377_v27 = vpop.eup %14376  ;;  %14382 = vpow2.f32 %v2030_v8 }
 0x31c   : > { %14384 = vpow2.f32 %v2032_v2  ;;  %v2073_v10 = vsel %vm1905_vm2, %v14377_v27, 0.0 }
 0x31d   : > { %v2058_v58 = vadd.f32 %v2057_v41, %v2056_v13  ;;  %v14379_v35 = vpop.eup %14378  ;;  %14386 = vpow2.f32 %v2034_v7 }
 0x31f   : > { %v2060_v52 = vadd.f32 %v2059_v39, %v2058_v58  ;;  %v14381_v12 = vpop.eup %14380  ;;  %v2075_v39 = vsel %vm1905_vm2, %v14379_v35, 0.0 }
 0x321   : > { %v2062_v0 = vadd.f32 %v2061_v20, %v2060_v52  ;;  %v14383_v32 = vpop.eup %14382  ;;  %v2077_v52 = vsel %vm1905_vm2, %v14381_v12, 0.0 }
 0x322   : > { %v14385_v20 = vpop.eup %14384  ;;  %v2079_v61 = vsel %vm1905_vm2, %v14383_v32, 0.0 }
 0x323   : > { %v2064_v30 = vadd.f32 %v2063_v49, %v2062_v0  ;;  %v16216_v0 = vpop.eup %14386  ;;  %v2081_v62 = vsel %vm1905_vm2, %v14385_v20, 0.0 }
 0x325   : > { %v2066_v51 = vadd.f32 %v2065_v45, %v2064_v30  ;;  %v2083_v30 = vsel %vm1905_vm2, %v16216_v0, 0.0 }
 0x327   : > { %v2068_v23 = vadd.f32 %v2067_v21, %v2066_v51 }
 0x329   : > { %v2070_v13 = vadd.f32 %v2069_v25, %v2068_v23 }
 0x32b   : > { %v2072_v41 = vadd.f32 %v2071_v43, %v2070_v13 }
 0x32d   : > { %v2074_v58 = vadd.f32 %v2073_v10, %v2072_v41 }
 0x32f   : > { %v2076_v44 = vadd.f32 %v2075_v39, %v2074_v58 }
 0x331   : > { %v2078_v46 = vadd.f32 %v2077_v52, %v2076_v44 }
 0x333   : > { %v2080_v49 = vadd.f32 %v2079_v61, %v2078_v46 }
 0x335   : > { %v2082_v17 = vadd.f32 %v2081_v62, %v2080_v49 }
 0x337   : > { %v2084_v45 = vadd.f32 %v2083_v30, %v2082_v17 }
 0x339   : > { %v2085_v53 = vrot.slane %v2084_v45, 4 }
 0x33b   : > { %v2086_v8 = vadd.f32 %v2085_v53, %v2084_v45 }
 0x33d   : > { %v2087_v51 = vrot.slane %v2086_v8, 2 }
 0x33f   : > { %v2088_v21 = vadd.f32 %v2087_v51, %v2086_v8 }
 0x341   : > { %v2089_v2 = vrot.slane %v2088_v21, 1 }
 0x343   : > { %v2090_v23 = vadd.f32 %v2089_v2, %v2088_v21 }
 0x345   : > { %14388 = vrcp.f32 %v2090_v23  ;;  %v2102_v41 = vand.u32 2147483648, %v2090_v23  ;;  %v2100_v39 = vand.u32 2147483647, %v2090_v23  ;;  %vm2096_vm4 = vweird.f32 %v2090_v23 }
 0x347   : > { %v2103_v46 = vor.u32 1.1754944e-38, %v2102_v41  ;;  %vm2101_vm6 = vcmp.eq.f32.partialorder %v2100_v39, 8.507059e+37 }
 0x34b   : > { %v14389_v25 = vpop.eup %14388 }
 0x34c   : > { %v2092_v7 = vmul.f32 %v14389_v25, %v2090_v23  ;;  %vm2097_vm3 = vweird.f32 %v14389_v25 }
 0x34d   : > { %vm2098_vm5 = vmor %vm2096_vm4, %vm2097_vm3 }
 0x34e   : > { %v2093_v13 = vsub.f32 1.0, %v2092_v7  ;;  %v13188_v7 = vld [vmem:[#allocation25 + $0x18] sm:$0xff] }
 0x34f   : > { %2751 = vmatpush.bf16.msrb.mxu3 %v13188_v7 }
 0x350   : > { %v2094_v58 = vmul.f32 %v14389_v25, %v2093_v13  ;;  %v13187_v13 = vld [vmem:[#allocation25 + $0x10] sm:$0xff] }
 0x352   : > { %v2095_v52 = vadd.f32 %v14389_v25, %v2094_v58 }
 0x353   : > { %2752 = vmatpush.bf16.msrb.mxu3 %v13187_v13 }
 0x354   : > { %v2099_v61 = vsel %vm2098_vm5, %v14389_v25, %v2095_v52 }
 0x355   : > { %v2527_v43 = vpop.f32.mrf.mxu2  ;;  %v16228_v62 = vsel %vm2101_vm6, %v2103_v46, %v2099_v61 }
 0x356   : > { %v2528_v10 = vadd.f32 %v16062_v57, %v2527_v43  ;;  %v2105_v17 = vmul.f32 %v16104_v60, %v16228_v62  ;;  %v2122_v8 = vmul.f32 %v16200_v48, %v16228_v62  ;;  %v2125_v51 = vmul.f32 %v14379_v35, %v16228_v62  ;;  %v13186_v48 = vld [vmem:[#allocation25 + $0x8] sm:$0xff]  ;;  %v13185_v35 = vld [vmem:[#allocation25] sm:$0xff] }
 0x357   : > { %v2128_v21 = vmul.f32 %v14385_v20, %v16228_v62  ;;  %v2124_v23 = vmul.f32 %v14377_v27, %v16228_v62  ;;  %v2127_v60 = vmul.f32 %v14383_v32, %v16228_v62  ;;  %v16245_v25 = vmul.f32 %v14381_v12, %v16228_v62  ;;  %2753 = vmatpush.bf16.msrb.mxu3 %v13186_v48 }
 0x358   : > { %v16222_v44 = vmax.f32 %v2528_v10, 0.0  ;;  %2132 = vperm.xlu0 %14277, %v2105_v17   ;;  %v2106_v20 = vmul.f32 %v16106_v28, %v16228_v62  ;;  %v2108_v27 = vmul.f32 %v16116_v6, %v16228_v62  ;;  %v2110_v43 = vmul.f32 %v16128_v63, %v16228_v62 }
 0x359   : > { %v2113_v6 = vmul.f32 %v16146_v24, %v16228_v62  ;;  %v2107_v13 = vmul.f32 %v16112_v22, %v16228_v62  ;;  %v2111_v48 = vmul.f32 %v16134_v5, %v16228_v62  ;;  %v2121_v22 = vmul.f32 %v16194_v37, %v16228_v62  ;;  %v2570_v5 = vld [vmem:[%s16824_s12] sm:$0xff]  ;;  %v2571_v37 = vld [vmem:[%s16824_s12 + $0x8] sm:$0xff] }
 0x35a   : > { %2543 = vst.msk [vmem:[#allocation3 + $0x10] sm:$0xff] %vm2503_vm1, %v16222_v44  ;;  %v2552_v49 = vmul.f32 %v16065_v29, %v16222_v44 }
 0x35b   : > { %2754 = vmatpush.bf16.msrb.mxu3 %v13185_v35  ;;  %v2114_v35 = vmul.f32 %v16152_v16, %v16228_v62  ;;  %v2574_v16 = vld [vmem:[%s16824_s12 + $0x20] sm:$0xff] }
 0x35c   : > { %v2561_v30 = vsel %vm2503_vm1, %v2552_v49, 0.0 }
 0x35d   : > { %v2529_v45 = vpop.f32.mrf.mxu2  ;;  %2562 = vadd.xlane.f32.xlu1 %v2561_v30  ;;  %v2116_v30 = vmul.f32 %v16164_v33, %v16228_v62  ;;  %v2109_v33 = vmul.f32 %v16122_v47, %v16228_v62  ;;  %v13196_v47 = vld [vmem:[#allocation28 + $0x38] sm:$0xff] }
 0x35e   : > { %v2530_v53 = vadd.f32 %v16062_v57, %v2529_v45 }
 0x35f   : > { %2830 = vmatpush.bf16.msra.mxu3 %v13196_v47  ;;  %v13189_v47 = vld [vmem:[#allocation28] sm:$0xff] }
 0x360   : > { %v16238_v2 = vmax.f32 %v2530_v53, 0.0 }
 0x362   : > { %2544 = vst.msk [vmem:[#allocation3 + $0x18] sm:$0xff] %vm2503_vm1, %v16238_v2 }
 0x376   : > { %2137 = vperm.xlu1 %14278, %v2106_v20  }
 0x37e   : > { %2147 = vperm.xlu1 %14278, %v2108_v27  }
 0x383   : > { %v2532_v32 = vpop.f32.mrf.mxu3 }
 0x384   : > { %v2533_v12 = vadd.f32 %v16062_v57, %v2532_v32  ;;  %v2553_v57 = vmul.f32 %v16065_v29, %v16238_v2 }
 0x386   : > { %v16254_v41 = vmax.f32 %v2533_v12, 0.0  ;;  %2157 = vperm.xlu1 %14278, %v2110_v43   ;;  %v2564_v61 = vsel %vm2503_vm1, %v2553_v57, 0.0  ;;  %v13195_v12 = vld [vmem:[#allocation28 + $0x30] sm:$0xff] }
 0x387   : > { %v2573_v43 = vld [vmem:[%s16824_s12 + $0x18] sm:$0xff]  ;;  %2831 = vmatpush.bf16.msra.mxu3 %v13195_v12 }
 0x388   : > { %2545 = vst.msk [vmem:[#allocation3 + $0x20] sm:$0xff] %vm2503_vm1, %v16254_v41  ;;  %v2554_v28 = vmul.f32 %v16065_v29, %v16254_v41  ;;  %v2119_v29 = vmul.f32 %v16182_v38, %v16228_v62  ;;  %v2117_v38 = vmul.f32 %v16170_v31, %v16228_v62 }
 0x38a   : > { %v2567_v10 = vsel %vm2503_vm1, %v2554_v28, 0.0 }
 0x38b   : > { %v2534_v58 = vpop.f32.mrf.mxu3  ;;  %2568 = vadd.xlane.f32.xlu2 %v2567_v10 }
 0x38e   : > { %2172 = vperm.xlu1 %14278, %v2113_v6   ;;  %v13194_v6 = vld [vmem:[#allocation28 + $0x28] sm:$0xff] }
 0x38f   : > { %v2694_v63 = vld [vmem:[#allocation3] ss:$5 sm:$0xff]  ;;  %v2696_v39 = vld [vmem:[#allocation3 + $0x1] ss:$5 sm:$0xff]  ;;  %2832 = vmatpush.bf16.msra.mxu3 %v13194_v6 }
 0x390   : > { %v2697_v52 = vmax.f32 %v2694_v63, %v2696_v39  ;;  %v2699_v46 = vld [vmem:[#allocation3 + $0x2] ss:$5 sm:$0xff]  ;;  %v2702_v17 = vld [vmem:[#allocation3 + $0x3] ss:$5 sm:$0xff] }
 0x391   : > { %v2705_v53 = vld [vmem:[#allocation3 + $0x4] ss:$5 sm:$0xff] }
 0x392   : > { %v2700_v49 = vmax.f32 %v2697_v52, %v2699_v46  ;;  %v13193_v39 = vld [vmem:[#allocation28 + $0x20] sm:$0xff] }
 0x393   : > { %2565 = vadd.xlane.f32.xlu2 %v2564_v61  ;;  %2833 = vmatpush.bf16.msra.mxu3 %v13193_v39 }
 0x394   : > { %v2703_v45 = vmax.f32 %v2700_v49, %v2702_v17  ;;  %v13192_v17 = vld [vmem:[#allocation28 + $0x18] sm:$0xff] }
 0x396   : > { %2187 = vperm.xlu1 %14278, %v2116_v30   ;;  %v2706_v24 = vmax.f32 %v2703_v45, %v2705_v53 }
 0x397   : > { %2834 = vmatpush.bf16.msra.mxu3 %v13192_v17 }
 0x398   : > { %v2707_v7 = vpack.c.bf16 %v2706_v24, %v2706_v24 }
 0x39a   : > { %9859 = vmatmul.msk.bf16.vlgmr.msrb.gmra.mxu3 %vm2503_vm1, %v2707_v7 }
 0x39e   : > { %2202 = vperm.xlu1 %14278, %v2119_v29  }
 0x3a6   : > { %2217 = vperm.xlu1 %14278, %v2122_v8   ;;  %v2557_v8 = vpop.xlane.xlu1 %2556 }
 0x3a7   : > { %v2575_v31 = vadd.f32 %v2570_v5, %v2557_v8  ;;  %v14285_v8 = vld [vmem:[#allocation26] ss:$0 sm:$0xff] }
 0x3ab   : > { %2142 = vperm.xlu2 %14275, %v2107_v13   ;;  %v13191_v13 = vld [vmem:[#allocation28 + $0x10] sm:$0xff] }
 0x3ac   : > { %2835 = vmatpush.bf16.msra.mxu3 %v13191_v13 }
 0x3ae   : > { %2232 = vperm.xlu1 %14278, %v2125_v51  }
 0x3b3   : > { %2152 = vperm.xlu2 %14275, %v2109_v33  }
 0x3b6   : > { %2247 = vperm.xlu1 %14278, %v2128_v21   ;;  %v2560_v21 = vpop.xlane.xlu0 %2559 }
 0x3b7   : > { %v2576_v27 = vadd.f32 %v2571_v37, %v2560_v21 }
 0x3bb   : > { %2162 = vperm.xlu2 %14275, %v2111_v48  }
 0x3c3   : > { %2177 = vperm.xlu2 %14275, %v2114_v35   ;;  %v13190_v35 = vld [vmem:[#allocation28 + $0x8] sm:$0xff] }
 0x3c4   : > { %2836 = vmatpush.bf16.msra.mxu3 %v13190_v35 }
 0x3c8   : > { %2837 = vmatpush.bf16.msra.mxu3 %v13189_v47 }
 0x3cb   : > { %2192 = vperm.xlu2 %14275, %v2117_v38  }
 0x3d0   : > { %v2563_v20 = vpop.xlane.xlu1 %2562 }
 0x3d3   : > { %2212 = vperm.xlu2 %14275, %v2121_v22  }
 0x3db   : > { %2227 = vperm.xlu2 %14275, %v2124_v23  }
 0x3e3   : > { %2242 = vperm.xlu2 %14275, %v2127_v60   ;;  %v2572_v60 = vld [vmem:[%s16824_s12 + $0x10] sm:$0xff] }
 0x3e4   : > { %v2577_v32 = vadd.f32 %v2572_v60, %v2563_v20 }
 0x3fe   : > { %v2569_v51 = vpop.xlane.xlu2 %2568 }
 0x3ff   : > { %v2579_v23 = vadd.f32 %v2574_v16, %v2569_v51 }
 0x401   : > { %14390 = vtanh.f32 %v2579_v23 }
 0x402   : > { %14392 = vtanh.f32 %v2575_v31 }
 0x403   : > { %14394 = vtanh.f32 %v2576_v27 }
 0x404   : > { %14396 = vtanh.f32 %v2577_v32 }
 0x406   : > { %v2566_v28 = vpop.xlane.xlu2 %2565 }
 0x407   : > { %v14391_v10 = vpop.eup %14390  ;;  %v2578_v58 = vadd.f32 %v2573_v43, %v2566_v28 }
 0x408   : > { %v14393_v57 = vpop.eup %14392  ;;  %v2589_v63 = vsel %vm1905_vm2, %v14391_v10, -inf }
 0x409   : > { %14398 = vtanh.f32 %v2578_v58  ;;  %v14395_v52 = vpop.eup %14394  ;;  %v2585_v46 = vsel %vm1905_vm2, %v14393_v57, -inf }
 0x40a   : > { %v14397_v61 = vpop.eup %14396  ;;  %v2590_v49 = vmax.f32 %v2585_v46, %v2589_v63  ;;  %v2586_v45 = vsel %vm1905_vm2, %v14395_v52, -inf }
 0x40b   : > { %v2587_v53 = vsel %vm1905_vm2, %v14397_v61, -inf }
 0x40c   : > { %v2591_v7 = vmax.f32 %v2590_v49, %v2586_v45 }
 0x40f   : > { %v14399_v30 = vpop.eup %14398 }
 0x410   : > { %v2588_v24 = vsel %vm1905_vm2, %v14399_v30, -inf }
 0x411   : > { %v2592_v29 = vmax.f32 %v2587_v53, %v2588_v24 }
 0x413   : > { %v2593_v33 = vmax.f32 %v2591_v7, %v2592_v29 }
 0x415   : > { %v2594_v48 = vrot.slane %v2593_v33, 4 }
 0x417   : > { %v2595_v38 = vmax.f32 %v2593_v33, %v2594_v48 }
 0x419   : > { %v2596_v22 = vrot.slane %v2595_v38, 2 }
 0x41b   : > { %v2597_v5 = vmax.f32 %v2595_v38, %v2596_v22 }
 0x41d   : > { %v2598_v16 = vrot.slane %v2597_v5, 1  ;;  %v2756_v51 = vpop.f32.mrf.mxu3 }
 0x41e   : > { %v2757_v31 = vadd.f32 %v14285_v8, %v2756_v51 }
 0x41f   : > { %v2599_v37 = vmax.f32 %v2597_v5, %v2598_v16 }
 0x420   : > { %v2760_v21 = vmax.f32 %v2757_v31, 0.0 }
 0x421   : > { %v2602_v23 = vsub.f32 %v14397_v61, %v2599_v37  ;;  %v2603_v60 = vsub.f32 %v14399_v30, %v2599_v37  ;;  %v2600_v27 = vsub.f32 %v14393_v57, %v2599_v37  ;;  %v2601_v32 = vsub.f32 %v14395_v52, %v2599_v37 }
 0x422   : > { %v2761_v20 = vpack.c.bf16 %v2760_v21, %v2760_v21  ;;  %v2604_v12 = vsub.f32 %v14391_v10, %v2599_v37 }
 0x423   : > { %v2605_v43 = vmul.f32 1.442695, %v2600_v27  ;;  %v2607_v58 = vmul.f32 1.442695, %v2601_v32  ;;  %v2609_v6 = vmul.f32 1.442695, %v2602_v23 }
 0x424   : > { %2838 = vmatmul.bf16.vlgmr.msra.gmra.mxu3 %v2761_v20  ;;  %v2611_v63 = vmul.f32 1.442695, %v2603_v60  ;;  %v2613_v39 = vmul.f32 1.442695, %v2604_v12 }
 0x425   : > { %v2758_v28 = vpop.f32.mrf.mxu3  ;;  %14400 = vpow2.f32 %v2605_v43 }
 0x426   : > { %14402 = vpow2.f32 %v2607_v58  ;;  %v14286_v58 = vld [vmem:[#allocation29] ss:$0 sm:$0xff] }
 0x427   : > { %14404 = vpow2.f32 %v2609_v6 }
 0x428   : > { %14406 = vpow2.f32 %v2611_v63 }
 0x429   : > { %14408 = vpow2.f32 %v2613_v39  ;;  %v14287_v39 = vld [vmem:[#allocation31] ss:$0 sm:$0xff] }
 0x42b   : > { %v14401_v46 = vpop.eup %14400 }
 0x42c   : > { %v14403_v49 = vpop.eup %14402  ;;  %v2615_v61 = vsel %vm1905_vm2, %v14401_v46, 0.0 }
 0x42d   : > { %v14405_v17 = vpop.eup %14404  ;;  %v2616_v57 = vsel %vm1905_vm2, %v14403_v49, 0.0 }
 0x42e   : > { %v14407_v10 = vpop.eup %14406  ;;  %v2617_v52 = vadd.f32 %v2616_v57, %v2615_v61  ;;  %v2618_v30 = vsel %vm1905_vm2, %v14405_v17, 0.0 }
 0x42f   : > { %v14409_v45 = vpop.eup %14408  ;;  %v2620_v24 = vsel %vm1905_vm2, %v14407_v10, 0.0 }
 0x430   : > { %v2619_v53 = vadd.f32 %v2618_v30, %v2617_v52  ;;  %v2622_v29 = vsel %vm1905_vm2, %v14409_v45, 0.0 }
 0x432   : > { %v2621_v7 = vadd.f32 %v2620_v24, %v2619_v53  ;;  %v2112_v24 = vmul.f32 %v16140_v4, %v16228_v62  ;;  %v2129_v4 = vmul.f32 %v16216_v0, %v16228_v62 }
 0x434   : > { %v2623_v13 = vadd.f32 %v2622_v29, %v2621_v7  ;;  %v2115_v7 = vmul.f32 %v16158_v11, %v16228_v62  ;;  %v2118_v29 = vmul.f32 %v16176_v15, %v16228_v62  ;;  %v2138_v11 = vpop.permute.xlu1 %2137  ;;  %v2133_v15 = vpop.permute.xlu0 %2132 }
 0x436   : > { %v2624_v33 = vrot.slane %v2623_v13, 4 }
 0x438   : > { %v2625_v48 = vadd.f32 %v2624_v33, %v2623_v13  ;;  %v2120_v13 = vmul.f32 %v16188_v56, %v16228_v62  ;;  %v2123_v33 = vmul.f32 %v16206_v59, %v16228_v62  ;;  %v2852_v56 = vld [vmem:[%s16896_s4] sm:$0xff]  ;;  %v2256_v59 = vmul.f32 %v2138_v11, %v15642_v36  ;;  %s991_s4 = sshll.u32 %s16912_s2, 4  ;;  %s992_s4 = int_to_ptr.hbm [resolvable:$true] %s991_s4 }
 0x439   : > { %996 = dma.hbm_to_vmem [thread:$0]  %s992_s4, 8192, %s994_s19, [#allocation8 + $0x2] }
 0x43a   : > { %v2626_v35 = vrot.slane %v2625_v48, 2  ;;  %v2281_v62 = vsel %vm1563_vm0, %v2256_v59, 0.0  ;;  %v16897_v59 = vld [vmem:[#allocation59_spill] sm:$0xff] }
 0x43c   : > { %v2627_v38 = vadd.f32 %v2626_v35, %v2625_v48  ;;  %v2143_v48 = vpop.permute.xlu2 %2142  ;;  %v2148_v35 = vpop.permute.xlu1 %2147 }
 0x43d   : > { %v2257_v0 = vmul.f32 %v2143_v48, %v15655_v1 }
 0x43e   : > { %v2628_v22 = vrot.slane %v2627_v38, 1 }
 0x440   : > { %v2629_v47 = vadd.f32 %v2628_v22, %v2627_v38 }
 0x442   : > { %14410 = vrcp.f32 %v2629_v47  ;;  %v2641_v51 = vand.u32 2147483648, %v2629_v47  ;;  %v2639_v37 = vand.u32 2147483647, %v2629_v47  ;;  %vm2635_vm8 = vweird.f32 %v2629_v47 }
 0x444   : > { %v2642_v23 = vor.u32 1.1754944e-38, %v2641_v51  ;;  %vm2640_vm10 = vcmp.eq.f32.partialorder %v2639_v37, 8.507059e+37  ;;  %v2153_v38 = vpop.permute.xlu2 %2152  ;;  %v2158_v22 = vpop.permute.xlu1 %2157  ;;  %v2283_v51 = vsel %vm1563_vm0, %v2257_v0, 0.0 }
 0x445   : > { %v2259_v36 = vmul.f32 %v2153_v38, %v15682_v26 }
 0x448   : > { %v14411_v8 = vpop.eup %14410 }
 0x449   : > { %v2631_v5 = vmul.f32 %v14411_v8, %v2629_v47  ;;  %vm2636_vm7 = vweird.f32 %v14411_v8 }
 0x44a   : > { %vm2637_vm9 = vmor %vm2635_vm8, %vm2636_vm7 }
 0x44b   : > { %v2632_v16 = vsub.f32 1.0, %v2631_v5 }
 0x44c   : > { %v2163_v5 = vpop.permute.xlu2 %2162  ;;  %v2173_v37 = vpop.permute.xlu1 %2172 }
 0x44d   : > { %v2633_v31 = vmul.f32 %v14411_v8, %v2632_v16 }
 0x44f   : > { %v2634_v21 = vadd.f32 %v14411_v8, %v2633_v31 }
 0x451   : > { %v2638_v60 = vsel %vm2637_vm9, %v14411_v8, %v2634_v21  ;;  %v2258_v21 = vmul.f32 %v2148_v35, %v15668_v55 }
 0x452   : > { %v2643_v20 = vsel %vm2640_vm10, %v2642_v23, %v2638_v60 }
 0x453   : > { %v2645_v27 = vmul.f32 %v14403_v49, %v2643_v20  ;;  %v2644_v32 = vmul.f32 %v14401_v46, %v2643_v20  ;;  %v2646_v12 = vmul.f32 %v14405_v17, %v2643_v20  ;;  %v2648_v43 = vmul.f32 %v14409_v45, %v2643_v20 }
 0x454   : > { %v2647_v28 = vmul.f32 %v14407_v10, %v2643_v20  ;;  %v2285_v1 = vsel %vm1563_vm0, %v2258_v21, 0.0 }
 0x455   : > { %2656 = vperm.xlu1 %14278, %v2645_v27   ;;  %2651 = vperm.xlu2 %14275, %v2644_v32   ;;  %v2287_v27 = vsel %vm1563_vm0, %v2259_v36, 0.0 }
 0x45d   : > { %2671 = vperm.xlu1 %14278, %v2648_v43   ;;  %2666 = vperm.xlu2 %14275, %v2647_v28   ;;  %v2260_v43 = vmul.f32 %v2158_v22, %v15693_v42  ;;  %v2261_v28 = vmul.f32 %v2163_v5, %v15708_v3 }
 0x4a7   : > { %v2839_v6 = vpop.f32.mrf.mxu3 }
 0x4a8   : > { %v2840_v63 = vadd.f32 %v14286_v58, %v2839_v6  ;;  %v2178_v6 = vpop.permute.xlu2 %2177 }
 0x4aa   : > { %v16308_v61 = vmax.f32 %v2840_v63, 0.0  ;;  %v2188_v63 = vpop.permute.xlu1 %2187 }
 0x4ac   : > { %2844 = vst [vmem:[#allocation4] sm:$0xff] %v16308_v61  ;;  %v2849_v57 = vmul.f32 %v14287_v39, %v16308_v61  ;;  %v2289_v39 = vsel %vm1563_vm0, %v2260_v43, 0.0 }
 0x4ae   : > { %2850 = vadd.xlane.f32.xlu0 %v2849_v57  ;;  %v2291_v57 = vsel %vm1563_vm0, %v2261_v28, 0.0  ;;  %v16901_v28 = vld [vmem:[#allocation62_spill] sm:$0xff] }
 0x4af   : > { %v2841_v49 = vpop.f32.mrf.mxu3 }
 0x4b2   : > { %v2203_v11 = vpop.permute.xlu1 %2202 }
 0x4b3   : > { %v2899_v46 = vld [vmem:[#allocation4] ss:$4 sm:$0x3]  ;;  %v2901_v17 = vld [vmem:[#allocation4 + $0x1] ss:$4 sm:$0x3] }
 0x4b4   : > { %v2902_v52 = vmax.f32 %v2899_v46, %v2901_v17  ;;  %v2904_v30 = vld [vmem:[#allocation4 + $0x2] ss:$4 sm:$0x3]  ;;  %v2907_v10 = vld [vmem:[#allocation4 + $0x3] ss:$4 sm:$0x3] }
 0x4b6   : > { %v2905_v45 = vmax.f32 %v2902_v52, %v2904_v30  ;;  %v2263_v52 = vmul.f32 %v2173_v37, %v15729_v34 }
 0x4b8   : > { %v16312_v53 = vmax.f32 %v2905_v45, %v2907_v10 }
 0x4c2   : > { %2167 = vperm.xlu0 %14277, %v2112_v24  }
 0x4ca   : > { %2182 = vperm.xlu0 %14277, %v2115_v7   ;;  %v2295_v7 = vsel %vm1563_vm0, %v2263_v52, 0.0 }
 0x4d2   : > { %2197 = vperm.xlu0 %14277, %v2118_v29   ;;  %v2264_v29 = vmul.f32 %v2178_v6, %v15741_v50 }
 0x4d4   : > { %v2297_v34 = vsel %vm1563_vm0, %v2264_v29, 0.0 }
 0x4da   : > { %2207 = vperm.xlu0 %14277, %v2120_v13   ;;  %v2193_v13 = vpop.permute.xlu2 %2192 }
 0x4e2   : > { %2222 = vperm.xlu0 %14277, %v2123_v33  }
 0x4ea   : > { %2237 = vperm.xlu0 %14277, %v16245_v25   ;;  %v2255_v25 = vmul.f32 %v2133_v15, %v15630_v19  ;;  %v2266_v15 = vmul.f32 %v2188_v63, %v15764_v40 }
 0x4ec   : > { %v2280_v16 = vsel %vm1563_vm0, %v2255_v25, 0.0  ;;  %v2301_v50 = vsel %vm1563_vm0, %v2266_v15, 0.0  ;;  %v2213_v25 = vpop.permute.xlu2 %2212 }
 0x4ed   : > { %v2282_v31 = vadd.f32 %v2281_v62, %v2280_v16 }
 0x4ef   : > { %v2284_v60 = vadd.f32 %v2283_v51, %v2282_v31  ;;  %v2218_v51 = vpop.permute.xlu1 %2217 }
 0x4f1   : > { %v2286_v32 = vadd.f32 %v2285_v1, %v2284_v60 }
 0x4f2   : > { %2252 = vperm.xlu0 %14277, %v2129_v4  }
 0x4f3   : > { %v2288_v58 = vadd.f32 %v2287_v27, %v2286_v32 }
 0x4f4   : > { %v2228_v6 = vpop.permute.xlu2 %2227 }
 0x4f5   : > { %v2290_v49 = vadd.f32 %v2289_v39, %v2288_v58 }
 0x4f7   : > { %v2292_v45 = vadd.f32 %v2291_v57, %v2290_v49  ;;  %v2233_v39 = vpop.permute.xlu1 %2232  ;;  %v16902_v49 = vld [vmem:[#allocation64_spill] sm:$0xff] }
 0x4fa   : > { %2661 = vperm.xlu0 %14277, %v2646_v12  }
 0x4ff   : > { %v2248_v15 = vpop.permute.xlu1 %2247 }
 0x521   : > { %v2851_v47 = vpop.xlane.xlu0 %2850 }
 0x522   : > { %v2853_v8 = vadd.f32 %v2852_v56, %v2851_v47  ;;  %v2267_v47 = vmul.f32 %v2193_v13, %v16897_v59 }
 0x524   : > { %14412 = vtanh.f32 %v2853_v8  ;;  %v2303_v31 = vsel %vm1563_vm0, %v2267_v47, 0.0 }
 0x52a   : > { %v14413_v23 = vpop.eup %14412 }
 0x52b   : > { %v2855_v19 = vsel %vm1905_vm2, %v14413_v23, -inf }
 0x52c   : > { %v2856_v20 = vrot.slane %v2855_v19, 4 }
 0x52e   : > { %v2857_v12 = vmax.f32 %v2855_v19, %v2856_v20 }
 0x530   : > { %v2858_v55 = vrot.slane %v2857_v12, 2 }
 0x532   : > { %v2859_v26 = vmax.f32 %v2857_v12, %v2858_v55  ;;  %v16900_v12 = vld [vmem:[#allocation63_spill] sm:$0xff] }
 0x533   : > { %v2271_v43 = vmul.f32 %v2213_v25, %v16900_v12  ;;  %v16906_v25 = vld [vmem:[#allocation69_spill] sm:$0xff] }
 0x534   : > { %v2860_v46 = vrot.slane %v2859_v26, 1  ;;  %v2168_v17 = vpop.permute.xlu0 %2167 }
 0x535   : > { %v2262_v30 = vmul.f32 %v2168_v17, %v15718_v18  ;;  %v2311_v17 = vsel %vm1563_vm0, %v2271_v43, 0.0  ;;  %v16911_v43 = vld [vmem:[#allocation71_spill] sm:$0xff] }
 0x536   : > { %v2861_v42 = vmax.f32 %v2859_v26, %v2860_v46  ;;  %v2272_v46 = vmul.f32 %v2218_v51, %v16902_v49 }
 0x537   : > { %v2293_v3 = vsel %vm1563_vm0, %v2262_v30, 0.0 }
 0x538   : > { %v2862_v10 = vsub.f32 %v14413_v23, %v2861_v42  ;;  %v2294_v24 = vadd.f32 %v2293_v3, %v2292_v45  ;;  %v16899_v23 = vld [vmem:[#allocation61_spill] sm:$0xff]  ;;  %v2313_v45 = vsel %vm1563_vm0, %v2272_v46, 0.0  ;;  %v16903_v42 = vld [vmem:[#allocation66_spill] sm:$0xff] }
 0x539   : > { %v2269_v60 = vmul.f32 %v2203_v11, %v16899_v23  ;;  %v2274_v3 = vmul.f32 %v2228_v6, %v16903_v42  ;;  %v16908_v23 = vld [vmem:[#allocation70_spill] sm:$0xff] }
 0x53a   : > { %v2863_v33 = vmul.f32 1.442695, %v2862_v10  ;;  %v2296_v4 = vadd.f32 %v2295_v7, %v2294_v24  ;;  %v16904_v10 = vld [vmem:[#allocation65_spill] sm:$0xff] }
 0x53b   : > { %v2307_v32 = vsel %vm1563_vm0, %v2269_v60, 0.0  ;;  %v2278_v60 = vmul.f32 %v2248_v15, %v16908_v23 }
 0x53c   : > { %14414 = vpow2.f32 %v2863_v33  ;;  %v2183_v48 = vpop.permute.xlu0 %2182  ;;  %v2298_v35 = vadd.f32 %v2297_v34, %v2296_v4  ;;  %v16905_v4 = vld [vmem:[#allocation67_spill] sm:$0xff] }
 0x53d   : > { %v2265_v18 = vmul.f32 %v2183_v48, %v15755_v14  ;;  %v16898_v14 = vld [vmem:[#allocation60_spill] sm:$0xff]  ;;  %v2275_v11 = vmul.f32 %v2233_v39, %v16905_v4  ;;  %v2243_v48 = vpop.permute.xlu2 %2242  ;;  %v2325_v12 = vsel %vm1563_vm0, %v2278_v60, 0.0 }
 0x53f   : > { %v2299_v38 = vsel %vm1563_vm0, %v2265_v18, 0.0  ;;  %v2317_v18 = vsel %vm1563_vm0, %v2274_v3, 0.0  ;;  %v2319_v47 = vsel %vm1563_vm0, %v2275_v11, 0.0 }
 0x540   : > { %v2300_v22 = vadd.f32 %v2299_v38, %v2298_v35 }
 0x542   : > { %v16354_v56 = vpop.eup %14414  ;;  %v2302_v62 = vadd.f32 %v2301_v50, %v2300_v22 }
 0x543   : > { %v2865_v8 = vsel %vm1905_vm2, %v16354_v56, 0.0 }
 0x544   : > { %v2866_v0 = vrot.slane %v2865_v8, 4  ;;  %v2198_v5 = vpop.permute.xlu0 %2197  ;;  %v2304_v36 = vadd.f32 %v2303_v31, %v2302_v62  ;;  %v16907_v62 = vld [vmem:[#allocation68_spill] sm:$0xff] }
 0x545   : > { %v2268_v16 = vmul.f32 %v2198_v5, %v16898_v14 }
 0x546   : > { %v2867_v40 = vadd.f32 %v2866_v0, %v2865_v8  ;;  %v2277_v0 = vmul.f32 %v2243_v48, %v16906_v25 }
 0x547   : > { %v2305_v37 = vsel %vm1563_vm0, %v2268_v16, 0.0 }
 0x548   : > { %v2868_v21 = vrot.slane %v2867_v40, 2  ;;  %v2306_v20 = vadd.f32 %v2305_v37, %v2304_v36  ;;  %v2652_v37 = vpop.permute.xlu2 %2651 }
 0x54a   : > { %v2869_v19 = vadd.f32 %v2868_v21, %v2867_v40  ;;  %v2308_v55 = vadd.f32 %v2307_v32, %v2306_v20 }
 0x54c   : > { %v2870_v1 = vrot.slane %v2869_v19, 1  ;;  %v2208_v27 = vpop.permute.xlu0 %2207 }
 0x54d   : > { %v2270_v58 = vmul.f32 %v2208_v27, %v16901_v28 }
 0x54e   : > { %v2871_v63 = vadd.f32 %v2870_v1, %v2869_v19  ;;  %v2323_v19 = vsel %vm1563_vm0, %v2277_v0, 0.0  ;;  %v2657_v1 = vpop.permute.xlu1 %2656 }
 0x54f   : > { %v2309_v26 = vsel %vm1563_vm0, %v2270_v58, 0.0  ;;  %v2675_v58 = vmul.f32 %v2657_v1, %v16078_v54 }
 0x550   : > { %v2310_v57 = vadd.f32 %v2309_v26, %v2308_v55  ;;  %14416 = vrcp.f32 %v2871_v63  ;;  %v2883_v22 = vand.u32 2147483648, %v2871_v63  ;;  %v2881_v59 = vand.u32 2147483647, %v2871_v63  ;;  %v2667_v26 = vpop.permute.xlu2 %2666 }
 0x551   : > { %vm2877_vm12 = vweird.f32 %v2871_v63 }
 0x552   : > { %v2312_v52 = vadd.f32 %v2311_v17, %v2310_v57  ;;  %v2884_v51 = vor.u32 1.1754944e-38, %v2883_v22  ;;  %vm2882_vm14 = vcmp.eq.f32.partialorder %v2881_v59, 8.507059e+37  ;;  %v2680_v57 = vsel %vm2503_vm1, %v2675_v58, 0.0 }
 0x554   : > { %v2223_v30 = vpop.permute.xlu0 %2222  ;;  %v2314_v29 = vadd.f32 %v2313_v45, %v2312_v52  ;;  %v2677_v52 = vmul.f32 %v2667_v26, %v16238_v2 }
 0x555   : > { %v2273_v24 = vmul.f32 %v2223_v30, %v16904_v10 }
 0x556   : > { %v14417_v7 = vpop.eup %14416  ;;  %v2672_v54 = vpop.permute.xlu1 %2671 }
 0x557   : > { %v2315_v13 = vsel %vm1563_vm0, %v2273_v24, 0.0  ;;  %v2873_v33 = vmul.f32 %v14417_v7, %v2871_v63  ;;  %vm2878_vm11 = vweird.f32 %v14417_v7  ;;  %v2674_v63 = vmul.f32 %v2652_v37, %v16067_v9 }
 0x558   : > { %v2316_v34 = vadd.f32 %v2315_v13, %v2314_v29  ;;  %vm2879_vm13 = vmor %vm2877_vm12, %vm2878_vm11  ;;  %v2678_v42 = vmul.f32 %v2672_v54, %v16254_v41 }
 0x559   : > { %v2874_v35 = vsub.f32 1.0, %v2873_v33  ;;  %v2679_v17 = vsel %vm2503_vm1, %v2674_v63, 0.0 }
 0x55a   : > { %v2318_v38 = vadd.f32 %v2317_v18, %v2316_v34  ;;  %v2681_v9 = vadd.f32 %v2680_v57, %v2679_v17  ;;  %v2686_v33 = vsel %vm2503_vm1, %v2678_v42, 0.0 }
 0x55b   : > { %v2875_v50 = vmul.f32 %v14417_v7, %v2874_v35 }
 0x55c   : > { %v2238_v8 = vpop.permute.xlu0 %2237  ;;  %v2320_v16 = vadd.f32 %v2319_v47, %v2318_v38 }
 0x55d   : > { %v2276_v5 = vmul.f32 %v2238_v8, %v16907_v62  ;;  %v2876_v14 = vadd.f32 %v14417_v7, %v2875_v50 }
 0x55f   : > { %v2321_v40 = vsel %vm1563_vm0, %v2276_v5, 0.0  ;;  %v2880_v31 = vsel %vm2879_vm13, %v14417_v7, %v2876_v14  ;;  %v2684_v7 = vsel %vm2503_vm1, %v2677_v52, 0.0 }
 0x560   : > { %v2322_v21 = vadd.f32 %v2321_v40, %v2320_v16  ;;  %v2885_v36 = vsel %vm2882_vm14, %v2884_v51, %v2880_v31 }
 0x561   : > { %v2886_v20 = vmul.f32 %v16354_v56, %v2885_v36 }
 0x562   : > { %v2324_v27 = vadd.f32 %v2323_v19, %v2322_v21 }
 0x563   : > { %2889 = vperm.xlu0 %14277, %v2886_v20  }
 0x564   : > { %v2253_v32 = vpop.permute.xlu0 %2252  ;;  %v2326_v28 = vadd.f32 %v2325_v12, %v2324_v27 }
 0x565   : > { %v2279_v56 = vmul.f32 %v2253_v32, %v16911_v43 }
 0x567   : > { %v2327_v6 = vsel %vm1563_vm0, %v2279_v56, 0.0 }
 0x568   : > { %v2328_v55 = vadd.f32 %v2327_v6, %v2326_v28 }
 0x56a   : > { %v2329_v39 = vrot.slane %v2328_v55, 4 }
 0x56c   : > { %v2330_v49 = vadd.f32 %v2329_v39, %v2328_v55  ;;  %v2662_v46 = vpop.permute.xlu0 %2661 }
 0x56d   : > { %v2676_v30 = vmul.f32 %v2662_v46, %v16222_v44 }
 0x56e   : > { %v2331_v45 = vrot.slane %v2330_v49, 2 }
 0x56f   : > { %v2682_v3 = vsel %vm2503_vm1, %v2676_v30, 0.0 }
 0x570   : > { %v2332_v10 = vadd.f32 %v2331_v45, %v2330_v49  ;;  %v2683_v24 = vadd.f32 %v2682_v3, %v2681_v9 }
 0x572   : > { %v2333_v29 = vrot.slane %v2332_v10, 1  ;;  %v2685_v13 = vadd.f32 %v2684_v7, %v2683_v24 }
 0x574   : > { %v16405_v4 = vadd.f32 %v2333_v29, %v2332_v10  ;;  %v2687_v2 = vadd.f32 %v2686_v33, %v2685_v13 }
 0x576   : > { %v2688_v11 = vrot.slane %v2687_v2, 4 }
 0x578   : > { %v2689_v44 = vadd.f32 %v2688_v11, %v2687_v2 }
 0x57a   : > { %v2690_v48 = vrot.slane %v2689_v44, 2 }
 0x57c   : > { %v2691_v34 = vadd.f32 %v2690_v48, %v2689_v44 }
 0x57e   : > { %v2692_v18 = vrot.slane %v2691_v34, 1 }
 0x580   : > { %v16407_v35 = vadd.f32 %v2692_v18, %v2691_v34 }
 0x5d5   : > { %v2890_v41 = vpop.permute.xlu0 %2889 }
 0x5d6   : > { %v2892_v15 = vmul.f32 %v2890_v41, %v16308_v61 }
 0x5d8   : > { %v2893_v38 = vrot.slane %v2892_v15, 4 }
 0x5da   : > { %v2894_v22 = vadd.f32 %v2893_v38, %v2892_v15 }
 0x5dc   : > { %v2895_v50 = vrot.slane %v2894_v22, 2 }
 0x5de   : > { %v2896_v59 = vadd.f32 %v2895_v50, %v2894_v22 }
 0x5e0   : > { %v2897_v47 = vrot.slane %v2896_v59, 1 }
 0x5e2   : > { %v16410_v8 = vadd.f32 %v2897_v47, %v2896_v59 }
 0x5e3   : > { %15077 = dma.done.wait [#allocation8], 30720 }
 0x5e4   : > { %15078 = vsyncadd [#allocation8], 4294936576 }
 0x5e5   : > { %15079 = dma.done.wait [#allocation8 + $0x1], 65536 }
 0x5e6   : > { %15080 = vsyncadd [#allocation8 + $0x1], 4294901760 }
 0x5e7   : > { %15081 = dma.done.wait [#allocation8 + $0x2], 8192 }
 0x5e8   : > { %15082 = vsyncadd [#allocation8 + $0x2], 4294959104  ;;  %v9990_v25 = vld [vmem:[#allocation5 + $0x140] sm:$0xf]  ;;  %v13237_v62 = vld [vmem:[#allocation5 + $0x144] sm:$0xf]  ;;  %v16414_v22 = vpack.c.bf16 %v16407_v35, %v16407_v35 }
 0x5e9   : > { %v13241_v0 = vld [vmem:[#allocation5 + $0x15c] sm:$0xf0]  ;;  %v9992_v14 = vld [vmem:[#allocation5 + $0x160] sm:$0xf0]  ;;  %v9998_v16 = vld [vmem:[#allocation5 + $0x148] sm:$0xf] }
 0x5ea   : > { %v9991_v5 = vor.u32 %v13241_v0, %v9990_v25  ;;  %v13242_v61 = vld [vmem:[#allocation5 + $0x164] sm:$0xf0]  ;;  %v9995_v51 = vor.u32 %v13237_v62, %v9992_v14  ;;  %v10350_v31 = vld [vmem:[#allocation5 + $0x358] sm:$0xf]  ;;  %v9958_v21 = vld [vmem:[#allocation5 + $0x100] sm:$0xf] }
 0x5eb   : > { %v9999_v40 = vor.u32 %v13242_v61, %v9998_v16  ;;  %v13308_v37 = vld [vmem:[#allocation5 + $0x374] sm:$0xf0]  ;;  %v13233_v23 = vld [vmem:[#allocation5 + $0x11c] sm:$0xf0]  ;;  %v13229_v60 = vld [vmem:[#allocation5 + $0x104] sm:$0xf] }
 0x5ec   : > { %3137 = vmatpush.bf16.msrb.mxu1 %v9991_v5  ;;  %v10351_v36 = vor.u32 %v13308_v37, %v10350_v31  ;;  %v9960_v19 = vld [vmem:[#allocation5 + $0x120] sm:$0xf0]  ;;  %3150 = vmatpush.bf16.msrb.mxu2 %v9995_v51  ;;  %v9959_v20 = vor.u32 %v13233_v23, %v9958_v21  ;;  %v9966_v27 = vld [vmem:[#allocation5 + $0x108] sm:$0xf]  ;;  %v10318_v12 = vld [vmem:[#allocation5 + $0x318] sm:$0xf] }
 0x5ed   : > { %3163 = vmatpush.bf16.msrb.mxu3 %v9999_v40  ;;  %v9963_v1 = vor.u32 %v13229_v60, %v9960_v19  ;;  %v13234_v32 = vld [vmem:[#allocation5 + $0x124] sm:$0xf0]  ;;  %v13300_v56 = vld [vmem:[#allocation5 + $0x334] sm:$0xf0]  ;;  %v9926_v28 = vld [vmem:[#allocation5 + $0xc0] sm:$0xf] }
 0x5ee   : > { %3887 = vmatpush.bf16.msrb.mxu0 %v10351_v36  ;;  %v9967_v43 = vor.u32 %v13234_v32, %v9966_v27  ;;  %v13225_v58 = vld [vmem:[#allocation5 + $0xdc] sm:$0xf0]  ;;  %v10319_v6 = vor.u32 %v13300_v56, %v10318_v12  ;;  %v13221_v55 = vld [vmem:[#allocation5 + $0xc4] sm:$0xf]  ;;  %v9934_v26 = vld [vmem:[#allocation5 + $0xc8] sm:$0xf] }
 0x5ef   : > { %v9928_v63 = vld [vmem:[#allocation5 + $0xe0] sm:$0xf0]  ;;  %v9927_v39 = vor.u32 %v13225_v58, %v9926_v28  ;;  %v13226_v57 = vld [vmem:[#allocation5 + $0xe4] sm:$0xf0]  ;;  %v10286_v54 = vld [vmem:[#allocation5 + $0x2d8] sm:$0xf] }
 0x5f0   : > { %3138 = vmatpush.bf16.msrb.mxu1 %v9959_v20  ;;  %v13292_v49 = vld [vmem:[#allocation5 + $0x2f4] sm:$0xf0]  ;;  %3151 = vmatpush.bf16.msrb.mxu2 %v9963_v1  ;;  %v9931_v46 = vor.u32 %v13221_v55, %v9928_v63  ;;  %v9935_v17 = vor.u32 %v13226_v57, %v9934_v26  ;;  %v9894_v52 = vld [vmem:[#allocation5 + $0x80] sm:$0xf]  ;;  %v13213_v9 = vld [vmem:[#allocation5 + $0x84] sm:$0xf] }
 0x5f1   : > { %3164 = vmatpush.bf16.msrb.mxu3 %v9967_v43  ;;  %v13217_v30 = vld [vmem:[#allocation5 + $0x9c] sm:$0xf0]  ;;  %v10287_v45 = vor.u32 %v13292_v49, %v10286_v54  ;;  %v9896_v42 = vld [vmem:[#allocation5 + $0xa0] sm:$0xf0]  ;;  %v9902_v3 = vld [vmem:[#allocation5 + $0x88] sm:$0xf] }
 0x5f2   : > { %3888 = vmatpush.bf16.msrb.mxu0 %v10319_v6  ;;  %v13218_v10 = vld [vmem:[#allocation5 + $0xa4] sm:$0xf0]  ;;  %v10254_v24 = vld [vmem:[#allocation5 + $0x298] sm:$0xf]  ;;  %v13238_v29 = vld [vmem:[#allocation5 + $0x14c] sm:$0xf]  ;;  %v9895_v13 = vor.u32 %v13217_v30, %v9894_v52  ;;  %v9899_v44 = vor.u32 %v13213_v9, %v9896_v42 }
 0x5f3   : > { %v13284_v7 = vld [vmem:[#allocation5 + $0x2b4] sm:$0xf0]  ;;  %v10000_v33 = vld [vmem:[#allocation5 + $0x168] sm:$0xf0]  ;;  %v10006_v2 = vld [vmem:[#allocation5 + $0x150] sm:$0xf]  ;;  %v9903_v48 = vor.u32 %v13218_v10, %v9902_v3 }
 0x5f4   : > { %3139 = vmatpush.bf16.msrb.mxu1 %v9927_v39  ;;  %v13243_v11 = vld [vmem:[#allocation5 + $0x16c] sm:$0xf0]  ;;  %3152 = vmatpush.bf16.msrb.mxu2 %v9931_v46  ;;  %v10255_v34 = vor.u32 %v13284_v7, %v10254_v24  ;;  %v10003_v18 = vor.u32 %v13238_v29, %v10000_v33  ;;  %v13239_v41 = vld [vmem:[#allocation5 + $0x154] sm:$0xf]  ;;  %v10222_v38 = vld [vmem:[#allocation5 + $0x258] sm:$0xf] }
 0x5f5   : > { %3165 = vmatpush.bf16.msrb.mxu3 %v9935_v17  ;;  %v10008_v15 = vld [vmem:[#allocation5 + $0x170] sm:$0xf0]  ;;  %v10007_v50 = vor.u32 %v13243_v11, %v10006_v2  ;;  %v13276_v59 = vld [vmem:[#allocation5 + $0x274] sm:$0xf0]  ;;  %v13230_v47 = vld [vmem:[#allocation5 + $0x10c] sm:$0xf] }
 0x5f6   : > { %3889 = vmatpush.bf16.msrb.mxu0 %v10287_v45  ;;  %v9968_v25 = vld [vmem:[#allocation5 + $0x128] sm:$0xf0]  ;;  %v9974_v0 = vld [vmem:[#allocation5 + $0x110] sm:$0xf]  ;;  %v10011_v5 = vor.u32 %v13239_v41, %v10008_v15  ;;  %v10223_v14 = vor.u32 %v13276_v59, %v10222_v38  ;;  %v13231_v61 = vld [vmem:[#allocation5 + $0x114] sm:$0xf] }
 0x5f7   : > { %v13235_v62 = vld [vmem:[#allocation5 + $0x12c] sm:$0xf0]  ;;  %v9971_v16 = vor.u32 %v13230_v47, %v9968_v25  ;;  %v9976_v51 = vld [vmem:[#allocation5 + $0x130] sm:$0xf0]  ;;  %v10190_v40 = vld [vmem:[#allocation5 + $0x218] sm:$0xf] }
 0x5f8   : > { %3140 = vmatpush.bf16.msrb.mxu1 %v9895_v13  ;;  %3153 = vmatpush.bf16.msrb.mxu2 %v9899_v44  ;;  %v9975_v35 = vor.u32 %v13235_v62, %v9974_v0  ;;  %v13268_v31 = vld [vmem:[#allocation5 + $0x234] sm:$0xf0]  ;;  %v13222_v37 = vld [vmem:[#allocation5 + $0xcc] sm:$0xf]  ;;  %v9942_v36 = vld [vmem:[#allocation5 + $0xd0] sm:$0xf]  ;;  %v9979_v60 = vor.u32 %v13231_v61, %v9976_v51  ;;  %v16424_v61 = vpack.c.bf16 %v16410_v8, %v16410_v8 }
 0x5f9   : > { %3166 = vmatpush.bf16.msrb.mxu3 %v9903_v48  ;;  %v9936_v21 = vld [vmem:[#allocation5 + $0xe8] sm:$0xf0]  ;;  %v13227_v23 = vld [vmem:[#allocation5 + $0xec] sm:$0xf0]  ;;  %v13223_v19 = vld [vmem:[#allocation5 + $0xd4] sm:$0xf]  ;;  %v10191_v20 = vor.u32 %v13268_v31, %v10190_v40 }
 0x5fa   : > { %3890 = vmatpush.bf16.msrb.mxu0 %v10255_v34  ;;  %v9939_v1 = vor.u32 %v13222_v37, %v9936_v21  ;;  %v9944_v27 = vld [vmem:[#allocation5 + $0xf0] sm:$0xf0]  ;;  %v10158_v32 = vld [vmem:[#allocation5 + $0x1d8] sm:$0xf]  ;;  %v9943_v43 = vor.u32 %v13227_v23, %v9942_v36  ;;  %v13214_v56 = vld [vmem:[#allocation5 + $0x8c] sm:$0xf] }
 0x5fb   : > { %10020 = vmatmul.msk.bf16.vlgmr.msrb.gmra.mxu1 %vm2503_vm1, %v16414_v22  ;;  %10021 = vmatmul.msk.bf16.vlgmr.msrb.gmra.mxu2 %vm2503_vm1, %v16414_v22  ;;  %v13260_v12 = vld [vmem:[#allocation5 + $0x1f4] sm:$0xf0]  ;;  %v9904_v28 = vld [vmem:[#allocation5 + $0xa8] sm:$0xf0]  ;;  %v9910_v58 = vld [vmem:[#allocation5 + $0x90] sm:$0xf]  ;;  %v9947_v26 = vor.u32 %v13223_v19, %v9944_v27 }
 0x5fc   : > { %3176 = vmatpush.bf16.msra.mxu1 %v10003_v18  ;;  %3189 = vmatpush.bf16.msra.mxu2 %v10007_v50  ;;  %v13219_v6 = vld [vmem:[#allocation5 + $0xac] sm:$0xf0]  ;;  %v10014_v55 = vld [vmem:[#allocation5 + $0x158] sm:$0xf]  ;;  %v13240_v39 = vld [vmem:[#allocation5 + $0x15c] sm:$0xf]  ;;  %v10159_v54 = vor.u32 %v13260_v12, %v10158_v32  ;;  %v9907_v49 = vor.u32 %v13214_v56, %v9904_v28 }
 0x5fd   : > { %10022 = vmatmul.msk.bf16.vlgmr.msrb.gmra.mxu3 %vm2503_vm1, %v16414_v22  ;;  %v13244_v63 = vld [vmem:[#allocation5 + $0x174] sm:$0xf0]  ;;  %v10016_v57 = vld [vmem:[#allocation5 + $0x178] sm:$0xf0]  ;;  %v13215_v46 = vld [vmem:[#allocation5 + $0x94] sm:$0xf]  ;;  %v9911_v52 = vor.u32 %v13219_v6, %v9910_v58 }
 0x5fe   : > { %3202 = vmatpush.bf16.msra.mxu3 %v10011_v5  ;;  %3891 = vmatpush.bf16.msrb.mxu0 %v10223_v14  ;;  %v9912_v17 = vld [vmem:[#allocation5 + $0xb0] sm:$0xf0]  ;;  %v10126_v30 = vld [vmem:[#allocation5 + $0x198] sm:$0xf]  ;;  %v10590_v45 = vld [vmem:[#allocation5 + $0x548] sm:$0xf]  ;;  %v10015_v42 = vor.u32 %v13244_v63, %v10014_v55  ;;  %v10019_v10 = vor.u32 %v13240_v39, %v10016_v57 }
 0x5ff   : > { %v13252_v9 = vld [vmem:[#allocation5 + $0x1b4] sm:$0xf0]  ;;  %v13370_v3 = vld [vmem:[#allocation5 + $0x564] sm:$0xf0]  ;;  %v10062_v24 = vld [vmem:[#allocation5 + $0x40] sm:$0xf]  ;;  %v9915_v29 = vor.u32 %v13215_v46, %v9912_v17 }
 0x600   : > { %3177 = vmatpush.bf16.msra.mxu1 %v9971_v16  ;;  %3190 = vmatpush.bf16.msra.mxu2 %v9975_v35  ;;  %v13209_v7 = vld [vmem:[#allocation5 + $0x5c] sm:$0xf0]  ;;  %v9982_v13 = vld [vmem:[#allocation5 + $0x118] sm:$0xf]  ;;  %v10127_v33 = vor.u32 %v13252_v9, %v10126_v30  ;;  %v13232_v11 = vld [vmem:[#allocation5 + $0x11c] sm:$0xf]  ;;  %v10591_v34 = vor.u32 %v13370_v3, %v10590_v45 }
 0x601   : > { %v13236_v2 = vld [vmem:[#allocation5 + $0x134] sm:$0xf0]  ;;  %v9984_v44 = vld [vmem:[#allocation5 + $0x138] sm:$0xf0]  ;;  %v10063_v48 = vor.u32 %v13209_v7, %v10062_v24  ;;  %v10030_v18 = vld [vmem:[#allocation5] sm:$0xf] }
 0x602   : > { %3203 = vmatpush.bf16.msra.mxu3 %v9979_v60  ;;  %3892 = vmatpush.bf16.msrb.mxu0 %v10191_v20  ;;  %v13201_v41 = vld [vmem:[#allocation5 + $0x1c] sm:$0xf0]  ;;  %v10558_v15 = vld [vmem:[#allocation5 + $0x508] sm:$0xf]  ;;  %v9983_v50 = vor.u32 %v13236_v2, %v9982_v13  ;;  %v9987_v59 = vor.u32 %v13232_v11, %v9984_v44  ;;  %v9950_v47 = vld [vmem:[#allocation5 + $0xd8] sm:$0xf]  ;;  %v16435_v13 = vpack.c.bf16 %v16405_v4, %v16405_v4 }
 0x603   : > { %v13362_v38 = vld [vmem:[#allocation5 + $0x524] sm:$0xf0]  ;;  %v13228_v25 = vld [vmem:[#allocation5 + $0xf4] sm:$0xf0]  ;;  %v13206_v0 = vld [vmem:[#allocation5 + $0x4c] sm:$0xf]  ;;  %v10031_v14 = vor.u32 %v13201_v41, %v10030_v18 }
 0x604   : > { %3178 = vmatpush.bf16.msra.mxu1 %v9939_v1  ;;  %3191 = vmatpush.bf16.msra.mxu2 %v9943_v43  ;;  %v13224_v62 = vld [vmem:[#allocation5 + $0xdc] sm:$0xf]  ;;  %v10072_v16 = vld [vmem:[#allocation5 + $0x68] sm:$0xf0]  ;;  %v10559_v51 = vor.u32 %v13362_v38, %v10558_v15  ;;  %v10526_v40 = vld [vmem:[#allocation5 + $0x4c8] sm:$0xf]  ;;  %v9951_v8 = vor.u32 %v13228_v25, %v9950_v47 }
 0x605   : > { %v9952_v5 = vld [vmem:[#allocation5 + $0xf8] sm:$0xf0]  ;;  %v10075_v35 = vor.u32 %v13206_v0, %v10072_v16  ;;  %v13354_v31 = vld [vmem:[#allocation5 + $0x4e4] sm:$0xf0]  ;;  %v13198_v37 = vld [vmem:[#allocation5 + $0xc] sm:$0xf] }
 0x606   : > { %3204 = vmatpush.bf16.msra.mxu3 %v9947_v26  ;;  %3893 = vmatpush.bf16.msrb.mxu0 %v10159_v54  ;;  %v10040_v21 = vld [vmem:[#allocation5 + $0x28] sm:$0xf0]  ;;  %v9955_v36 = vor.u32 %v13224_v62, %v9952_v5  ;;  %v9918_v23 = vld [vmem:[#allocation5 + $0x98] sm:$0xf]  ;;  %v13216_v19 = vld [vmem:[#allocation5 + $0x9c] sm:$0xf]  ;;  %v10527_v27 = vor.u32 %v13354_v31, %v10526_v40 }
 0x607   : > { %v13220_v60 = vld [vmem:[#allocation5 + $0xb4] sm:$0xf0]  ;;  %v9920_v20 = vld [vmem:[#allocation5 + $0xb8] sm:$0xf0]  ;;  %v10070_v1 = vld [vmem:[#allocation5 + $0x48] sm:$0xf]  ;;  %v10043_v56 = vor.u32 %v13198_v37, %v10040_v21 }
 0x608   : > { %3179 = vmatpush.bf16.msra.mxu1 %v9907_v49  ;;  %3192 = vmatpush.bf16.msra.mxu2 %v9911_v52  ;;  %v13210_v32 = vld [vmem:[#allocation5 + $0x64] sm:$0xf0]  ;;  %v13205_v12 = vld [vmem:[#allocation5 + $0x44] sm:$0xf]  ;;  %v9919_v6 = vor.u32 %v13220_v60, %v9918_v23  ;;  %v9923_v55 = vor.u32 %v13216_v19, %v9920_v20  ;;  %v13207_v30 = vld [vmem:[#allocation5 + $0x54] sm:$0xf]  ;;  %v16445_v23 = vpack.c.bf16 %v16312_v53, %v16312_v53 }
 0x609   : > { %v10064_v43 = vld [vmem:[#allocation5 + $0x60] sm:$0xf0]  ;;  %v10494_v28 = vld [vmem:[#allocation5 + $0x488] sm:$0xf]  ;;  %v10071_v63 = vor.u32 %v13210_v32, %v10070_v1  ;;  %v10080_v45 = vld [vmem:[#allocation5 + $0x70] sm:$0xf0] }
 0x60a   : > { %3205 = vmatpush.bf16.msra.mxu3 %v9915_v29  ;;  %3894 = vmatpush.bf16.msrb.mxu0 %v10127_v33  ;;  %v13346_v58 = vld [vmem:[#allocation5 + $0x4a4] sm:$0xf0]  ;;  %v10067_v26 = vor.u32 %v13205_v12, %v10064_v43  ;;  %v13197_v49 = vld [vmem:[#allocation5 + $0x4] sm:$0xf]  ;;  %v13212_v3 = vld [vmem:[#allocation5 + $0x74] sm:$0xf0]  ;;  %v10083_v11 = vor.u32 %v13207_v30, %v10080_v45 }
 0x60b   : > { %10023 = vmatmul.msk.bf16.vlgmr.msra.gmra.mxu1 %vm2503_vm1, %v16414_v22  ;;  %10024 = vmatmul.msk.bf16.vlgmr.msra.gmra.mxu2 %vm2503_vm1, %v16414_v22  ;;  %v10038_v39 = vld [vmem:[#allocation5 + $0x8] sm:$0xf]  ;;  %v10495_v57 = vor.u32 %v13346_v58, %v10494_v28  ;;  %v10032_v46 = vld [vmem:[#allocation5 + $0x20] sm:$0xf0]  ;;  %v10078_v7 = vld [vmem:[#allocation5 + $0x50] sm:$0xf] }
 0x60c   : > { %3215 = vmatpush.bf16.msrb.mxu1 %v10015_v42  ;;  %3228 = vmatpush.bf16.msrb.mxu2 %v10019_v10  ;;  %v13202_v54 = vld [vmem:[#allocation5 + $0x24] sm:$0xf0]  ;;  %v10086_v42 = vld [vmem:[#allocation5 + $0x58] sm:$0xf]  ;;  %v10035_v10 = vor.u32 %v13197_v49, %v10032_v46  ;;  %v13211_v29 = vld [vmem:[#allocation5 + $0x6c] sm:$0xf0] }
 0x60d   : > { %10025 = vmatmul.msk.bf16.vlgmr.msra.gmra.mxu3 %vm2503_vm1, %v16414_v22  ;;  %3895 = vmatmul.bf16.vlgmr.msrb.gmra.mxu0 %v16424_v61  ;;  %v10462_v17 = vld [vmem:[#allocation5 + $0x448] sm:$0xf]  ;;  %v10039_v9 = vor.u32 %v13202_v54, %v10038_v39  ;;  %v10087_v44 = vor.u32 %v13212_v3, %v10086_v42  ;;  %v10054_v18 = vld [vmem:[#allocation5 + $0x18] sm:$0xf]  ;;  %v10079_v15 = vor.u32 %v13211_v29, %v10078_v7  ;;  %v10326_v21 = vld [vmem:[#allocation5 + $0x340] sm:$0xf] }
 0x60e   : > { %3326 = vmatpush.bf16.msrb.mxu3 %v10063_v48  ;;  %4332 = vmatpush.bf16.msra.mxu0 %v10591_v34  ;;  %v13338_v52 = vld [vmem:[#allocation5 + $0x464] sm:$0xf0]  ;;  %v13199_v48 = vld [vmem:[#allocation5 + $0x14] sm:$0xf]  ;;  %v13204_v41 = vld [vmem:[#allocation5 + $0x34] sm:$0xf0] }
 0x60f   : > { %v10463_v24 = vor.u32 %v13338_v52, %v10462_v17  ;;  %v10430_v33 = vld [vmem:[#allocation5 + $0x408] sm:$0xf]  ;;  %v10048_v34 = vld [vmem:[#allocation5 + $0x30] sm:$0xf0]  ;;  %v10055_v0 = vor.u32 %v13204_v41, %v10054_v18  ;;  %v13372_v40 = vld [vmem:[#allocation5 + $0x574] sm:$0xf0] }
 0x610   : > { %3216 = vmatpush.bf16.msrb.mxu1 %v9983_v50  ;;  %3229 = vmatpush.bf16.msrb.mxu2 %v9987_v59  ;;  %v13330_v2 = vld [vmem:[#allocation5 + $0x424] sm:$0xf0]  ;;  %v10046_v50 = vld [vmem:[#allocation5 + $0x10] sm:$0xf]  ;;  %v10051_v25 = vor.u32 %v13199_v48, %v10048_v34  ;;  %v10574_v31 = vld [vmem:[#allocation5 + $0x518] sm:$0xf] }
 0x611   : > { %v10431_v38 = vor.u32 %v13330_v2, %v10430_v33  ;;  %v13203_v59 = vld [vmem:[#allocation5 + $0x2c] sm:$0xf0]  ;;  %v10398_v4 = vld [vmem:[#allocation5 + $0x3c8] sm:$0xf]  ;;  %v13364_v37 = vld [vmem:[#allocation5 + $0x534] sm:$0xf0] }
 0x612   : > { %3327 = vmatpush.bf16.msrb.mxu3 %v10031_v14  ;;  %4333 = vmatpush.bf16.msra.mxu0 %v10559_v51  ;;  %v13322_v47 = vld [vmem:[#allocation5 + $0x3e4] sm:$0xf0]  ;;  %v10047_v62 = vor.u32 %v13203_v59, %v10046_v50  ;;  %v10606_v51 = vld [vmem:[#allocation5 + $0x558] sm:$0xf]  ;;  %v10328_v60 = vld [vmem:[#allocation5 + $0x360] sm:$0xf0]  ;;  %v10575_v1 = vor.u32 %v13364_v37, %v10574_v31 }
 0x613   : > { %v10399_v5 = vor.u32 %v13322_v47, %v10398_v4  ;;  %v10366_v14 = vld [vmem:[#allocation5 + $0x388] sm:$0xf]  ;;  %v13208_v19 = vld [vmem:[#allocation5 + $0x5c] sm:$0xf]  ;;  %v10542_v32 = vld [vmem:[#allocation5 + $0x4d8] sm:$0xf] }
 0x614   : > { %3217 = vmatpush.bf16.msrb.mxu1 %v9951_v8  ;;  %3230 = vmatpush.bf16.msrb.mxu2 %v9955_v36  ;;  %v13314_v16 = vld [vmem:[#allocation5 + $0x3a4] sm:$0xf0]  ;;  %v13305_v8 = vld [vmem:[#allocation5 + $0x35c] sm:$0xf0]  ;;  %v13301_v36 = vld [vmem:[#allocation5 + $0x344] sm:$0xf] }
 0x615   : > { %v10088_v20 = vld [vmem:[#allocation5 + $0x78] sm:$0xf0]  ;;  %v13356_v12 = vld [vmem:[#allocation5 + $0x4f4] sm:$0xf0]  ;;  %v10331_v43 = vor.u32 %v13301_v36, %v10328_v60  ;;  %v13297_v28 = vld [vmem:[#allocation5 + $0x31c] sm:$0xf0] }
 0x616   : > { %3365 = vmatpush.bf16.msra.mxu3 %v10075_v35  ;;  %4334 = vmatpush.bf16.msra.mxu0 %v10527_v27  ;;  %v10607_v35 = vor.u32 %v13372_v40, %v10606_v51  ;;  %v10327_v27 = vor.u32 %v13305_v8, %v10326_v21  ;;  %v13293_v58 = vld [vmem:[#allocation5 + $0x304] sm:$0xf]  ;;  %v13348_v54 = vld [vmem:[#allocation5 + $0x4b4] sm:$0xf0]  ;;  %v10262_v46 = vld [vmem:[#allocation5 + $0x2c0] sm:$0xf] }
 0x617   : > { %v10296_v53 = vld [vmem:[#allocation5 + $0x320] sm:$0xf0]  ;;  %v13289_v17 = vld [vmem:[#allocation5 + $0x2dc] sm:$0xf0]  ;;  %v10478_v3 = vld [vmem:[#allocation5 + $0x458] sm:$0xf] }
 0x618   : > { %3218 = vmatpush.bf16.msrb.mxu1 %v9919_v6  ;;  %3231 = vmatpush.bf16.msrb.mxu2 %v9923_v55  ;;  %v10091_v6 = vor.u32 %v13208_v19, %v10088_v20  ;;  %v13200_v55 = vld [vmem:[#allocation5 + $0x1c] sm:$0xf]  ;;  %v10299_v49 = vor.u32 %v13293_v58, %v10296_v53  ;;  %v13285_v30 = vld [vmem:[#allocation5 + $0x2c4] sm:$0xf]  ;;  %v10263_v42 = vor.u32 %v13289_v17, %v10262_v46  ;;  %v10230_v7 = vld [vmem:[#allocation5 + $0x280] sm:$0xf] }
 0x619   : > { %v13281_v29 = vld [vmem:[#allocation5 + $0x29c] sm:$0xf0]  ;;  %v13277_v33 = vld [vmem:[#allocation5 + $0x284] sm:$0xf]  ;;  %v10446_v48 = vld [vmem:[#allocation5 + $0x418] sm:$0xf] }
 0x61a   : > { %3366 = vmatpush.bf16.msra.mxu3 %v10043_v56  ;;  %4335 = vmatpush.bf16.msra.mxu0 %v10495_v57  ;;  %v10294_v56 = vld [vmem:[#allocation5 + $0x300] sm:$0xf]  ;;  %v10510_v57 = vld [vmem:[#allocation5 + $0x498] sm:$0xf]  ;;  %v10232_v2 = vld [vmem:[#allocation5 + $0x2a0] sm:$0xf0] }
 0x61b   : > { %10026 = vmatmul.msk.bf16.vlgmr.msrb.gmra.mxu1 %vm2503_vm1, %v16414_v22  ;;  %10027 = vmatmul.msk.bf16.vlgmr.msrb.gmra.mxu2 %vm2503_vm1, %v16414_v22  ;;  %v10367_v22 = vor.u32 %v13314_v16, %v10366_v14  ;;  %v10295_v39 = vor.u32 %v13297_v28, %v10294_v56  ;;  %v10511_v45 = vor.u32 %v13348_v54, %v10510_v57  ;;  %v13332_v34 = vld [vmem:[#allocation5 + $0x434] sm:$0xf0]  ;;  %v10198_v41 = vld [vmem:[#allocation5 + $0x240] sm:$0xf]  ;;  %v10200_v50 = vld [vmem:[#allocation5 + $0x260] sm:$0xf0] }
 0x61c   : > { %3352 = vmatpush.bf16.msra.mxu2 %v10071_v63  ;;  %3339 = vmatpush.bf16.msra.mxu1 %v10067_v26  ;;  %v10056_v63 = vld [vmem:[#allocation5 + $0x38] sm:$0xf0]  ;;  %v10543_v26 = vor.u32 %v13356_v12, %v10542_v32  ;;  %v10235_v18 = vor.u32 %v13277_v33, %v10232_v2  ;;  %v10334_v59 = vld [vmem:[#allocation5 + $0x348] sm:$0xf]  ;;  %v10447_v47 = vor.u32 %v13332_v34, %v10446_v48  ;;  %v10166_v16 = vld [vmem:[#allocation5 + $0x200] sm:$0xf] }
 0x61d   : > { %10092 = vmatmul.msk.bf16.vlgmr.msrb.gmra.mxu3 %vm1563_vm0, %v16435_v13  ;;  %v10059_v52 = vor.u32 %v13200_v55, %v10056_v63  ;;  %v13306_v4 = vld [vmem:[#allocation5 + $0x364] sm:$0xf0]  ;;  %v13265_v51 = vld [vmem:[#allocation5 + $0x21c] sm:$0xf0]  ;;  %v13261_v40 = vld [vmem:[#allocation5 + $0x204] sm:$0xf] }
 0x61e   : > { %4336 = vmatpush.bf16.msra.mxu0 %v10463_v24  ;;  %3404 = vmatpush.bf16.msrb.mxu3 %v10087_v44  ;;  %v10231_v44 = vor.u32 %v13281_v29, %v10230_v7  ;;  %v10335_v14 = vor.u32 %v13306_v4, %v10334_v59  ;;  %v13298_v31 = vld [vmem:[#allocation5 + $0x324] sm:$0xf0]  ;;  %v10382_v21 = vld [vmem:[#allocation5 + $0x398] sm:$0xf]  ;;  %v10167_v8 = vor.u32 %v13265_v51, %v10166_v16  ;;  %v10134_v60 = vld [vmem:[#allocation5 + $0x1c0] sm:$0xf] }
 0x61f   : > { %v13316_v36 = vld [vmem:[#allocation5 + $0x3b4] sm:$0xf0]  ;;  %v13257_v19 = vld [vmem:[#allocation5 + $0x1dc] sm:$0xf0]  ;;  %v10846_v32 = vld [vmem:[#allocation5 + $0x748] sm:$0xf] }
 0x620   : > { %3353 = vmatpush.bf16.msra.mxu2 %v10039_v9  ;;  %3340 = vmatpush.bf16.msra.mxu1 %v10035_v10  ;;  %v10264_v9 = vld [vmem:[#allocation5 + $0x2e0] sm:$0xf0]  ;;  %v13340_v10 = vld [vmem:[#allocation5 + $0x474] sm:$0xf0]  ;;  %v13434_v12 = vld [vmem:[#allocation5 + $0x764] sm:$0xf0]  ;;  %v10383_v58 = vor.u32 %v13316_v36, %v10382_v21 }
 0x621   : > { %v10267_v24 = vor.u32 %v13285_v30, %v10264_v9  ;;  %v10270_v56 = vld [vmem:[#allocation5 + $0x2c8] sm:$0xf]  ;;  %v10847_v53 = vor.u32 %v13434_v12, %v10846_v32  ;;  %v10102_v55 = vld [vmem:[#allocation5 + $0x180] sm:$0xf]  ;;  %v10104_v54 = vld [vmem:[#allocation5 + $0x1a0] sm:$0xf0] }
 0x622   : > { %4337 = vmatpush.bf16.msra.mxu0 %v10431_v38  ;;  %3405 = vmatpush.bf16.msrb.mxu3 %v10055_v0  ;;  %v13269_v38 = vld [vmem:[#allocation5 + $0x244] sm:$0xf]  ;;  %v10414_v0 = vld [vmem:[#allocation5 + $0x3d8] sm:$0xf]  ;;  %v13290_v28 = vld [vmem:[#allocation5 + $0x2e4] sm:$0xf0] }
 0x623   : > { %v13249_v63 = vld [vmem:[#allocation5 + $0x19c] sm:$0xf0]  ;;  %v10271_v57 = vor.u32 %v13290_v28, %v10270_v56  ;;  %v13426_v46 = vld [vmem:[#allocation5 + $0x724] sm:$0xf0]  ;;  %v13302_v30 = vld [vmem:[#allocation5 + $0x34c] sm:$0xf] }
 0x624   : > { %3391 = vmatpush.bf16.msrb.mxu2 %v10083_v11  ;;  %3378 = vmatpush.bf16.msrb.mxu1 %v10079_v15  ;;  %v10479_v11 = vor.u32 %v13340_v10, %v10478_v3  ;;  %v13273_v15 = vld [vmem:[#allocation5 + $0x25c] sm:$0xf0]  ;;  %v10238_v17 = vld [vmem:[#allocation5 + $0x288] sm:$0xf]  ;;  %v10336_v9 = vld [vmem:[#allocation5 + $0x368] sm:$0xf0]  ;;  %v10103_v3 = vor.u32 %v13249_v63, %v10102_v55 }
 0x625   : > { %v10782_v29 = vld [vmem:[#allocation5 + $0x6c8] sm:$0xf]  ;;  %v10339_v2 = vor.u32 %v13302_v30, %v10336_v9  ;;  %v13294_v34 = vld [vmem:[#allocation5 + $0x30c] sm:$0xf]  ;;  %v10278_v16 = vld [vmem:[#allocation5 + $0x2d0] sm:$0xf] }
 0x626   : > { %4338 = vmatpush.bf16.msra.mxu0 %v10399_v5  ;;  %v10203_v5 = vor.u32 %v13269_v38, %v10200_v50  ;;  %v13418_v33 = vld [vmem:[#allocation5 + $0x6e4] sm:$0xf0]  ;;  %v13291_v51 = vld [vmem:[#allocation5 + $0x2ec] sm:$0xf0]  ;;  %v13262_v30 = vld [vmem:[#allocation5 + $0x20c] sm:$0xf] }
 0x627   : > { %v13274_v48 = vld [vmem:[#allocation5 + $0x264] sm:$0xf0]  ;;  %v10783_v38 = vor.u32 %v13418_v33, %v10782_v29  ;;  %v10279_v21 = vor.u32 %v13291_v51, %v10278_v16  ;;  %v10214_v55 = vld [vmem:[#allocation5 + $0x250] sm:$0xf]  ;;  %v10830_v16 = vld [vmem:[#allocation5 + $0x718] sm:$0xf] }
 0x628   : > { %3392 = vmatpush.bf16.msrb.mxu2 %v10051_v25  ;;  %3379 = vmatpush.bf16.msrb.mxu1 %v10047_v62  ;;  %v10199_v25 = vor.u32 %v13273_v15, %v10198_v41  ;;  %v13324_v62 = vld [vmem:[#allocation5 + $0x3f4] sm:$0xf0]  ;;  %v10310_v41 = vld [vmem:[#allocation5 + $0x310] sm:$0xf]  ;;  %v10750_v59 = vld [vmem:[#allocation5 + $0x688] sm:$0xf] }
 0x629   : > { %v10415_v37 = vor.u32 %v13324_v62, %v10414_v0  ;;  %v13299_v15 = vld [vmem:[#allocation5 + $0x32c] sm:$0xf0]  ;;  %v13410_v4 = vld [vmem:[#allocation5 + $0x6a4] sm:$0xf0]  ;;  %v13428_v51 = vld [vmem:[#allocation5 + $0x734] sm:$0xf0] }
 0x62a   : > { %4339 = vmatpush.bf16.msra.mxu0 %v10367_v22  ;;  %v10168_v22 = vld [vmem:[#allocation5 + $0x220] sm:$0xf0]  ;;  %v10174_v0 = vld [vmem:[#allocation5 + $0x208] sm:$0xf]  ;;  %v13275_v63 = vld [vmem:[#allocation5 + $0x26c] sm:$0xf0] }
 0x62b   : > { %10093 = vmatmul.msk.bf16.vlgmr.msra.gmra.mxu1 %vm1563_vm0, %v16435_v13  ;;  %10094 = vmatmul.msk.bf16.vlgmr.msra.gmra.mxu2 %vm1563_vm0, %v16435_v13  ;;  %v10171_v20 = vor.u32 %v13261_v40, %v10168_v22  ;;  %v13266_v62 = vld [vmem:[#allocation5 + $0x224] sm:$0xf0]  ;;  %v10751_v40 = vor.u32 %v13410_v4, %v10750_v59  ;;  %v13287_v59 = vld [vmem:[#allocation5 + $0x2d4] sm:$0xf]  ;;  %vm9507_vm15 = vcmask 122880  }
 0x62c   : > { %3809 = vmatpush.bf16.msra.mxu2 %v10327_v27  ;;  %3417 = vmatpush.bf16.msra.mxu1 %v10091_v6  ;;  %v13253_v27 = vld [vmem:[#allocation5 + $0x1c4] sm:$0xf]  ;;  %v10135_v6 = vor.u32 %v13257_v19, %v10134_v60  ;;  %v10175_v22 = vor.u32 %v13266_v62, %v10174_v0  ;;  %v13258_v36 = vld [vmem:[#allocation5 + $0x1e4] sm:$0xf0]  ;;  %v10240_v60 = vld [vmem:[#allocation5 + $0x2a8] sm:$0xf0] }
 0x62d   : > { %4340 = vmatmul.bf16.vlgmr.msra.gmra.mxu0 %v16445_v23  ;;  %10095 = vmatmul.msk.bf16.vlgmr.msra.gmra.mxu3 %vm1563_vm0, %v16435_v13  ;;  %v10246_v19 = vld [vmem:[#allocation5 + $0x290] sm:$0xf]  ;;  %v10686_v32 = vld [vmem:[#allocation5 + $0x608] sm:$0xf]  ;;  %v10280_v4 = vld [vmem:[#allocation5 + $0x2f0] sm:$0xf0] }
 0x62e   : > { %4384 = vmatpush.bf16.msrb.mxu0 %v10607_v35  ;;  %3822 = vmatpush.bf16.msra.mxu3 %v10331_v43  ;;  %v10302_v35 = vld [vmem:[#allocation5 + $0x308] sm:$0xf]  ;;  %v10136_v43 = vld [vmem:[#allocation5 + $0x1e0] sm:$0xf0]  ;;  %v13246_v0 = vld [vmem:[#allocation5 + $0x18c] sm:$0xf] }
 0x62f   : > { %v13394_v12 = vld [vmem:[#allocation5 + $0x624] sm:$0xf0] }
 0x630   : > { %3810 = vmatpush.bf16.msra.mxu2 %v10295_v39  ;;  %3418 = vmatpush.bf16.msra.mxu1 %v10059_v52  ;;  %v10139_v39 = vor.u32 %v13253_v27, %v10136_v43  ;;  %v13282_v52 = vld [vmem:[#allocation5 + $0x2a4] sm:$0xf0] }
 0x631   : > { %v10239_v7 = vor.u32 %v13282_v52, %v10238_v17  ;;  %v10110_v28 = vld [vmem:[#allocation5 + $0x188] sm:$0xf]  ;;  %v10215_v52 = vor.u32 %v13275_v63, %v10214_v55  ;;  %v13361_v55 = vld [vmem:[#allocation5 + $0x51c] sm:$0xf0] }
 0x632   : > { %4385 = vmatpush.bf16.msrb.mxu0 %v10575_v1  ;;  %3823 = vmatpush.bf16.msra.mxu3 %v10299_v49  ;;  %v10303_v1 = vor.u32 %v13298_v31, %v10302_v35  ;;  %v10814_v49 = vld [vmem:[#allocation5 + $0x708] sm:$0xf] }
 0x633   : > { %v10815_v10 = vor.u32 %v13426_v46, %v10814_v49  ;;  %v10718_v35 = vld [vmem:[#allocation5 + $0x648] sm:$0xf] }
 0x634   : > { %3811 = vmatpush.bf16.msra.mxu2 %v10263_v42  ;;  %v13307_v42 = vld [vmem:[#allocation5 + $0x36c] sm:$0xf0]  ;;  %v13402_v31 = vld [vmem:[#allocation5 + $0x664] sm:$0xf0] }
 0x635   : > { %v10654_v49 = vld [vmem:[#allocation5 + $0x5c8] sm:$0xf] }
 0x636   : > { %4386 = vmatpush.bf16.msrb.mxu0 %v10543_v26  ;;  %3824 = vmatpush.bf16.msra.mxu3 %v10267_v24  ;;  %v13245_v26 = vld [vmem:[#allocation5 + $0x184] sm:$0xf]  ;;  %v13386_v46 = vld [vmem:[#allocation5 + $0x5e4] sm:$0xf0] }
 0x637   : > { %v10107_v24 = vor.u32 %v13245_v26, %v10104_v54  ;;  %v10687_v26 = vor.u32 %v13394_v12, %v10686_v32  ;;  %v10622_v29 = vld [vmem:[#allocation5 + $0x588] sm:$0xf]  ;;  %v13271_v32 = vld [vmem:[#allocation5 + $0x254] sm:$0xf]  ;;  %v10798_v12 = vld [vmem:[#allocation5 + $0x6d8] sm:$0xf] }
 0x638   : > { %3812 = vmatpush.bf16.msra.mxu2 %v10231_v44  ;;  %v10206_v44 = vld [vmem:[#allocation5 + $0x248] sm:$0xf] }
 0x639   : > { %v10207_v50 = vor.u32 %v13274_v48, %v10206_v44  ;;  %v13378_v33 = vld [vmem:[#allocation5 + $0x5a4] sm:$0xf0]  ;;  %v13254_v44 = vld [vmem:[#allocation5 + $0x1cc] sm:$0xf]  ;;  %v10862_v48 = vld [vmem:[#allocation5 + $0x758] sm:$0xf] }
 0x63a   : > { %4387 = vmatpush.bf16.msrb.mxu0 %v10511_v45  ;;  %3825 = vmatpush.bf16.msra.mxu3 %v10235_v18  ;;  %v10342_v45 = vld [vmem:[#allocation5 + $0x350] sm:$0xf]  ;;  %v10304_v18 = vld [vmem:[#allocation5 + $0x328] sm:$0xf0] }
 0x63b   : > { %10096 = vmatmul.msk.bf16.vlgmr.msrb.gmra.mxu1 %vm1563_vm0, %v16435_v13  ;;  %10097 = vmatmul.msk.bf16.vlgmr.msrb.gmra.mxu2 %vm1563_vm0, %v16435_v13 }
 0x63c   : > { %3813 = vmatpush.bf16.msra.mxu2 %v10199_v25  ;;  %3835 = vmatpush.bf16.msrb.mxu1 %v10335_v14  ;;  %v10311_v25 = vor.u32 %v13299_v15, %v10310_v41  ;;  %v10272_v14 = vld [vmem:[#allocation5 + $0x2e8] sm:$0xf0]  ;;  %v10150_v15 = vld [vmem:[#allocation5 + $0x1d0] sm:$0xf] }
 0x63d   : > { %10098 = vmatmul.msk.bf16.vlgmr.msrb.gmra.mxu3 %vm1563_vm0, %v16435_v13  ;;  %v10144_v41 = vld [vmem:[#allocation5 + $0x1e8] sm:$0xf0] }
 0x63e   : > { %4388 = vmatpush.bf16.msrb.mxu0 %v10479_v11  ;;  %3826 = vmatpush.bf16.msra.mxu3 %v10203_v5  ;;  %v10343_v11 = vor.u32 %v13307_v42, %v10342_v45  ;;  %v13286_v5 = vld [vmem:[#allocation5 + $0x2cc] sm:$0xf]  ;;  %v10182_v42 = vld [vmem:[#allocation5 + $0x210] sm:$0xf]  ;;  %v10147_v62 = vor.u32 %v13254_v44, %v10144_v41  ;;  %v10256_v44 = vld [vmem:[#allocation5 + $0x2b8] sm:$0xf0] }
 0x63f   : > { %v10176_v45 = vld [vmem:[#allocation5 + $0x228] sm:$0xf0]  ;;  %v13247_v41 = vld [vmem:[#allocation5 + $0x194] sm:$0xf] }
 0x640   : > { %3814 = vmatpush.bf16.msra.mxu2 %v10167_v8  ;;  %3836 = vmatpush.bf16.msrb.mxu1 %v10303_v1  ;;  %v10142_v8 = vld [vmem:[#allocation5 + $0x1c8] sm:$0xf]  ;;  %v10719_v1 = vor.u32 %v13402_v31, %v10718_v35  ;;  %v13251_v35 = vld [vmem:[#allocation5 + $0x1ac] sm:$0xf0]  ;;  %v13279_v31 = vld [vmem:[#allocation5 + $0x294] sm:$0xf] }
 0x641   : > { %v10143_v27 = vor.u32 %v13258_v36, %v10142_v8  ;;  %v10352_v8 = vld [vmem:[#allocation5 + $0x378] sm:$0xf0]  ;;  %v10831_v36 = vor.u32 %v13428_v51, %v10830_v16  ;;  %v13365_v16 = vld [vmem:[#allocation5 + $0x544] sm:$0xf] }
 0x642   : > { %4389 = vmatpush.bf16.msrb.mxu0 %v10447_v47  ;;  %3827 = vmatpush.bf16.msra.mxu3 %v10171_v20  ;;  %v10307_v47 = vor.u32 %v13294_v34, %v10304_v18  ;;  %v13283_v20 = vld [vmem:[#allocation5 + $0x2ac] sm:$0xf0]  ;;  %v13436_v34 = vld [vmem:[#allocation5 + $0x774] sm:$0xf0]  ;;  %v10584_v51 = vld [vmem:[#allocation5 + $0x560] sm:$0xf0] }
 0x643   : > { %v10247_v56 = vor.u32 %v13283_v20, %v10246_v19 }
 0x644   : > { %3815 = vmatpush.bf16.msra.mxu2 %v10135_v6  ;;  %3837 = vmatpush.bf16.msrb.mxu1 %v10271_v57  ;;  %v13270_v6 = vld [vmem:[#allocation5 + $0x24c] sm:$0xf]  ;;  %v10344_v57 = vld [vmem:[#allocation5 + $0x370] sm:$0xf0] }
 0x646   : > { %4390 = vmatpush.bf16.msrb.mxu0 %v10415_v37  ;;  %3828 = vmatpush.bf16.msra.mxu3 %v10139_v39  ;;  %v10275_v37 = vor.u32 %v13286_v5, %v10272_v14  ;;  %v13303_v39 = vld [vmem:[#allocation5 + $0x354] sm:$0xf]  ;;  %v10112_v14 = vld [vmem:[#allocation5 + $0x1a8] sm:$0xf0] }
 0x647   : > { %v10347_v9 = vor.u32 %v13303_v39, %v10344_v57  ;;  %v10115_v19 = vor.u32 %v13246_v0, %v10112_v14  ;;  %v13263_v57 = vld [vmem:[#allocation5 + $0x214] sm:$0xf]  ;;  %v13272_v0 = vld [vmem:[#allocation5 + $0x25c] sm:$0xf]  ;;  %v13337_v14 = vld [vmem:[#allocation5 + $0x45c] sm:$0xf0] }
 0x648   : > { %3816 = vmatpush.bf16.msra.mxu2 %v10103_v3  ;;  %3838 = vmatpush.bf16.msrb.mxu1 %v10239_v7  ;;  %v13267_v3 = vld [vmem:[#allocation5 + $0x22c] sm:$0xf0]  ;;  %v10312_v7 = vld [vmem:[#allocation5 + $0x330] sm:$0xf0] }
 0x64a   : > { %4391 = vmatpush.bf16.msrb.mxu0 %v10383_v58  ;;  %3829 = vmatpush.bf16.msra.mxu3 %v10107_v24  ;;  %v13250_v58 = vld [vmem:[#allocation5 + $0x1a4] sm:$0xf0]  ;;  %v13295_v24 = vld [vmem:[#allocation5 + $0x314] sm:$0xf] }
 0x64b   : > { %10099 = vmatmul.msk.bf16.vlgmr.msra.gmra.mxu1 %vm1563_vm0, %v16435_v13  ;;  %3817 = vmatmul.bf16.vlgmr.msra.gmra.mxu2 %v16424_v61  ;;  %v13278_v13 = vld [vmem:[#allocation5 + $0x28c] sm:$0xf]  ;;  %v10111_v54 = vor.u32 %v13250_v58, %v10110_v28  ;;  %v10315_v18 = vor.u32 %v13295_v24, %v10312_v7  ;;  %v10216_v28 = vld [vmem:[#allocation5 + $0x270] sm:$0xf0]  ;;  %v13296_v58 = vld [vmem:[#allocation5 + $0x31c] sm:$0xf] }
 0x64c   : > { %3848 = vmatpush.bf16.msrb.mxu2 %v10339_v2  ;;  %3839 = vmatpush.bf16.msrb.mxu1 %v10207_v50  ;;  %v10243_v43 = vor.u32 %v13278_v13, %v10240_v60  ;;  %v10179_v2 = vor.u32 %v13262_v30, %v10176_v45  ;;  %v10623_v50 = vor.u32 %v13378_v33, %v10622_v29  ;;  %v10582_v13 = vld [vmem:[#allocation5 + $0x540] sm:$0xf]  ;;  %v10288_v30 = vld [vmem:[#allocation5 + $0x2f8] sm:$0xf0]  ;;  %v13255_v24 = vld [vmem:[#allocation5 + $0x1d4] sm:$0xf] }
 0x64d   : > { %4392 = vmatmul.bf16.vlgmr.msrb.gmra.mxu0 %v16445_v23  ;;  %3830 = vmatmul.bf16.vlgmr.msra.gmra.mxu3 %v16424_v61  ;;  %v13369_v60 = vld [vmem:[#allocation5 + $0x55c] sm:$0xf0]  ;;  %v10734_v7 = vld [vmem:[#allocation5 + $0x658] sm:$0xf] }
 0x64e   : > { %4832 = vmatpush.bf16.msra.mxu0 %v10847_v53  ;;  %3861 = vmatpush.bf16.msrb.mxu3 %v10343_v11  ;;  %v10208_v53 = vld [vmem:[#allocation5 + $0x268] sm:$0xf0]  ;;  %v10183_v11 = vor.u32 %v13267_v3, %v10182_v42  ;;  %v13353_v45 = vld [vmem:[#allocation5 + $0x4dc] sm:$0xf0]  ;;  %v13404_v29 = vld [vmem:[#allocation5 + $0x674] sm:$0xf0] }
 0x64f   : > { %v10211_v17 = vor.u32 %v13270_v6, %v10208_v53  ;;  %v10320_v6 = vld [vmem:[#allocation5 + $0x338] sm:$0xf0]  ;;  %v10550_v53 = vld [vmem:[#allocation5 + $0x500] sm:$0xf] }
 0x650   : > { %3849 = vmatpush.bf16.msrb.mxu2 %v10307_v47  ;;  %3840 = vmatpush.bf16.msrb.mxu1 %v10175_v22  ;;  %v10863_v47 = vor.u32 %v13436_v34, %v10862_v48  ;;  %v10118_v22 = vld [vmem:[#allocation5 + $0x190] sm:$0xf]  ;;  %v10323_v39 = vor.u32 %v13296_v58, %v10320_v6  ;;  %v10486_v48 = vld [vmem:[#allocation5 + $0x480] sm:$0xf]  ;;  %v13256_v6 = vld [vmem:[#allocation5 + $0x1dc] sm:$0xf] }
 0x651   : > { %v10119_v20 = vor.u32 %v13251_v35, %v10118_v22  ;;  %v13345_v34 = vld [vmem:[#allocation5 + $0x49c] sm:$0xf0] }
 0x652   : > { %4833 = vmatpush.bf16.msra.mxu0 %v10815_v10  ;;  %3862 = vmatpush.bf16.msrb.mxu3 %v10311_v25  ;;  %v10655_v10 = vor.u32 %v13386_v46, %v10654_v49  ;;  %v16467_v25 = vshrl.u32 %v16445_v23, 16  ;;  %v13412_v49 = vld [vmem:[#allocation5 + $0x6b4] sm:$0xf0]  ;;  %v10551_v46 = vor.u32 %v13361_v55, %v10550_v53  ;;  %v10160_v53 = vld [vmem:[#allocation5 + $0x1f8] sm:$0xf0] }
 0x653   : > { %v10390_v55 = vld [vmem:[#allocation5 + $0x3c0] sm:$0xf] }
 0x654   : > { %3850 = vmatpush.bf16.msrb.mxu2 %v10275_v37  ;;  %3841 = vmatpush.bf16.msrb.mxu1 %v10143_v27  ;;  %v10248_v37 = vld [vmem:[#allocation5 + $0x2b0] sm:$0xf0] }
 0x656   : > { %4834 = vmatpush.bf16.msra.mxu0 %v10783_v38  ;;  %3863 = vmatpush.bf16.msrb.mxu3 %v10279_v21  ;;  %v13259_v38 = vld [vmem:[#allocation5 + $0x1ec] sm:$0xf0]  ;;  %v13304_v21 = vld [vmem:[#allocation5 + $0x35c] sm:$0xf] }
 0x657   : > { %v10151_v5 = vor.u32 %v13259_v38, %v10150_v15  ;;  %v10355_v27 = vor.u32 %v13304_v21, %v10352_v8  ;;  %v10587_v8 = vor.u32 %v13365_v16, %v10584_v51  ;;  %v13350_v16 = vld [vmem:[#allocation5 + $0x4cc] sm:$0xf] }
 0x658   : > { %3851 = vmatpush.bf16.msrb.mxu2 %v10243_v43  ;;  %3842 = vmatpush.bf16.msrb.mxu1 %v10111_v54  ;;  %v13420_v43 = vld [vmem:[#allocation5 + $0x6f4] sm:$0xf0] }
 0x659   : > { %v10799_v63 = vor.u32 %v13420_v43, %v10798_v12  ;;  %v10766_v54 = vld [vmem:[#allocation5 + $0x698] sm:$0xf] }
 0x65a   : > { %4835 = vmatpush.bf16.msra.mxu0 %v10751_v40  ;;  %3864 = vmatpush.bf16.msrb.mxu3 %v10247_v56  ;;  %v10283_v40 = vor.u32 %v13287_v59, %v10280_v4  ;;  %v10583_v56 = vor.u32 %v13369_v60, %v10582_v13  ;;  %v10767_v42 = vor.u32 %v13412_v49, %v10766_v54  ;;  %v10702_v59 = vld [vmem:[#allocation5 + $0x618] sm:$0xf]  ;;  %v10192_v13 = vld [vmem:[#allocation5 + $0x238] sm:$0xf0]  ;;  %v10422_v60 = vld [vmem:[#allocation5 + $0x400] sm:$0xf] }
 0x65b   : > { %3843 = vmatmul.bf16.vlgmr.msrb.gmra.mxu1 %v16424_v61  ;;  %v13396_v4 = vld [vmem:[#allocation5 + $0x634] sm:$0xf0]  ;;  %v10163_v54 = vor.u32 %v13256_v6, %v10160_v53  ;;  %v13248_v49 = vld [vmem:[#allocation5 + $0x19c] sm:$0xf]  ;;  %v13334_v6 = vld [vmem:[#allocation5 + $0x44c] sm:$0xf] }
 0x65c   : > { %3852 = vmatpush.bf16.msrb.mxu2 %v10211_v17  ;;  %3874 = vmatpush.bf16.msra.mxu1 %v10347_v9  ;;  %v10184_v17 = vld [vmem:[#allocation5 + $0x230] sm:$0xf0]  ;;  %v10518_v9 = vld [vmem:[#allocation5 + $0x4c0] sm:$0xf]  ;;  %v10638_v43 = vld [vmem:[#allocation5 + $0x598] sm:$0xf] }
 0x65d   : > { %v10187_v3 = vor.u32 %v13263_v57, %v10184_v17  ;;  %v10519_v33 = vor.u32 %v13353_v45, %v10518_v9  ;;  %v13313_v9 = vld [vmem:[#allocation5 + $0x39c] sm:$0xf0]  ;;  %v13341_v45 = vld [vmem:[#allocation5 + $0x484] sm:$0xf] }
 0x65e   : > { %4836 = vmatpush.bf16.msra.mxu0 %v10719_v1  ;;  %3865 = vmatpush.bf16.msrb.mxu3 %v10215_v52  ;;  %v10251_v1 = vor.u32 %v13279_v31, %v10248_v37  ;;  %v13288_v52 = vld [vmem:[#allocation5 + $0x2dc] sm:$0xf]  ;;  %v10670_v31 = vld [vmem:[#allocation5 + $0x5d8] sm:$0xf] }
 0x65f   : > { %v13388_v37 = vld [vmem:[#allocation5 + $0x5f4] sm:$0xf0] }
 0x660   : > { %3853 = vmatpush.bf16.msrb.mxu2 %v10179_v2  ;;  %3875 = vmatpush.bf16.msra.mxu1 %v10315_v18  ;;  %v10152_v2 = vld [vmem:[#allocation5 + $0x1f0] sm:$0xf0]  ;;  %v10735_v18 = vor.u32 %v13404_v29, %v10734_v7  ;;  %v10592_v7 = vld [vmem:[#allocation5 + $0x568] sm:$0xf0]  ;;  %v10598_v29 = vld [vmem:[#allocation5 + $0x550] sm:$0xf] }
 0x661   : > { %v10155_v15 = vor.u32 %v13255_v24, %v10152_v2 }
 0x662   : > { %4837 = vmatpush.bf16.msra.mxu0 %v10687_v26  ;;  %3866 = vmatpush.bf16.msrb.mxu3 %v10183_v11  ;;  %v10219_v26 = vor.u32 %v13271_v32, %v10216_v28  ;;  %v13280_v11 = vld [vmem:[#allocation5 + $0x29c] sm:$0xf] }
 0x663   : > { %v10259_v38 = vor.u32 %v13280_v11, %v10256_v44 }
 0x664   : > { %3854 = vmatpush.bf16.msrb.mxu2 %v10147_v62  ;;  %3876 = vmatpush.bf16.msra.mxu1 %v10283_v40  ;;  %v10224_v62 = vld [vmem:[#allocation5 + $0x278] sm:$0xf0]  ;;  %v10703_v40 = vor.u32 %v13396_v4, %v10702_v59  ;;  %v10566_v59 = vld [vmem:[#allocation5 + $0x510] sm:$0xf] }
 0x665   : > { %v10227_v35 = vor.u32 %v13272_v0, %v10224_v62  ;;  %v13363_v4 = vld [vmem:[#allocation5 + $0x52c] sm:$0xf0] }
 0x666   : > { %4838 = vmatpush.bf16.msra.mxu0 %v10655_v10  ;;  %3867 = vmatpush.bf16.msrb.mxu3 %v10151_v5  ;;  %v10291_v10 = vor.u32 %v13288_v52, %v10288_v30  ;;  %v10454_v5 = vld [vmem:[#allocation5 + $0x440] sm:$0xf]  ;;  %v10128_v52 = vld [vmem:[#allocation5 + $0x1b8] sm:$0xf0]  ;;  %v10567_v62 = vor.u32 %v13363_v4, %v10566_v59 }
 0x667   : > { %v10455_v21 = vor.u32 %v13337_v14, %v10454_v5  ;;  %v10358_v30 = vld [vmem:[#allocation5 + $0x380] sm:$0xf]  ;;  %v10131_v11 = vor.u32 %v13248_v49, %v10128_v52  ;;  %v13325_v5 = vld [vmem:[#allocation5 + $0x404] sm:$0xf]  ;;  %v10600_v49 = vld [vmem:[#allocation5 + $0x570] sm:$0xf0] }
 0x668   : > { %3855 = vmatpush.bf16.msrb.mxu2 %v10115_v19  ;;  %3877 = vmatpush.bf16.msra.mxu1 %v10251_v1  ;;  %v13329_v19 = vld [vmem:[#allocation5 + $0x41c] sm:$0xf0]  ;;  %v10552_v1 = vld [vmem:[#allocation5 + $0x520] sm:$0xf0]  ;;  %v10359_v44 = vor.u32 %v13313_v9, %v10358_v30 }
 0x669   : > { %v10423_v28 = vor.u32 %v13329_v19, %v10422_v60  ;;  %v10424_v14 = vld [vmem:[#allocation5 + $0x420] sm:$0xf0]  ;;  %v13342_v19 = vld [vmem:[#allocation5 + $0x48c] sm:$0xf]  ;;  %v13625_v52 = vld [vmem:[#allocation6 + $0x5dc] sm:$0xf0] }
 0x66a   : > { %4839 = vmatpush.bf16.msra.mxu0 %v10623_v50  ;;  %3868 = vmatpush.bf16.msrb.mxu3 %v10119_v20  ;;  %v10120_v50 = vld [vmem:[#allocation5 + $0x1b0] sm:$0xf0]  ;;  %v13357_v20 = vld [vmem:[#allocation5 + $0x504] sm:$0xf] }
 0x66b   : > { %3856 = vmatmul.bf16.vlgmr.msrb.gmra.mxu2 %v16424_v61  ;;  %v10123_v22 = vor.u32 %v13247_v41, %v10120_v50  ;;  %v10555_v58 = vor.u32 %v13357_v20, %v10552_v1  ;;  %v13333_v41 = vld [vmem:[#allocation5 + $0x444] sm:$0xf]  ;;  %v10560_v50 = vld [vmem:[#allocation5 + $0x528] sm:$0xf0]  ;;  %v13347_v1 = vld [vmem:[#allocation5 + $0x4ac] sm:$0xf0] }
 0x66c   : > { %3900 = vmatpush.bf16.msra.mxu2 %v10355_v27  ;;  %3878 = vmatpush.bf16.msra.mxu1 %v10219_v26  ;;  %v10671_v27 = vor.u32 %v13388_v37, %v10670_v31  ;;  %v13349_v26 = vld [vmem:[#allocation5 + $0x4c4] sm:$0xf]  ;;  %v13355_v31 = vld [vmem:[#allocation5 + $0x4ec] sm:$0xf0]  ;;  %v10496_v20 = vld [vmem:[#allocation5 + $0x4a8] sm:$0xf0] }
 0x66d   : > { %4840 = vmatmul.bf16.vlgmr.msra.gmra.mxu0 %v16467_v25  ;;  %3869 = vmatmul.bf16.vlgmr.msrb.gmra.mxu3 %v16424_v61  ;;  %v10392_v60 = vld [vmem:[#allocation5 + $0x3e0] sm:$0xf0] }
 0x66e   : > { %4884 = vmatpush.bf16.msrb.mxu0 %v10863_v47  ;;  %4306 = vmatpush.bf16.msra.mxu3 %v10583_v56  ;;  %v10487_v47 = vor.u32 %v13345_v34, %v10486_v48  ;;  %v13380_v56 = vld [vmem:[#allocation5 + $0x5b4] sm:$0xf0] }
 0x66f   : > { %v10639_v57 = vor.u32 %v13380_v56, %v10638_v43  ;;  %v10499_v43 = vor.u32 %v13342_v19, %v10496_v20  ;;  %v13343_v19 = vld [vmem:[#allocation5 + $0x494] sm:$0xf] }
 0x670   : > { %3901 = vmatpush.bf16.msra.mxu2 %v10323_v39  ;;  %3879 = vmatpush.bf16.msra.mxu1 %v10187_v3  ;;  %v10520_v39 = vld [vmem:[#allocation5 + $0x4e0] sm:$0xf0]  ;;  %v13366_v3 = vld [vmem:[#allocation5 + $0x54c] sm:$0xf]  ;;  %v10504_v20 = vld [vmem:[#allocation5 + $0x4b0] sm:$0xf0] }
 0x671   : > { %v10523_v17 = vor.u32 %v13349_v26, %v10520_v39  ;;  %v10595_v34 = vor.u32 %v13366_v3, %v10592_v7  ;;  %v10470_v26 = vld [vmem:[#allocation5 + $0x450] sm:$0xf] }
 0x672   : > { %4885 = vmatpush.bf16.msrb.mxu0 %v10831_v36  ;;  %4307 = vmatpush.bf16.msra.mxu3 %v10551_v46  ;;  %v13264_v36 = vld [vmem:[#allocation5 + $0x21c] sm:$0xf]  ;;  %v13339_v39 = vld [vmem:[#allocation5 + $0x46c] sm:$0xf0] }
 0x673   : > { %v10195_v12 = vor.u32 %v13264_v36, %v10192_v13  ;;  %v13317_v13 = vld [vmem:[#allocation5 + $0x3c4] sm:$0xf]  ;;  %v10471_v9 = vor.u32 %v13339_v39, %v10470_v26 }
 0x674   : > { %3902 = vmatpush.bf16.msra.mxu2 %v10291_v10  ;;  %3880 = vmatpush.bf16.msra.mxu1 %v10155_v15  ;;  %v10456_v15 = vld [vmem:[#allocation5 + $0x460] sm:$0xf0] }
 0x676   : > { %4886 = vmatpush.bf16.msrb.mxu0 %v10799_v63  ;;  %4308 = vmatpush.bf16.msra.mxu3 %v10519_v33  ;;  %v13321_v63 = vld [vmem:[#allocation5 + $0x3dc] sm:$0xf0]  ;;  %v13371_v33 = vld [vmem:[#allocation5 + $0x56c] sm:$0xf0] }
 0x677   : > { %v10391_v46 = vor.u32 %v13321_v63, %v10390_v55  ;;  %v10464_v63 = vld [vmem:[#allocation5 + $0x468] sm:$0xf0] }
 0x678   : > { %3903 = vmatpush.bf16.msra.mxu2 %v10259_v38  ;;  %3881 = vmatpush.bf16.msra.mxu1 %v10123_v22  ;;  %v16472_v32 = vpop.f32.mrf.mxu1  ;;  %v13358_v38 = vld [vmem:[#allocation5 + $0x50c] sm:$0xf]  ;;  %v10467_v30 = vor.u32 %v13334_v6, %v10464_v63 }
 0x679   : > { %v10563_v0 = vor.u32 %v13358_v38, %v10560_v50  ;;  %v10528_v22 = vld [vmem:[#allocation5 + $0x4e8] sm:$0xf0] }
 0x67a   : > { %4887 = vmatpush.bf16.msrb.mxu0 %v10767_v42  ;;  %4309 = vmatpush.bf16.msra.mxu3 %v10487_v47  ;;  %v10488_v42 = vld [vmem:[#allocation5 + $0x4a0] sm:$0xf0]  ;;  %v10459_v47 = vor.u32 %v13333_v41, %v10456_v15  ;;  %v13318_v38 = vld [vmem:[#allocation5 + $0x3cc] sm:$0xf] }
 0x67b   : > { %3882 = vmatmul.bf16.vlgmr.msra.gmra.mxu1 %v16424_v61  ;;  %v10491_v48 = vor.u32 %v13341_v45, %v10488_v42  ;;  %v13326_v45 = vld [vmem:[#allocation5 + $0x40c] sm:$0xf] }
 0x67c   : > { %3904 = vmatpush.bf16.msra.mxu2 %v10227_v35  ;;  %4319 = vmatpush.bf16.msrb.mxu1 %v10587_v8  ;;  %v10534_v35 = vld [vmem:[#allocation5 + $0x4d0] sm:$0xf]  ;;  %v10531_v8 = vor.u32 %v13350_v16, %v10528_v22  ;;  %v10432_v42 = vld [vmem:[#allocation5 + $0x428] sm:$0xf0]  ;;  %v10536_v16 = vld [vmem:[#allocation5 + $0x4f0] sm:$0xf0] }
 0x67d   : > { %v10535_v36 = vor.u32 %v13355_v31, %v10534_v35  ;;  %v10435_v41 = vor.u32 %v13326_v45, %v10432_v42  ;;  %v10400_v50 = vld [vmem:[#allocation5 + $0x3e8] sm:$0xf0]  ;;  %v10576_v45 = vld [vmem:[#allocation5 + $0x538] sm:$0xf0]  ;;  %v11478_v42 = vld [vmem:[#allocation6 + $0x4c0] sm:$0xf] }
 0x67e   : > { %4888 = vmatpush.bf16.msrb.mxu0 %v10735_v18  ;;  %4310 = vmatpush.bf16.msra.mxu3 %v10455_v21  ;;  %v16475_v10 = vpop.f32.mrf.mxu2  ;;  %v10599_v18 = vor.u32 %v13371_v33, %v10598_v29  ;;  %v10427_v21 = vor.u32 %v13325_v5, %v10424_v14  ;;  %v10438_v29 = vld [vmem:[#allocation5 + $0x410] sm:$0xf]  ;;  %v13351_v5 = vld [vmem:[#allocation5 + $0x4d4] sm:$0xf]  ;;  %v13310_v22 = vld [vmem:[#allocation5 + $0x38c] sm:$0xf]  ;;  %v10403_v31 = vor.u32 %v13318_v38, %v10400_v50 }
 0x67f   : > { %v13331_v33 = vld [vmem:[#allocation5 + $0x42c] sm:$0xf0]  ;;  %v10774_v38 = vld [vmem:[#allocation5 + $0x6c0] sm:$0xf] }
 0x680   : > { %3905 = vmatpush.bf16.msra.mxu2 %v10195_v12  ;;  %4320 = vmatpush.bf16.msrb.mxu1 %v10555_v58  ;;  %v16477_v24 = vpop.f32.mrf.mxu3  ;;  %v3144_v2 = vpop.f32.mrf.mxu1  ;;  %v10395_v12 = vor.u32 %v13317_v13, %v10392_v60  ;;  %v10360_v58 = vld [vmem:[#allocation5 + $0x3a0] sm:$0xf0]  ;;  %v10439_v15 = vor.u32 %v13331_v33, %v10438_v29  ;;  %v13315_v13 = vld [vmem:[#allocation5 + $0x3ac] sm:$0xf0]  ;;  %v10539_v60 = vor.u32 %v13351_v5, %v10536_v16  ;;  %v13425_v29 = vld [vmem:[#allocation5 + $0x71c] sm:$0xf0] }
 0x681   : > { %v13359_v2 = vld [vmem:[#allocation5 + $0x514] sm:$0xf]  ;;  %v13417_v50 = vld [vmem:[#allocation5 + $0x6dc] sm:$0xf0] }
 0x682   : > { %4889 = vmatpush.bf16.msrb.mxu0 %v10703_v40  ;;  %4311 = vmatpush.bf16.msra.mxu3 %v10423_v28  ;;  %v13309_v28 = vld [vmem:[#allocation5 + $0x384] sm:$0xf]  ;;  %v13319_v5 = vld [vmem:[#allocation5 + $0x3d4] sm:$0xf] }
 0x683   : > { %v10408_v16 = vld [vmem:[#allocation5 + $0x3f0] sm:$0xf0] }
 0x684   : > { %3906 = vmatpush.bf16.msra.mxu2 %v10163_v54  ;;  %4321 = vmatpush.bf16.msrb.mxu1 %v10523_v17  ;;  %v13367_v54 = vld [vmem:[#allocation5 + $0x554] sm:$0xf]  ;;  %v10363_v17 = vor.u32 %v13309_v28, %v10360_v58  ;;  %v13433_v28 = vld [vmem:[#allocation5 + $0x75c] sm:$0xf0] }
 0x685   : > { %v10603_v7 = vor.u32 %v13367_v54, %v10600_v49  ;;  %v13335_v49 = vld [vmem:[#allocation5 + $0x454] sm:$0xf] }
 0x686   : > { %4890 = vmatpush.bf16.msrb.mxu0 %v10671_v27  ;;  %4312 = vmatpush.bf16.msra.mxu3 %v10391_v46  ;;  %v3157_v51 = vpop.f32.mrf.mxu2  ;;  %v11606_v46 = vld [vmem:[#allocation6 + $0x5c0] sm:$0xf] }
 0x687   : > { %v11607_v3 = vor.u32 %v13625_v52, %v11606_v46  ;;  %v11542_v51 = vld [vmem:[#allocation6 + $0x540] sm:$0xf]  ;;  %v10472_v46 = vld [vmem:[#allocation5 + $0x470] sm:$0xf0] }
 0x688   : > { %3907 = vmatpush.bf16.msra.mxu2 %v10131_v11  ;;  %4322 = vmatpush.bf16.msrb.mxu1 %v10491_v48  ;;  %v3170_v40 = vpop.f32.mrf.mxu3  ;;  %v16482_v37 = vpop.f32.mrf.mxu1  ;;  %v11574_v48 = vld [vmem:[#allocation6 + $0x580] sm:$0xf] }
 0x689   : > { %v13609_v40 = vld [vmem:[#allocation6 + $0x55c] sm:$0xf0] }
 0x68a   : > { %4891 = vmatpush.bf16.msrb.mxu0 %v10639_v57  ;;  %4313 = vmatpush.bf16.msra.mxu3 %v10359_v44  ;;  %v16484_v27 = vpop.f32.mrf.mxu0  ;;  %v10568_v44 = vld [vmem:[#allocation5 + $0x530] sm:$0xf0]  ;;  %v11543_v35 = vor.u32 %v13609_v40, %v11542_v51  ;;  %v13344_v51 = vld [vmem:[#allocation5 + $0x49c] sm:$0xf]  ;;  %v10775_v40 = vor.u32 %v13417_v50, %v10774_v38 }
 0x68b   : > { %3908 = vmatmul.bf16.vlgmr.msra.gmra.mxu2 %v16424_v61  ;;  %v10502_v61 = vld [vmem:[#allocation5 + $0x490] sm:$0xf] }
 0x68c   : > { %4345 = vmatpush.bf16.msrb.mxu2 %v10595_v34  ;;  %4323 = vmatpush.bf16.msrb.mxu1 %v10459_v47  ;;  %v10503_v56 = vor.u32 %v13347_v1, %v10502_v61  ;;  %v13617_v34 = vld [vmem:[#allocation6 + $0x59c] sm:$0xf0]  ;;  %v10571_v47 = vor.u32 %v13359_v2, %v10568_v44  ;;  %v13368_v61 = vld [vmem:[#allocation5 + $0x55c] sm:$0xf]  ;;  %v10475_v2 = vor.u32 %v13335_v49, %v10472_v46  ;;  %v13327_v44 = vld [vmem:[#allocation5 + $0x414] sm:$0xf] }
 0x68d   : > { %4892 = vmatmul.bf16.vlgmr.msrb.gmra.mxu0 %v16467_v25  ;;  %4314 = vmatmul.bf16.vlgmr.msra.gmra.mxu3 %v16445_v23  ;;  %v10608_v1 = vld [vmem:[#allocation5 + $0x578] sm:$0xf0]  ;;  %v12630_v49 = vld [vmem:[#allocation6 + $0xdc0] sm:$0xf] }
 0x68e   : > { %4358 = vmatpush.bf16.msrb.mxu3 %v10599_v18  ;;  %v16486_v53 = vpop.f32.mrf.mxu2  ;;  %8076 = vmatpush.bf16.msra.mxu0 %v11607_v3  ;;  %v11575_v18 = vor.u32 %v13617_v34, %v11574_v48  ;;  %v10611_v54 = vor.u32 %v13368_v61, %v10608_v1  ;;  %v13593_v3 = vld [vmem:[#allocation6 + $0x4dc] sm:$0xf0]  ;;  %v10440_v48 = vld [vmem:[#allocation5 + $0x430] sm:$0xf0]  ;;  %v13352_v34 = vld [vmem:[#allocation5 + $0x4dc] sm:$0xf]  ;;  %v10411_v1 = vor.u32 %v13319_v5, %v10408_v16 }
 0x68f   : > { %v11479_v33 = vor.u32 %v13593_v3, %v11478_v42  ;;  %v10376_v61 = vld [vmem:[#allocation5 + $0x3b0] sm:$0xf0]  ;;  %v13881_v46 = vld [vmem:[#allocation6 + $0xddc] sm:$0xf0]  ;;  %v13413_v5 = vld [vmem:[#allocation5 + $0x6c4] sm:$0xf] }
 0x690   : > { %4346 = vmatpush.bf16.msrb.mxu2 %v10563_v0  ;;  %4324 = vmatpush.bf16.msrb.mxu1 %v10427_v21  ;;  %v16488_v55 = vpop.f32.mrf.mxu3  ;;  %v3183_v57 = vpop.f32.mrf.mxu1  ;;  %v10406_v0 = vld [vmem:[#allocation5 + $0x3d0] sm:$0xf]  ;;  %v10776_v16 = vld [vmem:[#allocation5 + $0x6e0] sm:$0xf0] }
 0x691   : > { %v10507_v57 = vor.u32 %v13343_v19, %v10504_v20  ;;  %v13311_v20 = vld [vmem:[#allocation5 + $0x394] sm:$0xf] }
 0x692   : > { %4359 = vmatpush.bf16.msrb.mxu3 %v10567_v62  ;;  %v3898_v11 = vpop.f32.mrf.mxu0  ;;  %v13323_v62 = vld [vmem:[#allocation5 + $0x3ec] sm:$0xf0]  ;;  %8077 = vmatpush.bf16.msra.mxu0 %v11575_v18  ;;  %v10544_v18 = vld [vmem:[#allocation5 + $0x4f8] sm:$0xf0] }
 0x693   : > { %v10407_v21 = vor.u32 %v13323_v62, %v10406_v0  ;;  %v10443_v0 = vor.u32 %v13327_v44, %v10440_v48  ;;  %v10547_v62 = vor.u32 %v13352_v34, %v10544_v18  ;;  %v13393_v48 = vld [vmem:[#allocation5 + $0x61c] sm:$0xf0]  ;;  %v13421_v34 = vld [vmem:[#allocation5 + $0x704] sm:$0xf] }
 0x694   : > { %4347 = vmatpush.bf16.msrb.mxu2 %v10531_v8  ;;  %4325 = vmatpush.bf16.msrb.mxu1 %v10395_v12  ;;  %v10368_v8 = vld [vmem:[#allocation5 + $0x3a8] sm:$0xf0]  ;;  %v11510_v12 = vld [vmem:[#allocation6 + $0x500] sm:$0xf] }
 0x695   : > { %v10371_v6 = vor.u32 %v13310_v22, %v10368_v8  ;;  %v13577_v8 = vld [vmem:[#allocation6 + $0x45c] sm:$0xf0] }
 0x696   : > { %4360 = vmatpush.bf16.msrb.mxu3 %v10535_v36  ;;  %v3196_v59 = vpop.f32.mrf.mxu2  ;;  %v10374_v36 = vld [vmem:[#allocation5 + $0x390] sm:$0xf]  ;;  %8078 = vmatpush.bf16.msra.mxu0 %v11543_v35  ;;  %v10512_v35 = vld [vmem:[#allocation5 + $0x4b8] sm:$0xf0] }
 0x697   : > { %v10375_v63 = vor.u32 %v13315_v13, %v10374_v36  ;;  %v10742_v13 = vld [vmem:[#allocation5 + $0x680] sm:$0xf] }
 0x698   : > { %4348 = vmatpush.bf16.msrb.mxu2 %v10499_v43  ;;  %4326 = vmatpush.bf16.msrb.mxu1 %v10363_v17  ;;  %v3209_v4 = vpop.f32.mrf.mxu3  ;;  %v16491_v14 = vpop.f32.mrf.mxu1  ;;  %v13601_v43 = vld [vmem:[#allocation6 + $0x51c] sm:$0xf0]  ;;  %v13360_v17 = vld [vmem:[#allocation5 + $0x51c] sm:$0xf] }
 0x699   : > { %v11511_v58 = vor.u32 %v13601_v43, %v11510_v12  ;;  %v10579_v11 = vor.u32 %v13360_v17, %v10576_v45  ;;  %v10515_v12 = vor.u32 %v13344_v51, %v10512_v35  ;;  %v13336_v43 = vld [vmem:[#allocation5 + $0x45c] sm:$0xf]  ;;  %v12631_v45 = vor.u32 %v13881_v46, %v12630_v49  ;;  %v12566_v51 = vld [vmem:[#allocation6 + $0xd40] sm:$0xf] }
 0x69a   : > { %4361 = vmatpush.bf16.msrb.mxu3 %v10503_v56  ;;  %v10838_v56 = vld [vmem:[#allocation5 + $0x740] sm:$0xf] }
 0x69b   : > { %4327 = vmatmul.bf16.vlgmr.msrb.gmra.mxu1 %v16445_v23  ;;  %8079 = vmatpush.bf16.msra.mxu0 %v11511_v58 }
 0x69c   : > { %4349 = vmatpush.bf16.msrb.mxu2 %v10467_v30  ;;  %4371 = vmatpush.bf16.msra.mxu1 %v10603_v7  ;;  %v10839_v30 = vor.u32 %v13433_v28, %v10838_v56  ;;  %v10806_v7 = vld [vmem:[#allocation5 + $0x700] sm:$0xf]  ;;  %v10480_v56 = vld [vmem:[#allocation5 + $0x478] sm:$0xf0] }
 0x69d   : > { %v10710_v28 = vld [vmem:[#allocation5 + $0x640] sm:$0xf] }
 0x69e   : > { %4362 = vmatpush.bf16.msrb.mxu3 %v10471_v9  ;;  %v16493_v26 = vpop.f32.mrf.mxu2 }
 0x69f   : > { %8080 = vmatpush.bf16.msra.mxu0 %v11479_v33  ;;  %v13328_v33 = vld [vmem:[#allocation5 + $0x41c] sm:$0xf] }
 0x6a0   : > { %4350 = vmatpush.bf16.msrb.mxu2 %v10435_v41  ;;  %4372 = vmatpush.bf16.msra.mxu1 %v10571_v47  ;;  %v3329_v39 = vpop.f32.mrf.mxu3  ;;  %v3222_v9 = vpop.f32.mrf.mxu1  ;;  %v11446_v41 = vld [vmem:[#allocation6 + $0x480] sm:$0xf] }
 0x6a1   : > { %v16496_v52 = vadd.f32 %v3329_v39, %v16472_v32  ;;  %v10807_v32 = vor.u32 %v13425_v29, %v10806_v7  ;;  %v13569_v39 = vld [vmem:[#allocation6 + $0x41c] sm:$0xf0]  ;;  %v10483_v9 = vor.u32 %v13336_v43, %v10480_v56  ;;  %v13405_v43 = vld [vmem:[#allocation5 + $0x684] sm:$0xf] }
 0x6a2   : > { %4363 = vmatpush.bf16.msrb.mxu3 %v10439_v15  ;;  %v13585_v15 = vld [vmem:[#allocation6 + $0x49c] sm:$0xf0]  ;;  %v10744_v56 = vld [vmem:[#allocation5 + $0x6a0] sm:$0xf0] }
 0x6a3   : > { %v11447_v59 = vor.u32 %v13585_v15, %v11446_v41  ;;  %v12598_v41 = vld [vmem:[#allocation6 + $0xd80] sm:$0xf] }
 0x6a4   : > { %4351 = vmatpush.bf16.msrb.mxu2 %v10403_v31  ;;  %4373 = vmatpush.bf16.msra.mxu1 %v10539_v60  ;;  %v13409_v60 = vld [vmem:[#allocation5 + $0x69c] sm:$0xf0] }
 0x6a5   : > { %8081 = vmatpush.bf16.msra.mxu0 %v11447_v59  ;;  %v10743_v58 = vor.u32 %v13409_v60, %v10742_v13  ;;  %v13873_v15 = vld [vmem:[#allocation6 + $0xd9c] sm:$0xf0] }
 0x6a6   : > { %4364 = vmatpush.bf16.msrb.mxu3 %v10407_v21  ;;  %v3235_v4 = vpop.f32.mrf.mxu2  ;;  %v11414_v21 = vld [vmem:[#allocation6 + $0x440] sm:$0xf]  ;;  %v12599_v50 = vor.u32 %v13873_v15, %v12598_v41 }
 0x6a7   : > { %v11415_v19 = vor.u32 %v13577_v8, %v11414_v21  ;;  %v13312_v21 = vld [vmem:[#allocation5 + $0x39c] sm:$0xf]  ;;  %v10614_v13 = vld [vmem:[#allocation5 + $0x580] sm:$0xf] }
 0x6a8   : > { %4352 = vmatpush.bf16.msrb.mxu2 %v10371_v6  ;;  %4374 = vmatpush.bf16.msra.mxu1 %v10507_v57  ;;  %v3331_v47 = vpop.f32.mrf.mxu3  ;;  %v3342_v22 = vpop.f32.mrf.mxu1  ;;  %v13401_v6 = vld [vmem:[#allocation5 + $0x65c] sm:$0xf0]  ;;  %v10840_v57 = vld [vmem:[#allocation5 + $0x760] sm:$0xf0]  ;;  %v10384_v8 = vld [vmem:[#allocation5 + $0x3b8] sm:$0xf0] }
 0x6a9   : > { %v16503_v36 = vadd.f32 %v3342_v22, %v16475_v10  ;;  %8082 = vmatpush.bf16.msra.mxu0 %v11415_v19  ;;  %v13429_v10 = vld [vmem:[#allocation5 + $0x744] sm:$0xf]  ;;  %v10711_v3 = vor.u32 %v13401_v6, %v10710_v28  ;;  %v13320_v47 = vld [vmem:[#allocation5 + $0x3dc] sm:$0xf]  ;;  %v10848_v6 = vld [vmem:[#allocation5 + $0x768] sm:$0xf0] }
 0x6aa   : > { %4365 = vmatpush.bf16.msrb.mxu3 %v10375_v63  ;;  %v16500_v31 = vpop.f32.mrf.mxu0  ;;  %v11382_v63 = vld [vmem:[#allocation6 + $0x400] sm:$0xf]  ;;  %v10843_v7 = vor.u32 %v13429_v10, %v10840_v57 }
 0x6ab   : > { %4353 = vmatmul.bf16.vlgmr.msrb.gmra.mxu2 %v16445_v23  ;;  %v12534_v10 = vld [vmem:[#allocation6 + $0xd00] sm:$0xf] }
 0x6ac   : > { %4397 = vmatpush.bf16.msra.mxu2 %v10611_v54  ;;  %4375 = vmatpush.bf16.msra.mxu1 %v10475_v2  ;;  %v11383_v54 = vor.u32 %v13569_v39, %v11382_v63  ;;  %v10448_v2 = vld [vmem:[#allocation5 + $0x438] sm:$0xf0]  ;;  %v10854_v63 = vld [vmem:[#allocation5 + $0x750] sm:$0xf]  ;;  %v13857_v57 = vld [vmem:[#allocation6 + $0xd1c] sm:$0xf0] }
 0x6ad   : > { %4366 = vmatmul.bf16.vlgmr.msrb.gmra.mxu3 %v16445_v23  ;;  %v10451_v38 = vor.u32 %v13328_v33, %v10448_v2  ;;  %v13435_v39 = vld [vmem:[#allocation5 + $0x76c] sm:$0xf0]  ;;  %v12535_v49 = vor.u32 %v13857_v57, %v12534_v10  ;;  %v12502_v2 = vld [vmem:[#allocation6 + $0xcc0] sm:$0xf]  ;;  %v13398_v57 = vld [vmem:[#allocation5 + $0x64c] sm:$0xf] }
 0x6ae   : > { %4806 = vmatpush.bf16.msra.mxu3 %v10839_v30  ;;  %v16505_v17 = vpop.f32.mrf.mxu2  ;;  %v10379_v30 = vor.u32 %v13311_v20, %v10376_v61  ;;  %8083 = vmatpush.bf16.msra.mxu0 %v11383_v54  ;;  %v10779_v61 = vor.u32 %v13413_v5, %v10776_v16  ;;  %v10387_v54 = vor.u32 %v13312_v21, %v10384_v8  ;;  %v13427_v33 = vld [vmem:[#allocation5 + $0x72c] sm:$0xf0]  ;;  %v13841_v16 = vld [vmem:[#allocation6 + $0xc9c] sm:$0xf0]  ;;  %v10648_v21 = vld [vmem:[#allocation5 + $0x5e0] sm:$0xf0] }
 0x6af   : > { %v13419_v5 = vld [vmem:[#allocation5 + $0x6ec] sm:$0xf0] }
 0x6b0   : > { %4398 = vmatpush.bf16.msra.mxu2 %v10579_v11  ;;  %4376 = vmatpush.bf16.msra.mxu1 %v10443_v0  ;;  %v3368_v42 = vpop.f32.mrf.mxu3  ;;  %v3344_v29 = vpop.f32.mrf.mxu1  ;;  %v10678_v11 = vld [vmem:[#allocation5 + $0x600] sm:$0xf]  ;;  %v10416_v0 = vld [vmem:[#allocation5 + $0x3f8] sm:$0xf0] }
 0x6b1   : > { %v16508_v44 = vadd.f32 %v3368_v42, %v16482_v37  ;;  %v10679_v59 = vor.u32 %v13393_v48, %v10678_v11  ;;  %v13385_v37 = vld [vmem:[#allocation5 + $0x5dc] sm:$0xf0]  ;;  %v10419_v35 = vor.u32 %v13320_v47, %v10416_v0  ;;  %v10822_v29 = vld [vmem:[#allocation5 + $0x710] sm:$0xf]  ;;  %v13414_v0 = vld [vmem:[#allocation5 + $0x6cc] sm:$0xf] }
 0x6b2   : > { %4807 = vmatpush.bf16.msra.mxu3 %v10807_v32  ;;  %v10808_v32 = vld [vmem:[#allocation5 + $0x720] sm:$0xf0]  ;;  %v4343_v18 = vpop.f32.mrf.mxu0  ;;  %8128 = vmatpush.bf16.msrb.mxu0 %v12631_v45  ;;  %v13849_v11 = vld [vmem:[#allocation6 + $0xcdc] sm:$0xf0]  ;;  %v10823_v47 = vor.u32 %v13427_v33, %v10822_v29 }
 0x6b3   : > { %v10811_v4 = vor.u32 %v13421_v34, %v10808_v32  ;;  %v10712_v45 = vld [vmem:[#allocation5 + $0x660] sm:$0xf0]  ;;  %v12503_v34 = vor.u32 %v13849_v11, %v12502_v2  ;;  %v13390_v11 = vld [vmem:[#allocation5 + $0x60c] sm:$0xf] }
 0x6b4   : > { %4399 = vmatpush.bf16.msra.mxu2 %v10547_v62  ;;  %4377 = vmatpush.bf16.msra.mxu1 %v10411_v1  ;;  %v10646_v62 = vld [vmem:[#allocation5 + $0x5c0] sm:$0xf] }
 0x6b5   : > { %v10647_v20 = vor.u32 %v13385_v37, %v10646_v62  ;;  %v10784_v62 = vld [vmem:[#allocation5 + $0x6e8] sm:$0xf0]  ;;  %v10790_v37 = vld [vmem:[#allocation5 + $0x6d0] sm:$0xf] }
 0x6b6   : > { %4808 = vmatpush.bf16.msra.mxu3 %v10775_v40  ;;  %8129 = vmatpush.bf16.msrb.mxu0 %v12599_v50  ;;  %v13865_v40 = vld [vmem:[#allocation6 + $0xd5c] sm:$0xf0]  ;;  %v3357_v22 = vpop.f32.mrf.mxu2  ;;  %v10680_v50 = vld [vmem:[#allocation5 + $0x620] sm:$0xf0]  ;;  %v10787_v8 = vor.u32 %v13414_v0, %v10784_v62 }
 0x6b7   : > { %v12567_v60 = vor.u32 %v13865_v40, %v12566_v51 }
 0x6b8   : > { %4400 = vmatpush.bf16.msra.mxu2 %v10515_v12  ;;  %4378 = vmatpush.bf16.msra.mxu1 %v10379_v30  ;;  %v3370_v19 = vpop.f32.mrf.mxu3  ;;  %v3381_v1 = vpop.f32.mrf.mxu1  ;;  %v13377_v12 = vld [vmem:[#allocation5 + $0x59c] sm:$0xf0]  ;;  %v10747_v30 = vor.u32 %v13405_v43, %v10744_v56 }
 0x6b9   : > { %v16512_v28 = vadd.f32 %v3381_v1, %v16486_v53  ;;  %v10615_v46 = vor.u32 %v13377_v12, %v10614_v13  ;;  %v13422_v53 = vld [vmem:[#allocation5 + $0x70c] sm:$0xf]  ;;  %v10758_v19 = vld [vmem:[#allocation5 + $0x690] sm:$0xf]  ;;  %v13833_v1 = vld [vmem:[#allocation6 + $0xc5c] sm:$0xf0] }
 0x6ba   : > { %4809 = vmatpush.bf16.msra.mxu3 %v10743_v58  ;;  %v13430_v58 = vld [vmem:[#allocation5 + $0x74c] sm:$0xf]  ;;  %8130 = vmatpush.bf16.msrb.mxu0 %v12567_v60 }
 0x6bb   : > { %4379 = vmatmul.bf16.vlgmr.msra.gmra.mxu1 %v16445_v23  ;;  %v10851_v42 = vor.u32 %v13430_v58, %v10848_v6  ;;  %v13406_v13 = vld [vmem:[#allocation5 + $0x68c] sm:$0xf]  ;;  %v13373_v58 = vld [vmem:[#allocation5 + $0x584] sm:$0xf] }
 0x6bc   : > { %4401 = vmatpush.bf16.msra.mxu2 %v10483_v9  ;;  %4819 = vmatpush.bf16.msrb.mxu1 %v10843_v7  ;;  %v13397_v9 = vld [vmem:[#allocation5 + $0x644] sm:$0xf]  ;;  %v10816_v7 = vld [vmem:[#allocation5 + $0x728] sm:$0xf0] }
 0x6bd   : > { %v10715_v41 = vor.u32 %v13397_v9, %v10712_v45  ;;  %v10752_v60 = vld [vmem:[#allocation5 + $0x6a8] sm:$0xf0]  ;;  %v10616_v6 = vld [vmem:[#allocation5 + $0x5a0] sm:$0xf0]  ;;  %v12406_v9 = vld [vmem:[#allocation6 + $0xc00] sm:$0xf] }
 0x6be   : > { %4810 = vmatpush.bf16.msra.mxu3 %v10711_v3  ;;  %v10855_v3 = vor.u32 %v13435_v39, %v10854_v63  ;;  %8131 = vmatpush.bf16.msrb.mxu0 %v12535_v49  ;;  %v3394_v48 = vpop.f32.mrf.mxu2  ;;  %v10755_v39 = vor.u32 %v13406_v13, %v10752_v60  ;;  %v10726_v49 = vld [vmem:[#allocation5 + $0x650] sm:$0xf]  ;;  %v13825_v45 = vld [vmem:[#allocation6 + $0xc1c] sm:$0xf0] }
 0x6bf   : > { %v16515_v32 = vadd.f32 %v3394_v48, %v16488_v55  ;;  %v12470_v55 = vld [vmem:[#allocation6 + $0xc80] sm:$0xf]  ;;  %v10630_v13 = vld [vmem:[#allocation5 + $0x590] sm:$0xf] }
 0x6c0   : > { %4402 = vmatpush.bf16.msra.mxu2 %v10451_v38  ;;  %4820 = vmatpush.bf16.msrb.mxu1 %v10811_v4  ;;  %v3407_v18 = vpop.f32.mrf.mxu3  ;;  %v3383_v15 = vpop.f32.mrf.mxu1  ;;  %v13389_v38 = vld [vmem:[#allocation5 + $0x604] sm:$0xf]  ;;  %v10819_v4 = vor.u32 %v13422_v53, %v10816_v7  ;;  %v12471_v40 = vor.u32 %v13841_v16, %v12470_v55  ;;  %v12407_v53 = vor.u32 %v13825_v45, %v12406_v9  ;;  %v10656_v55 = vld [vmem:[#allocation5 + $0x5e8] sm:$0xf0]  ;;  %v10662_v16 = vld [vmem:[#allocation5 + $0x5d0] sm:$0xf] }
 0x6c1   : > { %v10619_v7 = vor.u32 %v13373_v58, %v10616_v6  ;;  %v13423_v15 = vld [vmem:[#allocation5 + $0x714] sm:$0xf]  ;;  %v13379_v60 = vld [vmem:[#allocation5 + $0x5ac] sm:$0xf0]  ;;  %v3356_v58 = vadd.f32 %v16505_v17, %v16477_v24  ;;  %v13416_v24 = vld [vmem:[#allocation5 + $0x6dc] sm:$0xf] }
 0x6c2   : > { %4811 = vmatpush.bf16.msra.mxu3 %v10679_v59  ;;  %v3408_v59 = vadd.f32 %v3407_v18, %v16491_v14  ;;  %8132 = vmatpush.bf16.msrb.mxu0 %v12503_v34  ;;  %v10683_v14 = vor.u32 %v13389_v38, %v10680_v50  ;;  %v10688_v34 = vld [vmem:[#allocation5 + $0x628] sm:$0xf0]  ;;  %v10694_v18 = vld [vmem:[#allocation5 + $0x610] sm:$0xf]  ;;  %v10824_v38 = vld [vmem:[#allocation5 + $0x730] sm:$0xf0] }
 0x6c3   : > { %v10691_v0 = vor.u32 %v13390_v11, %v10688_v34  ;;  %v16537_v9 = vld [vmem:[#allocation32] sm:$0xff] }
 0x6c4   : > { %4403 = vmatpush.bf16.msra.mxu2 %v10419_v35  ;;  %4821 = vmatpush.bf16.msrb.mxu1 %v10779_v61  ;;  %v16521_v51 = vadd.f32 %v16484_v27, %v3408_v59  ;;  %v13381_v35 = vld [vmem:[#allocation5 + $0x5c4] sm:$0xf]  ;;  %v12438_v61 = vld [vmem:[#allocation6 + $0xc40] sm:$0xf]  ;;  %v10800_v17 = vld [vmem:[#allocation5 + $0x6f8] sm:$0xf0] }
 0x6c5   : > { %v12439_v12 = vor.u32 %v13833_v1, %v12438_v61  ;;  %v10651_v56 = vor.u32 %v13381_v35, %v10648_v21  ;;  %v13432_v61 = vld [vmem:[#allocation5 + $0x75c] sm:$0xf]  ;;  %v13383_v34 = vld [vmem:[#allocation5 + $0x5d4] sm:$0xf] }
 0x6c6   : > { %4812 = vmatpush.bf16.msra.mxu3 %v10647_v20  ;;  %v13411_v20 = vld [vmem:[#allocation5 + $0x6ac] sm:$0xf0]  ;;  %8133 = vmatpush.bf16.msrb.mxu0 %v12471_v40  ;;  %v3396_v27 = vpop.f32.mrf.mxu2  ;;  %v10864_v1 = vld [vmem:[#allocation5 + $0x778] sm:$0xf0] }
 0x6c7   : > { %v10759_v10 = vor.u32 %v13411_v20, %v10758_v19  ;;  %v13387_v40 = vld [vmem:[#allocation5 + $0x5ec] sm:$0xf0]  ;;  %v13407_v19 = vld [vmem:[#allocation5 + $0x694] sm:$0xf] }
 0x6c8   : > { %4404 = vmatpush.bf16.msra.mxu2 %v10387_v54  ;;  %4822 = vmatpush.bf16.msrb.mxu1 %v10747_v30  ;;  %v3409_v43 = vpop.f32.mrf.mxu3  ;;  %v3420_v63 = vpop.f32.mrf.mxu1  ;;  %v10720_v54 = vld [vmem:[#allocation5 + $0x668] sm:$0xf0]  ;;  %v13403_v30 = vld [vmem:[#allocation5 + $0x66c] sm:$0xf0]  ;;  %v10663_v21 = vor.u32 %v13387_v40, %v10662_v16  ;;  %v10760_v20 = vld [vmem:[#allocation5 + $0x6b0] sm:$0xf0] }
 0x6c9   : > { %v10723_v33 = vor.u32 %v13398_v57, %v10720_v54  ;;  %v10727_v2 = vor.u32 %v13403_v30, %v10726_v49  ;;  %v10728_v57 = vld [vmem:[#allocation5 + $0x670] sm:$0xf0]  ;;  %v13424_v54 = vld [vmem:[#allocation5 + $0x71c] sm:$0xf] }
 0x6ca   : > { %4813 = vmatpush.bf16.msra.mxu3 %v10615_v46  ;;  %v16523_v22 = vpop.f32.mrf.mxu0  ;;  %v16526_v46 = vadd.f32 %v3420_v63, %v16493_v26  ;;  %8134 = vmatpush.bf16.msrb.mxu0 %v12439_v12  ;;  %v13395_v26 = vld [vmem:[#allocation5 + $0x62c] sm:$0xf0]  ;;  %v10763_v63 = vor.u32 %v13407_v19, %v10760_v20  ;;  %v10832_v49 = vld [vmem:[#allocation5 + $0x738] sm:$0xf0] }
 0x6cb   : > { %4405 = vmatmul.bf16.vlgmr.msra.gmra.mxu2 %v16445_v23  ;;  %v10791_v23 = vor.u32 %v13419_v5, %v10790_v37  ;;  %v10695_v62 = vor.u32 %v13395_v26, %v10694_v18  ;;  %v13382_v37 = vld [vmem:[#allocation5 + $0x5cc] sm:$0xf]  ;;  %v10827_v5 = vor.u32 %v13423_v15, %v10824_v38  ;;  %v10664_v26 = vld [vmem:[#allocation5 + $0x5f0] sm:$0xf0]  ;;  %v10768_v15 = vld [vmem:[#allocation5 + $0x6b8] sm:$0xf0] }
 0x6cc   : > { %4845 = vmatpush.bf16.msrb.mxu2 %v10851_v42  ;;  %4823 = vmatpush.bf16.msrb.mxu1 %v10715_v41  ;;  %v13431_v42 = vld [vmem:[#allocation5 + $0x754] sm:$0xf]  ;;  %v10659_v35 = vor.u32 %v13382_v37, %v10656_v55  ;;  %v13400_v55 = vld [vmem:[#allocation5 + $0x65c] sm:$0xf] }
 0x6cd   : > { %4814 = vmatmul.bf16.vlgmr.msra.gmra.mxu3 %v16467_v25  ;;  %v13375_v37 = vld [vmem:[#allocation5 + $0x594] sm:$0xf]  ;;  %v10736_v16 = vld [vmem:[#allocation5 + $0x678] sm:$0xf0] }
 0x6ce   : > { %4858 = vmatpush.bf16.msrb.mxu3 %v10855_v3  ;;  %v10856_v3 = vld [vmem:[#allocation5 + $0x770] sm:$0xf0]  ;;  %8135 = vmatpush.bf16.msrb.mxu0 %v12407_v53  ;;  %v3818_v41 = vpop.f32.mrf.mxu2 }
 0x6cf   : > { %v10859_v48 = vor.u32 %v13431_v42, %v10856_v3  ;;  %v16529_v50 = vadd.f32 %v3818_v41, %v16496_v52  ;;  %v10792_v52 = vld [vmem:[#allocation5 + $0x6f0] sm:$0xf0]  ;;  %v10835_v42 = vor.u32 %v13424_v54, %v10832_v49  ;;  %v13408_v41 = vld [vmem:[#allocation5 + $0x69c] sm:$0xf]  ;;  %v13497_v54 = vld [vmem:[#allocation6 + $0x1dc] sm:$0xf0] }
 0x6d0   : > { %4846 = vmatpush.bf16.msrb.mxu2 %v10819_v4  ;;  %4824 = vmatpush.bf16.msrb.mxu1 %v10683_v14  ;;  %v3831_v59 = vpop.f32.mrf.mxu3  ;;  %v13415_v14 = vld [vmem:[#allocation5 + $0x6d4] sm:$0xf]  ;;  %v13376_v49 = vld [vmem:[#allocation5 + $0x59c] sm:$0xf] }
 0x6d1   : > { %v16532_v4 = vadd.f32 %v3831_v59, %v16503_v36  ;;  %v10624_v36 = vld [vmem:[#allocation5 + $0x5a8] sm:$0xf0]  ;;  %v13391_v3 = vld [vmem:[#allocation5 + $0x614] sm:$0xf]  ;;  %v13621_v59 = vld [vmem:[#allocation6 + $0x5c4] sm:$0xf] }
 0x6d2   : > { %4859 = vmatpush.bf16.msrb.mxu3 %v10823_v47  ;;  %v4395_v29 = vpop.f32.mrf.mxu0  ;;  %v3422_v47 = vpop.f32.mrf.mxu1  ;;  %v10696_v53 = vld [vmem:[#allocation5 + $0x630] sm:$0xf0] }
 0x6d3   : > { %v4922_v29 = vperm.slane %v16537_v9, 2  ;;  %v10699_v11 = vor.u32 %v13391_v3, %v10696_v53  ;;  %v11608_v47 = vld [vmem:[#allocation6 + $0x5e0] sm:$0xf0] }
 0x6d4   : > { %4847 = vmatpush.bf16.msrb.mxu2 %v10787_v8  ;;  %4825 = vmatpush.bf16.msrb.mxu1 %v10651_v56  ;;  %v13374_v8 = vld [vmem:[#allocation5 + $0x58c] sm:$0xf]  ;;  %v10631_v56 = vor.u32 %v13379_v60, %v10630_v13  ;;  %v10704_v13 = vld [vmem:[#allocation5 + $0x638] sm:$0xf0] }
 0x6d5   : > { %v10627_v43 = vor.u32 %v13374_v8, %v10624_v36  ;;  %v10739_v36 = vor.u32 %v13400_v55, %v10736_v16 }
 0x6d6   : > { %4860 = vmatpush.bf16.msrb.mxu3 %v10791_v23  ;;  %v10795_v23 = vor.u32 %v13415_v14, %v10792_v52  ;;  %v3820_v27 = vpop.f32.mrf.mxu2  ;;  %v11611_v14 = vor.u32 %v13621_v59, %v11608_v47  ;;  %v13613_v52 = vld [vmem:[#allocation6 + $0x584] sm:$0xf]  ;;  %v11350_v47 = vld [vmem:[#allocation6 + $0x3c0] sm:$0xf] }
 0x6d7   : > { %v11416_v59 = vld [vmem:[#allocation6 + $0x460] sm:$0xf0] }
 0x6d8   : > { %4848 = vmatpush.bf16.msrb.mxu2 %v10755_v39  ;;  %4826 = vmatpush.bf16.msrb.mxu1 %v10619_v7  ;;  %v3833_v12 = vpop.f32.mrf.mxu3  ;;  %v10867_v39 = vor.u32 %v13432_v61, %v10864_v1  ;;  %v13605_v61 = vld [vmem:[#allocation6 + $0x544] sm:$0xf] }
 0x6d9   : > { %v11544_v1 = vld [vmem:[#allocation6 + $0x560] sm:$0xf0] }
 0x6da   : > { %4861 = vmatpush.bf16.msrb.mxu3 %v10759_v10  ;;  %v3844_v6 = vpop.f32.mrf.mxu1  ;;  %v13399_v10 = vld [vmem:[#allocation5 + $0x654] sm:$0xf] }
 0x6db   : > { %4827 = vmatmul.bf16.vlgmr.msrb.gmra.mxu1 %v16467_v25  ;;  %v3915_v30 = vadd.f32 %v3844_v6, %v3356_v58  ;;  %v10731_v45 = vor.u32 %v13399_v10, %v10728_v57  ;;  %v10672_v58 = vld [vmem:[#allocation5 + $0x5f8] sm:$0xf0]  ;;  %v11547_v6 = vor.u32 %v13605_v61, %v11544_v1  ;;  %v11094_v57 = vld [vmem:[#allocation6 + $0x1c0] sm:$0xf] }
 0x6dc   : > { %4849 = vmatpush.bf16.msrb.mxu2 %v10723_v33  ;;  %4871 = vmatpush.bf16.msra.mxu1 %v10859_v48  ;;  %v10803_v48 = vor.u32 %v13416_v24, %v10800_v17  ;;  %v11062_v17 = vld [vmem:[#allocation6 + $0x180] sm:$0xf] }
 0x6dd   : > { %v4412_v7 = vadd.f32 %v16500_v31, %v3915_v30  ;;  %v10667_v31 = vor.u32 %v13383_v34, %v10664_v26  ;;  %v10640_v30 = vld [vmem:[#allocation5 + $0x5b8] sm:$0xf0]  ;;  %v11448_v34 = vld [vmem:[#allocation6 + $0x4a0] sm:$0xf0]  ;;  %v13481_v26 = vld [vmem:[#allocation6 + $0x15c] sm:$0xf0] }
 0x6de   : > { %4862 = vmatpush.bf16.msrb.mxu3 %v10727_v2  ;;  %v10643_v24 = vor.u32 %v13376_v49, %v10640_v30 }
 0x6e0   : > { %4850 = vmatpush.bf16.msrb.mxu2 %v10691_v0  ;;  %4872 = vmatpush.bf16.msra.mxu1 %v10827_v5  ;;  %v10632_v5 = vld [vmem:[#allocation5 + $0x5b0] sm:$0xf0] }
 0x6e1   : > { %v10635_v8 = vor.u32 %v13375_v37, %v10632_v5  ;;  %v10998_v37 = vld [vmem:[#allocation6 + $0x100] sm:$0xf] }
 0x6e2   : > { %4863 = vmatpush.bf16.msrb.mxu3 %v10695_v62  ;;  %v3846_v18 = vpop.f32.mrf.mxu1  ;;  %v10771_v62 = vor.u32 %v13408_v41, %v10768_v15  ;;  %v13473_v5 = vld [vmem:[#allocation6 + $0x11c] sm:$0xf0] }
 0x6e3   : > { %v11030_v18 = vld [vmem:[#allocation6 + $0x140] sm:$0xf]  ;;  %v10999_v16 = vor.u32 %v13473_v5, %v10998_v37 }
 0x6e4   : > { %4851 = vmatpush.bf16.msrb.mxu2 %v10659_v35  ;;  %4873 = vmatpush.bf16.msra.mxu1 %v10795_v23  ;;  %v11576_v35 = vld [vmem:[#allocation6 + $0x5a0] sm:$0xf0]  ;;  %v13392_v23 = vld [vmem:[#allocation5 + $0x61c] sm:$0xf]  ;;  %v11031_v41 = vor.u32 %v13481_v26, %v11030_v18  ;;  %v11190_v5 = vld [vmem:[#allocation6 + $0x280] sm:$0xf] }
 0x6e5   : > { %v11579_v60 = vor.u32 %v13613_v52, %v11576_v35  ;;  %v13565_v35 = vld [vmem:[#allocation6 + $0x404] sm:$0xf] }
 0x6e6   : > { %4864 = vmatpush.bf16.msrb.mxu3 %v10663_v21 }
 0x6e8   : > { %4852 = vmatpush.bf16.msrb.mxu2 %v10627_v43  ;;  %4874 = vmatpush.bf16.msra.mxu1 %v10763_v63  ;;  %v10707_v43 = vor.u32 %v13392_v23, %v10704_v13  ;;  %v13597_v63 = vld [vmem:[#allocation6 + $0x504] sm:$0xf] }
 0x6ea   : > { %4865 = vmatpush.bf16.msrb.mxu3 %v10631_v56  ;;  %v4841_v33 = vpop.f32.mrf.mxu0  ;;  %v13384_v56 = vld [vmem:[#allocation5 + $0x5dc] sm:$0xf] }
 0x6eb   : > { %4853 = vmatmul.bf16.vlgmr.msrb.gmra.mxu2 %v16467_v25  ;;  %v4912_v2 = vadd.f32 %v4841_v33, %v4412_v7  ;;  %v10675_v10 = vor.u32 %v13384_v56, %v10672_v58  ;;  %v13489_v7 = vld [vmem:[#allocation6 + $0x19c] sm:$0xf0] }
 0x6ec   : > { %4897 = vmatpush.bf16.msra.mxu2 %v10867_v39  ;;  %4875 = vmatpush.bf16.msra.mxu1 %v10731_v45  ;;  %v11512_v39 = vld [vmem:[#allocation6 + $0x520] sm:$0xf0]  ;;  %v13545_v56 = vld [vmem:[#allocation6 + $0x35c] sm:$0xf0] }
 0x6ed   : > { %4866 = vmatmul.bf16.vlgmr.msrb.gmra.mxu3 %v16467_v25  ;;  %v4938_v38 = vadd.f32 %v4922_v29, %v4912_v2  ;;  %v11515_v45 = vor.u32 %v13597_v63, %v11512_v39  ;;  %v11063_v29 = vor.u32 %v13489_v7, %v11062_v17  ;;  %v13869_v63 = vld [vmem:[#allocation6 + $0xd84] sm:$0xf] }
 0x6ee   : > { %v3857_v19 = vpop.f32.mrf.mxu2 }
 0x6ef   : > { %v4946_v0 = vmax.f32 %v4938_v38, 0.0  ;;  %v16547_v27 = vadd.f32 %v3857_v19, %v16508_v44  ;;  %v11095_v44 = vor.u32 %v13497_v54, %v11094_v57  ;;  %v13573_v38 = vld [vmem:[#allocation6 + $0x444] sm:$0xf]  ;;  %v10934_v57 = vld [vmem:[#allocation6 + $0x80] sm:$0xf] }
 0x6f0   : > { %4898 = vmatpush.bf16.msra.mxu2 %v10835_v42  ;;  %4876 = vmatpush.bf16.msra.mxu1 %v10699_v11  ;;  %v3870_v20 = vpop.f32.mrf.mxu3  ;;  %v11480_v42 = vld [vmem:[#allocation6 + $0x4e0] sm:$0xf0]  ;;  %v11419_v52 = vor.u32 %v13573_v38, %v11416_v59  ;;  %v13457_v54 = vld [vmem:[#allocation6 + $0x9c] sm:$0xf0] }
 0x6f1   : > { %v16543_v40 = vpack.c.bf16 %v4946_v0, %v4946_v0  ;;  %v16550_v12 = vadd.f32 %v3870_v20, %v16512_v28  ;;  %v13589_v28 = vld [vmem:[#allocation6 + $0x4c4] sm:$0xf]  ;;  %8050 = vmatpush.bf16.msra.mxu3 %v11095_v44  ;;  %v13561_v0 = vld [vmem:[#allocation6 + $0x3dc] sm:$0xf0]  ;;  %v10935_v30 = vor.u32 %v13457_v54, %v10934_v57 }
 0x6f2   : > { %v4843_v21 = vpop.f32.mrf.mxu0  ;;  %v11483_v2 = vor.u32 %v13589_v28, %v11480_v42  ;;  %v12632_v19 = vld [vmem:[#allocation6 + $0xde0] sm:$0xf0]  ;;  %v11254_v44 = vld [vmem:[#allocation6 + $0x300] sm:$0xf] }
 0x6f3   : > { %8084 = vmatmul.bf16.vlgmr.msra.gmra.mxu0 %v16543_v40  ;;  %v10870_v38 = vld [vmem:[#allocation6] sm:$0xf] }
 0x6f4   : > { %4899 = vmatpush.bf16.msra.mxu2 %v10803_v48  ;;  %4877 = vmatpush.bf16.msra.mxu1 %v10667_v31  ;;  %v13581_v48 = vld [vmem:[#allocation6 + $0x484] sm:$0xf]  ;;  %v4926_v31 = vperm.slane %v16537_v9, 6  ;;  %v13441_v59 = vld [vmem:[#allocation6 + $0x1c] sm:$0xf0] }
 0x6f5   : > { %8180 = vmatpush.bf16.msra.mxu0 %v11611_v14  ;;  %8051 = vmatpush.bf16.msra.mxu3 %v11063_v29  ;;  %v11451_v15 = vor.u32 %v13581_v48, %v11448_v34  ;;  %v10902_v29 = vld [vmem:[#allocation6 + $0x40] sm:$0xf] }
 0x6f6   : > { %v3859_v3 = vpop.f32.mrf.mxu2  ;;  %v13529_v34 = vld [vmem:[#allocation6 + $0x2dc] sm:$0xf0] }
 0x6f7   : > { %v13861_v3 = vld [vmem:[#allocation6 + $0xd44] sm:$0xf]  ;;  %v13737_v57 = vld [vmem:[#allocation6 + $0x95c] sm:$0xf0] }
 0x6f8   : > { %4900 = vmatpush.bf16.msra.mxu2 %v10771_v62  ;;  %4878 = vmatpush.bf16.msra.mxu1 %v10635_v8  ;;  %v3872_v53 = vpop.f32.mrf.mxu3  ;;  %v3883_v33 = vpop.f32.mrf.mxu1  ;;  %v11351_v62 = vor.u32 %v13561_v0, %v11350_v47  ;;  %v11318_v8 = vld [vmem:[#allocation6 + $0x380] sm:$0xf] }
 0x6f9   : > { %8181 = vmatpush.bf16.msra.mxu0 %v11579_v60  ;;  %v16554_v11 = vadd.f32 %v3883_v33, %v16515_v32  ;;  %8052 = vmatpush.bf16.msra.mxu3 %v11031_v41  ;;  %v4416_v32 = vadd.f32 %v16523_v22, %v16521_v51  ;;  %v10966_v51 = vld [vmem:[#allocation6 + $0xc0] sm:$0xf]  ;;  %v13877_v60 = vld [vmem:[#allocation6 + $0xdc4] sm:$0xf] }
 0x6fa   : > { %v13465_v22 = vld [vmem:[#allocation6 + $0xdc] sm:$0xf0]  ;;  %v12568_v53 = vld [vmem:[#allocation6 + $0xd60] sm:$0xf0] }
 0x6fb   : > { %4879 = vmatmul.bf16.vlgmr.msra.gmra.mxu1 %v16467_v25  ;;  %v10967_v20 = vor.u32 %v13465_v22, %v10966_v51  ;;  %v13449_v33 = vld [vmem:[#allocation6 + $0x5c] sm:$0xf0]  ;;  %v12571_v26 = vor.u32 %v13861_v3, %v12568_v53  ;;  %v13853_v41 = vld [vmem:[#allocation6 + $0xd04] sm:$0xf] }
 0x6fc   : > { %4901 = vmatpush.bf16.msra.mxu2 %v10739_v36  ;;  %8063 = vmatpush.bf16.msrb.mxu1 %v11351_v62  ;;  %v13553_v36 = vld [vmem:[#allocation6 + $0x39c] sm:$0xf0]  ;;  %v10903_v48 = vor.u32 %v13449_v33, %v10902_v29 }
 0x6fd   : > { %8182 = vmatpush.bf16.msra.mxu0 %v11547_v6  ;;  %8053 = vmatpush.bf16.msra.mxu3 %v10999_v16  ;;  %v11319_v13 = vor.u32 %v13553_v36, %v11318_v8  ;;  %v12635_v6 = vor.u32 %v13877_v60, %v12632_v19  ;;  %v11862_v47 = vld [vmem:[#allocation6 + $0x7c0] sm:$0xf] }
 0x6fe   : > { %v13689_v0 = vld [vmem:[#allocation6 + $0x7dc] sm:$0xf0] }
 0x6ff   : > { %v11863_v62 = vor.u32 %v13689_v0, %v11862_v47  ;;  %v11830_v8 = vld [vmem:[#allocation6 + $0x780] sm:$0xf] }
 0x700   : > { %4902 = vmatpush.bf16.msra.mxu2 %v10707_v43  ;;  %v3885_v21 = vpop.f32.mrf.mxu1  ;;  %8064 = vmatpush.bf16.msrb.mxu1 %v11319_v13  ;;  %v11286_v43 = vld [vmem:[#allocation6 + $0x340] sm:$0xf] }
 0x701   : > { %8183 = vmatpush.bf16.msra.mxu0 %v11515_v45  ;;  %8054 = vmatpush.bf16.msra.mxu3 %v10967_v20  ;;  %v11287_v39 = vor.u32 %v13545_v56, %v11286_v43  ;;  %v13537_v45 = vld [vmem:[#allocation6 + $0x31c] sm:$0xf0]  ;;  %v12504_v21 = vld [vmem:[#allocation6 + $0xce0] sm:$0xf0] }
 0x702   : > { %v13681_v36 = vld [vmem:[#allocation6 + $0x79c] sm:$0xf0] }
 0x703   : > { %v11831_v51 = vor.u32 %v13681_v36, %v11830_v8  ;;  %v13745_v22 = vld [vmem:[#allocation6 + $0x99c] sm:$0xf0]  ;;  %v13618_v8 = vld [vmem:[#allocation6 + $0x5a4] sm:$0xf0] }
 0x704   : > { %4903 = vmatpush.bf16.msra.mxu2 %v10675_v10  ;;  %v12600_v10 = vld [vmem:[#allocation6 + $0xda0] sm:$0xf0]  ;;  %8065 = vmatpush.bf16.msrb.mxu1 %v11287_v39  ;;  %v11158_v60 = vld [vmem:[#allocation6 + $0x240] sm:$0xf] }
 0x705   : > { %8184 = vmatpush.bf16.msra.mxu0 %v11483_v2  ;;  %v12603_v42 = vor.u32 %v13869_v63, %v12600_v10  ;;  %8055 = vmatpush.bf16.msra.mxu3 %v10935_v30  ;;  %v11222_v2 = vld [vmem:[#allocation6 + $0x2c0] sm:$0xf]  ;;  %v13829_v30 = vld [vmem:[#allocation6 + $0xc44] sm:$0xf] }
 0x706   : > { %v11223_v18 = vor.u32 %v13529_v34, %v11222_v2  ;;  %v13513_v19 = vld [vmem:[#allocation6 + $0x25c] sm:$0xf0] }
 0x707   : > { %v11159_v56 = vor.u32 %v13513_v19, %v11158_v60  ;;  %v13673_v63 = vld [vmem:[#allocation6 + $0x75c] sm:$0xf0] }
 0x708   : > { %4904 = vmatpush.bf16.msra.mxu2 %v10643_v24  ;;  %v11255_v24 = vor.u32 %v13537_v45, %v11254_v44  ;;  %v12054_v39 = vld [vmem:[#allocation6 + $0x940] sm:$0xf] }
 0x709   : > { %8185 = vmatpush.bf16.msra.mxu0 %v11451_v15  ;;  %v12536_v15 = vld [vmem:[#allocation6 + $0xd20] sm:$0xf0]  ;;  %8056 = vmatpush.bf16.msra.mxu3 %v10903_v48  ;;  %v11126_v54 = vld [vmem:[#allocation6 + $0x200] sm:$0xf]  ;;  %v12055_v44 = vor.u32 %v13737_v57, %v12054_v39 }
 0x70a   : > { %v4893_v55 = vpop.f32.mrf.mxu0  ;;  %8066 = vmatpush.bf16.msrb.mxu1 %v11255_v24  ;;  %v12539_v16 = vor.u32 %v13853_v41, %v12536_v15  ;;  %v12374_v3 = vld [vmem:[#allocation6 + $0xbc0] sm:$0xf] }
 0x70b   : > { %4905 = vmatmul.bf16.vlgmr.msra.gmra.mxu2 %v16467_v25  ;;  %v4916_v14 = vadd.f32 %v4893_v55, %v4416_v32  ;;  %v11384_v25 = vld [vmem:[#allocation6 + $0x420] sm:$0xf0]  ;;  %v12118_v32 = vld [vmem:[#allocation6 + $0x9c0] sm:$0xf] }
 0x70c   : > { %v11387_v1 = vor.u32 %v13565_v35, %v11384_v25  ;;  %v13521_v55 = vld [vmem:[#allocation6 + $0x29c] sm:$0xf0]  ;;  %v13845_v35 = vld [vmem:[#allocation6 + $0xcc4] sm:$0xf]  ;;  %8089 = vmatpush.bf16.msrb.mxu2 %v11863_v62  ;;  %v11614_v62 = vld [vmem:[#allocation6 + $0x5c8] sm:$0xf] }
 0x70d   : > { %v4942_v23 = vadd.f32 %v4926_v31, %v4916_v14  ;;  %8186 = vmatpush.bf16.msra.mxu0 %v11419_v52  ;;  %v13753_v31 = vld [vmem:[#allocation6 + $0x9dc] sm:$0xf0]  ;;  %v11191_v52 = vor.u32 %v13521_v55, %v11190_v5  ;;  %v12507_v20 = vor.u32 %v13845_v35, %v12504_v21 }
 0x70e   : > { %v3909_v28 = vpop.f32.mrf.mxu2  ;;  %8067 = vmatpush.bf16.msrb.mxu1 %v11223_v18  ;;  %v12119_v37 = vor.u32 %v13753_v31, %v12118_v32  ;;  %v13817_v53 = vld [vmem:[#allocation6 + $0xbdc] sm:$0xf0]  ;;  %v13821_v18 = vld [vmem:[#allocation6 + $0xc04] sm:$0xf] }
 0x70f   : > { %v4950_v61 = vmax.f32 %v4942_v23, 0.0  ;;  %v16564_v17 = vadd.f32 %v3909_v28, %v16526_v46  ;;  %v10871_v46 = vor.u32 %v13441_v59, %v10870_v38  ;;  %v12086_v23 = vld [vmem:[#allocation6 + $0x980] sm:$0xf]  ;;  %v12375_v24 = vor.u32 %v13817_v53, %v12374_v3  ;;  %v12408_v38 = vld [vmem:[#allocation6 + $0xc20] sm:$0xf0] }
 0x710   : > { %v16566_v7 = vpop.f32.mrf.mxu3  ;;  %v12087_v43 = vor.u32 %v13745_v22, %v12086_v23  ;;  %8090 = vmatpush.bf16.msrb.mxu2 %v11831_v51  ;;  %v11766_v29 = vld [vmem:[#allocation6 + $0x700] sm:$0xf]  ;;  %v11518_v53 = vld [vmem:[#allocation6 + $0x508] sm:$0xf] }
 0x711   : > { %v16560_v58 = vpack.c.bf16 %v4950_v61, %v4950_v61  ;;  %8187 = vmatpush.bf16.msra.mxu0 %v11387_v1  ;;  %8057 = vmatpush.bf16.msra.mxu3 %v10871_v46  ;;  %v13837_v61 = vld [vmem:[#allocation6 + $0xc84] sm:$0xf]  ;;  %v13665_v33 = vld [vmem:[#allocation6 + $0x71c] sm:$0xf0] }
 0x712   : > { %v4895_v49 = vpop.f32.mrf.mxu0  ;;  %8068 = vmatpush.bf16.msrb.mxu1 %v11191_v52  ;;  %v12472_v1 = vld [vmem:[#allocation6 + $0xca0] sm:$0xf0]  ;;  %v12022_v2 = vld [vmem:[#allocation6 + $0x900] sm:$0xf]  ;;  %v11767_v48 = vor.u32 %v13665_v33, %v11766_v29 }
 0x713   : > { %8136 = vmatmul.bf16.vlgmr.msrb.gmra.mxu0 %v16560_v58  ;;  %v13505_v49 = vld [vmem:[#allocation6 + $0x21c] sm:$0xf0]  ;;  %v12475_v28 = vor.u32 %v13837_v61, %v12472_v1 }
 0x714   : > { %v11127_v45 = vor.u32 %v13505_v49, %v11126_v54  ;;  %v13729_v34 = vld [vmem:[#allocation6 + $0x91c] sm:$0xf0] }
 0x715   : > { %8232 = vmatpush.bf16.msrb.mxu0 %v12635_v6  ;;  %8102 = vmatpush.bf16.msrb.mxu3 %v12119_v37  ;;  %v11798_v6 = vld [vmem:[#allocation6 + $0x740] sm:$0xf]  ;;  %v12023_v41 = vor.u32 %v13729_v34, %v12022_v2  ;;  %v13626_v37 = vld [vmem:[#allocation6 + $0x5e4] sm:$0xf0] }
 0x716   : > { %v3911_v14 = vpop.f32.mrf.mxu2  ;;  %8069 = vmatpush.bf16.msrb.mxu1 %v11159_v56  ;;  %v11799_v10 = vor.u32 %v13673_v63, %v11798_v6  ;;  %v12342_v59 = vld [vmem:[#allocation6 + $0xb80] sm:$0xf]  ;;  %v11615_v21 = vor.u32 %v13626_v37, %v11614_v62  ;;  %v11550_v56 = vld [vmem:[#allocation6 + $0x548] sm:$0xf] }
 0x717   : > { %v13809_v47 = vld [vmem:[#allocation6 + $0xb9c] sm:$0xf0]  ;;  %v12411_v14 = vor.u32 %v13821_v18, %v12408_v38  ;;  %v13610_v6 = vld [vmem:[#allocation6 + $0x564] sm:$0xf0] }
 0x718   : > { %v4317_v25 = vpop.f32.mrf.mxu3  ;;  %v16568_v13 = vpop.f32.mrf.mxu1  ;;  %8091 = vmatpush.bf16.msrb.mxu2 %v11799_v10  ;;  %v12343_v46 = vor.u32 %v13809_v47, %v12342_v59  ;;  %v11734_v0 = vld [vmem:[#allocation6 + $0x6c0] sm:$0xf]  ;;  %v11551_v3 = vor.u32 %v13610_v6, %v11550_v56 }
 0x719   : > { %8233 = vmatpush.bf16.msrb.mxu0 %v12603_v42  ;;  %8103 = vmatpush.bf16.msrb.mxu3 %v12087_v43  ;;  %v12440_v42 = vld [vmem:[#allocation6 + $0xc60] sm:$0xf0]  ;;  %v13657_v32 = vld [vmem:[#allocation6 + $0x6dc] sm:$0xf0]  ;;  %v11582_v25 = vld [vmem:[#allocation6 + $0x588] sm:$0xf] }
 0x71a   : > { %8070 = vmatpush.bf16.msrb.mxu1 %v11127_v45  ;;  %v12443_v15 = vor.u32 %v13829_v30, %v12440_v42  ;;  %v11990_v31 = vld [vmem:[#allocation6 + $0x8c0] sm:$0xf]  ;;  %v11735_v5 = vor.u32 %v13657_v32, %v11734_v0  ;;  %v11583_v43 = vor.u32 %v13618_v8, %v11582_v25  ;;  %v11486_v0 = vld [vmem:[#allocation6 + $0x4c8] sm:$0xf] }
 0x71b   : > { %v13721_v55 = vld [vmem:[#allocation6 + $0x8dc] sm:$0xf0]  ;;  %v13594_v32 = vld [vmem:[#allocation6 + $0x4e4] sm:$0xf0] }
 0x71c   : > { %8092 = vmatpush.bf16.msrb.mxu2 %v11767_v48  ;;  %v12310_v52 = vld [vmem:[#allocation6 + $0xb40] sm:$0xf]  ;;  %v11454_v25 = vld [vmem:[#allocation6 + $0x488] sm:$0xf] }
 0x71d   : > { %8234 = vmatpush.bf16.msrb.mxu0 %v12571_v26  ;;  %8104 = vmatpush.bf16.msrb.mxu3 %v12055_v44  ;;  %v13801_v35 = vld [vmem:[#allocation6 + $0xb5c] sm:$0xf0]  ;;  %v13586_v8 = vld [vmem:[#allocation6 + $0x4a4] sm:$0xf0] }
 0x71e   : > { %8115 = vmatpush.bf16.msra.mxu1 %v12375_v24  ;;  %v12311_v36 = vor.u32 %v13801_v35, %v12310_v52  ;;  %v11702_v23 = vld [vmem:[#allocation6 + $0x680] sm:$0xf]  ;;  %v13602_v24 = vld [vmem:[#allocation6 + $0x524] sm:$0xf0]  ;;  %v11487_v35 = vor.u32 %v13594_v32, %v11486_v0 }
 0x71f   : > { %v13649_v51 = vld [vmem:[#allocation6 + $0x69c] sm:$0xf0]  ;;  %v11519_v47 = vor.u32 %v13602_v24, %v11518_v53 }
 0x720   : > { %v4330_v26 = vpop.f32.mrf.mxu1  ;;  %8093 = vmatpush.bf16.msrb.mxu2 %v11735_v5  ;;  %v11958_v22 = vld [vmem:[#allocation6 + $0x880] sm:$0xf]  ;;  %v11703_v60 = vor.u32 %v13649_v51, %v11702_v23 }
 0x721   : > { %8235 = vmatpush.bf16.msrb.mxu0 %v12539_v16  ;;  %8105 = vmatpush.bf16.msrb.mxu3 %v12023_v41  ;;  %v11991_v16 = vor.u32 %v13721_v55, %v11990_v31  ;;  %v13713_v19 = vld [vmem:[#allocation6 + $0x89c] sm:$0xf0] }
 0x722   : > { %8116 = vmatpush.bf16.msra.mxu1 %v12343_v46  ;;  %v12278_v61 = vld [vmem:[#allocation6 + $0xb00] sm:$0xf] }
 0x723   : > { %8188 = vmatmul.bf16.vlgmr.msra.gmra.mxu0 %v16543_v40  ;;  %v13793_v1 = vld [vmem:[#allocation6 + $0xb1c] sm:$0xf0] }
 0x724   : > { %8094 = vmatpush.bf16.msrb.mxu2 %v11703_v60  ;;  %v12279_v63 = vor.u32 %v13793_v1, %v12278_v61  ;;  %v11670_v57 = vld [vmem:[#allocation6 + $0x640] sm:$0xf]  ;;  %v11422_v1 = vld [vmem:[#allocation6 + $0x448] sm:$0xf] }
 0x725   : > { %8236 = vmatpush.bf16.msrb.mxu0 %v12507_v20  ;;  %8106 = vmatpush.bf16.msrb.mxu3 %v11991_v16  ;;  %v11959_v20 = vor.u32 %v13713_v19, %v11958_v22  ;;  %v13641_v54 = vld [vmem:[#allocation6 + $0x65c] sm:$0xf0] }
 0x726   : > { %8117 = vmatpush.bf16.msra.mxu1 %v12311_v36  ;;  %v11926_v49 = vld [vmem:[#allocation6 + $0x840] sm:$0xf]  ;;  %v11671_v30 = vor.u32 %v13641_v54, %v11670_v57 }
 0x727   : > { %v13705_v44 = vld [vmem:[#allocation6 + $0x85c] sm:$0xf0] }
 0x728   : > { %v11927_v45 = vor.u32 %v13705_v44, %v11926_v49  ;;  %v13785_v42 = vld [vmem:[#allocation6 + $0xadc] sm:$0xf0]  ;;  %8095 = vmatpush.bf16.msrb.mxu2 %v11671_v30  ;;  %v11390_v49 = vld [vmem:[#allocation6 + $0x408] sm:$0xf] }
 0x729   : > { %8237 = vmatpush.bf16.msrb.mxu0 %v12475_v28  ;;  %8107 = vmatpush.bf16.msrb.mxu3 %v11959_v20  ;;  %v12246_v28 = vld [vmem:[#allocation6 + $0xac0] sm:$0xf]  ;;  %v11455_v20 = vor.u32 %v13586_v8, %v11454_v25  ;;  %v13570_v30 = vld [vmem:[#allocation6 + $0x424] sm:$0xf0] }
 0x72a   : > { %8118 = vmatpush.bf16.msra.mxu1 %v12279_v63  ;;  %v12247_v29 = vor.u32 %v13785_v42, %v12246_v28  ;;  %v11638_v33 = vld [vmem:[#allocation6 + $0x600] sm:$0xf]  ;;  %v12638_v44 = vld [vmem:[#allocation6 + $0xdc8] sm:$0xf]  ;;  %v11391_v53 = vor.u32 %v13570_v30, %v11390_v49 }
 0x72b   : > { %v13633_v2 = vld [vmem:[#allocation6 + $0x61c] sm:$0xf0]  ;;  %v12478_v49 = vld [vmem:[#allocation6 + $0xc88] sm:$0xf] }
 0x72c   : > { %v11894_v48 = vld [vmem:[#allocation6 + $0x800] sm:$0xf]  ;;  %v11639_v34 = vor.u32 %v13633_v2, %v11638_v33  ;;  %v13874_v33 = vld [vmem:[#allocation6 + $0xda4] sm:$0xf0] }
 0x72d   : > { %8238 = vmatpush.bf16.msrb.mxu0 %v12443_v15  ;;  %8108 = vmatpush.bf16.msrb.mxu3 %v11927_v45  ;;  %v13697_v18 = vld [vmem:[#allocation6 + $0x81c] sm:$0xf0]  ;;  %v13882_v45 = vld [vmem:[#allocation6 + $0xde4] sm:$0xf0] }
 0x72e   : > { %v16571_v39 = vpop.f32.mrf.mxu2  ;;  %8119 = vmatpush.bf16.msra.mxu1 %v12247_v29  ;;  %v12886_v26 = vld [vmem:[#allocation6 + $0xfc0] sm:$0xf]  ;;  %v11895_v15 = vor.u32 %v13697_v18, %v11894_v48  ;;  %8096 = vmatpush.bf16.msrb.mxu2 %v11639_v34  ;;  %v12639_v24 = vor.u32 %v13882_v45, %v12638_v44  ;;  %v12606_v29 = vld [vmem:[#allocation6 + $0xd88] sm:$0xf]  ;;  %v4920_v18 = vperm.slane %v16537_v9, 0 }
 0x72f   : > { %v13945_v41 = vld [vmem:[#allocation6 + $0xfdc] sm:$0xf0]  ;;  %v13842_v30 = vld [vmem:[#allocation6 + $0xca4] sm:$0xf0]  ;;  %v13557_v45 = vld [vmem:[#allocation6 + $0x3c4] sm:$0xf] }
 0x730   : > { %v16573_v10 = vpop.f32.mrf.mxu3  ;;  %v12887_v38 = vor.u32 %v13945_v41, %v12886_v26  ;;  %v12214_v59 = vld [vmem:[#allocation6 + $0xa80] sm:$0xf]  ;;  %v12607_v26 = vor.u32 %v13874_v33, %v12606_v29  ;;  %v12574_v41 = vld [vmem:[#allocation6 + $0xd48] sm:$0xf] }
 0x731   : > { %8239 = vmatpush.bf16.msrb.mxu0 %v12411_v14  ;;  %v13777_v46 = vld [vmem:[#allocation6 + $0xa9c] sm:$0xf0]  ;;  %8109 = vmatpush.bf16.msrb.mxu3 %v11895_v15  ;;  %v4410_v15 = vadd.f32 %v16566_v7, %v16529_v50  ;;  %v13834_v29 = vld [vmem:[#allocation6 + $0xc64] sm:$0xf0] }
 0x732   : > { %8141 = vmatpush.bf16.msra.mxu2 %v12887_v38  ;;  %v12215_v37 = vor.u32 %v13777_v46, %v12214_v59  ;;  %v12854_v5 = vld [vmem:[#allocation6 + $0xf80] sm:$0xf]  ;;  %v13866_v59 = vld [vmem:[#allocation6 + $0xd64] sm:$0xf0] }
 0x733   : > { %v13937_v55 = vld [vmem:[#allocation6 + $0xf9c] sm:$0xf0] }
 0x734   : > { %8240 = vmatmul.bf16.vlgmr.msrb.gmra.mxu0 %v16560_v58  ;;  %8120 = vmatpush.bf16.msra.mxu1 %v12215_v37  ;;  %v12855_v16 = vor.u32 %v13937_v55, %v12854_v5  ;;  %v12182_v14 = vld [vmem:[#allocation6 + $0xa40] sm:$0xf]  ;;  %v13493_v37 = vld [vmem:[#allocation6 + $0x1c4] sm:$0xf]  ;;  %v12542_v55 = vld [vmem:[#allocation6 + $0xd08] sm:$0xf] }
 0x735   : > { %8284 = vmatpush.bf16.msra.mxu0 %v11615_v21  ;;  %v13769_v21 = vld [vmem:[#allocation6 + $0xa5c] sm:$0xf0]  ;;  %v11096_v5 = vld [vmem:[#allocation6 + $0x1e0] sm:$0xf0] }
 0x736   : > { %v4356_v31 = vpop.f32.mrf.mxu2  ;;  %8142 = vmatpush.bf16.msra.mxu2 %v12855_v16  ;;  %v12183_v36 = vor.u32 %v13769_v21, %v12182_v14  ;;  %v12822_v23 = vld [vmem:[#allocation6 + $0xf40] sm:$0xf]  ;;  %v13858_v14 = vld [vmem:[#allocation6 + $0xd24] sm:$0xf0]  ;;  %v11099_v25 = vor.u32 %v13493_v37, %v11096_v5  ;;  %v11288_v37 = vld [vmem:[#allocation6 + $0x360] sm:$0xf0] }
 0x737   : > { %v13929_v51 = vld [vmem:[#allocation6 + $0xf5c] sm:$0xf0]  ;;  %v12543_v8 = vor.u32 %v13858_v14, %v12542_v55  ;;  %v13453_v14 = vld [vmem:[#allocation6 + $0x84] sm:$0xf] }
 0x738   : > { %v4369_v62 = vpop.f32.mrf.mxu3  ;;  %v16576_v52 = vpop.f32.mrf.mxu1  ;;  %8121 = vmatpush.bf16.msra.mxu1 %v12183_v36  ;;  %v12823_v22 = vor.u32 %v13929_v51, %v12822_v23  ;;  %v12150_v60 = vld [vmem:[#allocation6 + $0xa00] sm:$0xf]  ;;  %v13485_v36 = vld [vmem:[#allocation6 + $0x184] sm:$0xf] }
 0x739   : > { %8285 = vmatpush.bf16.msra.mxu0 %v11583_v43  ;;  %v13761_v19 = vld [vmem:[#allocation6 + $0xa1c] sm:$0xf0]  ;;  %v13578_v43 = vld [vmem:[#allocation6 + $0x464] sm:$0xf0]  ;;  %v12575_v62 = vor.u32 %v13866_v59, %v12574_v41  ;;  %v13461_v41 = vld [vmem:[#allocation6 + $0xc4] sm:$0xf] }
 0x73a   : > { %v12151_v61 = vor.u32 %v13761_v19, %v12150_v60  ;;  %8143 = vmatpush.bf16.msra.mxu2 %v12823_v22  ;;  %v12790_v56 = vld [vmem:[#allocation6 + $0xf00] sm:$0xf]  ;;  %v11423_v57 = vor.u32 %v13578_v43, %v11422_v1  ;;  %v11064_v22 = vld [vmem:[#allocation6 + $0x1a0] sm:$0xf0]  ;;  %v12510_v60 = vld [vmem:[#allocation6 + $0xcc8] sm:$0xf] }
 0x73b   : > { %v13921_v6 = vld [vmem:[#allocation6 + $0xf1c] sm:$0xf0]  ;;  %v13850_v19 = vld [vmem:[#allocation6 + $0xce4] sm:$0xf0]  ;;  %v4921_v1 = vperm.slane %v16537_v9, 1 }
 0x73c   : > { %8122 = vmatpush.bf16.msra.mxu1 %v12151_v61  ;;  %v12791_v63 = vor.u32 %v13921_v6, %v12790_v56  ;;  %v12758_v28 = vld [vmem:[#allocation6 + $0xec0] sm:$0xf]  ;;  %v4411_v61 = vadd.f32 %v16568_v13, %v16532_v4  ;;  %v11067_v56 = vor.u32 %v13485_v36, %v11064_v22  ;;  %v12511_v6 = vor.u32 %v13850_v19, %v12510_v60  ;;  %v10968_v59 = vld [vmem:[#allocation6 + $0xe0] sm:$0xf0] }
 0x73d   : > { %8286 = vmatpush.bf16.msra.mxu0 %v11551_v3  ;;  %v13913_v42 = vld [vmem:[#allocation6 + $0xedc] sm:$0xf0]  ;;  %v12479_v13 = vor.u32 %v13842_v30, %v12478_v49  ;;  %v10971_v5 = vor.u32 %v13461_v41, %v10968_v59  ;;  %v13445_v60 = vld [vmem:[#allocation6 + $0x44] sm:$0xf] }
 0x73e   : > { %8144 = vmatpush.bf16.msra.mxu2 %v12791_v63  ;;  %v12759_v3 = vor.u32 %v13913_v42, %v12758_v28  ;;  %v12726_v2 = vld [vmem:[#allocation6 + $0xe80] sm:$0xf]  ;;  %v13477_v63 = vld [vmem:[#allocation6 + $0x144] sm:$0xf] }
 0x73f   : > { %v13905_v48 = vld [vmem:[#allocation6 + $0xe9c] sm:$0xf0]  ;;  %v11352_v28 = vld [vmem:[#allocation6 + $0x3e0] sm:$0xf0] }
 0x740   : > { %v4382_v54 = vpop.f32.mrf.mxu1  ;;  %v12727_v34 = vor.u32 %v13905_v48, %v12726_v2  ;;  %v13897_v46 = vld [vmem:[#allocation6 + $0xe5c] sm:$0xf0]  ;;  %v13469_v42 = vld [vmem:[#allocation6 + $0x104] sm:$0xf]  ;;  %v11355_v33 = vor.u32 %v13557_v45, %v11352_v28 }
 0x741   : > { %8287 = vmatpush.bf16.msra.mxu0 %v11519_v47  ;;  %v12694_v47 = vld [vmem:[#allocation6 + $0xe40] sm:$0xf]  ;;  %v11032_v54 = vld [vmem:[#allocation6 + $0x160] sm:$0xf0] }
 0x742   : > { %8145 = vmatpush.bf16.msra.mxu2 %v12759_v3  ;;  %v12695_v32 = vor.u32 %v13897_v46, %v12694_v47  ;;  %v13889_v50 = vld [vmem:[#allocation6 + $0xe1c] sm:$0xf0]  ;;  %v11035_v4 = vor.u32 %v13477_v63, %v11032_v54  ;;  %v11000_v3 = vld [vmem:[#allocation6 + $0x120] sm:$0xf0]  ;;  %v12414_v47 = vld [vmem:[#allocation6 + $0xc08] sm:$0xf] }
 0x743   : > { %v13549_v48 = vld [vmem:[#allocation6 + $0x384] sm:$0xf]  ;;  %v13826_v46 = vld [vmem:[#allocation6 + $0xc24] sm:$0xf0] }
 0x744   : > { %v12415_v55 = vor.u32 %v13826_v46, %v12414_v47  ;;  %v10904_v19 = vld [vmem:[#allocation6 + $0x60] sm:$0xf0] }
 0x745   : > { %8288 = vmatpush.bf16.msra.mxu0 %v11487_v35  ;;  %v12662_v35 = vld [vmem:[#allocation6 + $0xe00] sm:$0xf]  ;;  %v10907_v30 = vor.u32 %v13445_v60, %v10904_v19  ;;  %v13669_v60 = vld [vmem:[#allocation6 + $0x744] sm:$0xf] }
 0x746   : > { %8146 = vmatpush.bf16.msra.mxu2 %v12727_v34  ;;  %v12663_v7 = vor.u32 %v13889_v50, %v12662_v35  ;;  %v11320_v34 = vld [vmem:[#allocation6 + $0x3a0] sm:$0xf0] }
 0x747   : > { %v10936_v35 = vld [vmem:[#allocation6 + $0xa0] sm:$0xf0] }
 0x748   : > { %v10939_v36 = vor.u32 %v13453_v14, %v10936_v35  ;;  %v13590_v35 = vld [vmem:[#allocation6 + $0x4cc] sm:$0xf]  ;;  %v11800_v19 = vld [vmem:[#allocation6 + $0x760] sm:$0xf0] }
 0x749   : > { %8289 = vmatpush.bf16.msra.mxu0 %v11455_v20 }
 0x74a   : > { %8147 = vmatpush.bf16.msra.mxu2 %v12695_v32  ;;  %v13622_v32 = vld [vmem:[#allocation6 + $0x5cc] sm:$0xf] }
 0x74d   : > { %8290 = vmatpush.bf16.msra.mxu0 %v11423_v57 }
 0x74e   : > { %v16581_v38 = vpop.f32.mrf.mxu2  ;;  %8148 = vmatpush.bf16.msra.mxu2 %v12663_v7  ;;  %v13614_v7 = vld [vmem:[#allocation6 + $0x58c] sm:$0xf] }
 0x750   : > { %v4815_v0 = vpop.f32.mrf.mxu3 }
 0x751   : > { %8291 = vmatpush.bf16.msra.mxu0 %v11391_v53  ;;  %v4910_v31 = vadd.f32 %v4815_v0, %v4410_v15  ;;  %v11323_v0 = vor.u32 %v13549_v48, %v11320_v34 }
 0x753   : > { %v4936_v16 = vadd.f32 %v4920_v18, %v4910_v31  ;;  %v11003_v18 = vor.u32 %v13469_v42, %v11000_v3  ;;  %v11616_v31 = vld [vmem:[#allocation6 + $0x5e8] sm:$0xf0]  ;;  %v13749_v42 = vld [vmem:[#allocation6 + $0x9c4] sm:$0xf] }
 0x754   : > { %8292 = vmatmul.bf16.vlgmr.msra.gmra.mxu0 %v16543_v40  ;;  %v12120_v3 = vld [vmem:[#allocation6 + $0x9e0] sm:$0xf0] }
 0x755   : > { %8336 = vmatpush.bf16.msrb.mxu0 %v12639_v24  ;;  %v4944_v21 = vmax.f32 %v4936_v16, 0.0  ;;  %v12446_v24 = vld [vmem:[#allocation6 + $0xc48] sm:$0xf]  ;;  %v11619_v16 = vor.u32 %v13622_v32, %v11616_v31  ;;  %v12123_v47 = vor.u32 %v13749_v42, %v12120_v3  ;;  %v11832_v32 = vld [vmem:[#allocation6 + $0x7a0] sm:$0xf0] }
 0x756   : > { %v4408_v51 = vpop.f32.mrf.mxu2  ;;  %v13741_v31 = vld [vmem:[#allocation6 + $0x984] sm:$0xf]  ;;  %v11424_v42 = vld [vmem:[#allocation6 + $0x468] sm:$0xf0] }
 0x757   : > { %v16584_v23 = vpack.c.bf16 %v4944_v21, %v4944_v21  ;;  %v11584_v21 = vld [vmem:[#allocation6 + $0x5a8] sm:$0xf0]  ;;  %v4413_v51 = vadd.f32 %v16571_v39, %v16547_v27  ;;  %v13525_v27 = vld [vmem:[#allocation6 + $0x2c4] sm:$0xf] }
 0x758   : > { %v4817_v20 = vpop.f32.mrf.mxu3  ;;  %v4828_v43 = vpop.f32.mrf.mxu1  ;;  %v11587_v22 = vor.u32 %v13614_v7, %v11584_v21  ;;  %v11224_v39 = vld [vmem:[#allocation6 + $0x2e0] sm:$0xf0]  ;;  %v4415_v7 = vadd.f32 %v16576_v52, %v16554_v11  ;;  %v16610_v21 = vld [vmem:[#allocation32] sm:$0xff] }
 0x759   : > { %8337 = vmatpush.bf16.msrb.mxu0 %v12607_v26  ;;  %8058 = vmatmul.bf16.vlgmr.msra.gmra.mxu3 %v16584_v23  ;;  %v4911_v57 = vadd.f32 %v4828_v43, %v4411_v61  ;;  %v12447_v26 = vor.u32 %v13834_v29, %v12446_v24  ;;  %v4414_v20 = vadd.f32 %v16573_v10, %v16550_v12  ;;  %v4923_v61 = vperm.slane %v16537_v9, 3  ;;  %v13437_v10 = vld [vmem:[#allocation6 + $0x4] sm:$0xf] }
 0x75a   : > { %8154 = vmatpush.bf16.msra.mxu3 %v11099_v25  ;;  %v13533_v25 = vld [vmem:[#allocation6 + $0x304] sm:$0xf] }
 0x75b   : > { %v4937_v44 = vadd.f32 %v4921_v1, %v4911_v57  ;;  %v4924_v1 = vperm.slane %v16537_v9, 4  ;;  %v11227_v9 = vor.u32 %v13525_v27, %v11224_v39  ;;  %v11192_v24 = vld [vmem:[#allocation6 + $0x2a0] sm:$0xf0]  ;;  %v11803_v27 = vor.u32 %v13669_v60, %v11800_v19 }
 0x75c   : > { %v12056_v11 = vld [vmem:[#allocation6 + $0x960] sm:$0xf0] }
 0x75d   : > { %8338 = vmatpush.bf16.msrb.mxu0 %v12575_v62  ;;  %v4945_v53 = vmax.f32 %v4937_v44, 0.0  ;;  %v13541_v62 = vld [vmem:[#allocation6 + $0x344] sm:$0xf] }
 0x75e   : > { %8155 = vmatpush.bf16.msra.mxu3 %v11067_v56  ;;  %v11291_v50 = vor.u32 %v13541_v62, %v11288_v37  ;;  %v13606_v56 = vld [vmem:[#allocation6 + $0x54c] sm:$0xf]  ;;  %v10872_v44 = vld [vmem:[#allocation6 + $0x20] sm:$0xf0] }
 0x75f   : > { %v16590_v2 = vpack.c.bf16 %v4945_v53, %v4945_v53  ;;  %v13517_v53 = vld [vmem:[#allocation6 + $0x284] sm:$0xf]  ;;  %v10875_v34 = vor.u32 %v13437_v10, %v10872_v44 }
 0x760   : > { %v4830_v15 = vpop.f32.mrf.mxu1  ;;  %v11195_v46 = vor.u32 %v13517_v53, %v11192_v24  ;;  %v13501_v52 = vld [vmem:[#allocation6 + $0x204] sm:$0xf] }
 0x761   : > { %8339 = vmatpush.bf16.msrb.mxu0 %v12543_v8  ;;  %8071 = vmatmul.bf16.vlgmr.msrb.gmra.mxu1 %v16590_v2  ;;  %v11256_v8 = vld [vmem:[#allocation6 + $0x320] sm:$0xf0] }
 0x762   : > { %8156 = vmatpush.bf16.msra.mxu3 %v11035_v4  ;;  %8167 = vmatpush.bf16.msrb.mxu1 %v11355_v33  ;;  %v11259_v43 = vor.u32 %v13533_v25, %v11256_v8  ;;  %v13685_v4 = vld [vmem:[#allocation6 + $0x7c4] sm:$0xf]  ;;  %v4925_v25 = vperm.slane %v16610_v21, 5 }
 0x763   : > { %v13813_v39 = vld [vmem:[#allocation6 + $0xbc4] sm:$0xf] }
 0x764   : > { %v11768_v10 = vld [vmem:[#allocation6 + $0x720] sm:$0xf0] }
 0x765   : > { %8340 = vmatpush.bf16.msrb.mxu0 %v12511_v6  ;;  %v11552_v6 = vld [vmem:[#allocation6 + $0x568] sm:$0xf0]  ;;  %v13805_v24 = vld [vmem:[#allocation6 + $0xb84] sm:$0xf] }
 0x766   : > { %8157 = vmatpush.bf16.msra.mxu3 %v11003_v18  ;;  %8168 = vmatpush.bf16.msrb.mxu1 %v11323_v0  ;;  %v11555_v12 = vor.u32 %v13606_v56, %v11552_v6  ;;  %v13598_v18 = vld [vmem:[#allocation6 + $0x50c] sm:$0xf]  ;;  %v13677_v0 = vld [vmem:[#allocation6 + $0x784] sm:$0xf] }
 0x767   : > { %v11835_v8 = vor.u32 %v13677_v0, %v11832_v32  ;;  %v13582_v6 = vld [vmem:[#allocation6 + $0x48c] sm:$0xf]  ;;  %v12280_v19 = vld [vmem:[#allocation6 + $0xb20] sm:$0xf0] }
 0x768   : > { %v13566_v32 = vld [vmem:[#allocation6 + $0x40c] sm:$0xf] }
 0x769   : > { %8341 = vmatpush.bf16.msrb.mxu0 %v12479_v13  ;;  %v11864_v13 = vld [vmem:[#allocation6 + $0x7e0] sm:$0xf0] }
 0x76a   : > { %8158 = vmatpush.bf16.msra.mxu3 %v10971_v5  ;;  %8169 = vmatpush.bf16.msrb.mxu1 %v11291_v50  ;;  %v11867_v41 = vor.u32 %v13685_v4, %v11864_v13  ;;  %v12088_v5 = vld [vmem:[#allocation6 + $0x9a0] sm:$0xf0]  ;;  %v11488_v50 = vld [vmem:[#allocation6 + $0x4e8] sm:$0xf0] }
 0x76b   : > { %v13574_v13 = vld [vmem:[#allocation6 + $0x44c] sm:$0xf] }
 0x76d   : > { %8342 = vmatpush.bf16.msrb.mxu0 %v12447_v26  ;;  %v11520_v26 = vld [vmem:[#allocation6 + $0x528] sm:$0xf0] }
 0x76e   : > { %v4854_v63 = vpop.f32.mrf.mxu2  ;;  %8159 = vmatpush.bf16.msra.mxu3 %v10939_v36  ;;  %8170 = vmatpush.bf16.msrb.mxu1 %v11259_v43  ;;  %v11523_v37 = vor.u32 %v13598_v18, %v11520_v26  ;;  %v11128_v43 = vld [vmem:[#allocation6 + $0x220] sm:$0xf0] }
 0x76f   : > { %v4913_v54 = vadd.f32 %v4854_v63, %v4413_v51  ;;  %v12091_v51 = vor.u32 %v13741_v31, %v12088_v5  ;;  %v11456_v63 = vld [vmem:[#allocation6 + $0x4a8] sm:$0xf0]  ;;  %v11736_v18 = vld [vmem:[#allocation6 + $0x6e0] sm:$0xf0] }
 0x770   : > { %v4867_v57 = vpop.f32.mrf.mxu3  ;;  %v16600_v48 = vpop.f32.mrf.mxu0  ;;  %v11392_v31 = vld [vmem:[#allocation6 + $0x428] sm:$0xf0]  ;;  %v12312_v5 = vld [vmem:[#allocation6 + $0xb60] sm:$0xf0] }
 0x771   : > { %8343 = vmatpush.bf16.msrb.mxu0 %v12415_v55  ;;  %v4914_v49 = vadd.f32 %v4867_v57, %v4414_v20  ;;  %v4939_v45 = vadd.f32 %v4923_v61, %v4913_v54  ;;  %v13509_v55 = vld [vmem:[#allocation6 + $0x244] sm:$0xf] }
 0x772   : > { %8160 = vmatpush.bf16.msra.mxu3 %v10907_v30  ;;  %8171 = vmatpush.bf16.msrb.mxu1 %v11227_v9  ;;  %v13733_v20 = vld [vmem:[#allocation6 + $0x944] sm:$0xf]  ;;  %v11131_v30 = vor.u32 %v13501_v52, %v11128_v43  ;;  %v4417_v43 = vadd.f32 %v16581_v38, %v16564_v17 }
 0x773   : > { %v4940_v28 = vadd.f32 %v4924_v1, %v4914_v49  ;;  %v4947_v29 = vmax.f32 %v4939_v45, 0.0  ;;  %v11491_v1 = vor.u32 %v13590_v35, %v11488_v50  ;;  %v12376_v54 = vld [vmem:[#allocation6 + $0xbe0] sm:$0xf0]  ;;  %v12059_v49 = vor.u32 %v13733_v20, %v12056_v11  ;;  %v13870_v20 = vld [vmem:[#allocation6 + $0xd8c] sm:$0xf] }
 0x774   : > { %8344 = vmatmul.bf16.vlgmr.msrb.gmra.mxu0 %v16560_v58  ;;  %v11459_v45 = vor.u32 %v13582_v6, %v11456_v63  ;;  %v12024_v9 = vld [vmem:[#allocation6 + $0x920] sm:$0xf0]  ;;  %v12379_v4 = vor.u32 %v13813_v39, %v12376_v54 }
 0x775   : > { %8388 = vmatpush.bf16.msra.mxu0 %v11619_v16  ;;  %v4948_v33 = vmax.f32 %v4940_v28, 0.0  ;;  %v16602_v15 = vpack.c.bf16 %v4947_v29, %v4947_v29  ;;  %v11160_v16 = vld [vmem:[#allocation6 + $0x260] sm:$0xf0] }
 0x776   : > { %v4856_v62 = vpop.f32.mrf.mxu2  ;;  %8161 = vmatpush.bf16.msra.mxu3 %v10875_v34  ;;  %8172 = vmatpush.bf16.msrb.mxu1 %v11195_v46  ;;  %v13725_v28 = vld [vmem:[#allocation6 + $0x904] sm:$0xf] }
 0x777   : > { %v16604_v59 = vpack.c.bf16 %v4948_v33, %v4948_v33  ;;  %8097 = vmatmul.bf16.vlgmr.msrb.gmra.mxu2 %v16602_v15  ;;  %v12344_v29 = vld [vmem:[#allocation6 + $0xba0] sm:$0xf0]  ;;  %v12027_v33 = vor.u32 %v13725_v28, %v12024_v9 }
 0x778   : > { %v4869_v14 = vpop.f32.mrf.mxu3  ;;  %8193 = vmatpush.bf16.msrb.mxu2 %v11867_v41  ;;  %v4880_v36 = vpop.f32.mrf.mxu1  ;;  %v13653_v34 = vld [vmem:[#allocation6 + $0x6c4] sm:$0xf]  ;;  %v11427_v41 = vor.u32 %v13574_v13, %v11424_v42  ;;  %v12347_v0 = vor.u32 %v13805_v24, %v12344_v29  ;;  %v11102_v42 = vld [vmem:[#allocation6 + $0x1c8] sm:$0xf] }
 0x779   : > { %8389 = vmatpush.bf16.msra.mxu0 %v11587_v22  ;;  %8110 = vmatmul.bf16.vlgmr.msrb.gmra.mxu3 %v16604_v59  ;;  %v11163_v22 = vor.u32 %v13509_v55, %v11160_v16  ;;  %v4915_v61 = vadd.f32 %v4880_v36, %v4415_v7  ;;  %v8087_v56 = vpop.f32.mrf.mxu0  ;;  %v11992_v46 = vld [vmem:[#allocation6 + $0x8e0] sm:$0xf0]  ;;  %v13878_v55 = vld [vmem:[#allocation6 + $0xdcc] sm:$0xf]  ;;  %v11395_v7 = vor.u32 %v13566_v32, %v11392_v31  ;;  %v13498_v29 = vld [vmem:[#allocation6 + $0x1e4] sm:$0xf0] }
 0x77a   : > { %8206 = vmatpush.bf16.msrb.mxu3 %v12123_v47  ;;  %v13717_v47 = vld [vmem:[#allocation6 + $0x8c4] sm:$0xf]  ;;  %v12640_v16 = vld [vmem:[#allocation6 + $0xde8] sm:$0xf0]  ;;  %v4927_v56 = vperm.slane %v16610_v21, 7 }
 0x77b   : > { %v4941_v57 = vadd.f32 %v4925_v25, %v4915_v61  ;;  %8173 = vmatpush.bf16.msrb.mxu1 %v11163_v22  ;;  %v13797_v62 = vld [vmem:[#allocation6 + $0xb44] sm:$0xf]  ;;  %v11995_v14 = vor.u32 %v13717_v47, %v11992_v46  ;;  %v12608_v61 = vld [vmem:[#allocation6 + $0xda8] sm:$0xf0] }
 0x77c   : > { %8194 = vmatpush.bf16.msrb.mxu2 %v11835_v8  ;;  %v13645_v35 = vld [vmem:[#allocation6 + $0x684] sm:$0xf]  ;;  %v12315_v36 = vor.u32 %v13797_v62, %v12312_v5  ;;  %v12611_v39 = vor.u32 %v13870_v20, %v12608_v61  ;;  %v12544_v47 = vld [vmem:[#allocation6 + $0xd28] sm:$0xf0]  ;;  %v11103_v62 = vor.u32 %v13498_v29, %v11102_v42  ;;  %v10974_v29 = vld [vmem:[#allocation6 + $0xc8] sm:$0xf] }
 0x77d   : > { %8390 = vmatpush.bf16.msra.mxu0 %v11555_v12  ;;  %v13661_v12 = vld [vmem:[#allocation6 + $0x704] sm:$0xf]  ;;  %v4949_v44 = vmax.f32 %v4941_v57, 0.0 }
 0x77e   : > { %8207 = vmatpush.bf16.msrb.mxu3 %v12091_v51  ;;  %v11771_v53 = vor.u32 %v13661_v12, %v11768_v10  ;;  %v11704_v50 = vld [vmem:[#allocation6 + $0x6a0] sm:$0xf0]  ;;  %v12643_v51 = vor.u32 %v13878_v55, %v12640_v16  ;;  %v13862_v10 = vld [vmem:[#allocation6 + $0xd4c] sm:$0xf] }
 0x77f   : > { %v16613_v3 = vpack.c.bf16 %v4949_v44, %v4949_v44  ;;  %8174 = vmatpush.bf16.msrb.mxu1 %v11131_v30  ;;  %v13709_v25 = vld [vmem:[#allocation6 + $0x884] sm:$0xf]  ;;  %v11707_v60 = vor.u32 %v13645_v35, %v11704_v50  ;;  %v12576_v44 = vld [vmem:[#allocation6 + $0xd68] sm:$0xf0]  ;;  %v11070_v35 = vld [vmem:[#allocation6 + $0x188] sm:$0xf] }
 0x780   : > { %8195 = vmatpush.bf16.msrb.mxu2 %v11803_v27  ;;  %v4882_v26 = vpop.f32.mrf.mxu1  ;;  %v11960_v8 = vld [vmem:[#allocation6 + $0x8a0] sm:$0xf0]  ;;  %v12579_v24 = vor.u32 %v13862_v10, %v12576_v44  ;;  %v13490_v50 = vld [vmem:[#allocation6 + $0x1a4] sm:$0xf0] }
 0x781   : > { %8391 = vmatpush.bf16.msra.mxu0 %v11523_v37  ;;  %8123 = vmatmul.bf16.vlgmr.msra.gmra.mxu1 %v16613_v3  ;;  %v11739_v37 = vor.u32 %v13653_v34, %v11736_v18  ;;  %v13789_v22 = vld [vmem:[#allocation6 + $0xb04] sm:$0xf]  ;;  %v11006_v44 = vld [vmem:[#allocation6 + $0x108] sm:$0xf] }
 0x782   : > { %8208 = vmatpush.bf16.msrb.mxu3 %v12059_v49  ;;  %v13637_v11 = vld [vmem:[#allocation6 + $0x644] sm:$0xf]  ;;  %v12283_v27 = vor.u32 %v13789_v22, %v12280_v19  ;;  %v11071_v22 = vor.u32 %v13490_v50, %v11070_v35  ;;  %v10942_v35 = vld [vmem:[#allocation6 + $0x88] sm:$0xf] }
 0x783   : > { %8219 = vmatpush.bf16.msra.mxu1 %v12379_v4  ;;  %v11672_v52 = vld [vmem:[#allocation6 + $0x660] sm:$0xf0]  ;;  %v13458_v50 = vld [vmem:[#allocation6 + $0xa4] sm:$0xf0] }
 0x784   : > { %8196 = vmatpush.bf16.msrb.mxu2 %v11771_v53  ;;  %v13701_v6 = vld [vmem:[#allocation6 + $0x844] sm:$0xf]  ;;  %v11675_v12 = vor.u32 %v13637_v11, %v11672_v52  ;;  %v13482_v11 = vld [vmem:[#allocation6 + $0x164] sm:$0xf0] }
 0x785   : > { %8392 = vmatpush.bf16.msra.mxu0 %v11491_v1  ;;  %v11963_v1 = vor.u32 %v13709_v25, %v11960_v8  ;;  %v11928_v63 = vld [vmem:[#allocation6 + $0x860] sm:$0xf0]  ;;  %v13846_v8 = vld [vmem:[#allocation6 + $0xccc] sm:$0xf] }
 0x786   : > { %8209 = vmatpush.bf16.msrb.mxu3 %v12027_v33  ;;  %v13781_v54 = vld [vmem:[#allocation6 + $0xac4] sm:$0xf]  ;;  %v11931_v17 = vor.u32 %v13701_v6, %v11928_v63  ;;  %v12480_v6 = vld [vmem:[#allocation6 + $0xca8] sm:$0xf0] }
 0x787   : > { %8220 = vmatpush.bf16.msra.mxu1 %v12347_v0  ;;  %v12248_v49 = vld [vmem:[#allocation6 + $0xae0] sm:$0xf0] }
 0x788   : > { %8197 = vmatpush.bf16.msrb.mxu2 %v11739_v37  ;;  %v11640_v38 = vld [vmem:[#allocation6 + $0x620] sm:$0xf0]  ;;  %v12251_v53 = vor.u32 %v13781_v54, %v12248_v49 }
 0x789   : > { %8393 = vmatpush.bf16.msra.mxu0 %v11459_v45  ;;  %8162 = vmatmul.bf16.vlgmr.msra.gmra.mxu3 %v16584_v23  ;;  %v13629_v45 = vld [vmem:[#allocation6 + $0x604] sm:$0xf] }
 0x78a   : > { %8210 = vmatpush.bf16.msrb.mxu3 %v11995_v14  ;;  %v13693_v21 = vld [vmem:[#allocation6 + $0x804] sm:$0xf]  ;;  %v11643_v26 = vor.u32 %v13629_v45, %v11640_v38  ;;  %v13474_v45 = vld [vmem:[#allocation6 + $0x124] sm:$0xf0]  ;;  %v13830_v38 = vld [vmem:[#allocation6 + $0xc4c] sm:$0xf] }
 0x78b   : > { %8221 = vmatpush.bf16.msra.mxu1 %v12315_v36  ;;  %v11896_v28 = vld [vmem:[#allocation6 + $0x820] sm:$0xf0]  ;;  %v12512_v36 = vld [vmem:[#allocation6 + $0xce8] sm:$0xf0] }
 0x78c   : > { %8198 = vmatpush.bf16.msrb.mxu2 %v11707_v60  ;;  %v13941_v4 = vld [vmem:[#allocation6 + $0xfc4] sm:$0xf]  ;;  %v11899_v0 = vor.u32 %v13693_v21, %v11896_v28  ;;  %v12515_v61 = vor.u32 %v13846_v8, %v12512_v36  ;;  %v12448_v21 = vld [vmem:[#allocation6 + $0xc68] sm:$0xf0]  ;;  %v11326_v28 = vld [vmem:[#allocation6 + $0x388] sm:$0xf] }
 0x78d   : > { %8394 = vmatpush.bf16.msra.mxu0 %v11427_v41  ;;  %v12888_v13 = vld [vmem:[#allocation6 + $0xfe0] sm:$0xf0]  ;;  %v13854_v41 = vld [vmem:[#allocation6 + $0xd0c] sm:$0xf]  ;;  %v11262_v8 = vld [vmem:[#allocation6 + $0x308] sm:$0xf] }
 0x78e   : > { %v4906_v57 = vpop.f32.mrf.mxu2  ;;  %8211 = vmatpush.bf16.msrb.mxu3 %v11963_v1  ;;  %v13773_v33 = vld [vmem:[#allocation6 + $0xa84] sm:$0xf]  ;;  %v12891_v31 = vor.u32 %v13941_v4, %v12888_v13  ;;  %v12547_v14 = vor.u32 %v13854_v41, %v12544_v47  ;;  %v11038_v1 = vld [vmem:[#allocation6 + $0x148] sm:$0xf]  ;;  %v11007_v13 = vor.u32 %v13474_v45, %v11006_v44 }
 0x78f   : > { %v4917_v30 = vadd.f32 %v4906_v57, %v4417_v43  ;;  %8222 = vmatpush.bf16.msra.mxu1 %v12283_v27  ;;  %v12216_v34 = vld [vmem:[#allocation6 + $0xaa0] sm:$0xf0]  ;;  %v11358_v57 = vld [vmem:[#allocation6 + $0x3c8] sm:$0xf]  ;;  %v11039_v54 = vor.u32 %v13482_v11, %v11038_v1 }
 0x790   : > { %8199 = vmatpush.bf16.msrb.mxu2 %v11675_v12  ;;  %v16621_v46 = vpop.f32.mrf.mxu0  ;;  %v13933_v37 = vld [vmem:[#allocation6 + $0xf84] sm:$0xf]  ;;  %v12219_v16 = vor.u32 %v13773_v33, %v12216_v34  ;;  %v13562_v27 = vld [vmem:[#allocation6 + $0x3e4] sm:$0xf0] }
 0x791   : > { %8395 = vmatpush.bf16.msra.mxu0 %v11395_v7  ;;  %v4943_v9 = vadd.f32 %v4927_v56, %v4917_v30  ;;  %8175 = vmatmul.bf16.vlgmr.msrb.gmra.mxu1 %v16590_v2  ;;  %v12856_v5 = vld [vmem:[#allocation6 + $0xfa0] sm:$0xf0]  ;;  %v13838_v56 = vld [vmem:[#allocation6 + $0xc8c] sm:$0xf]  ;;  %v13466_v33 = vld [vmem:[#allocation6 + $0xe4] sm:$0xf0] }
 0x792   : > { %8212 = vmatpush.bf16.msrb.mxu3 %v11931_v17  ;;  %v13765_v7 = vld [vmem:[#allocation6 + $0xa44] sm:$0xf]  ;;  %v12483_v12 = vor.u32 %v13838_v56, %v12480_v6  ;;  %v11359_v17 = vor.u32 %v13562_v27, %v11358_v57  ;;  %v11294_v41 = vld [vmem:[#allocation6 + $0x348] sm:$0xf]  ;;  %v11558_v57 = vld [vmem:[#allocation6 + $0x550] sm:$0xf] }
 0x793   : > { %v4951_v18 = vmax.f32 %v4943_v9, 0.0  ;;  %8223 = vmatpush.bf16.msra.mxu1 %v12251_v53  ;;  %v12184_v25 = vld [vmem:[#allocation6 + $0xa60] sm:$0xf0]  ;;  %v13554_v9 = vld [vmem:[#allocation6 + $0x3a4] sm:$0xf0]  ;;  %v12451_v53 = vor.u32 %v13830_v38, %v12448_v21 }
 0x794   : > { %8396 = vmatmul.bf16.vlgmr.msra.gmra.mxu0 %v16543_v40  ;;  %8200 = vmatpush.bf16.msrb.mxu2 %v11643_v26  ;;  %v13925_v60 = vld [vmem:[#allocation6 + $0xf44] sm:$0xf]  ;;  %v12187_v20 = vor.u32 %v13765_v7, %v12184_v25  ;;  %v11327_v34 = vor.u32 %v13554_v9, %v11326_v28  ;;  %v12416_v26 = vld [vmem:[#allocation6 + $0xc28] sm:$0xf0]  ;;  %v13538_v36 = vld [vmem:[#allocation6 + $0x324] sm:$0xf0] }
 0x795   : > { %8440 = vmatpush.bf16.msrb.mxu0 %v12643_v51  ;;  %v16623_v32 = vpack.c.bf16 %v4951_v18, %v4951_v18  ;;  %v12859_v51 = vor.u32 %v13933_v37, %v12856_v5  ;;  %v12824_v19 = vld [vmem:[#allocation6 + $0xf60] sm:$0xf0]  ;;  %v13822_v18 = vld [vmem:[#allocation6 + $0xc0c] sm:$0xf]  ;;  %v10975_v5 = vor.u32 %v13466_v33, %v10974_v29  ;;  %v10910_v1 = vld [vmem:[#allocation6 + $0x48] sm:$0xf] }
 0x796   : > { %v4908_v55 = vpop.f32.mrf.mxu2  ;;  %8213 = vmatpush.bf16.msrb.mxu3 %v11899_v0  ;;  %v13757_v52 = vld [vmem:[#allocation6 + $0xa04] sm:$0xf]  ;;  %v13546_v0 = vld [vmem:[#allocation6 + $0x364] sm:$0xf0]  ;;  %v13611_v27 = vld [vmem:[#allocation6 + $0x56c] sm:$0xf0] }
 0x797   : > { %8149 = vmatmul.bf16.vlgmr.msra.gmra.mxu2 %v16623_v32  ;;  %8224 = vmatpush.bf16.msra.mxu1 %v12219_v16  ;;  %v12152_v43 = vld [vmem:[#allocation6 + $0xa20] sm:$0xf0]  ;;  %v12419_v16 = vor.u32 %v13822_v18, %v12416_v26  ;;  %v11295_v7 = vor.u32 %v13546_v0, %v11294_v41  ;;  %v13450_v11 = vld [vmem:[#allocation6 + $0x64] sm:$0xf0]  ;;  %v11559_v38 = vor.u32 %v13611_v27, %v11558_v57 }
 0x798   : > { %8245 = vmatpush.bf16.msra.mxu2 %v12891_v31  ;;  %v8139_v63 = vpop.f32.mrf.mxu0  ;;  %v13917_v49 = vld [vmem:[#allocation6 + $0xf04] sm:$0xf]  ;;  %v12155_v30 = vor.u32 %v13757_v52, %v12152_v43  ;;  %v11622_v31 = vld [vmem:[#allocation6 + $0x5d0] sm:$0xf]  ;;  %v11263_v52 = vor.u32 %v13538_v36, %v11262_v8  ;;  %v11230_v56 = vld [vmem:[#allocation6 + $0x2c8] sm:$0xf] }
 0x799   : > { %8441 = vmatpush.bf16.msrb.mxu0 %v12611_v39  ;;  %8214 = vmatmul.bf16.vlgmr.msrb.gmra.mxu3 %v16604_v59  ;;  %v12827_v39 = vor.u32 %v13925_v60, %v12824_v19  ;;  %v12792_v10 = vld [vmem:[#allocation6 + $0xf20] sm:$0xf0]  ;;  %v10943_v19 = vor.u32 %v13458_v50, %v10942_v35  ;;  %v13530_v63 = vld [vmem:[#allocation6 + $0x2e4] sm:$0xf0] }
 0x79a   : > { %8258 = vmatpush.bf16.msra.mxu3 %v11103_v62  ;;  %v12795_v4 = vor.u32 %v13917_v49, %v12792_v10  ;;  %v13909_v42 = vld [vmem:[#allocation6 + $0xec4] sm:$0xf]  ;;  %v13627_v62 = vld [vmem:[#allocation6 + $0x5ec] sm:$0xf0]  ;;  %v13442_v10 = vld [vmem:[#allocation6 + $0x24] sm:$0xf0] }
 0x79b   : > { %8225 = vmatpush.bf16.msra.mxu1 %v12187_v20  ;;  %v13901_v55 = vld [vmem:[#allocation6 + $0xe84] sm:$0xf]  ;;  %v11623_v25 = vor.u32 %v13627_v62, %v11622_v31  ;;  %v11870_v44 = vld [vmem:[#allocation6 + $0x7c8] sm:$0xf] }
 0x79c   : > { %8246 = vmatpush.bf16.msra.mxu2 %v12859_v51  ;;  %v11590_v51 = vld [vmem:[#allocation6 + $0x590] sm:$0xf]  ;;  %v13893_v20 = vld [vmem:[#allocation6 + $0xe44] sm:$0xf]  ;;  %v13690_v45 = vld [vmem:[#allocation6 + $0x7e4] sm:$0xf0] }
 0x79d   : > { %8442 = vmatpush.bf16.msrb.mxu0 %v12579_v24  ;;  %v12760_v24 = vld [vmem:[#allocation6 + $0xee0] sm:$0xf0]  ;;  %v12126_v21 = vld [vmem:[#allocation6 + $0x9c8] sm:$0xf]  ;;  %v11871_v29 = vor.u32 %v13690_v45, %v11870_v44 }
 0x79e   : > { %8259 = vmatpush.bf16.msra.mxu3 %v11071_v22  ;;  %v12763_v37 = vor.u32 %v13909_v42, %v12760_v24  ;;  %v13619_v22 = vld [vmem:[#allocation6 + $0x5ac] sm:$0xf0]  ;;  %v13885_v49 = vld [vmem:[#allocation6 + $0xe04] sm:$0xf]  ;;  %v13754_v28 = vld [vmem:[#allocation6 + $0x9e4] sm:$0xf0] }
 0x79f   : > { %8226 = vmatpush.bf16.msra.mxu1 %v12155_v30  ;;  %v11591_v43 = vor.u32 %v13619_v22, %v11590_v51  ;;  %v12664_v30 = vld [vmem:[#allocation6 + $0xe20] sm:$0xf0]  ;;  %v11198_v9 = vld [vmem:[#allocation6 + $0x288] sm:$0xf]  ;;  %v13603_v42 = vld [vmem:[#allocation6 + $0x52c] sm:$0xf0]  ;;  %v12127_v33 = vor.u32 %v13754_v28, %v12126_v21 }
 0x7a0   : > { %8247 = vmatpush.bf16.msra.mxu2 %v12827_v39  ;;  %v16628_v47 = vpop.f32.mrf.mxu0  ;;  %v13682_v18 = vld [vmem:[#allocation6 + $0x7a4] sm:$0xf0] }
 0x7a1   : > { %8443 = vmatpush.bf16.msrb.mxu0 %v12547_v14  ;;  %v12728_v14 = vld [vmem:[#allocation6 + $0xea0] sm:$0xf0]  ;;  %v12094_v0 = vld [vmem:[#allocation6 + $0x988] sm:$0xf] }
 0x7a2   : > { %8260 = vmatpush.bf16.msra.mxu3 %v11039_v54  ;;  %8227 = vmatmul.bf16.vlgmr.msra.gmra.mxu1 %v16613_v3  ;;  %v12731_v60 = vor.u32 %v13901_v55, %v12728_v14  ;;  %v10911_v54 = vor.u32 %v13450_v11, %v10910_v1  ;;  %v13746_v31 = vld [vmem:[#allocation6 + $0x9a4] sm:$0xf0]  ;;  %v11494_v55 = vld [vmem:[#allocation6 + $0x4d0] sm:$0xf] }
 0x7a3   : > { %8271 = vmatpush.bf16.msrb.mxu1 %v11359_v17  ;;  %v11231_v17 = vor.u32 %v13530_v63, %v11230_v56  ;;  %v11166_v62 = vld [vmem:[#allocation6 + $0x248] sm:$0xf]  ;;  %v12095_v35 = vor.u32 %v13746_v31, %v12094_v0 }
 0x7a4   : > { %8248 = vmatpush.bf16.msra.mxu2 %v12795_v4  ;;  %v13522_v4 = vld [vmem:[#allocation6 + $0x2a4] sm:$0xf0] }
 0x7a5   : > { %8444 = vmatpush.bf16.msrb.mxu0 %v12515_v61  ;;  %v12696_v61 = vld [vmem:[#allocation6 + $0xe60] sm:$0xf0]  ;;  %v11199_v26 = vor.u32 %v13522_v4, %v11198_v9  ;;  %v11806_v50 = vld [vmem:[#allocation6 + $0x748] sm:$0xf] }
 0x7a6   : > { %8261 = vmatpush.bf16.msra.mxu3 %v11007_v13  ;;  %v12699_v39 = vor.u32 %v13893_v20, %v12696_v61  ;;  %v11526_v13 = vld [vmem:[#allocation6 + $0x510] sm:$0xf]  ;;  %v12062_v36 = vld [vmem:[#allocation6 + $0x948] sm:$0xf] }
 0x7a7   : > { %8272 = vmatpush.bf16.msrb.mxu1 %v11327_v34  ;;  %8201 = vmatmul.bf16.vlgmr.msrb.gmra.mxu2 %v16602_v15  ;;  %v11838_v34 = vld [vmem:[#allocation6 + $0x788] sm:$0xf]  ;;  %v11527_v41 = vor.u32 %v13603_v42, %v11526_v13  ;;  %v13587_v20 = vld [vmem:[#allocation6 + $0x4ac] sm:$0xf0] }
 0x7a8   : > { %8249 = vmatpush.bf16.msra.mxu2 %v12763_v37  ;;  %v8191_v6 = vpop.f32.mrf.mxu0  ;;  %v11839_v14 = vor.u32 %v13682_v18, %v11838_v34  ;;  %v13738_v51 = vld [vmem:[#allocation6 + $0x964] sm:$0xf0]  ;;  %v11398_v13 = vld [vmem:[#allocation6 + $0x410] sm:$0xf] }
 0x7a9   : > { %8445 = vmatpush.bf16.msrb.mxu0 %v12483_v12  ;;  %v10878_v12 = vld [vmem:[#allocation6 + $0x8] sm:$0xf]  ;;  %v13571_v42 = vld [vmem:[#allocation6 + $0x42c] sm:$0xf0] }
 0x7aa   : > { %8262 = vmatpush.bf16.msra.mxu3 %v10975_v5  ;;  %v10879_v24 = vor.u32 %v13442_v10, %v10878_v12  ;;  %v13514_v5 = vld [vmem:[#allocation6 + $0x264] sm:$0xf0] }
 0x7ab   : > { %8273 = vmatpush.bf16.msrb.mxu1 %v11295_v7  ;;  %v13674_v7 = vld [vmem:[#allocation6 + $0x764] sm:$0xf0] }
 0x7ac   : > { %8250 = vmatpush.bf16.msra.mxu2 %v12731_v60  ;;  %v11134_v22 = vld [vmem:[#allocation6 + $0x208] sm:$0xf]  ;;  %v11807_v11 = vor.u32 %v13674_v7, %v11806_v50  ;;  %v13875_v50 = vld [vmem:[#allocation6 + $0xdac] sm:$0xf0] }
 0x7ad   : > { %8446 = vmatpush.bf16.msrb.mxu0 %v12451_v53  ;;  %v12667_v53 = vor.u32 %v13885_v49, %v12664_v30  ;;  %v13506_v60 = vld [vmem:[#allocation6 + $0x224] sm:$0xf0]  ;;  %v11430_v49 = vld [vmem:[#allocation6 + $0x450] sm:$0xf] }
 0x7ae   : > { %8263 = vmatpush.bf16.msra.mxu3 %v10943_v19  ;;  %v11462_v19 = vld [vmem:[#allocation6 + $0x490] sm:$0xf]  ;;  %v12382_v61 = vld [vmem:[#allocation6 + $0xbc8] sm:$0xf] }
 0x7af   : > { %8274 = vmatpush.bf16.msrb.mxu1 %v11263_v52  ;;  %v13818_v1 = vld [vmem:[#allocation6 + $0xbe4] sm:$0xf0]  ;;  %v12063_v52 = vor.u32 %v13738_v51, %v12062_v36  ;;  %v11463_v56 = vor.u32 %v13587_v20, %v11462_v19  ;;  %v13579_v30 = vld [vmem:[#allocation6 + $0x46c] sm:$0xf0] }
 0x7b0   : > { %8251 = vmatpush.bf16.msra.mxu2 %v12699_v39  ;;  %v11774_v6 = vld [vmem:[#allocation6 + $0x708] sm:$0xf]  ;;  %v12383_v39 = vor.u32 %v13818_v1, %v12382_v61  ;;  %v12582_v1 = vld [vmem:[#allocation6 + $0xd50] sm:$0xf] }
 0x7b1   : > { %8447 = vmatpush.bf16.msrb.mxu0 %v12419_v16  ;;  %v16633_v37 = vpop.f32.mrf.mxu0  ;;  %v13595_v16 = vld [vmem:[#allocation6 + $0x4ec] sm:$0xf0]  ;;  %v13666_v63 = vld [vmem:[#allocation6 + $0x724] sm:$0xf0] }
 0x7b2   : > { %8264 = vmatpush.bf16.msra.mxu3 %v10911_v54  ;;  %v11495_v8 = vor.u32 %v13595_v16, %v11494_v55  ;;  %v12030_v57 = vld [vmem:[#allocation6 + $0x908] sm:$0xf]  ;;  %v11775_v44 = vor.u32 %v13666_v63, %v11774_v6 }
 0x7b3   : > { %8275 = vmatpush.bf16.msrb.mxu1 %v11231_v17  ;;  %v13730_v54 = vld [vmem:[#allocation6 + $0x924] sm:$0xf0] }
 0x7b4   : > { %8448 = vmatmul.bf16.vlgmr.msrb.gmra.mxu0 %v16560_v58  ;;  %8252 = vmatpush.bf16.msra.mxu2 %v12667_v53  ;;  %v12350_v12 = vld [vmem:[#allocation6 + $0xb88] sm:$0xf]  ;;  %v12031_v17 = vor.u32 %v13730_v54, %v12030_v57 }
 0x7b5   : > { %8492 = vmatpush.bf16.msra.mxu0 %v11623_v25  ;;  %v11167_v25 = vor.u32 %v13514_v5, %v11166_v62  ;;  %v13810_v10 = vld [vmem:[#allocation6 + $0xba4] sm:$0xf0] }
 0x7b6   : > { %8265 = vmatpush.bf16.msra.mxu3 %v10879_v24  ;;  %v11742_v45 = vld [vmem:[#allocation6 + $0x6c8] sm:$0xf]  ;;  %v12351_v4 = vor.u32 %v13810_v10, %v12350_v12  ;;  %v11104_v12 = vld [vmem:[#allocation6 + $0x1e8] sm:$0xf0] }
 0x7b7   : > { %8276 = vmatpush.bf16.msrb.mxu1 %v11199_v26  ;;  %8253 = vmatmul.bf16.vlgmr.msra.gmra.mxu2 %v16623_v32  ;;  %v13658_v21 = vld [vmem:[#allocation6 + $0x6e4] sm:$0xf0]  ;;  %v11399_v26 = vor.u32 %v13571_v42, %v11398_v13 }
 0x7b8   : > { %8297 = vmatpush.bf16.msrb.mxu2 %v11871_v29  ;;  %v11998_v28 = vld [vmem:[#allocation6 + $0x8c8] sm:$0xf]  ;;  %v12646_v29 = vld [vmem:[#allocation6 + $0xdd0] sm:$0xf]  ;;  %v11743_v34 = vor.u32 %v13658_v21, %v11742_v45 }
 0x7b9   : > { %8493 = vmatpush.bf16.msra.mxu0 %v11591_v43  ;;  %8266 = vmatmul.bf16.vlgmr.msra.gmra.mxu3 %v16584_v23  ;;  %v11135_v43 = vor.u32 %v13506_v60, %v11134_v22  ;;  %v8243_v27 = vpop.f32.mrf.mxu0  ;;  %v13722_v9 = vld [vmem:[#allocation6 + $0x8e4] sm:$0xf0] }
 0x7ba   : > { %8310 = vmatpush.bf16.msrb.mxu3 %v12127_v33  ;;  %v12318_v53 = vld [vmem:[#allocation6 + $0xb48] sm:$0xf]  ;;  %v13883_v33 = vld [vmem:[#allocation6 + $0xdec] sm:$0xf0]  ;;  %v11999_v18 = vor.u32 %v13722_v9, %v11998_v28 }
 0x7bb   : > { %8277 = vmatpush.bf16.msrb.mxu1 %v11167_v25  ;;  %v13802_v24 = vld [vmem:[#allocation6 + $0xb64] sm:$0xf0]  ;;  %v12647_v62 = vor.u32 %v13883_v33, %v12646_v29  ;;  %v11072_v33 = vld [vmem:[#allocation6 + $0x1a8] sm:$0xf0] }
 0x7bc   : > { %8298 = vmatpush.bf16.msrb.mxu2 %v11839_v14  ;;  %v13650_v0 = vld [vmem:[#allocation6 + $0x6a4] sm:$0xf0]  ;;  %v12319_v31 = vor.u32 %v13802_v24, %v12318_v53  ;;  %v13486_v53 = vld [vmem:[#allocation6 + $0x18c] sm:$0xf] }
 0x7bd   : > { %8494 = vmatpush.bf16.msra.mxu0 %v11559_v38  ;;  %v11431_v38 = vor.u32 %v13579_v30, %v11430_v49  ;;  %v11966_v5 = vld [vmem:[#allocation6 + $0x888] sm:$0xf]  ;;  %v13494_v30 = vld [vmem:[#allocation6 + $0x1cc] sm:$0xf] }
 0x7be   : > { %8311 = vmatpush.bf16.msrb.mxu3 %v12095_v35  ;;  %v13714_v55 = vld [vmem:[#allocation6 + $0x8a4] sm:$0xf0]  ;;  %v12614_v35 = vld [vmem:[#allocation6 + $0xd90] sm:$0xf]  ;;  %v11107_v9 = vor.u32 %v13494_v30, %v11104_v12 }
 0x7bf   : > { %8278 = vmatpush.bf16.msrb.mxu1 %v11135_v43  ;;  %v12286_v16 = vld [vmem:[#allocation6 + $0xb08] sm:$0xf]  ;;  %v11967_v25 = vor.u32 %v13714_v55, %v11966_v5  ;;  %v12615_v22 = vor.u32 %v13875_v50, %v12614_v35 }
 0x7c0   : > { %8299 = vmatpush.bf16.msrb.mxu2 %v11807_v11  ;;  %v13794_v14 = vld [vmem:[#allocation6 + $0xb24] sm:$0xf0]  ;;  %v13867_v11 = vld [vmem:[#allocation6 + $0xd6c] sm:$0xf0] }
 0x7c1   : > { %8495 = vmatpush.bf16.msra.mxu0 %v11527_v41  ;;  %v11710_v41 = vld [vmem:[#allocation6 + $0x688] sm:$0xf]  ;;  %v12287_v51 = vor.u32 %v13794_v14, %v12286_v16  ;;  %v13478_v16 = vld [vmem:[#allocation6 + $0x14c] sm:$0xf] }
 0x7c2   : > { %8312 = vmatpush.bf16.msrb.mxu3 %v12063_v52  ;;  %8279 = vmatmul.bf16.vlgmr.msrb.gmra.mxu1 %v16590_v2  ;;  %v11711_v7 = vor.u32 %v13650_v0, %v11710_v41  ;;  %v13642_v36 = vld [vmem:[#allocation6 + $0x664] sm:$0xf0]  ;;  %v13851_v41 = vld [vmem:[#allocation6 + $0xcec] sm:$0xf0]  ;;  %v11040_v14 = vld [vmem:[#allocation6 + $0x168] sm:$0xf0] }
 0x7c3   : > { %8323 = vmatpush.bf16.msra.mxu1 %v12383_v39  ;;  %v11934_v60 = vld [vmem:[#allocation6 + $0x848] sm:$0xf]  ;;  %v12583_v39 = vor.u32 %v13867_v11, %v12582_v1 }
 0x7c4   : > { %8300 = vmatpush.bf16.msrb.mxu2 %v11775_v44  ;;  %v13706_v19 = vld [vmem:[#allocation6 + $0x864] sm:$0xf0] }
 0x7c5   : > { %8496 = vmatpush.bf16.msra.mxu0 %v11495_v8  ;;  %v11678_v8 = vld [vmem:[#allocation6 + $0x648] sm:$0xf] }
 0x7c6   : > { %8313 = vmatpush.bf16.msrb.mxu3 %v12031_v17  ;;  %v12254_v20 = vld [vmem:[#allocation6 + $0xac8] sm:$0xf]  ;;  %v11679_v52 = vor.u32 %v13642_v36, %v11678_v8  ;;  %v12550_v17 = vld [vmem:[#allocation6 + $0xd10] sm:$0xf]  ;;  %v13558_v36 = vld [vmem:[#allocation6 + $0x3cc] sm:$0xf] }
 0x7c7   : > { %8324 = vmatpush.bf16.msra.mxu1 %v12351_v4  ;;  %v13786_v61 = vld [vmem:[#allocation6 + $0xae4] sm:$0xf0]  ;;  %v13843_v8 = vld [vmem:[#allocation6 + $0xcac] sm:$0xf0] }
 0x7c8   : > { %8301 = vmatpush.bf16.msrb.mxu2 %v11743_v34  ;;  %v11646_v43 = vld [vmem:[#allocation6 + $0x608] sm:$0xf]  ;;  %v12255_v27 = vor.u32 %v13786_v61, %v12254_v20 }
 0x7c9   : > { %8497 = vmatpush.bf16.msra.mxu0 %v11463_v56  ;;  %v11935_v56 = vor.u32 %v13706_v19, %v11934_v60  ;;  %v13634_v6 = vld [vmem:[#allocation6 + $0x624] sm:$0xf0]  ;;  %v11043_v60 = vor.u32 %v13478_v16, %v11040_v14 }
 0x7ca   : > { %8314 = vmatpush.bf16.msrb.mxu3 %v11999_v18  ;;  %v11902_v63 = vld [vmem:[#allocation6 + $0x808] sm:$0xf]  ;;  %v11647_v45 = vor.u32 %v13634_v6, %v11646_v43  ;;  %v13470_v43 = vld [vmem:[#allocation6 + $0x10c] sm:$0xf]  ;;  %v12454_v6 = vld [vmem:[#allocation6 + $0xc50] sm:$0xf] }
 0x7cb   : > { %8325 = vmatpush.bf16.msra.mxu1 %v12319_v31  ;;  %v13698_v57 = vld [vmem:[#allocation6 + $0x824] sm:$0xf0] }
 0x7cc   : > { %8302 = vmatpush.bf16.msrb.mxu2 %v11711_v7  ;;  %v12894_v54 = vld [vmem:[#allocation6 + $0xfc8] sm:$0xf]  ;;  %v11903_v21 = vor.u32 %v13698_v57, %v11902_v63  ;;  %v13835_v63 = vld [vmem:[#allocation6 + $0xc6c] sm:$0xf0]  ;;  %v13550_v57 = vld [vmem:[#allocation6 + $0x38c] sm:$0xf] }
 0x7cd   : > { %8498 = vmatpush.bf16.msra.mxu0 %v11431_v38  ;;  %v13946_v49 = vld [vmem:[#allocation6 + $0xfe4] sm:$0xf0]  ;;  %v13859_v38 = vld [vmem:[#allocation6 + $0xd2c] sm:$0xf0] }
 0x7ce   : > { %8315 = vmatpush.bf16.msrb.mxu3 %v11967_v25  ;;  %v12222_v10 = vld [vmem:[#allocation6 + $0xa88] sm:$0xf]  ;;  %v12895_v28 = vor.u32 %v13946_v49, %v12894_v54  ;;  %v12551_v29 = vor.u32 %v13859_v38, %v12550_v17  ;;  %v12486_v25 = vld [vmem:[#allocation6 + $0xc90] sm:$0xf]  ;;  %v16643_v49 = vld [vmem:[#allocation34] sm:$0xff] }
 0x7cf   : > { %8326 = vmatpush.bf16.msra.mxu1 %v12287_v51  ;;  %v13778_v44 = vld [vmem:[#allocation6 + $0xaa4] sm:$0xf0]  ;;  %v11360_v51 = vld [vmem:[#allocation6 + $0x3e8] sm:$0xf0]  ;;  %v12487_v11 = vor.u32 %v13843_v8, %v12486_v25  ;;  %v12422_v38 = vld [vmem:[#allocation6 + $0xc10] sm:$0xf] }
 0x7d0   : > { %8303 = vmatpush.bf16.msrb.mxu2 %v11679_v52  ;;  %v12223_v4 = vor.u32 %v13778_v44, %v12222_v10  ;;  %v12862_v13 = vld [vmem:[#allocation6 + $0xf88] sm:$0xf]  ;;  %v11363_v52 = vor.u32 %v13558_v36, %v11360_v51  ;;  %v12455_v10 = vor.u32 %v13835_v63, %v12454_v6  ;;  %v10976_v17 = vld [vmem:[#allocation6 + $0xe8] sm:$0xf0] }
 0x7d1   : > { %8499 = vmatpush.bf16.msra.mxu0 %v11399_v26  ;;  %v13938_v42 = vld [vmem:[#allocation6 + $0xfa4] sm:$0xf0]  ;;  %v16639_v24 = vpop.f32.mrf.mxu0  ;;  %v12518_v26 = vld [vmem:[#allocation6 + $0xcd0] sm:$0xf] }
 0x7d2   : > { %8316 = vmatpush.bf16.msrb.mxu3 %v11935_v56  ;;  %v12190_v34 = vld [vmem:[#allocation6 + $0xa48] sm:$0xf]  ;;  %v12863_v0 = vor.u32 %v13938_v42, %v12862_v13  ;;  %v12519_v35 = vor.u32 %v13851_v41, %v12518_v26  ;;  %v11008_v56 = vld [vmem:[#allocation6 + $0x128] sm:$0xf0]  ;;  %v13623_v42 = vld [vmem:[#allocation6 + $0x5d4] sm:$0xf] }
 0x7d3   : > { %8327 = vmatpush.bf16.msra.mxu1 %v12255_v27  ;;  %v13770_v18 = vld [vmem:[#allocation6 + $0xa64] sm:$0xf0]  ;;  %v11328_v27 = vld [vmem:[#allocation6 + $0x3a8] sm:$0xf0]  ;;  %v11011_v54 = vor.u32 %v13470_v43, %v11008_v56  ;;  %v11560_v43 = vld [vmem:[#allocation6 + $0x570] sm:$0xf0] }
 0x7d4   : > { %8500 = vmatmul.bf16.vlgmr.msra.gmra.mxu0 %v16543_v40  ;;  %8304 = vmatpush.bf16.msrb.mxu2 %v11647_v45  ;;  %v12830_v31 = vld [vmem:[#allocation6 + $0xf48] sm:$0xf]  ;;  %v12191_v5 = vor.u32 %v13770_v18, %v12190_v34  ;;  %v11331_v44 = vor.u32 %v13550_v57, %v11328_v27  ;;  %v13462_v45 = vld [vmem:[#allocation6 + $0xcc] sm:$0xf] }
 0x7d5   : > { %8544 = vmatpush.bf16.msrb.mxu0 %v12647_v62  ;;  %v11075_v62 = vor.u32 %v13486_v53, %v11072_v33  ;;  %v13930_v55 = vld [vmem:[#allocation6 + $0xf64] sm:$0xf0]  ;;  %v11624_v53 = vld [vmem:[#allocation6 + $0x5f0] sm:$0xf0]  ;;  %v10979_v33 = vor.u32 %v13462_v45, %v10976_v17  ;;  %v13438_v27 = vld [vmem:[#allocation6 + $0xc] sm:$0xf] }
 0x7d6   : > { %8317 = vmatpush.bf16.msrb.mxu3 %v11903_v21  ;;  %v12158_v50 = vld [vmem:[#allocation6 + $0xa08] sm:$0xf]  ;;  %v13827_v21 = vld [vmem:[#allocation6 + $0xc2c] sm:$0xf0]  ;;  %v12128_v45 = vld [vmem:[#allocation6 + $0x9e8] sm:$0xf0] }
 0x7d7   : > { %8328 = vmatpush.bf16.msra.mxu1 %v12223_v4  ;;  %8305 = vmatmul.bf16.vlgmr.msrb.gmra.mxu2 %v16602_v15  ;;  %v13762_v7 = vld [vmem:[#allocation6 + $0xa24] sm:$0xf0]  ;;  %v8034_v4 = vperm.slane %v16643_v49, 0  ;;  %v12423_v26 = vor.u32 %v13827_v21, %v12422_v38  ;;  %v13518_v17 = vld [vmem:[#allocation6 + $0x28c] sm:$0xf] }
 0x7d8   : > { %8349 = vmatpush.bf16.msra.mxu2 %v12895_v28  ;;  %v12159_v19 = vor.u32 %v13762_v7, %v12158_v50  ;;  %v12798_v20 = vld [vmem:[#allocation6 + $0xf08] sm:$0xf]  ;;  %v13542_v28 = vld [vmem:[#allocation6 + $0x34c] sm:$0xf]  ;;  %v11592_v50 = vld [vmem:[#allocation6 + $0x5b0] sm:$0xf0] }
 0x7d9   : > { %8545 = vmatpush.bf16.msrb.mxu0 %v12615_v22  ;;  %8318 = vmatmul.bf16.vlgmr.msrb.gmra.mxu3 %v16604_v59  ;;  %v12831_v22 = vor.u32 %v13930_v55, %v12830_v31  ;;  %v13922_v61 = vld [vmem:[#allocation6 + $0xf24] sm:$0xf0]  ;;  %v8295_v1 = vpop.f32.mrf.mxu0  ;;  %v10944_v31 = vld [vmem:[#allocation6 + $0xa8] sm:$0xf0] }
 0x7da   : > { %8362 = vmatpush.bf16.msra.mxu3 %v11107_v9  ;;  %v12766_v30 = vld [vmem:[#allocation6 + $0xec8] sm:$0xf]  ;;  %v11296_v9 = vld [vmem:[#allocation6 + $0x368] sm:$0xf0] }
 0x7db   : > { %8329 = vmatpush.bf16.msra.mxu1 %v12191_v5  ;;  %v13914_v12 = vld [vmem:[#allocation6 + $0xee4] sm:$0xf0]  ;;  %v11299_v41 = vor.u32 %v13542_v28, %v11296_v9  ;;  %v13534_v5 = vld [vmem:[#allocation6 + $0x30c] sm:$0xf]  ;;  %v13599_v28 = vld [vmem:[#allocation6 + $0x514] sm:$0xf] }
 0x7dc   : > { %8350 = vmatpush.bf16.msra.mxu2 %v12863_v0  ;;  %v12767_v13 = vor.u32 %v13914_v12, %v12766_v30  ;;  %v12734_v34 = vld [vmem:[#allocation6 + $0xe88] sm:$0xf]  ;;  %v13454_v0 = vld [vmem:[#allocation6 + $0x8c] sm:$0xf]  ;;  %v11528_v9 = vld [vmem:[#allocation6 + $0x530] sm:$0xf0] }
 0x7dd   : > { %8546 = vmatpush.bf16.msrb.mxu0 %v12583_v39  ;;  %v12799_v39 = vor.u32 %v13922_v61, %v12798_v20  ;;  %v13906_v18 = vld [vmem:[#allocation6 + $0xea4] sm:$0xf0]  ;;  %v11264_v55 = vld [vmem:[#allocation6 + $0x328] sm:$0xf0]  ;;  %v10947_v25 = vor.u32 %v13454_v0, %v10944_v31 }
 0x7de   : > { %8363 = vmatpush.bf16.msra.mxu3 %v11075_v62  ;;  %v11627_v62 = vor.u32 %v13623_v42, %v11624_v53  ;;  %v12735_v14 = vor.u32 %v13906_v18, %v12734_v34  ;;  %v8072_v7 = vpop.f32.mrf.mxu1  ;;  %v12702_v8 = vld [vmem:[#allocation6 + $0xe48] sm:$0xf]  ;;  %v13526_v61 = vld [vmem:[#allocation6 + $0x2cc] sm:$0xf] }
 0x7df   : > { %8330 = vmatpush.bf16.msra.mxu1 %v12159_v19  ;;  %v13898_v36 = vld [vmem:[#allocation6 + $0xe64] sm:$0xf0]  ;;  %v10912_v19 = vld [vmem:[#allocation6 + $0x68] sm:$0xf0] }
 0x7e0   : > { %8351 = vmatpush.bf16.msra.mxu2 %v12831_v22  ;;  %v11267_v22 = vor.u32 %v13534_v5, %v11264_v55  ;;  %v11232_v1 = vld [vmem:[#allocation6 + $0x2e8] sm:$0xf0]  ;;  %v12670_v56 = vld [vmem:[#allocation6 + $0xe08] sm:$0xf]  ;;  %v13591_v5 = vld [vmem:[#allocation6 + $0x4d4] sm:$0xf] }
 0x7e1   : > { %8547 = vmatpush.bf16.msrb.mxu0 %v12551_v29  ;;  %v8059_v29 = vpop.f32.mrf.mxu3  ;;  %v13890_v57 = vld [vmem:[#allocation6 + $0xe24] sm:$0xf0]  ;;  %v13686_v30 = vld [vmem:[#allocation6 + $0x7cc] sm:$0xf]  ;;  %v11496_v55 = vld [vmem:[#allocation6 + $0x4f0] sm:$0xf0] }
 0x7e2   : > { %8364 = vmatpush.bf16.msra.mxu3 %v11043_v60  ;;  %8331 = vmatmul.bf16.vlgmr.msra.gmra.mxu1 %v16613_v3  ;;  %v8060_v16 = vadd.f32 %v8059_v29, %v8034_v4  ;;  %v13446_v60 = vld [vmem:[#allocation6 + $0x4c] sm:$0xf]  ;;  %v12671_v21 = vor.u32 %v13890_v57, %v12670_v56 }
 0x7e3   : > { %8375 = vmatpush.bf16.msrb.mxu1 %v11363_v52  ;;  %v13607_v52 = vld [vmem:[#allocation6 + $0x554] sm:$0xf]  ;;  %v10915_v63 = vor.u32 %v13446_v60, %v10912_v19  ;;  %v11872_v12 = vld [vmem:[#allocation6 + $0x7e8] sm:$0xf0] }
 0x7e4   : > { %8352 = vmatpush.bf16.msra.mxu2 %v12799_v39  ;;  %v16647_v51 = vadd.f32 %v8072_v7, %v8060_v16  ;;  %v10880_v39 = vld [vmem:[#allocation6 + $0x28] sm:$0xf0]  ;;  %v11875_v42 = vor.u32 %v13686_v30, %v11872_v12  ;;  %v13583_v19 = vld [vmem:[#allocation6 + $0x494] sm:$0xf] }
 0x7e5   : > { %8548 = vmatpush.bf16.msrb.mxu0 %v12519_v35  ;;  %v13615_v35 = vld [vmem:[#allocation6 + $0x594] sm:$0xf]  ;;  %v11200_v38 = vld [vmem:[#allocation6 + $0x2a8] sm:$0xf0] }
 0x7e6   : > { %8365 = vmatpush.bf16.msra.mxu3 %v11011_v54  ;;  %v11595_v20 = vor.u32 %v13615_v35, %v11592_v50  ;;  %v11235_v54 = vor.u32 %v13526_v61, %v11232_v1  ;;  %v8074_v4 = vpop.f32.mrf.mxu1  ;;  %v11203_v29 = vor.u32 %v13518_v17, %v11200_v38  ;;  %v11840_v34 = vld [vmem:[#allocation6 + $0x7a8] sm:$0xf0]  ;;  %v13575_v30 = vld [vmem:[#allocation6 + $0x454] sm:$0xf] }
 0x7e7   : > { %8376 = vmatpush.bf16.msrb.mxu1 %v11331_v44  ;;  %v11563_v44 = vor.u32 %v13607_v52, %v11560_v43  ;;  %v13742_v18 = vld [vmem:[#allocation6 + $0x98c] sm:$0xf]  ;;  %v11432_v12 = vld [vmem:[#allocation6 + $0x470] sm:$0xf0] }
 0x7e8   : > { %8353 = vmatpush.bf16.msra.mxu2 %v12767_v13  ;;  %v10883_v13 = vor.u32 %v13438_v27, %v10880_v39  ;;  %v12096_v0 = vld [vmem:[#allocation6 + $0x9a8] sm:$0xf0] }
 0x7e9   : > { %8549 = vmatpush.bf16.msrb.mxu0 %v12487_v11  ;;  %v12703_v11 = vor.u32 %v13898_v36, %v12702_v8  ;;  %v8061_v6 = vpop.f32.mrf.mxu3  ;;  %v13510_v31 = vld [vmem:[#allocation6 + $0x24c] sm:$0xf]  ;;  %v12099_v35 = vor.u32 %v13742_v18, %v12096_v0  ;;  %v11499_v36 = vor.u32 %v13591_v5, %v11496_v55  ;;  %v12648_v0 = vld [vmem:[#allocation6 + $0xdf0] sm:$0xf0] }
 0x7ea   : > { %8366 = vmatpush.bf16.msra.mxu3 %v10979_v33  ;;  %v13678_v33 = vld [vmem:[#allocation6 + $0x78c] sm:$0xf] }
 0x7eb   : > { %8377 = vmatpush.bf16.msrb.mxu1 %v11299_v41  ;;  %v11531_v41 = vor.u32 %v13599_v28, %v11528_v9  ;;  %v11843_v16 = vor.u32 %v13678_v33, %v11840_v34  ;;  %v11808_v7 = vld [vmem:[#allocation6 + $0x768] sm:$0xf0]  ;;  %v11435_v28 = vor.u32 %v13575_v30, %v11432_v12  ;;  %v8086_v34 = vadd.f32 %v16600_v48, %v16647_v51  ;;  %v12584_v30 = vld [vmem:[#allocation6 + $0xd70] sm:$0xf0] }
 0x7ec   : > { %8354 = vmatpush.bf16.msra.mxu2 %v12735_v14  ;;  %v13670_v14 = vld [vmem:[#allocation6 + $0x74c] sm:$0xf] }
 0x7ed   : > { %8550 = vmatpush.bf16.msrb.mxu0 %v12455_v10  ;;  %v13750_v10 = vld [vmem:[#allocation6 + $0x9cc] sm:$0xf] }
 0x7ee   : > { %8367 = vmatpush.bf16.msra.mxu3 %v10947_v25  ;;  %v12131_v53 = vor.u32 %v13750_v10, %v12128_v45  ;;  %v13734_v25 = vld [vmem:[#allocation6 + $0x94c] sm:$0xf] }
 0x7ef   : > { %8378 = vmatpush.bf16.msrb.mxu1 %v11267_v22  ;;  %v12064_v8 = vld [vmem:[#allocation6 + $0x968] sm:$0xf0] }
 0x7f0   : > { %8355 = vmatpush.bf16.msra.mxu2 %v12703_v11  ;;  %v13502_v22 = vld [vmem:[#allocation6 + $0x20c] sm:$0xf]  ;;  %v11811_v11 = vor.u32 %v13670_v14, %v11808_v7  ;;  %v12067_v52 = vor.u32 %v13734_v25, %v12064_v8 }
 0x7f1   : > { %8551 = vmatpush.bf16.msrb.mxu0 %v12423_v26  ;;  %v16650_v26 = vpop.f32.mrf.mxu0  ;;  %v11136_v60 = vld [vmem:[#allocation6 + $0x228] sm:$0xf0] }
 0x7f2   : > { %8368 = vmatpush.bf16.msra.mxu3 %v10915_v63  ;;  %v13814_v61 = vld [vmem:[#allocation6 + $0xbcc] sm:$0xf]  ;;  %v11139_v43 = vor.u32 %v13502_v22, %v11136_v60  ;;  %v13871_v60 = vld [vmem:[#allocation6 + $0xd94] sm:$0xf] }
 0x7f3   : > { %8379 = vmatpush.bf16.msrb.mxu1 %v11235_v54  ;;  %v12384_v1 = vld [vmem:[#allocation6 + $0xbe8] sm:$0xf0] }
 0x7f4   : > { %8552 = vmatmul.bf16.vlgmr.msrb.gmra.mxu0 %v16560_v58  ;;  %8356 = vmatpush.bf16.msra.mxu2 %v12671_v21  ;;  %v13662_v56 = vld [vmem:[#allocation6 + $0x70c] sm:$0xf]  ;;  %v12387_v27 = vor.u32 %v13814_v61, %v12384_v1 }
 0x7f5   : > { %8596 = vmatpush.bf16.msra.mxu0 %v11627_v62  ;;  %v11168_v62 = vld [vmem:[#allocation6 + $0x268] sm:$0xf0] }
 0x7f6   : > { %8369 = vmatpush.bf16.msra.mxu3 %v10883_v13  ;;  %v11171_v50 = vor.u32 %v13510_v31, %v11168_v62  ;;  %v11776_v6 = vld [vmem:[#allocation6 + $0x728] sm:$0xf0] }
 0x7f7   : > { %8380 = vmatpush.bf16.msrb.mxu1 %v11203_v29  ;;  %8357 = vmatmul.bf16.vlgmr.msra.gmra.mxu2 %v16623_v32  ;;  %v13726_v39 = vld [vmem:[#allocation6 + $0x90c] sm:$0xf]  ;;  %v11779_v45 = vor.u32 %v13662_v56, %v11776_v6 }
 0x7f8   : > { %8401 = vmatpush.bf16.msrb.mxu2 %v11875_v42  ;;  %v12032_v54 = vld [vmem:[#allocation6 + $0x928] sm:$0xf0]  ;;  %v13567_v42 = vld [vmem:[#allocation6 + $0x414] sm:$0xf] }
 0x7f9   : > { %8597 = vmatpush.bf16.msra.mxu0 %v11595_v20  ;;  %8370 = vmatmul.bf16.vlgmr.msra.gmra.mxu3 %v16584_v23  ;;  %v11464_v20 = vld [vmem:[#allocation6 + $0x4b0] sm:$0xf0]  ;;  %v8347_v63 = vpop.f32.mrf.mxu0  ;;  %v13806_v10 = vld [vmem:[#allocation6 + $0xb8c] sm:$0xf]  ;;  %v12035_v17 = vor.u32 %v13726_v39, %v12032_v54 }
 0x7fa   : > { %8414 = vmatpush.bf16.msrb.mxu3 %v12131_v53  ;;  %v11467_v57 = vor.u32 %v13583_v19, %v11464_v20  ;;  %v13654_v38 = vld [vmem:[#allocation6 + $0x6cc] sm:$0xf]  ;;  %v11400_v53 = vld [vmem:[#allocation6 + $0x430] sm:$0xf0]  ;;  %v8098_v31 = vpop.f32.mrf.mxu2 }
 0x7fb   : > { %8381 = vmatpush.bf16.msrb.mxu1 %v11171_v50  ;;  %v11744_v21 = vld [vmem:[#allocation6 + $0x6e8] sm:$0xf0]  ;;  %v12616_v19 = vld [vmem:[#allocation6 + $0xdb0] sm:$0xf0] }
 0x7fc   : > { %8402 = vmatpush.bf16.msrb.mxu2 %v11843_v16  ;;  %v13718_v4 = vld [vmem:[#allocation6 + $0x8cc] sm:$0xf]  ;;  %v11747_v18 = vor.u32 %v13654_v38, %v11744_v21  ;;  %v8099_v16 = vadd.f32 %v8098_v31, %v8086_v34  ;;  %v8111_v14 = vpop.f32.mrf.mxu3  ;;  %v12619_v63 = vor.u32 %v13871_v60, %v12616_v19  ;;  %v13863_v54 = vld [vmem:[#allocation6 + $0xd54] sm:$0xf] }
 0x7fd   : > { %8598 = vmatpush.bf16.msra.mxu0 %v11563_v44  ;;  %v12352_v44 = vld [vmem:[#allocation6 + $0xba8] sm:$0xf0] }
 0x7fe   : > { %8415 = vmatpush.bf16.msrb.mxu3 %v12099_v35  ;;  %v12355_v9 = vor.u32 %v13806_v10, %v12352_v44  ;;  %v12000_v13 = vld [vmem:[#allocation6 + $0x8e8] sm:$0xf0]  ;;  %v11403_v35 = vor.u32 %v13567_v42, %v11400_v53  ;;  %v8112_v48 = vadd.f32 %v8111_v14, %v8099_v16  ;;  %v12587_v42 = vor.u32 %v13863_v54, %v12584_v30  ;;  %v13499_v53 = vld [vmem:[#allocation6 + $0x1ec] sm:$0xf0] }
 0x7ff   : > { %8382 = vmatpush.bf16.msrb.mxu1 %v11139_v43  ;;  %v13798_v29 = vld [vmem:[#allocation6 + $0xb4c] sm:$0xf]  ;;  %v12003_v62 = vor.u32 %v13718_v4, %v12000_v13  ;;  %v11110_v13 = vld [vmem:[#allocation6 + $0x1d0] sm:$0xf] }
 0x800   : > { %8403 = vmatpush.bf16.msrb.mxu2 %v11811_v11  ;;  %v12320_v33 = vld [vmem:[#allocation6 + $0xb68] sm:$0xf0]  ;;  %v8124_v11 = vpop.f32.mrf.mxu1  ;;  %v11366_v54 = vld [vmem:[#allocation6 + $0x3d0] sm:$0xf] }
 0x801   : > { %8599 = vmatpush.bf16.msra.mxu0 %v11531_v41  ;;  %v13879_v41 = vld [vmem:[#allocation6 + $0xdd4] sm:$0xf]  ;;  %v13646_v5 = vld [vmem:[#allocation6 + $0x68c] sm:$0xf]  ;;  %v12323_v50 = vor.u32 %v13798_v29, %v12320_v33  ;;  %v16657_v6 = vadd.f32 %v8124_v11, %v8112_v48  ;;  %v13563_v30 = vld [vmem:[#allocation6 + $0x3ec] sm:$0xf0] }
 0x802   : > { %8416 = vmatpush.bf16.msrb.mxu3 %v12067_v52  ;;  %8383 = vmatmul.bf16.vlgmr.msrb.gmra.mxu1 %v16590_v2  ;;  %v11712_v55 = vld [vmem:[#allocation6 + $0x6a8] sm:$0xf0]  ;;  %v12651_v8 = vor.u32 %v13879_v41, %v12648_v0  ;;  %v8100_v10 = vpop.f32.mrf.mxu2  ;;  %v12552_v41 = vld [vmem:[#allocation6 + $0xd30] sm:$0xf0] }
 0x803   : > { %8427 = vmatpush.bf16.msra.mxu1 %v12387_v27  ;;  %v13710_v7 = vld [vmem:[#allocation6 + $0x88c] sm:$0xf]  ;;  %v11715_v51 = vor.u32 %v13646_v5, %v11712_v55  ;;  %v11111_v5 = vor.u32 %v13499_v53, %v11110_v13  ;;  %v11014_v13 = vld [vmem:[#allocation6 + $0x110] sm:$0xf]  ;;  %v13831_v53 = vld [vmem:[#allocation6 + $0xc54] sm:$0xf] }
 0x804   : > { %8404 = vmatpush.bf16.msrb.mxu2 %v11779_v45  ;;  %v11968_v25 = vld [vmem:[#allocation6 + $0x8a8] sm:$0xf0]  ;;  %v8113_v21 = vpop.f32.mrf.mxu3 }
 0x805   : > { %8600 = vmatpush.bf16.msra.mxu0 %v11499_v36  ;;  %v13790_v36 = vld [vmem:[#allocation6 + $0xb0c] sm:$0xf]  ;;  %v11971_v20 = vor.u32 %v13710_v7, %v11968_v25  ;;  %v13491_v7 = vld [vmem:[#allocation6 + $0x1ac] sm:$0xf0] }
 0x806   : > { %8417 = vmatpush.bf16.msrb.mxu3 %v12035_v17  ;;  %v12288_v22 = vld [vmem:[#allocation6 + $0xb28] sm:$0xf0] }
 0x807   : > { %8428 = vmatpush.bf16.msra.mxu1 %v12355_v9  ;;  %v13638_v61 = vld [vmem:[#allocation6 + $0x64c] sm:$0xf]  ;;  %v12291_v52 = vor.u32 %v13790_v36, %v12288_v22  ;;  %v13847_v36 = vld [vmem:[#allocation6 + $0xcd4] sm:$0xf] }
 0x808   : > { %8405 = vmatpush.bf16.msrb.mxu2 %v11747_v18  ;;  %v11680_v1 = vld [vmem:[#allocation6 + $0x668] sm:$0xf0]  ;;  %v13855_v18 = vld [vmem:[#allocation6 + $0xd14] sm:$0xf] }
 0x809   : > { %8601 = vmatpush.bf16.msra.mxu0 %v11467_v57  ;;  %v13702_v43 = vld [vmem:[#allocation6 + $0x84c] sm:$0xf]  ;;  %v11683_v39 = vor.u32 %v13638_v61, %v11680_v1  ;;  %v12520_v22 = vld [vmem:[#allocation6 + $0xcf0] sm:$0xf0] }
 0x80a   : > { %8418 = vmatpush.bf16.msrb.mxu3 %v12003_v62  ;;  %v11936_v56 = vld [vmem:[#allocation6 + $0x868] sm:$0xf0]  ;;  %v8126_v62 = vpop.f32.mrf.mxu1 }
 0x80b   : > { %8429 = vmatpush.bf16.msra.mxu1 %v12323_v50  ;;  %v13782_v57 = vld [vmem:[#allocation6 + $0xacc] sm:$0xf]  ;;  %v11939_v44 = vor.u32 %v13702_v43, %v11936_v56  ;;  %v12555_v50 = vor.u32 %v13855_v18, %v12552_v41  ;;  %v13483_v43 = vld [vmem:[#allocation6 + $0x16c] sm:$0xf0]  ;;  %v12523_v56 = vor.u32 %v13847_v36, %v12520_v22  ;;  %v11630_v22 = vld [vmem:[#allocation6 + $0x5d8] sm:$0xf] }
 0x80c   : > { %v12256_v27 = vld [vmem:[#allocation6 + $0xae8] sm:$0xf0]  ;;  %8406 = vmatpush.bf16.msrb.mxu2 %v11715_v51  ;;  %v8035_v51 = vperm.slane %v16643_v49, 1 }
 0x80d   : > { %8602 = vmatpush.bf16.msra.mxu0 %v11435_v28  ;;  %v13630_v12 = vld [vmem:[#allocation6 + $0x60c] sm:$0xf]  ;;  %v12259_v28 = vor.u32 %v13782_v57, %v12256_v27  ;;  %v13839_v27 = vld [vmem:[#allocation6 + $0xc94] sm:$0xf] }
 0x80e   : > { %8419 = vmatpush.bf16.msrb.mxu3 %v11971_v20  ;;  %v11648_v45 = vld [vmem:[#allocation6 + $0x628] sm:$0xf0]  ;;  %v8163_v20 = vpop.f32.mrf.mxu3 }
 0x80f   : > { %v13694_v17 = vld [vmem:[#allocation6 + $0x80c] sm:$0xf]  ;;  %8430 = vmatpush.bf16.msra.mxu1 %v12291_v52  ;;  %v11651_v34 = vor.u32 %v13630_v12, %v11648_v45  ;;  %v11046_v52 = vld [vmem:[#allocation6 + $0x150] sm:$0xf]  ;;  %v8164_v12 = vadd.f32 %v8163_v20, %v8035_v51  ;;  %v13628_v51 = vld [vmem:[#allocation6 + $0x5f4] sm:$0xf0] }
 0x810   : > { %v11904_v38 = vld [vmem:[#allocation6 + $0x828] sm:$0xf0]  ;;  %8407 = vmatpush.bf16.msrb.mxu2 %v11683_v39  ;;  %v12488_v39 = vld [vmem:[#allocation6 + $0xcb0] sm:$0xf0]  ;;  %v11047_v45 = vor.u32 %v13483_v43, %v11046_v52 }
 0x811   : > { %8603 = vmatpush.bf16.msra.mxu0 %v11403_v35  ;;  %v13942_v9 = vld [vmem:[#allocation6 + $0xfcc] sm:$0xf]  ;;  %v11907_v0 = vor.u32 %v13694_v17, %v11904_v38  ;;  %v11078_v35 = vld [vmem:[#allocation6 + $0x190] sm:$0xf]  ;;  %v16660_v48 = vpop.f32.mrf.mxu0 }
 0x812   : > { %v12896_v4 = vld [vmem:[#allocation6 + $0xfe8] sm:$0xf0]  ;;  %8420 = vmatpush.bf16.msrb.mxu3 %v11939_v44  ;;  %v11079_v61 = vor.u32 %v13491_v7, %v11078_v35  ;;  %v8176_v44 = vpop.f32.mrf.mxu1  ;;  %v13467_v35 = vld [vmem:[#allocation6 + $0xec] sm:$0xf0]  ;;  %v12424_v7 = vld [vmem:[#allocation6 + $0xc30] sm:$0xf0] }
 0x813   : > { %v13774_v29 = vld [vmem:[#allocation6 + $0xa8c] sm:$0xf]  ;;  %v12899_v31 = vor.u32 %v13942_v9, %v12896_v4  ;;  %8431 = vmatpush.bf16.msra.mxu1 %v12259_v28  ;;  %v16665_v28 = vadd.f32 %v8176_v44, %v8164_v12  ;;  %v12491_v9 = vor.u32 %v13839_v27, %v12488_v39  ;;  %v11367_v4 = vor.u32 %v13563_v30, %v11366_v54  ;;  %v11270_v39 = vld [vmem:[#allocation6 + $0x310] sm:$0xf]  ;;  %v11598_v12 = vld [vmem:[#allocation6 + $0x598] sm:$0xf] }
 0x814   : > { %8604 = vmatmul.bf16.vlgmr.msra.gmra.mxu0 %v16543_v40  ;;  %v12224_v33 = vld [vmem:[#allocation6 + $0xaa8] sm:$0xf0]  ;;  %8408 = vmatpush.bf16.msrb.mxu2 %v11651_v34  ;;  %v13555_v34 = vld [vmem:[#allocation6 + $0x3ac] sm:$0xf0]  ;;  %v11631_v27 = vor.u32 %v13628_v51, %v11630_v22  ;;  %v13604_v22 = vld [vmem:[#allocation6 + $0x534] sm:$0xf0] }
 0x815   : > { %8648 = vmatpush.bf16.msrb.mxu0 %v12651_v8  ;;  %v12227_v55 = vor.u32 %v13774_v29, %v12224_v33  ;;  %v13934_v16 = vld [vmem:[#allocation6 + $0xf8c] sm:$0xf]  ;;  %v12456_v29 = vld [vmem:[#allocation6 + $0xc70] sm:$0xf0]  ;;  %v11334_v33 = vld [vmem:[#allocation6 + $0x390] sm:$0xf] }
 0x816   : > { %v12864_v14 = vld [vmem:[#allocation6 + $0xfa8] sm:$0xf0]  ;;  %8421 = vmatpush.bf16.msrb.mxu3 %v11907_v0  ;;  %v8165_v0 = vpop.f32.mrf.mxu3  ;;  %v13539_v54 = vld [vmem:[#allocation6 + $0x32c] sm:$0xf0] }
 0x817   : > { %v13766_v25 = vld [vmem:[#allocation6 + $0xa4c] sm:$0xf]  ;;  %v12867_v60 = vor.u32 %v13934_v16, %v12864_v14  ;;  %8432 = vmatpush.bf16.msra.mxu1 %v12227_v55  ;;  %8409 = vmatmul.bf16.vlgmr.msrb.gmra.mxu2 %v16602_v15  ;;  %v12459_v55 = vor.u32 %v13831_v53, %v12456_v29  ;;  %v11335_v16 = vor.u32 %v13555_v34, %v11334_v33  ;;  %v10982_v14 = vld [vmem:[#allocation6 + $0xd0] sm:$0xf]  ;;  %v11566_v53 = vld [vmem:[#allocation6 + $0x558] sm:$0xf] }
 0x818   : > { %v12192_v8 = vld [vmem:[#allocation6 + $0xa68] sm:$0xf0]  ;;  %8453 = vmatpush.bf16.msra.mxu2 %v12899_v31  ;;  %v10983_v20 = vor.u32 %v13467_v35, %v10982_v14  ;;  %v13612_v29 = vld [vmem:[#allocation6 + $0x574] sm:$0xf0]  ;;  %v13443_v0 = vld [vmem:[#allocation6 + $0x2c] sm:$0xf0] }
 0x819   : > { %8649 = vmatpush.bf16.msrb.mxu0 %v12619_v63  ;;  %v13926_v19 = vld [vmem:[#allocation6 + $0xf4c] sm:$0xf]  ;;  %v12195_v1 = vor.u32 %v13766_v25, %v12192_v8  ;;  %8422 = vmatmul.bf16.vlgmr.msrb.gmra.mxu3 %v16604_v59  ;;  %v8399_v18 = vpop.f32.mrf.mxu0  ;;  %v11302_v25 = vld [vmem:[#allocation6 + $0x350] sm:$0xf]  ;;  %v11567_v35 = vor.u32 %v13612_v29, %v11566_v53  ;;  %v11470_v29 = vld [vmem:[#allocation6 + $0x498] sm:$0xf] }
 0x81a   : > { %8466 = vmatpush.bf16.msra.mxu3 %v11111_v5  ;;  %v12832_v11 = vld [vmem:[#allocation6 + $0xf68] sm:$0xf0]  ;;  %v13547_v8 = vld [vmem:[#allocation6 + $0x36c] sm:$0xf0] }
 0x81b   : > { %v13758_v63 = vld [vmem:[#allocation6 + $0xa0c] sm:$0xf]  ;;  %v12835_v10 = vor.u32 %v13926_v19, %v12832_v11  ;;  %8433 = vmatpush.bf16.msra.mxu1 %v12195_v1  ;;  %v8138_v19 = vadd.f32 %v16621_v46, %v16657_v6  ;;  %v8150_v11 = vpop.f32.mrf.mxu2  ;;  %v11303_v43 = vor.u32 %v13547_v8, %v11302_v25  ;;  %v12134_v14 = vld [vmem:[#allocation6 + $0x9d0] sm:$0xf] }
 0x81c   : > { %v12160_v57 = vld [vmem:[#allocation6 + $0xa28] sm:$0xf0]  ;;  %8454 = vmatpush.bf16.msra.mxu2 %v12867_v60  ;;  %v8178_v60 = vpop.f32.mrf.mxu1  ;;  %v13523_v25 = vld [vmem:[#allocation6 + $0x2ac] sm:$0xf0] }
 0x81d   : > { %8650 = vmatpush.bf16.msrb.mxu0 %v12587_v42  ;;  %v12163_v17 = vor.u32 %v13758_v63, %v12160_v57  ;;  %v13918_v38 = vld [vmem:[#allocation6 + $0xf0c] sm:$0xf]  ;;  %v13475_v42 = vld [vmem:[#allocation6 + $0x12c] sm:$0xf0]  ;;  %v16670_v57 = vadd.f32 %v8150_v11, %v8138_v19 }
 0x81e   : > { %8467 = vmatpush.bf16.msra.mxu3 %v11079_v61  ;;  %v12800_v21 = vld [vmem:[#allocation6 + $0xf28] sm:$0xf0]  ;;  %v11015_v31 = vor.u32 %v13475_v42, %v11014_v13  ;;  %v13459_v63 = vld [vmem:[#allocation6 + $0xac] sm:$0xf0]  ;;  %v16672_v46 = vpop.f32.mrf.mxu3 }
 0x81f   : > { %v12803_v41 = vor.u32 %v13918_v38, %v12800_v21  ;;  %8434 = vmatpush.bf16.msra.mxu1 %v12163_v17  ;;  %v13910_v62 = vld [vmem:[#allocation6 + $0xecc] sm:$0xf]  ;;  %v11271_v17 = vor.u32 %v13539_v54, %v11270_v39  ;;  %v10918_v38 = vld [vmem:[#allocation6 + $0x50] sm:$0xf]  ;;  %v11502_v39 = vld [vmem:[#allocation6 + $0x4d8] sm:$0xf] }
 0x820   : > { %8455 = vmatpush.bf16.msra.mxu2 %v12835_v10  ;;  %v12768_v5 = vld [vmem:[#allocation6 + $0xee8] sm:$0xf0]  ;;  %v13620_v10 = vld [vmem:[#allocation6 + $0x5b4] sm:$0xf0]  ;;  %v13451_v21 = vld [vmem:[#allocation6 + $0x6c] sm:$0xf0] }
 0x821   : > { %8651 = vmatpush.bf16.msrb.mxu0 %v12555_v50  ;;  %v13823_v50 = vld [vmem:[#allocation6 + $0xc14] sm:$0xf]  ;;  %v12771_v36 = vor.u32 %v13910_v62, %v12768_v5  ;;  %v13902_v61 = vld [vmem:[#allocation6 + $0xe8c] sm:$0xf]  ;;  %v13531_v13 = vld [vmem:[#allocation6 + $0x2ec] sm:$0xf0]  ;;  %v10919_v34 = vor.u32 %v13451_v21, %v10918_v38 }
 0x822   : > { %8468 = vmatpush.bf16.msra.mxu3 %v11047_v45  ;;  %8435 = vmatmul.bf16.vlgmr.msra.gmra.mxu1 %v16613_v3  ;;  %v12736_v1 = vld [vmem:[#allocation6 + $0xea8] sm:$0xf0]  ;;  %v12427_v52 = vor.u32 %v13823_v50, %v12424_v7  ;;  %v13755_v50 = vld [vmem:[#allocation6 + $0x9ec] sm:$0xf0]  ;;  %v13596_v54 = vld [vmem:[#allocation6 + $0x4f4] sm:$0xf0] }
 0x823   : > { %8479 = vmatpush.bf16.msrb.mxu1 %v11367_v4  ;;  %v12739_v30 = vor.u32 %v13902_v61, %v12736_v1  ;;  %v13894_v44 = vld [vmem:[#allocation6 + $0xe4c] sm:$0xf]  ;;  %v11238_v4 = vld [vmem:[#allocation6 + $0x2d0] sm:$0xf]  ;;  %v8152_v62 = vpop.f32.mrf.mxu2 }
 0x824   : > { %8456 = vmatpush.bf16.msra.mxu2 %v12803_v41  ;;  %v12704_v45 = vld [vmem:[#allocation6 + $0xe68] sm:$0xf0]  ;;  %v10886_v41 = vld [vmem:[#allocation6 + $0x10] sm:$0xf]  ;;  %v11239_v5 = vor.u32 %v13531_v13, %v11238_v4  ;;  %v11503_v13 = vor.u32 %v13596_v54, %v11502_v39  ;;  %v12654_v54 = vld [vmem:[#allocation6 + $0xdd8] sm:$0xf] }
 0x825   : > { %8652 = vmatpush.bf16.msrb.mxu0 %v12523_v56  ;;  %v10950_v56 = vld [vmem:[#allocation6 + $0x90] sm:$0xf]  ;;  %v12707_v42 = vor.u32 %v13894_v44, %v12704_v45  ;;  %v13886_v33 = vld [vmem:[#allocation6 + $0xe0c] sm:$0xf]  ;;  %v10887_v60 = vor.u32 %v13443_v0, %v10886_v41  ;;  %v8190_v44 = vadd.f32 %v16628_v47, %v16665_v28 }
 0x826   : > { %8469 = vmatpush.bf16.msra.mxu3 %v11015_v31  ;;  %v10951_v6 = vor.u32 %v13459_v63, %v10950_v56  ;;  %v12672_v18 = vld [vmem:[#allocation6 + $0xe28] sm:$0xf0]  ;;  %v16675_v31 = vpop.f32.mrf.mxu1  ;;  %v11206_v7 = vld [vmem:[#allocation6 + $0x290] sm:$0xf]  ;;  %v8217_v51 = vpop.f32.mrf.mxu3 }
 0x827   : > { %8480 = vmatpush.bf16.msrb.mxu1 %v11335_v16  ;;  %v13691_v16 = vld [vmem:[#allocation6 + $0x7ec] sm:$0xf0]  ;;  %v12675_v8 = vor.u32 %v13886_v33, %v12672_v18  ;;  %v11207_v61 = vor.u32 %v13523_v25, %v11206_v7  ;;  %v11438_v7 = vld [vmem:[#allocation6 + $0x458] sm:$0xf] }
 0x828   : > { %8457 = vmatpush.bf16.msra.mxu2 %v12771_v36  ;;  %v11534_v36 = vld [vmem:[#allocation6 + $0x518] sm:$0xf]  ;;  %v11846_v1 = vld [vmem:[#allocation6 + $0x790] sm:$0xf] }
 0x829   : > { %8653 = vmatpush.bf16.msrb.mxu0 %v12491_v9  ;;  %v11599_v9 = vor.u32 %v13620_v10, %v11598_v12  ;;  %v13683_v11 = vld [vmem:[#allocation6 + $0x7ac] sm:$0xf0]  ;;  %v13580_v25 = vld [vmem:[#allocation6 + $0x474] sm:$0xf0] }
 0x82a   : > { %8470 = vmatpush.bf16.msra.mxu3 %v10983_v20  ;;  %v12135_v20 = vor.u32 %v13755_v50, %v12134_v14  ;;  %v13747_v56 = vld [vmem:[#allocation6 + $0x9ac] sm:$0xf0] }
 0x82b   : > { %8481 = vmatpush.bf16.msrb.mxu1 %v11303_v43  ;;  %v11535_v43 = vor.u32 %v13604_v22, %v11534_v36  ;;  %v11174_v63 = vld [vmem:[#allocation6 + $0x250] sm:$0xf]  ;;  %v8202_v4 = vpop.f32.mrf.mxu2 }
 0x82c   : > { %8458 = vmatpush.bf16.msra.mxu2 %v12739_v30  ;;  %v11847_v30 = vor.u32 %v13683_v11, %v11846_v1  ;;  %v11814_v12 = vld [vmem:[#allocation6 + $0x750] sm:$0xf]  ;;  %v8203_v33 = vadd.f32 %v8202_v4, %v8190_v44  ;;  %v11439_v1 = vor.u32 %v13580_v25, %v11438_v7  ;;  %v12590_v25 = vld [vmem:[#allocation6 + $0xd58] sm:$0xf] }
 0x82d   : > { %8654 = vmatpush.bf16.msrb.mxu0 %v12459_v55  ;;  %v11878_v55 = vld [vmem:[#allocation6 + $0x7d0] sm:$0xf] }
 0x82e   : > { %8471 = vmatpush.bf16.msra.mxu3 %v10951_v6  ;;  %v11879_v19 = vor.u32 %v13691_v16, %v11878_v55  ;;  %v8230_v6 = vpop.f32.mrf.mxu1  ;;  %v13675_v38 = vld [vmem:[#allocation6 + $0x76c] sm:$0xf0]  ;;  %v8216_v28 = vadd.f32 %v16672_v46, %v8203_v33  ;;  %v13876_v33 = vld [vmem:[#allocation6 + $0xdb4] sm:$0xf0] }
 0x82f   : > { %8482 = vmatpush.bf16.msrb.mxu1 %v11271_v17  ;;  %v12070_v21 = vld [vmem:[#allocation6 + $0x950] sm:$0xf]  ;;  %v11815_v47 = vor.u32 %v13675_v38, %v11814_v12 }
 0x830   : > { %8459 = vmatpush.bf16.msra.mxu2 %v12707_v42  ;;  %v11142_v42 = vld [vmem:[#allocation6 + $0x210] sm:$0xf]  ;;  %v8229_v22 = vadd.f32 %v16675_v31, %v8216_v28 }
 0x831   : > { %8655 = vmatpush.bf16.msrb.mxu0 %v12427_v52  ;;  %v12102_v52 = vld [vmem:[#allocation6 + $0x990] sm:$0xf]  ;;  %v16677_v10 = vpop.f32.mrf.mxu0 }
 0x832   : > { %8472 = vmatpush.bf16.msra.mxu3 %v10919_v34  ;;  %v12103_v45 = vor.u32 %v13747_v56, %v12102_v52  ;;  %v13507_v53 = vld [vmem:[#allocation6 + $0x22c] sm:$0xf0]  ;;  %v13588_v34 = vld [vmem:[#allocation6 + $0x4b4] sm:$0xf0] }
 0x833   : > { %8483 = vmatpush.bf16.msrb.mxu1 %v11239_v5  ;;  %v12390_v18 = vld [vmem:[#allocation6 + $0xbd0] sm:$0xf]  ;;  %v11143_v62 = vor.u32 %v13507_v53, %v11142_v42  ;;  %v11471_v16 = vor.u32 %v13588_v34, %v11470_v29  ;;  %v11406_v56 = vld [vmem:[#allocation6 + $0x418] sm:$0xf]  ;;  %v8036_v42 = vperm.slane %v16643_v49, 2 }
 0x834   : > { %8656 = vmatmul.bf16.vlgmr.msrb.gmra.mxu0 %v16560_v58  ;;  %8460 = vmatpush.bf16.msra.mxu2 %v12675_v8  ;;  %v13819_v41 = vld [vmem:[#allocation6 + $0xbec] sm:$0xf0]  ;;  %v12622_v29 = vld [vmem:[#allocation6 + $0xd98] sm:$0xf] }
 0x835   : > { %8700 = vmatpush.bf16.msra.mxu0 %v11631_v27  ;;  %v13515_v27 = vld [vmem:[#allocation6 + $0x26c] sm:$0xf0]  ;;  %v12391_v14 = vor.u32 %v13819_v41, %v12390_v18  ;;  %v8242_v18 = vadd.f32 %v16633_v37, %v8229_v22  ;;  %v12623_v49 = vor.u32 %v13876_v33, %v12622_v29  ;;  %v13868_v37 = vld [vmem:[#allocation6 + $0xd74] sm:$0xf0] }
 0x836   : > { %8473 = vmatpush.bf16.msra.mxu3 %v10887_v60  ;;  %v11175_v17 = vor.u32 %v13515_v27, %v11174_v63  ;;  %v11782_v5 = vld [vmem:[#allocation6 + $0x710] sm:$0xf]  ;;  %v13572_v63 = vld [vmem:[#allocation6 + $0x434] sm:$0xf0] }
 0x837   : > { %8484 = vmatpush.bf16.msrb.mxu1 %v11207_v61  ;;  %8461 = vmatmul.bf16.vlgmr.msra.gmra.mxu2 %v16623_v32  ;;  %v13667_v55 = vld [vmem:[#allocation6 + $0x72c] sm:$0xf0]  ;;  %v8204_v61 = vpop.f32.mrf.mxu2  ;;  %v13852_v29 = vld [vmem:[#allocation6 + $0xcf4] sm:$0xf0] }
 0x838   : > { %8505 = vmatpush.bf16.msrb.mxu2 %v11879_v19  ;;  %v13731_v50 = vld [vmem:[#allocation6 + $0x92c] sm:$0xf0]  ;;  %v11783_v51 = vor.u32 %v13667_v55, %v11782_v5 }
 0x839   : > { %8701 = vmatpush.bf16.msra.mxu0 %v11599_v9  ;;  %v13739_v9 = vld [vmem:[#allocation6 + $0x96c] sm:$0xf0]  ;;  %8474 = vmatmul.bf16.vlgmr.msra.gmra.mxu3 %v16584_v23  ;;  %v8451_v46 = vpop.f32.mrf.mxu0 }
 0x83a   : > { %8518 = vmatpush.bf16.msrb.mxu3 %v12135_v20  ;;  %v12071_v0 = vor.u32 %v13739_v9, %v12070_v21  ;;  %v12358_v8 = vld [vmem:[#allocation6 + $0xb90] sm:$0xf] }
 0x83b   : > { %8485 = vmatpush.bf16.msrb.mxu1 %v11175_v17  ;;  %v13811_v36 = vld [vmem:[#allocation6 + $0xbac] sm:$0xf0] }
 0x83c   : > { %8506 = vmatpush.bf16.msrb.mxu2 %v11847_v30  ;;  %v11750_v19 = vld [vmem:[#allocation6 + $0x6d0] sm:$0xf]  ;;  %v12359_v11 = vor.u32 %v13811_v36, %v12358_v8  ;;  %v13884_v30 = vld [vmem:[#allocation6 + $0xdf4] sm:$0xf0]  ;;  %v8267_v34 = vpop.f32.mrf.mxu3 }
 0x83d   : > { %8702 = vmatpush.bf16.msra.mxu0 %v11567_v35  ;;  %v12038_v35 = vld [vmem:[#allocation6 + $0x910] sm:$0xf]  ;;  %v12655_v9 = vor.u32 %v13884_v30, %v12654_v54 }
 0x83e   : > { %8519 = vmatpush.bf16.msrb.mxu3 %v12103_v45  ;;  %v12039_v60 = vor.u32 %v13731_v50, %v12038_v35  ;;  %v13659_v20 = vld [vmem:[#allocation6 + $0x6ec] sm:$0xf0]  ;;  %v11407_v45 = vor.u32 %v13572_v63, %v11406_v56  ;;  %v8268_v50 = vadd.f32 %v8267_v34, %v8036_v42 }
 0x83f   : > { %8486 = vmatpush.bf16.msrb.mxu1 %v11143_v62  ;;  %v12006_v52 = vld [vmem:[#allocation6 + $0x8d0] sm:$0xf]  ;;  %v11751_v31 = vor.u32 %v13659_v20, %v11750_v19  ;;  %v8280_v36 = vpop.f32.mrf.mxu1 }
 0x840   : > { %8507 = vmatpush.bf16.msrb.mxu2 %v11815_v47  ;;  %v12326_v27 = vld [vmem:[#allocation6 + $0xb50] sm:$0xf]  ;;  %v16691_v19 = vadd.f32 %v8280_v36, %v8268_v50  ;;  %v13844_v50 = vld [vmem:[#allocation6 + $0xcb4] sm:$0xf0] }
 0x841   : > { %8703 = vmatpush.bf16.msra.mxu0 %v11535_v43  ;;  %v13723_v43 = vld [vmem:[#allocation6 + $0x8ec] sm:$0xf0] }
 0x842   : > { %8520 = vmatpush.bf16.msrb.mxu3 %v12071_v0  ;;  %v13803_v39 = vld [vmem:[#allocation6 + $0xb6c] sm:$0xf0]  ;;  %8487 = vmatmul.bf16.vlgmr.msrb.gmra.mxu1 %v16590_v2  ;;  %v12007_v12 = vor.u32 %v13723_v43, %v12006_v52  ;;  %v8254_v0 = vpop.f32.mrf.mxu2  ;;  %v12591_v52 = vor.u32 %v13868_v37, %v12590_v25  ;;  %v11112_v43 = vld [vmem:[#allocation6 + $0x1f0] sm:$0xf0] }
 0x843   : > { %8531 = vmatpush.bf16.msra.mxu1 %v12391_v14  ;;  %v11718_v6 = vld [vmem:[#allocation6 + $0x690] sm:$0xf]  ;;  %v12327_v17 = vor.u32 %v13803_v39, %v12326_v27  ;;  %v12558_v39 = vld [vmem:[#allocation6 + $0xd18] sm:$0xf]  ;;  %v11368_v25 = vld [vmem:[#allocation6 + $0x3f0] sm:$0xf0] }
 0x844   : > { %8508 = vmatpush.bf16.msrb.mxu2 %v11783_v51  ;;  %v13651_v44 = vld [vmem:[#allocation6 + $0x6ac] sm:$0xf0]  ;;  %v8269_v54 = vpop.f32.mrf.mxu3 }
 0x845   : > { %8704 = vmatpush.bf16.msra.mxu0 %v11503_v13  ;;  %v11974_v38 = vld [vmem:[#allocation6 + $0x890] sm:$0xf]  ;;  %v11719_v53 = vor.u32 %v13651_v44, %v11718_v6 }
 0x846   : > { %8521 = vmatpush.bf16.msrb.mxu3 %v12039_v60  ;;  %v13715_v21 = vld [vmem:[#allocation6 + $0x8ac] sm:$0xf0] }
 0x847   : > { %8532 = vmatpush.bf16.msra.mxu1 %v12359_v11  ;;  %v12294_v4 = vld [vmem:[#allocation6 + $0xb10] sm:$0xf]  ;;  %v11975_v41 = vor.u32 %v13715_v21, %v11974_v38  ;;  %v13495_v11 = vld [vmem:[#allocation6 + $0x1d4] sm:$0xf]  ;;  %v8282_v33 = vpop.f32.mrf.mxu1 }
 0x848   : > { %v13795_v13 = vld [vmem:[#allocation6 + $0xb2c] sm:$0xf0]  ;;  %8509 = vmatpush.bf16.msrb.mxu2 %v11751_v31  ;;  %v13860_v31 = vld [vmem:[#allocation6 + $0xd34] sm:$0xf0]  ;;  %v11115_v44 = vor.u32 %v13495_v11, %v11112_v43  ;;  %v13487_v21 = vld [vmem:[#allocation6 + $0x194] sm:$0xf] }
 0x849   : > { %8705 = vmatpush.bf16.msra.mxu0 %v11471_v16  ;;  %v11686_v47 = vld [vmem:[#allocation6 + $0x650] sm:$0xf]  ;;  %v12295_v62 = vor.u32 %v13795_v13, %v12294_v4  ;;  %v16688_v16 = vadd.f32 %v8254_v0, %v8242_v18  ;;  %v11080_v4 = vld [vmem:[#allocation6 + $0x1b0] sm:$0xf0]  ;;  %v13836_v11 = vld [vmem:[#allocation6 + $0xc74] sm:$0xf0] }
 0x84a   : > { %8522 = vmatpush.bf16.msrb.mxu3 %v12007_v12  ;;  %v13643_v28 = vld [vmem:[#allocation6 + $0x66c] sm:$0xf0]  ;;  %v8256_v6 = vpop.f32.mrf.mxu2  ;;  %v11336_v43 = vld [vmem:[#allocation6 + $0x3b0] sm:$0xf0] }
 0x84b   : > { %8533 = vmatpush.bf16.msra.mxu1 %v12327_v17  ;;  %v11942_v5 = vld [vmem:[#allocation6 + $0x850] sm:$0xf]  ;;  %v11687_v7 = vor.u32 %v13643_v28, %v11686_v47  ;;  %v11083_v47 = vor.u32 %v13487_v21, %v11080_v4  ;;  %v10984_v6 = vld [vmem:[#allocation6 + $0xf0] sm:$0xf0]  ;;  %v11632_v4 = vld [vmem:[#allocation6 + $0x5f8] sm:$0xf0] }
 0x84c   : > { %v13707_v55 = vld [vmem:[#allocation6 + $0x86c] sm:$0xf0]  ;;  %8510 = vmatpush.bf16.msrb.mxu2 %v11719_v53  ;;  %v12526_v53 = vld [vmem:[#allocation6 + $0xcd8] sm:$0xf] }
 0x84d   : > { %8706 = vmatpush.bf16.msra.mxu0 %v11439_v1  ;;  %v12262_v14 = vld [vmem:[#allocation6 + $0xad0] sm:$0xf]  ;;  %v11943_v22 = vor.u32 %v13707_v55, %v11942_v5  ;;  %v11048_v5 = vld [vmem:[#allocation6 + $0x170] sm:$0xf0]  ;;  %v12527_v55 = vor.u32 %v13852_v29, %v12526_v53 }
 0x84e   : > { %v13787_v35 = vld [vmem:[#allocation6 + $0xaec] sm:$0xf0]  ;;  %8523 = vmatpush.bf16.msrb.mxu3 %v11975_v41 }
 0x84f   : > { %v11654_v8 = vld [vmem:[#allocation6 + $0x610] sm:$0xf]  ;;  %8534 = vmatpush.bf16.msra.mxu1 %v12295_v62  ;;  %v12263_v20 = vor.u32 %v13787_v35, %v12262_v14  ;;  %v13479_v62 = vld [vmem:[#allocation6 + $0x154] sm:$0xf]  ;;  %v12494_v35 = vld [vmem:[#allocation6 + $0xc98] sm:$0xf] }
 0x850   : > { %v13635_v51 = vld [vmem:[#allocation6 + $0x62c] sm:$0xf0]  ;;  %8511 = vmatpush.bf16.msrb.mxu2 %v11687_v7  ;;  %v13559_v7 = vld [vmem:[#allocation6 + $0x3d4] sm:$0xf] }
 0x851   : > { %8707 = vmatpush.bf16.msra.mxu0 %v11407_v45  ;;  %v11910_v46 = vld [vmem:[#allocation6 + $0x810] sm:$0xf]  ;;  %v11655_v27 = vor.u32 %v13635_v51, %v11654_v8  ;;  %v16693_v34 = vpop.f32.mrf.mxu0  ;;  %v11051_v8 = vor.u32 %v13479_v62, %v11048_v5  ;;  %v8294_v62 = vadd.f32 %v16639_v24, %v16691_v19 }
 0x852   : > { %v13699_v60 = vld [vmem:[#allocation6 + $0x82c] sm:$0xf0]  ;;  %8524 = vmatpush.bf16.msrb.mxu3 %v11943_v22 }
 0x853   : > { %v12902_v61 = vld [vmem:[#allocation6 + $0xfd0] sm:$0xf]  ;;  %v11911_v30 = vor.u32 %v13699_v60, %v11910_v46  ;;  %8535 = vmatpush.bf16.msra.mxu1 %v12263_v20  ;;  %v12495_v46 = vor.u32 %v13844_v50, %v12494_v35  ;;  %v11371_v60 = vor.u32 %v13559_v7, %v11368_v25  ;;  %v13471_v20 = vld [vmem:[#allocation6 + $0x114] sm:$0xf] }
 0x854   : > { %8708 = vmatmul.bf16.vlgmr.msra.gmra.mxu0 %v16543_v40  ;;  %v13947_v1 = vld [vmem:[#allocation6 + $0xfec] sm:$0xf0]  ;;  %8512 = vmatpush.bf16.msrb.mxu2 %v11655_v27 }
 0x855   : > { %8752 = vmatpush.bf16.msrb.mxu0 %v12655_v9  ;;  %v12230_v56 = vld [vmem:[#allocation6 + $0xa90] sm:$0xf]  ;;  %v12903_v12 = vor.u32 %v13947_v1, %v12902_v61  ;;  %v12559_v9 = vor.u32 %v13860_v31, %v12558_v39  ;;  %v11016_v61 = vld [vmem:[#allocation6 + $0x130] sm:$0xf0]  ;;  %v12462_v1 = vld [vmem:[#allocation6 + $0xc58] sm:$0xf] }
 0x856   : > { %v13779_v63 = vld [vmem:[#allocation6 + $0xaac] sm:$0xf0]  ;;  %8525 = vmatpush.bf16.msrb.mxu3 %v11911_v30  ;;  %v11019_v27 = vor.u32 %v13471_v20, %v11016_v61  ;;  %v12463_v54 = vor.u32 %v13836_v11, %v12462_v1  ;;  %v13608_v20 = vld [vmem:[#allocation6 + $0x55c] sm:$0xf] }
 0x857   : > { %v12231_v45 = vor.u32 %v13779_v63, %v12230_v56  ;;  %v12870_v17 = vld [vmem:[#allocation6 + $0xf90] sm:$0xf]  ;;  %8513 = vmatmul.bf16.vlgmr.msrb.gmra.mxu2 %v16602_v15  ;;  %v11568_v61 = vld [vmem:[#allocation6 + $0x578] sm:$0xf0] }
 0x858   : > { %v13939_v38 = vld [vmem:[#allocation6 + $0xfac] sm:$0xf0]  ;;  %8557 = vmatpush.bf16.msra.mxu2 %v12903_v12  ;;  %v13463_v12 = vld [vmem:[#allocation6 + $0xd4] sm:$0xf] }
 0x859   : > { %8753 = vmatpush.bf16.msrb.mxu0 %v12623_v49  ;;  %v12198_v13 = vld [vmem:[#allocation6 + $0xa50] sm:$0xf]  ;;  %v12871_v18 = vor.u32 %v13939_v38, %v12870_v17  ;;  %8536 = vmatpush.bf16.msra.mxu1 %v12231_v45  ;;  %v8503_v56 = vpop.f32.mrf.mxu0  ;;  %v13828_v45 = vld [vmem:[#allocation6 + $0xc34] sm:$0xf0]  ;;  %v13543_v17 = vld [vmem:[#allocation6 + $0x354] sm:$0xf] }
 0x85a   : > { %v13771_v42 = vld [vmem:[#allocation6 + $0xa6c] sm:$0xf0]  ;;  %8570 = vmatpush.bf16.msra.mxu3 %v11115_v44  ;;  %v12430_v44 = vld [vmem:[#allocation6 + $0xc18] sm:$0xf]  ;;  %v11304_v38 = vld [vmem:[#allocation6 + $0x370] sm:$0xf0] }
 0x85b   : > { %v12838_v41 = vld [vmem:[#allocation6 + $0xf50] sm:$0xf]  ;;  %v12199_v28 = vor.u32 %v13771_v42, %v12198_v13  ;;  %8526 = vmatmul.bf16.vlgmr.msrb.gmra.mxu3 %v16604_v59  ;;  %v10987_v13 = vor.u32 %v13463_v12, %v10984_v6  ;;  %v12431_v29 = vor.u32 %v13828_v45, %v12430_v44  ;;  %v11307_v33 = vor.u32 %v13543_v17, %v11304_v38  ;;  %v13439_v56 = vld [vmem:[#allocation6 + $0x14] sm:$0xf]  ;;  %v13600_v38 = vld [vmem:[#allocation6 + $0x51c] sm:$0xf] }
 0x85c   : > { %v13931_v0 = vld [vmem:[#allocation6 + $0xf6c] sm:$0xf0]  ;;  %8558 = vmatpush.bf16.msra.mxu2 %v12871_v18  ;;  %v13455_v18 = vld [vmem:[#allocation6 + $0x94] sm:$0xf]  ;;  %v11571_v12 = vor.u32 %v13608_v20, %v11568_v61 }
 0x85d   : > { %8754 = vmatpush.bf16.msrb.mxu0 %v12591_v52  ;;  %v12166_v49 = vld [vmem:[#allocation6 + $0xa10] sm:$0xf]  ;;  %v12839_v37 = vor.u32 %v13931_v0, %v12838_v41  ;;  %8537 = vmatpush.bf16.msra.mxu1 %v12199_v28  ;;  %v13551_v52 = vld [vmem:[#allocation6 + $0x394] sm:$0xf] }
 0x85e   : > { %v13763_v14 = vld [vmem:[#allocation6 + $0xa2c] sm:$0xf0]  ;;  %8571 = vmatpush.bf16.msra.mxu3 %v11083_v47  ;;  %v11339_v30 = vor.u32 %v13551_v52, %v11336_v43  ;;  %v10952_v41 = vld [vmem:[#allocation6 + $0xb0] sm:$0xf0] }
 0x85f   : > { %v12167_v36 = vor.u32 %v13763_v14, %v12166_v49  ;;  %v12806_v22 = vld [vmem:[#allocation6 + $0xf10] sm:$0xf]  ;;  %v13535_v28 = vld [vmem:[#allocation6 + $0x314] sm:$0xf]  ;;  %v11600_v49 = vld [vmem:[#allocation6 + $0x5b8] sm:$0xf0]  ;;  %v8306_v14 = vpop.f32.mrf.mxu2  ;;  %v10955_v35 = vor.u32 %v13455_v18, %v10952_v41  ;;  %v8332_v11 = vpop.f32.mrf.mxu1 }
 0x860   : > { %v13923_v51 = vld [vmem:[#allocation6 + $0xf2c] sm:$0xf0]  ;;  %8559 = vmatpush.bf16.msra.mxu2 %v12839_v37  ;;  %v11272_v0 = vld [vmem:[#allocation6 + $0x330] sm:$0xf0]  ;;  %v8307_v25 = vadd.f32 %v8306_v14, %v8294_v62  ;;  %v8319_v37 = vpop.f32.mrf.mxu3 }
 0x861   : > { %8755 = vmatpush.bf16.msrb.mxu0 %v12559_v9  ;;  %v12807_v63 = vor.u32 %v13923_v51, %v12806_v22  ;;  %8538 = vmatpush.bf16.msra.mxu1 %v12167_v36  ;;  %v12774_v39 = vld [vmem:[#allocation6 + $0xed0] sm:$0xf]  ;;  %v13624_v9 = vld [vmem:[#allocation6 + $0x5dc] sm:$0xf]  ;;  %v13447_v36 = vld [vmem:[#allocation6 + $0x54] sm:$0xf] }
 0x862   : > { %8572 = vmatpush.bf16.msra.mxu3 %v11051_v8  ;;  %v13915_v31 = vld [vmem:[#allocation6 + $0xeec] sm:$0xf0]  ;;  %v11635_v47 = vor.u32 %v13624_v9, %v11632_v4  ;;  %v11275_v8 = vor.u32 %v13535_v28, %v11272_v0  ;;  %v10920_v22 = vld [vmem:[#allocation6 + $0x70] sm:$0xf0]  ;;  %v8320_v24 = vadd.f32 %v8319_v37, %v8307_v25 }
 0x863   : > { %v12775_v21 = vor.u32 %v13915_v31, %v12774_v39  ;;  %v12742_v42 = vld [vmem:[#allocation6 + $0xe90] sm:$0xf]  ;;  %v10923_v52 = vor.u32 %v13447_v36, %v10920_v22  ;;  %v13687_v31 = vld [vmem:[#allocation6 + $0x7d4] sm:$0xf] }
 0x864   : > { %8539 = vmatmul.bf16.vlgmr.msra.gmra.mxu1 %v16613_v3  ;;  %8560 = vmatpush.bf16.msra.mxu2 %v12807_v63  ;;  %v13907_v53 = vld [vmem:[#allocation6 + $0xeac] sm:$0xf0]  ;;  %v10888_v63 = vld [vmem:[#allocation6 + $0x30] sm:$0xf0] }
 0x865   : > { %8756 = vmatpush.bf16.msrb.mxu0 %v12527_v55  ;;  %8583 = vmatpush.bf16.msrb.mxu1 %v11371_v60  ;;  %v12743_v5 = vor.u32 %v13907_v53, %v12742_v42  ;;  %v13616_v55 = vld [vmem:[#allocation6 + $0x59c] sm:$0xf]  ;;  %v12710_v50 = vld [vmem:[#allocation6 + $0xe50] sm:$0xf]  ;;  %v11240_v60 = vld [vmem:[#allocation6 + $0x2f0] sm:$0xf0]  ;;  %v10891_v4 = vor.u32 %v13439_v56, %v10888_v63 }
 0x866   : > { %8573 = vmatpush.bf16.msra.mxu3 %v11019_v27  ;;  %v13899_v7 = vld [vmem:[#allocation6 + $0xe6c] sm:$0xf0]  ;;  %v11603_v51 = vor.u32 %v13616_v55, %v11600_v49  ;;  %v16701_v27 = vadd.f32 %v8332_v11, %v8320_v24  ;;  %v12136_v6 = vld [vmem:[#allocation6 + $0x9f0] sm:$0xf0]  ;;  %v11504_v55 = vld [vmem:[#allocation6 + $0x4f8] sm:$0xf0] }
 0x867   : > { %v12711_v19 = vor.u32 %v13899_v7, %v12710_v50  ;;  %v12678_v1 = vld [vmem:[#allocation6 + $0xe10] sm:$0xf]  ;;  %v13519_v44 = vld [vmem:[#allocation6 + $0x294] sm:$0xf]  ;;  %v8308_v9 = vpop.f32.mrf.mxu2  ;;  %v8334_v49 = vpop.f32.mrf.mxu1  ;;  %v11472_v24 = vld [vmem:[#allocation6 + $0x4b8] sm:$0xf0] }
 0x868   : > { %8561 = vmatpush.bf16.msra.mxu2 %v12775_v21  ;;  %v13891_v43 = vld [vmem:[#allocation6 + $0xe2c] sm:$0xf0]  ;;  %v11208_v45 = vld [vmem:[#allocation6 + $0x2b0] sm:$0xf0]  ;;  %v11536_v21 = vld [vmem:[#allocation6 + $0x538] sm:$0xf0]  ;;  %v8321_v42 = vpop.f32.mrf.mxu3 }
 0x869   : > { %8757 = vmatpush.bf16.msrb.mxu0 %v12495_v46  ;;  %8584 = vmatpush.bf16.msrb.mxu1 %v11339_v30  ;;  %v13527_v46 = vld [vmem:[#allocation6 + $0x2d4] sm:$0xf]  ;;  %v12679_v17 = vor.u32 %v13891_v43, %v12678_v1 }
 0x86a   : > { %8574 = vmatpush.bf16.msra.mxu3 %v10987_v13  ;;  %v11243_v39 = vor.u32 %v13527_v46, %v11240_v60  ;;  %v13751_v30 = vld [vmem:[#allocation6 + $0x9d4] sm:$0xf]  ;;  %v13584_v60 = vld [vmem:[#allocation6 + $0x49c] sm:$0xf] }
 0x86b   : > { %v12139_v53 = vor.u32 %v13751_v30, %v12136_v6  ;;  %v11848_v18 = vld [vmem:[#allocation6 + $0x7b0] sm:$0xf0]  ;;  %v11475_v56 = vor.u32 %v13584_v60, %v11472_v24  ;;  %v11440_v30 = vld [vmem:[#allocation6 + $0x478] sm:$0xf0] }
 0x86c   : > { %8562 = vmatpush.bf16.msra.mxu2 %v12743_v5  ;;  %v13743_v41 = vld [vmem:[#allocation6 + $0x994] sm:$0xf]  ;;  %v13592_v5 = vld [vmem:[#allocation6 + $0x4dc] sm:$0xf] }
 0x86d   : > { %8758 = vmatpush.bf16.msrb.mxu0 %v12463_v54  ;;  %8585 = vmatpush.bf16.msrb.mxu1 %v11307_v33  ;;  %v11880_v54 = vld [vmem:[#allocation6 + $0x7f0] sm:$0xf0]  ;;  %v11507_v22 = vor.u32 %v13592_v5, %v11504_v55 }
 0x86e   : > { %8575 = vmatpush.bf16.msra.mxu3 %v10955_v35  ;;  %v11883_v13 = vor.u32 %v13687_v31, %v11880_v54  ;;  %v13679_v33 = vld [vmem:[#allocation6 + $0x794] sm:$0xf]  ;;  %v13576_v54 = vld [vmem:[#allocation6 + $0x45c] sm:$0xf] }
 0x86f   : > { %v12104_v28 = vld [vmem:[#allocation6 + $0x9b0] sm:$0xf0]  ;;  %v11851_v14 = vor.u32 %v13679_v33, %v11848_v18  ;;  %v11443_v9 = vor.u32 %v13576_v54, %v11440_v30  ;;  %v13864_v54 = vld [vmem:[#allocation6 + $0xd5c] sm:$0xf] }
 0x870   : > { %8563 = vmatpush.bf16.msra.mxu2 %v12711_v19  ;;  %v13511_v0 = vld [vmem:[#allocation6 + $0x254] sm:$0xf]  ;;  %v12107_v7 = vor.u32 %v13743_v41, %v12104_v28  ;;  %v12656_v28 = vld [vmem:[#allocation6 + $0xdf8] sm:$0xf0] }
 0x871   : > { %8759 = vmatpush.bf16.msrb.mxu0 %v12431_v29  ;;  %8586 = vmatpush.bf16.msrb.mxu1 %v11275_v8  ;;  %v11211_v29 = vor.u32 %v13519_v44, %v11208_v45  ;;  %v11176_v62 = vld [vmem:[#allocation6 + $0x270] sm:$0xf0]  ;;  %v16703_v50 = vpop.f32.mrf.mxu0  ;;  %v12592_v30 = vld [vmem:[#allocation6 + $0xd78] sm:$0xf0] }
 0x872   : > { %8576 = vmatpush.bf16.msra.mxu3 %v10923_v52  ;;  %v13671_v35 = vld [vmem:[#allocation6 + $0x754] sm:$0xf]  ;;  %v11179_v25 = vor.u32 %v13511_v0, %v11176_v62 }
 0x873   : > { %v11816_v37 = vld [vmem:[#allocation6 + $0x770] sm:$0xf0] }
 0x874   : > { %8760 = vmatmul.bf16.vlgmr.msrb.gmra.mxu0 %v16560_v58  ;;  %8564 = vmatpush.bf16.msra.mxu2 %v12679_v17  ;;  %v13735_v8 = vld [vmem:[#allocation6 + $0x954] sm:$0xf]  ;;  %v11819_v61 = vor.u32 %v13671_v35, %v11816_v37 }
 0x875   : > { %8804 = vmatpush.bf16.msra.mxu0 %v11635_v47  ;;  %8587 = vmatpush.bf16.msrb.mxu1 %v11243_v39  ;;  %v11539_v47 = vor.u32 %v13600_v38, %v11536_v21  ;;  %v12072_v36 = vld [vmem:[#allocation6 + $0x970] sm:$0xf0] }
 0x876   : > { %8577 = vmatpush.bf16.msra.mxu3 %v10891_v4  ;;  %v11144_v46 = vld [vmem:[#allocation6 + $0x230] sm:$0xf0]  ;;  %v12075_v1 = vor.u32 %v13735_v8, %v12072_v36  ;;  %v16708_v8 = vld [vmem:[#allocation34] sm:$0xff] }
 0x877   : > { %8565 = vmatmul.bf16.vlgmr.msra.gmra.mxu2 %v16623_v32  ;;  %v13815_v19 = vld [vmem:[#allocation6 + $0xbd4] sm:$0xf]  ;;  %v8037_v36 = vperm.slane %v16708_v8, 3 }
 0x878   : > { %8609 = vmatpush.bf16.msrb.mxu2 %v11883_v13  ;;  %v12392_v20 = vld [vmem:[#allocation6 + $0xbf0] sm:$0xf0] }
 0x879   : > { %8805 = vmatpush.bf16.msra.mxu0 %v11603_v51  ;;  %8588 = vmatpush.bf16.msrb.mxu1 %v11211_v29  ;;  %v13503_v51 = vld [vmem:[#allocation6 + $0x214] sm:$0xf]  ;;  %v12395_v63 = vor.u32 %v13815_v19, %v12392_v20  ;;  %v8555_v45 = vpop.f32.mrf.mxu0  ;;  %v11408_v29 = vld [vmem:[#allocation6 + $0x438] sm:$0xf0] }
 0x87a   : > { %8622 = vmatpush.bf16.msrb.mxu3 %v12139_v53  ;;  %v11147_v11 = vor.u32 %v13503_v51, %v11144_v46  ;;  %v13663_v52 = vld [vmem:[#allocation6 + $0x714] sm:$0xf]  ;;  %v13568_v53 = vld [vmem:[#allocation6 + $0x41c] sm:$0xf]  ;;  %v16711_v60 = vpop.f32.mrf.mxu2 }
 0x87b   : > { %8578 = vmatmul.bf16.vlgmr.msra.gmra.mxu3 %v16584_v23  ;;  %v11784_v43 = vld [vmem:[#allocation6 + $0x730] sm:$0xf0]  ;;  %v11411_v55 = vor.u32 %v13568_v53, %v11408_v29  ;;  %v13872_v51 = vld [vmem:[#allocation6 + $0xd9c] sm:$0xf]  ;;  %v12595_v53 = vor.u32 %v13864_v54, %v12592_v30  ;;  %v13500_v29 = vld [vmem:[#allocation6 + $0x1f4] sm:$0xf0] }
 0x87c   : > { %8610 = vmatpush.bf16.msrb.mxu2 %v11851_v14  ;;  %v13727_v39 = vld [vmem:[#allocation6 + $0x914] sm:$0xf]  ;;  %v11787_v44 = vor.u32 %v13663_v52, %v11784_v43  ;;  %v12624_v46 = vld [vmem:[#allocation6 + $0xdb8] sm:$0xf0] }
 0x87d   : > { %8806 = vmatpush.bf16.msra.mxu0 %v11571_v12  ;;  %8589 = vmatpush.bf16.msrb.mxu1 %v11179_v25  ;;  %v12040_v31 = vld [vmem:[#allocation6 + $0x930] sm:$0xf0]  ;;  %v12627_v43 = vor.u32 %v13872_v51, %v12624_v46  ;;  %v13848_v51 = vld [vmem:[#allocation6 + $0xcdc] sm:$0xf] }
 0x87e   : > { %8623 = vmatpush.bf16.msrb.mxu3 %v12107_v7  ;;  %v13807_v12 = vld [vmem:[#allocation6 + $0xb94] sm:$0xf]  ;;  %v12043_v17 = vor.u32 %v13727_v39, %v12040_v31  ;;  %v12528_v46 = vld [vmem:[#allocation6 + $0xcf8] sm:$0xf0] }
 0x87f   : > { %v12360_v6 = vld [vmem:[#allocation6 + $0xbb0] sm:$0xf0]  ;;  %v13840_v54 = vld [vmem:[#allocation6 + $0xc9c] sm:$0xf] }
 0x880   : > { %8611 = vmatpush.bf16.msrb.mxu2 %v11819_v61  ;;  %v13655_v38 = vld [vmem:[#allocation6 + $0x6d4] sm:$0xf]  ;;  %v12363_v4 = vor.u32 %v13807_v12, %v12360_v6  ;;  %v8371_v61 = vpop.f32.mrf.mxu3  ;;  %v8384_v6 = vpop.f32.mrf.mxu1  ;;  %v12496_v30 = vld [vmem:[#allocation6 + $0xcb8] sm:$0xf0] }
 0x881   : > { %8807 = vmatpush.bf16.msra.mxu0 %v11539_v47  ;;  %8590 = vmatpush.bf16.msrb.mxu1 %v11147_v11  ;;  %v11752_v21 = vld [vmem:[#allocation6 + $0x6f0] sm:$0xf0]  ;;  %v13880_v47 = vld [vmem:[#allocation6 + $0xddc] sm:$0xf]  ;;  %v8372_v39 = vadd.f32 %v8371_v61, %v8037_v36 }
 0x882   : > { %8624 = vmatpush.bf16.msrb.mxu3 %v12075_v1  ;;  %v13719_v13 = vld [vmem:[#allocation6 + $0x8d4] sm:$0xf]  ;;  %v11755_v41 = vor.u32 %v13655_v38, %v11752_v21  ;;  %v12659_v7 = vor.u32 %v13880_v47, %v12656_v28  ;;  %v12560_v47 = vld [vmem:[#allocation6 + $0xd38] sm:$0xf0]  ;;  %v8360_v28 = vpop.f32.mrf.mxu2 }
 0x883   : > { %v12008_v42 = vld [vmem:[#allocation6 + $0x8f0] sm:$0xf0]  ;;  %v16714_v21 = vadd.f32 %v8384_v6, %v8372_v39  ;;  %v13564_v6 = vld [vmem:[#allocation6 + $0x3f4] sm:$0xf0] }
 0x884   : > { %v13799_v33 = vld [vmem:[#allocation6 + $0xb54] sm:$0xf]  ;;  %8591 = vmatmul.bf16.vlgmr.msrb.gmra.mxu1 %v16590_v2  ;;  %8612 = vmatpush.bf16.msrb.mxu2 %v11787_v44  ;;  %v12011_v0 = vor.u32 %v13719_v13, %v12008_v42  ;;  %v11118_v42 = vld [vmem:[#allocation6 + $0x1d8] sm:$0xf] }
 0x885   : > { %8808 = vmatpush.bf16.msra.mxu0 %v11507_v22  ;;  %8635 = vmatpush.bf16.msra.mxu1 %v12395_v63  ;;  %v12328_v18 = vld [vmem:[#allocation6 + $0xb70] sm:$0xf0] }
 0x886   : > { %8625 = vmatpush.bf16.msrb.mxu3 %v12043_v17  ;;  %v13647_v62 = vld [vmem:[#allocation6 + $0x694] sm:$0xf]  ;;  %v12331_v49 = vor.u32 %v13799_v33, %v12328_v18 }
 0x887   : > { %v11720_v5 = vld [vmem:[#allocation6 + $0x6b0] sm:$0xf0] }
 0x888   : > { %v13711_v14 = vld [vmem:[#allocation6 + $0x894] sm:$0xf]  ;;  %8613 = vmatpush.bf16.msrb.mxu2 %v11755_v41  ;;  %v11723_v22 = vor.u32 %v13647_v62, %v11720_v5  ;;  %v8373_v5 = vpop.f32.mrf.mxu3 }
 0x889   : > { %8809 = vmatpush.bf16.msra.mxu0 %v11475_v56  ;;  %8636 = vmatpush.bf16.msra.mxu1 %v12363_v4  ;;  %v11976_v35 = vld [vmem:[#allocation6 + $0x8b0] sm:$0xf0] }
 0x88a   : > { %v13791_v25 = vld [vmem:[#allocation6 + $0xb14] sm:$0xf]  ;;  %8626 = vmatpush.bf16.msrb.mxu3 %v12011_v0  ;;  %v11979_v24 = vor.u32 %v13711_v14, %v11976_v35 }
 0x88b   : > { %v12296_v37 = vld [vmem:[#allocation6 + $0xb30] sm:$0xf0] }
 0x88c   : > { %v13639_v19 = vld [vmem:[#allocation6 + $0x654] sm:$0xf]  ;;  %v12299_v1 = vor.u32 %v13791_v25, %v12296_v37  ;;  %8614 = vmatpush.bf16.msrb.mxu2 %v11723_v22  ;;  %v13492_v37 = vld [vmem:[#allocation6 + $0x1b4] sm:$0xf0] }
 0x88d   : > { %8810 = vmatpush.bf16.msra.mxu0 %v11443_v9  ;;  %v11688_v20 = vld [vmem:[#allocation6 + $0x670] sm:$0xf0]  ;;  %8637 = vmatpush.bf16.msra.mxu1 %v12331_v49 }
 0x88e   : > { %v13703_v11 = vld [vmem:[#allocation6 + $0x854] sm:$0xf]  ;;  %v11691_v31 = vor.u32 %v13639_v19, %v11688_v20  ;;  %8627 = vmatpush.bf16.msrb.mxu3 %v11979_v24  ;;  %v8386_v24 = vpop.f32.mrf.mxu1 }
 0x88f   : > { %v11944_v52 = vld [vmem:[#allocation6 + $0x870] sm:$0xf0] }
 0x890   : > { %v13783_v56 = vld [vmem:[#allocation6 + $0xad4] sm:$0xf]  ;;  %v11947_v44 = vor.u32 %v13703_v11, %v11944_v52  ;;  %8615 = vmatpush.bf16.msrb.mxu2 %v11691_v31 }
 0x891   : > { %8811 = vmatpush.bf16.msra.mxu0 %v11411_v55  ;;  %v12264_v63 = vld [vmem:[#allocation6 + $0xaf0] sm:$0xf0]  ;;  %8638 = vmatpush.bf16.msra.mxu1 %v12299_v1  ;;  %v11119_v55 = vor.u32 %v13500_v29, %v11118_v42  ;;  %v16716_v61 = vpop.f32.mrf.mxu0  ;;  %v11022_v42 = vld [vmem:[#allocation6 + $0x118] sm:$0xf]  ;;  %v13832_v29 = vld [vmem:[#allocation6 + $0xc5c] sm:$0xf] }
 0x892   : > { %v13631_v12 = vld [vmem:[#allocation6 + $0x614] sm:$0xf]  ;;  %v12267_v9 = vor.u32 %v13783_v56, %v12264_v63  ;;  %8628 = vmatpush.bf16.msrb.mxu3 %v11947_v44  ;;  %v13484_v56 = vld [vmem:[#allocation6 + $0x174] sm:$0xf0]  ;;  %v12531_v63 = vor.u32 %v13848_v51, %v12528_v46 }
 0x893   : > { %v11656_v45 = vld [vmem:[#allocation6 + $0x630] sm:$0xf0] }
 0x894   : > { %8812 = vmatmul.bf16.vlgmr.msra.gmra.mxu0 %v16543_v40  ;;  %v13695_v17 = vld [vmem:[#allocation6 + $0x814] sm:$0xf]  ;;  %v11659_v41 = vor.u32 %v13631_v12, %v11656_v45  ;;  %v13856_v40 = vld [vmem:[#allocation6 + $0xd1c] sm:$0xf]  ;;  %v11374_v12 = vld [vmem:[#allocation6 + $0x3d8] sm:$0xf] }
 0x895   : > { %8856 = vmatpush.bf16.msrb.mxu0 %v12659_v7  ;;  %v11912_v38 = vld [vmem:[#allocation6 + $0x830] sm:$0xf0]  ;;  %8639 = vmatpush.bf16.msra.mxu1 %v12267_v9  ;;  %v11086_v7 = vld [vmem:[#allocation6 + $0x198] sm:$0xf]  ;;  %v12563_v25 = vor.u32 %v13856_v40, %v12560_v47 }
 0x896   : > { %v13943_v4 = vld [vmem:[#allocation6 + $0xfd4] sm:$0xf]  ;;  %v11915_v0 = vor.u32 %v13695_v17, %v11912_v38  ;;  %8616 = vmatpush.bf16.msrb.mxu2 %v11659_v41  ;;  %v11087_v1 = vor.u32 %v13492_v37, %v11086_v7  ;;  %v13556_v41 = vld [vmem:[#allocation6 + $0x3b4] sm:$0xf0]  ;;  %v12432_v7 = vld [vmem:[#allocation6 + $0xc38] sm:$0xf0] }
 0x897   : > { %v12904_v13 = vld [vmem:[#allocation6 + $0xff0] sm:$0xf0]  ;;  %v13548_v37 = vld [vmem:[#allocation6 + $0x374] sm:$0xf0] }
 0x898   : > { %v13775_v33 = vld [vmem:[#allocation6 + $0xa94] sm:$0xf]  ;;  %v12907_v62 = vor.u32 %v13943_v4, %v12904_v13  ;;  %8629 = vmatpush.bf16.msrb.mxu3 %v11915_v0  ;;  %v12499_v4 = vor.u32 %v13840_v54, %v12496_v30  ;;  %v11375_v13 = vor.u32 %v13564_v6, %v11374_v12 }
 0x899   : > { %8857 = vmatpush.bf16.msrb.mxu0 %v12627_v43  ;;  %v12232_v18 = vld [vmem:[#allocation6 + $0xab0] sm:$0xf0]  ;;  %v11054_v43 = vld [vmem:[#allocation6 + $0x158] sm:$0xf]  ;;  %8617 = vmatmul.bf16.vlgmr.msrb.gmra.mxu2 %v16602_v15  ;;  %v8607_v47 = vpop.f32.mrf.mxu0 }
 0x89a   : > { %v12235_v49 = vor.u32 %v13775_v33, %v12232_v18  ;;  %v13935_v14 = vld [vmem:[#allocation6 + $0xf94] sm:$0xf]  ;;  %8661 = vmatpush.bf16.msra.mxu2 %v12907_v62  ;;  %v11055_v45 = vor.u32 %v13484_v56, %v11054_v43  ;;  %v12464_v33 = vld [vmem:[#allocation6 + $0xc78] sm:$0xf0]  ;;  %v11342_v18 = vld [vmem:[#allocation6 + $0x398] sm:$0xf]  ;;  %v8398_v56 = vadd.f32 %v16660_v48, %v16714_v21 }
 0x89b   : > { %v12872_v35 = vld [vmem:[#allocation6 + $0xfb0] sm:$0xf0]  ;;  %8630 = vmatmul.bf16.vlgmr.msrb.gmra.mxu3 %v16604_v59  ;;  %v12467_v5 = vor.u32 %v13832_v29, %v12464_v33  ;;  %v13540_v43 = vld [vmem:[#allocation6 + $0x334] sm:$0xf0]  ;;  %v13970_v29 = vld [vmem:[#allocation7 + $0xa8] sm:$0xff] }
 0x89c   : > { %v13767_v36 = vld [vmem:[#allocation6 + $0xa54] sm:$0xf]  ;;  %v12875_v19 = vor.u32 %v13935_v14, %v12872_v35  ;;  %8674 = vmatpush.bf16.msra.mxu3 %v11119_v55  ;;  %8640 = vmatpush.bf16.msra.mxu1 %v12235_v49  ;;  %v11343_v55 = vor.u32 %v13556_v41, %v11342_v18  ;;  %v10990_v49 = vld [vmem:[#allocation6 + $0xd8] sm:$0xf]  ;;  %v13824_v35 = vld [vmem:[#allocation6 + $0xc1c] sm:$0xf]  ;;  %v8423_v6 = vpop.f32.mrf.mxu3 }
 0x89d   : > { %8858 = vmatpush.bf16.msrb.mxu0 %v12595_v53  ;;  %v12200_v22 = vld [vmem:[#allocation6 + $0xa70] sm:$0xf0]  ;;  %v13476_v53 = vld [vmem:[#allocation6 + $0x134] sm:$0xf0]  ;;  %v12435_v24 = vor.u32 %v13824_v35, %v12432_v7 }
 0x89e   : > { %v13927_v20 = vld [vmem:[#allocation6 + $0xf54] sm:$0xf]  ;;  %v12203_v11 = vor.u32 %v13767_v36, %v12200_v22  ;;  %8662 = vmatpush.bf16.msra.mxu2 %v12875_v19  ;;  %v11023_v28 = vor.u32 %v13476_v53, %v11022_v42  ;;  %v13468_v14 = vld [vmem:[#allocation6 + $0xf4] sm:$0xf0] }
 0x89f   : > { %v12840_v52 = vld [vmem:[#allocation6 + $0xf70] sm:$0xf0]  ;;  %v10991_v22 = vor.u32 %v13468_v14, %v10990_v49  ;;  %v8436_v42 = vpop.f32.mrf.mxu1  ;;  %v10894_v18 = vld [vmem:[#allocation6 + $0x18] sm:$0xf] }
 0x8a0   : > { %v13759_v39 = vld [vmem:[#allocation6 + $0xa14] sm:$0xf]  ;;  %v12843_v44 = vor.u32 %v13927_v20, %v12840_v52  ;;  %8675 = vmatpush.bf16.msra.mxu3 %v11087_v1  ;;  %8641 = vmatpush.bf16.msra.mxu1 %v12203_v11  ;;  %v10958_v20 = vld [vmem:[#allocation6 + $0x98] sm:$0xf] }
 0x8a1   : > { %8859 = vmatpush.bf16.msrb.mxu0 %v12563_v25  ;;  %v12168_v31 = vld [vmem:[#allocation6 + $0xa30] sm:$0xf0]  ;;  %v11310_v25 = vld [vmem:[#allocation6 + $0x358] sm:$0xf] }
 0x8a2   : > { %v12171_v17 = vor.u32 %v13759_v39, %v12168_v31  ;;  %v13919_v38 = vld [vmem:[#allocation6 + $0xf14] sm:$0xf]  ;;  %8663 = vmatpush.bf16.msra.mxu2 %v12843_v44  ;;  %v11311_v19 = vor.u32 %v13548_v37, %v11310_v25  ;;  %v13460_v1 = vld [vmem:[#allocation6 + $0xb4] sm:$0xf0]  ;;  %v8410_v39 = vpop.f32.mrf.mxu2  ;;  %v13969_v25 = vld [vmem:[#allocation7 + $0xa0] sm:$0xff] }
 0x8a3   : > { %v12808_v9 = vld [vmem:[#allocation6 + $0xf30] sm:$0xf0]  ;;  %v13972_v11 = vld [vmem:[#allocation7 + $0xb8] sm:$0xff]  ;;  %v10959_v31 = vor.u32 %v13460_v1, %v10958_v20  ;;  %v8411_v12 = vadd.f32 %v8410_v39, %v8398_v56 }
 0x8a4   : > { %v12811_v40 = vor.u32 %v13919_v38, %v12808_v9  ;;  %8676 = vmatpush.bf16.msra.mxu3 %v11055_v45  ;;  %8642 = vmatpush.bf16.msra.mxu1 %v12171_v17  ;;  %v13911_v0 = vld [vmem:[#allocation6 + $0xed4] sm:$0xf]  ;;  %v11278_v52 = vld [vmem:[#allocation6 + $0x318] sm:$0xf]  ;;  %v8425_v37 = vpop.f32.mrf.mxu3 }
 0x8a5   : > { %8860 = vmatpush.bf16.msrb.mxu0 %v12531_v63  ;;  %v12776_v62 = vld [vmem:[#allocation6 + $0xef0] sm:$0xf0]  ;;  %v11279_v44 = vor.u32 %v13540_v43, %v11278_v52  ;;  %v10926_v45 = vld [vmem:[#allocation6 + $0x58] sm:$0xf] }
 0x8a6   : > { %8664 = vmatpush.bf16.msra.mxu2 %v12811_v40  ;;  %v12779_v36 = vor.u32 %v13911_v0, %v12776_v62  ;;  %v13903_v51 = vld [vmem:[#allocation6 + $0xe94] sm:$0xf]  ;;  %v13452_v17 = vld [vmem:[#allocation6 + $0x74] sm:$0xf0] }
 0x8a7   : > { %8643 = vmatmul.bf16.vlgmr.msra.gmra.mxu1 %v16613_v3  ;;  %v12744_v46 = vld [vmem:[#allocation6 + $0xeb0] sm:$0xf0]  ;;  %v11246_v9 = vld [vmem:[#allocation6 + $0x2d8] sm:$0xf]  ;;  %v10927_v53 = vor.u32 %v13452_v17, %v10926_v45 }
 0x8a8   : > { %8687 = vmatpush.bf16.msrb.mxu1 %v11375_v13  ;;  %8677 = vmatpush.bf16.msra.mxu3 %v11023_v28  ;;  %v12747_v63 = vor.u32 %v13903_v51, %v12744_v46  ;;  %v13895_v54 = vld [vmem:[#allocation6 + $0xe54] sm:$0xf]  ;;  %v8424_v13 = vadd.f32 %v8423_v6, %v8411_v12  ;;  %v13444_v41 = vld [vmem:[#allocation6 + $0x34] sm:$0xf0] }
 0x8a9   : > { %8861 = vmatpush.bf16.msrb.mxu0 %v12499_v4  ;;  %v12712_v30 = vld [vmem:[#allocation6 + $0xe70] sm:$0xf0]  ;;  %v13532_v4 = vld [vmem:[#allocation6 + $0x2f4] sm:$0xf0]  ;;  %v10895_v35 = vor.u32 %v13444_v41, %v10894_v18 }
 0x8aa   : > { %8665 = vmatpush.bf16.msra.mxu2 %v12779_v36  ;;  %v13971_v38 = vld [vmem:[#allocation7 + $0xb0] sm:$0xff]  ;;  %v12715_v48 = vor.u32 %v13895_v54, %v12712_v30  ;;  %v16724_v40 = vadd.f32 %v8436_v42, %v8424_v13  ;;  %v11247_v47 = vor.u32 %v13532_v4, %v11246_v9  ;;  %v11886_v28 = vld [vmem:[#allocation6 + $0x7d8] sm:$0xf] }
 0x8ab   : > { %v13887_v21 = vld [vmem:[#allocation6 + $0xe14] sm:$0xf]  ;;  %v13692_v0 = vld [vmem:[#allocation6 + $0x7f4] sm:$0xf0] }
 0x8ac   : > { %8688 = vmatpush.bf16.msrb.mxu1 %v11343_v55  ;;  %8678 = vmatpush.bf16.msra.mxu3 %v10991_v22  ;;  %v12680_v33 = vld [vmem:[#allocation6 + $0xe30] sm:$0xf0]  ;;  %v12142_v62 = vld [vmem:[#allocation6 + $0x9d8] sm:$0xf]  ;;  %v11887_v7 = vor.u32 %v13692_v0, %v11886_v28 }
 0x8ad   : > { %8862 = vmatpush.bf16.msrb.mxu0 %v12467_v5  ;;  %v13756_v5 = vld [vmem:[#allocation6 + $0x9f4] sm:$0xf0]  ;;  %v12683_v14 = vor.u32 %v13887_v21, %v12680_v33  ;;  %v13967_v21 = vld [vmem:[#allocation7 + $0x90] sm:$0xff] }
 0x8ae   : > { %8666 = vmatpush.bf16.msra.mxu2 %v12747_v63  ;;  %v11214_v55 = vld [vmem:[#allocation6 + $0x298] sm:$0xf]  ;;  %v12143_v36 = vor.u32 %v13756_v5, %v12142_v62  ;;  %v13966_v5 = vld [vmem:[#allocation7 + $0x88] sm:$0xff] }
 0x8af   : > { %v13524_v49 = vld [vmem:[#allocation6 + $0x2b4] sm:$0xf0] }
 0x8b0   : > { %8689 = vmatpush.bf16.msrb.mxu1 %v11311_v19  ;;  %8679 = vmatpush.bf16.msra.mxu3 %v10959_v31  ;;  %v11215_v22 = vor.u32 %v13524_v49, %v11214_v55  ;;  %v11854_v51 = vld [vmem:[#allocation6 + $0x798] sm:$0xf] }
 0x8b1   : > { %8863 = vmatpush.bf16.msrb.mxu0 %v12435_v24  ;;  %v13684_v46 = vld [vmem:[#allocation6 + $0x7b4] sm:$0xf0]  ;;  %v16726_v56 = vpop.f32.mrf.mxu0 }
 0x8b2   : > { %8667 = vmatpush.bf16.msra.mxu2 %v12715_v48  ;;  %v12110_v24 = vld [vmem:[#allocation6 + $0x998] sm:$0xf]  ;;  %v11855_v52 = vor.u32 %v13684_v46, %v11854_v51  ;;  %v13965_v51 = vld [vmem:[#allocation7 + $0x80] sm:$0xff] }
 0x8b3   : > { %v13748_v19 = vld [vmem:[#allocation6 + $0x9b4] sm:$0xf0] }
 0x8b4   : > { %8864 = vmatmul.bf16.vlgmr.msrb.gmra.mxu0 %v16560_v58  ;;  %8690 = vmatpush.bf16.msrb.mxu1 %v11279_v44  ;;  %v8412_v58 = vpop.f32.mrf.mxu2  ;;  %v11182_v20 = vld [vmem:[#allocation6 + $0x258] sm:$0xf]  ;;  %v12111_v63 = vor.u32 %v13748_v19, %v12110_v24 }
 0x8b5   : > { %9429 = vmatpush.bf16.msra.mxu0 %v13972_v11  ;;  %8680 = vmatpush.bf16.msra.mxu3 %v10927_v53  ;;  %v13516_v1 = vld [vmem:[#allocation6 + $0x274] sm:$0xf0]  ;;  %v8438_v11 = vpop.f32.mrf.mxu1 }
 0x8b6   : > { %8668 = vmatpush.bf16.msra.mxu2 %v12683_v14  ;;  %v13968_v43 = vld [vmem:[#allocation7 + $0x98] sm:$0xff]  ;;  %v11183_v39 = vor.u32 %v13516_v1, %v11182_v20 }
 0x8b7   : > { %v11822_v31 = vld [vmem:[#allocation6 + $0x758] sm:$0xf] }
 0x8b8   : > { %8691 = vmatpush.bf16.msrb.mxu1 %v11247_v47  ;;  %v13676_v54 = vld [vmem:[#allocation6 + $0x774] sm:$0xf0] }
 0x8b9   : > { %9430 = vmatpush.bf16.msra.mxu0 %v13971_v38  ;;  %8681 = vmatpush.bf16.msra.mxu3 %v10895_v35  ;;  %v12078_v30 = vld [vmem:[#allocation6 + $0x958] sm:$0xf]  ;;  %v11823_v38 = vor.u32 %v13676_v54, %v11822_v31  ;;  %v8659_v47 = vpop.f32.mrf.mxu0 }
 0x8ba   : > { %8713 = vmatpush.bf16.msrb.mxu2 %v11887_v7  ;;  %v13740_v12 = vld [vmem:[#allocation6 + $0x974] sm:$0xf0] }
 0x8bb   : > { %8669 = vmatmul.bf16.vlgmr.msra.gmra.mxu2 %v16623_v32  ;;  %v11150_v6 = vld [vmem:[#allocation6 + $0x218] sm:$0xf]  ;;  %v12079_v9 = vor.u32 %v13740_v12, %v12078_v30 }
 0x8bc   : > { %8692 = vmatpush.bf16.msrb.mxu1 %v11215_v22  ;;  %v13508_v44 = vld [vmem:[#allocation6 + $0x234] sm:$0xf0]  ;;  %8682 = vmatmul.bf16.vlgmr.msra.gmra.mxu3 %v16584_v23  ;;  %v8475_v30 = vpop.f32.mrf.mxu3 }
 0x8bd   : > { %9431 = vmatpush.bf16.msra.mxu0 %v13970_v29  ;;  %8726 = vmatpush.bf16.msrb.mxu3 %v12143_v36  ;;  %v12398_v45 = vld [vmem:[#allocation6 + $0xbd8] sm:$0xf]  ;;  %v11151_v4 = vor.u32 %v13508_v44, %v11150_v6 }
 0x8be   : > { %v13820_v17 = vld [vmem:[#allocation6 + $0xbf4] sm:$0xf0]  ;;  %8714 = vmatpush.bf16.msrb.mxu2 %v11855_v52  ;;  %v8450_v52 = vadd.f32 %v16677_v10, %v16724_v40 }
 0x8bf   : > { %v11790_v13 = vld [vmem:[#allocation6 + $0x718] sm:$0xf]  ;;  %v12399_v42 = vor.u32 %v13820_v17, %v12398_v45 }
 0x8c0   : > { %8693 = vmatpush.bf16.msrb.mxu1 %v11183_v39  ;;  %v13668_v48 = vld [vmem:[#allocation6 + $0x734] sm:$0xf0] }
 0x8c1   : > { %9432 = vmatpush.bf16.msra.mxu0 %v13969_v25  ;;  %8727 = vmatpush.bf16.msrb.mxu3 %v12111_v63  ;;  %v12046_v53 = vld [vmem:[#allocation6 + $0x918] sm:$0xf]  ;;  %v11791_v41 = vor.u32 %v13668_v48, %v11790_v13  ;;  %v8346_v25 = vadd.f32 %v16650_v26, %v16701_v27  ;;  %v8038_v26 = vperm.slane %v16708_v8, 4 }
 0x8c2   : > { %v13732_v29 = vld [vmem:[#allocation6 + $0x934] sm:$0xf0]  ;;  %8715 = vmatpush.bf16.msrb.mxu2 %v11823_v38  ;;  %v8488_v38 = vpop.f32.mrf.mxu1 }
 0x8c3   : > { %v12366_v33 = vld [vmem:[#allocation6 + $0xb98] sm:$0xf]  ;;  %v12047_v28 = vor.u32 %v13732_v29, %v12046_v53  ;;  %v8359_v20 = vadd.f32 %v16711_v60, %v8346_v25  ;;  %v8476_v10 = vadd.f32 %v8475_v30, %v8038_v26  ;;  %v11088_v25 = vld [vmem:[#allocation6 + $0x1b8] sm:$0xf0] }
 0x8c4   : > { %v13812_v18 = vld [vmem:[#allocation6 + $0xbb4] sm:$0xf0]  ;;  %8694 = vmatpush.bf16.msrb.mxu1 %v11151_v4 }
 0x8c5   : > { %9433 = vmatpush.bf16.msra.mxu0 %v13968_v43  ;;  %8728 = vmatpush.bf16.msrb.mxu3 %v12079_v9  ;;  %v11758_v0 = vld [vmem:[#allocation6 + $0x6d8] sm:$0xf]  ;;  %v12367_v55 = vor.u32 %v13812_v18, %v12366_v33  ;;  %v8462_v43 = vpop.f32.mrf.mxu2  ;;  %v8884_v44 = vpack.c.bf16 %v8359_v20, %v8359_v20  ;;  %v13496_v33 = vld [vmem:[#allocation6 + $0x1dc] sm:$0xf] }
 0x8c6   : > { %v13660_v62 = vld [vmem:[#allocation6 + $0x6f4] sm:$0xf0]  ;;  %8716 = vmatpush.bf16.msrb.mxu2 %v11791_v41  ;;  %v16737_v54 = vadd.f32 %v8462_v43, %v8450_v52  ;;  %v11120_v18 = vld [vmem:[#allocation6 + $0x1f8] sm:$0xf0] }
 0x8c7   : > { %v12014_v49 = vld [vmem:[#allocation6 + $0x8d8] sm:$0xf]  ;;  %8695 = vmatmul.bf16.vlgmr.msrb.gmra.mxu1 %v16590_v2  ;;  %v11759_v7 = vor.u32 %v13660_v62, %v11758_v0  ;;  %v11056_v52 = vld [vmem:[#allocation6 + $0x178] sm:$0xf0] }
 0x8c8   : > { %8739 = vmatpush.bf16.msra.mxu1 %v12399_v42  ;;  %v13724_v14 = vld [vmem:[#allocation6 + $0x8f4] sm:$0xf0]  ;;  %v13560_v43 = vld [vmem:[#allocation6 + $0x3dc] sm:$0xf] }
 0x8c9   : > { %9434 = vmatpush.bf16.msra.mxu0 %v13967_v21  ;;  %v12334_v58 = vld [vmem:[#allocation6 + $0xb58] sm:$0xf]  ;;  %8729 = vmatpush.bf16.msrb.mxu3 %v12047_v28  ;;  %v12015_v37 = vor.u32 %v13724_v14, %v12014_v49  ;;  %v16739_v21 = vadd.f32 %v8488_v38, %v8476_v10  ;;  %v11123_v49 = vor.u32 %v13496_v33, %v11120_v18  ;;  %v11344_v10 = vld [vmem:[#allocation6 + $0x3b8] sm:$0xf0] }
 0x8ca   : > { %v13804_v35 = vld [vmem:[#allocation6 + $0xb74] sm:$0xf0]  ;;  %8717 = vmatpush.bf16.msrb.mxu2 %v11759_v7  ;;  %v13488_v7 = vld [vmem:[#allocation6 + $0x19c] sm:$0xf] }
 0x8cb   : > { %v11726_v36 = vld [vmem:[#allocation6 + $0x698] sm:$0xf]  ;;  %v12335_v46 = vor.u32 %v13804_v35, %v12334_v58 }
 0x8cc   : > { %v13652_v22 = vld [vmem:[#allocation6 + $0x6b4] sm:$0xf0]  ;;  %8740 = vmatpush.bf16.msra.mxu1 %v12367_v55  ;;  %v8477_v55 = vpop.f32.mrf.mxu3 }
 0x8cd   : > { %9435 = vmatpush.bf16.msra.mxu0 %v13966_v5  ;;  %v11982_v24 = vld [vmem:[#allocation6 + $0x898] sm:$0xf]  ;;  %v11727_v27 = vor.u32 %v13652_v22, %v11726_v36  ;;  %8730 = vmatpush.bf16.msrb.mxu3 %v12015_v37  ;;  %v8464_v0 = vpop.f32.mrf.mxu2  ;;  %v8490_v22 = vpop.f32.mrf.mxu1  ;;  %v11280_v55 = vld [vmem:[#allocation6 + $0x338] sm:$0xf0] }
 0x8ce   : > { %v13716_v19 = vld [vmem:[#allocation6 + $0x8b4] sm:$0xf0]  ;;  %v13456_v0 = vld [vmem:[#allocation6 + $0x9c] sm:$0xf] }
 0x8cf   : > { %v12302_v1 = vld [vmem:[#allocation6 + $0xb18] sm:$0xf]  ;;  %v11983_v63 = vor.u32 %v13716_v19, %v11982_v24  ;;  %8718 = vmatpush.bf16.msrb.mxu2 %v11727_v27  ;;  %v11091_v24 = vor.u32 %v13488_v7, %v11088_v25 }
 0x8d0   : > { %v13796_v11 = vld [vmem:[#allocation6 + $0xb34] sm:$0xf0]  ;;  %8741 = vmatpush.bf16.msra.mxu1 %v12335_v46 }
 0x8d1   : > { %v11694_v39 = vld [vmem:[#allocation6 + $0x658] sm:$0xf]  ;;  %9436 = vmatpush.bf16.msra.mxu0 %v13965_v51  ;;  %v12303_v60 = vor.u32 %v13796_v11, %v12302_v1  ;;  %8731 = vmatpush.bf16.msrb.mxu3 %v11983_v63  ;;  %v16741_v46 = vpop.f32.mrf.mxu0  ;;  %v13480_v11 = vld [vmem:[#allocation6 + $0x15c] sm:$0xf] }
 0x8d2   : > { %v13644_v31 = vld [vmem:[#allocation6 + $0x674] sm:$0xf0]  ;;  %v11376_v63 = vld [vmem:[#allocation6 + $0x3f8] sm:$0xf0] }
 0x8d3   : > { %v11950_v12 = vld [vmem:[#allocation6 + $0x858] sm:$0xf]  ;;  %v11695_v8 = vor.u32 %v13644_v31, %v11694_v39  ;;  %v11059_v31 = vor.u32 %v13480_v11, %v11056_v52 }
 0x8d4   : > { %v13708_v6 = vld [vmem:[#allocation6 + $0x874] sm:$0xf0]  ;;  %9437 = vmatmul.bf16.vlgmr.msra.gmra.mxu0 %v8884_v44  ;;  %8742 = vmatpush.bf16.msra.mxu1 %v12303_v60  ;;  %v13472_v44 = vld [vmem:[#allocation6 + $0x11c] sm:$0xf] }
 0x8d5   : > { %v12270_v45 = vld [vmem:[#allocation6 + $0xad8] sm:$0xf]  ;;  %v11951_v9 = vor.u32 %v13708_v6, %v11950_v12  ;;  %8719 = vmatpush.bf16.msrb.mxu2 %v11695_v8  ;;  %v11379_v6 = vor.u32 %v13560_v43, %v11376_v63  ;;  %v10896_v43 = vld [vmem:[#allocation6 + $0x38] sm:$0xf0] }
 0x8d6   : > { %v13788_v17 = vld [vmem:[#allocation6 + $0xaf4] sm:$0xf0] }
 0x8d7   : > { %v11662_v40 = vld [vmem:[#allocation6 + $0x618] sm:$0xf]  ;;  %v12271_v42 = vor.u32 %v13788_v17, %v12270_v45  ;;  %8732 = vmatpush.bf16.msrb.mxu3 %v11951_v9  ;;  %v11024_v45 = vld [vmem:[#allocation6 + $0x138] sm:$0xf0] }
 0x8d8   : > { %v13636_v4 = vld [vmem:[#allocation6 + $0x634] sm:$0xf0]  ;;  %v13552_v17 = vld [vmem:[#allocation6 + $0x39c] sm:$0xf]  ;;  %v11027_v38 = vor.u32 %v13472_v44, %v11024_v45 }
 0x8d9   : > { %v11918_v13 = vld [vmem:[#allocation6 + $0x818] sm:$0xf]  ;;  %v11663_v28 = vor.u32 %v13636_v4, %v11662_v40  ;;  %8743 = vmatpush.bf16.msra.mxu1 %v12271_v42  ;;  %v8711_v40 = vpop.f32.mrf.mxu0  ;;  %v10992_v42 = vld [vmem:[#allocation6 + $0xf8] sm:$0xf0] }
 0x8da   : > { %v13700_v48 = vld [vmem:[#allocation6 + $0x834] sm:$0xf0]  ;;  %v11216_v44 = vld [vmem:[#allocation6 + $0x2b8] sm:$0xf0] }
 0x8db   : > { %v12910_v53 = vld [vmem:[#allocation6 + $0xfd8] sm:$0xf]  ;;  %v11919_v62 = vor.u32 %v13700_v48, %v11918_v13  ;;  %8720 = vmatpush.bf16.msrb.mxu2 %v11663_v28  ;;  %v11347_v13 = vor.u32 %v13552_v17, %v11344_v10  ;;  %v13464_v48 = vld [vmem:[#allocation6 + $0xdc] sm:$0xf] }
 0x8dc   : > { %v13948_v29 = vld [vmem:[#allocation6 + $0xff4] sm:$0xf0]  ;;  %v10995_v18 = vor.u32 %v13464_v48, %v10992_v42  ;;  %v13744_v48 = vld [vmem:[#allocation6 + $0x99c] sm:$0xf] }
 0x8dd   : > { %v12238_v41 = vld [vmem:[#allocation6 + $0xa98] sm:$0xf]  ;;  %v12911_v5 = vor.u32 %v13948_v29, %v12910_v53  ;;  %8733 = vmatpush.bf16.msrb.mxu3 %v11919_v62  ;;  %v13544_v53 = vld [vmem:[#allocation6 + $0x35c] sm:$0xf] }
 0x8de   : > { %v13780_v47 = vld [vmem:[#allocation6 + $0xab4] sm:$0xf0]  ;;  %8721 = vmatmul.bf16.vlgmr.msrb.gmra.mxu2 %v16602_v15  ;;  %v11312_v29 = vld [vmem:[#allocation6 + $0x378] sm:$0xf0] }
 0x8df   : > { %v12239_v14 = vor.u32 %v13780_v47, %v12238_v41  ;;  %v12878_v58 = vld [vmem:[#allocation6 + $0xf98] sm:$0xf]  ;;  %8765 = vmatpush.bf16.msra.mxu2 %v12911_v5  ;;  %v11315_v28 = vor.u32 %v13544_v53, %v11312_v29  ;;  %v10960_v62 = vld [vmem:[#allocation6 + $0xb8] sm:$0xf0] }
 0x8e0   : > { %v13940_v35 = vld [vmem:[#allocation6 + $0xfb4] sm:$0xf0]  ;;  %8734 = vmatmul.bf16.vlgmr.msrb.gmra.mxu3 %v16604_v59  ;;  %v13536_v5 = vld [vmem:[#allocation6 + $0x31c] sm:$0xf] }
 0x8e1   : > { %v12206_v37 = vld [vmem:[#allocation6 + $0xa58] sm:$0xf]  ;;  %v12879_v51 = vor.u32 %v13940_v35, %v12878_v58  ;;  %8778 = vmatpush.bf16.msra.mxu3 %v11123_v49  ;;  %8744 = vmatpush.bf16.msra.mxu1 %v12239_v14  ;;  %v8502_v49 = vadd.f32 %v16693_v34, %v16739_v21  ;;  %v8514_v58 = vpop.f32.mrf.mxu2  ;;  %v10963_v35 = vor.u32 %v13456_v0, %v10960_v62  ;;  %v8540_v34 = vpop.f32.mrf.mxu1  ;;  %v12112_v42 = vld [vmem:[#allocation6 + $0x9b8] sm:$0xf0] }
 0x8e2   : > { %v13772_v36 = vld [vmem:[#allocation6 + $0xa74] sm:$0xf0]  ;;  %v11283_v22 = vor.u32 %v13536_v5, %v11280_v55  ;;  %v13512_v53 = vld [vmem:[#allocation6 + $0x25c] sm:$0xf] }
 0x8e3   : > { %v12207_v19 = vor.u32 %v13772_v36, %v12206_v37  ;;  %v12846_v20 = vld [vmem:[#allocation6 + $0xf58] sm:$0xf]  ;;  %8766 = vmatpush.bf16.msra.mxu2 %v12879_v51  ;;  %v8515_v37 = vadd.f32 %v8514_v58, %v8502_v49  ;;  %v8527_v36 = vpop.f32.mrf.mxu3  ;;  %v13448_v51 = vld [vmem:[#allocation6 + $0x5c] sm:$0xf] }
 0x8e4   : > { %v13932_v1 = vld [vmem:[#allocation6 + $0xf74] sm:$0xf0]  ;;  %v11184_v29 = vld [vmem:[#allocation6 + $0x278] sm:$0xf0] }
 0x8e5   : > { %v12174_v26 = vld [vmem:[#allocation6 + $0xa18] sm:$0xf]  ;;  %v12847_v39 = vor.u32 %v13932_v1, %v12846_v20  ;;  %8779 = vmatpush.bf16.msra.mxu3 %v11091_v24  ;;  %8745 = vmatpush.bf16.msra.mxu1 %v12207_v19  ;;  %v10928_v24 = vld [vmem:[#allocation6 + $0x78] sm:$0xf0]  ;;  %v8528_v1 = vadd.f32 %v8527_v36, %v8515_v37 }
 0x8e6   : > { %v13764_v27 = vld [vmem:[#allocation6 + $0xa34] sm:$0xf0]  ;;  %v13528_v19 = vld [vmem:[#allocation6 + $0x2dc] sm:$0xf]  ;;  %v10931_v21 = vor.u32 %v13448_v51, %v10928_v24 }
 0x8e7   : > { %v12175_v30 = vor.u32 %v13764_v27, %v12174_v26  ;;  %v12814_v60 = vld [vmem:[#allocation6 + $0xf18] sm:$0xf]  ;;  %8767 = vmatpush.bf16.msra.mxu2 %v12847_v39  ;;  %v11248_v20 = vld [vmem:[#allocation6 + $0x2f8] sm:$0xf0]  ;;  %v16748_v63 = vadd.f32 %v8540_v34, %v8528_v1 }
 0x8e8   : > { %v13924_v12 = vld [vmem:[#allocation6 + $0xf34] sm:$0xf0]  ;;  %v13440_v27 = vld [vmem:[#allocation6 + $0x1c] sm:$0xf]  ;;  %v11251_v39 = vor.u32 %v13528_v19, %v11248_v20 }
 0x8e9   : > { %v12815_v8 = vor.u32 %v13924_v12, %v12814_v60  ;;  %8780 = vmatpush.bf16.msra.mxu3 %v11059_v31  ;;  %8746 = vmatpush.bf16.msra.mxu1 %v12175_v30  ;;  %v12782_v9 = vld [vmem:[#allocation6 + $0xed8] sm:$0xf]  ;;  %v13688_v31 = vld [vmem:[#allocation6 + $0x7dc] sm:$0xf]  ;;  %v8516_v17 = vpop.f32.mrf.mxu2  ;;  %v10899_v10 = vor.u32 %v13440_v27, %v10896_v43 }
 0x8ea   : > { %v13916_v4 = vld [vmem:[#allocation6 + $0xef4] sm:$0xf0]  ;;  %v11888_v30 = vld [vmem:[#allocation6 + $0x7f8] sm:$0xf0] }
 0x8eb   : > { %8768 = vmatpush.bf16.msra.mxu2 %v12815_v8  ;;  %v12783_v33 = vor.u32 %v13916_v4, %v12782_v9  ;;  %v12750_v41 = vld [vmem:[#allocation6 + $0xe98] sm:$0xf]  ;;  %v13752_v60 = vld [vmem:[#allocation6 + $0x9dc] sm:$0xf]  ;;  %v11891_v8 = vor.u32 %v13688_v31, %v11888_v30  ;;  %v8529_v40 = vpop.f32.mrf.mxu3 }
 0x8ec   : > { %8747 = vmatmul.bf16.vlgmr.msra.gmra.mxu1 %v16613_v3  ;;  %v13908_v47 = vld [vmem:[#allocation6 + $0xeb4] sm:$0xf0]  ;;  %v12144_v12 = vld [vmem:[#allocation6 + $0x9f8] sm:$0xf0]  ;;  %v8554_v40 = vadd.f32 %v16703_v50, %v16748_v63 }
 0x8ed   : > { %8791 = vmatpush.bf16.msrb.mxu1 %v11379_v6  ;;  %8781 = vmatpush.bf16.msra.mxu3 %v11027_v38  ;;  %v12751_v14 = vor.u32 %v13908_v47, %v12750_v41  ;;  %v12718_v7 = vld [vmem:[#allocation6 + $0xe58] sm:$0xf]  ;;  %v13520_v6 = vld [vmem:[#allocation6 + $0x29c] sm:$0xf]  ;;  %v12147_v38 = vor.u32 %v13752_v60, %v12144_v12  ;;  %v12115_v47 = vor.u32 %v13744_v48, %v12112_v42 }
 0x8ee   : > { %v13900_v25 = vld [vmem:[#allocation6 + $0xe74] sm:$0xf0]  ;;  %v11219_v9 = vor.u32 %v13520_v6, %v11216_v44  ;;  %v13680_v4 = vld [vmem:[#allocation6 + $0x79c] sm:$0xf] }
 0x8ef   : > { %8769 = vmatpush.bf16.msra.mxu2 %v12783_v33  ;;  %v12719_v11 = vor.u32 %v13900_v25, %v12718_v7  ;;  %v12686_v52 = vld [vmem:[#allocation6 + $0xe18] sm:$0xf]  ;;  %v8542_v33 = vpop.f32.mrf.mxu1  ;;  %v13672_v0 = vld [vmem:[#allocation6 + $0x75c] sm:$0xf] }
 0x8f0   : > { %v13892_v26 = vld [vmem:[#allocation6 + $0xe34] sm:$0xf0]  ;;  %v11824_v62 = vld [vmem:[#allocation6 + $0x778] sm:$0xf0] }
 0x8f1   : > { %8792 = vmatpush.bf16.msrb.mxu1 %v11347_v13  ;;  %8782 = vmatpush.bf16.msra.mxu3 %v10995_v18  ;;  %v12687_v45 = vor.u32 %v13892_v26, %v12686_v52  ;;  %v11856_v13 = vld [vmem:[#allocation6 + $0x7b8] sm:$0xf0]  ;;  %v16750_v41 = vpop.f32.mrf.mxu0  ;;  %v11827_v7 = vor.u32 %v13672_v0, %v11824_v62 }
 0x8f2   : > { %v11859_v18 = vor.u32 %v13680_v4, %v11856_v13  ;;  %v13736_v5 = vld [vmem:[#allocation6 + $0x95c] sm:$0xf] }
 0x8f3   : > { %8770 = vmatpush.bf16.msra.mxu2 %v12751_v14  ;;  %v12080_v55 = vld [vmem:[#allocation6 + $0x978] sm:$0xf0] }
 0x8f4   : > { %v13504_v49 = vld [vmem:[#allocation6 + $0x21c] sm:$0xf]  ;;  %v12083_v25 = vor.u32 %v13736_v5, %v12080_v55 }
 0x8f5   : > { %8793 = vmatpush.bf16.msrb.mxu1 %v11315_v28  ;;  %8783 = vmatpush.bf16.msra.mxu3 %v10963_v35  ;;  %v11187_v28 = vor.u32 %v13512_v53, %v11184_v29  ;;  %v11152_v14 = vld [vmem:[#allocation6 + $0x238] sm:$0xf0] }
 0x8f6   : > { %v13816_v58 = vld [vmem:[#allocation6 + $0xbdc] sm:$0xf]  ;;  %v11155_v37 = vor.u32 %v13504_v49, %v11152_v14 }
 0x8f7   : > { %8771 = vmatpush.bf16.msra.mxu2 %v12719_v11  ;;  %v12400_v35 = vld [vmem:[#allocation6 + $0xbf8] sm:$0xf0] }
 0x8f8   : > { %v13664_v36 = vld [vmem:[#allocation6 + $0x71c] sm:$0xf]  ;;  %v12403_v51 = vor.u32 %v13816_v58, %v12400_v35 }
 0x8f9   : > { %8794 = vmatpush.bf16.msrb.mxu1 %v11283_v22  ;;  %8784 = vmatpush.bf16.msra.mxu3 %v10931_v21  ;;  %v11792_v22 = vld [vmem:[#allocation6 + $0x738] sm:$0xf0]  ;;  %v8763_v52 = vpop.f32.mrf.mxu0 }
 0x8fa   : > { %v13728_v24 = vld [vmem:[#allocation6 + $0x91c] sm:$0xf]  ;;  %v11795_v11 = vor.u32 %v13664_v36, %v11792_v22 }
 0x8fb   : > { %8772 = vmatpush.bf16.msra.mxu2 %v12687_v45  ;;  %v12048_v19 = vld [vmem:[#allocation6 + $0x938] sm:$0xf0] }
 0x8fc   : > { %v13808_v20 = vld [vmem:[#allocation6 + $0xb9c] sm:$0xf] }
 0x8fd   : > { %8795 = vmatpush.bf16.msrb.mxu1 %v11251_v39  ;;  %8785 = vmatpush.bf16.msra.mxu3 %v10899_v10  ;;  %v12368_v1 = vld [vmem:[#allocation6 + $0xbb8] sm:$0xf0] }
 0x8fe   : > { %8773 = vmatmul.bf16.vlgmr.msra.gmra.mxu2 %v16623_v32  ;;  %v13656_v34 = vld [vmem:[#allocation6 + $0x6dc] sm:$0xf]  ;;  %v12371_v26 = vor.u32 %v13808_v20, %v12368_v1  ;;  %v16759_v42 = vpop.f32.mrf.mxu3 }
 0x8ff   : > { %8817 = vmatpush.bf16.msrb.mxu2 %v11891_v8  ;;  %v11760_v21 = vld [vmem:[#allocation6 + $0x6f8] sm:$0xf0] }
 0x900   : > { %8786 = vmatmul.bf16.vlgmr.msra.gmra.mxu3 %v16584_v23  ;;  %v12051_v23 = vor.u32 %v13728_v24, %v12048_v19  ;;  %v13720_v27 = vld [vmem:[#allocation6 + $0x8dc] sm:$0xf]  ;;  %v11763_v30 = vor.u32 %v13656_v34, %v11760_v21 }
 0x901   : > { %8830 = vmatpush.bf16.msrb.mxu3 %v12147_v38  ;;  %8796 = vmatpush.bf16.msrb.mxu1 %v11219_v9  ;;  %v12016_v43 = vld [vmem:[#allocation6 + $0x8f8] sm:$0xf0]  ;;  %v8566_v9 = vpop.f32.mrf.mxu2  ;;  %v16761_v50 = vpop.f32.mrf.mxu1 }
 0x902   : > { %v13800_v39 = vld [vmem:[#allocation6 + $0xb5c] sm:$0xf]  ;;  %v12019_v60 = vor.u32 %v13720_v27, %v12016_v43  ;;  %v16757_v48 = vadd.f32 %v8566_v9, %v8554_v40  ;;  %v13953_v40 = vld [vmem:[#allocation7 + $0x20] sm:$0xff]  ;;  %v13963_v9 = vld [vmem:[#allocation7 + $0x70] sm:$0xff] }
 0x903   : > { %8818 = vmatpush.bf16.msrb.mxu2 %v11859_v18  ;;  %v12336_v31 = vld [vmem:[#allocation6 + $0xb78] sm:$0xf0] }
 0x904   : > { %v13648_v12 = vld [vmem:[#allocation6 + $0x69c] sm:$0xf]  ;;  %v12339_v44 = vor.u32 %v13800_v39, %v12336_v31 }
 0x905   : > { %8831 = vmatpush.bf16.msrb.mxu3 %v12115_v47  ;;  %8797 = vmatpush.bf16.msrb.mxu1 %v11187_v28  ;;  %v11728_v6 = vld [vmem:[#allocation6 + $0x6b8] sm:$0xf0] }
 0x906   : > { %v13712_v45 = vld [vmem:[#allocation6 + $0x89c] sm:$0xf]  ;;  %v11731_v38 = vor.u32 %v13648_v12, %v11728_v6  ;;  %v13954_v12 = vld [vmem:[#allocation7 + $0x28] sm:$0xff] }
 0x907   : > { %8819 = vmatpush.bf16.msrb.mxu2 %v11827_v7  ;;  %v11984_v17 = vld [vmem:[#allocation6 + $0x8b8] sm:$0xf0] }
 0x908   : > { %v13792_v10 = vld [vmem:[#allocation6 + $0xb1c] sm:$0xf] }
 0x909   : > { %8832 = vmatpush.bf16.msrb.mxu3 %v12083_v25  ;;  %8798 = vmatpush.bf16.msrb.mxu1 %v11155_v37  ;;  %v12304_v8 = vld [vmem:[#allocation6 + $0xb38] sm:$0xf0]  ;;  %v8568_v37 = vpop.f32.mrf.mxu2 }
 0x90a   : > { %v13640_v4 = vld [vmem:[#allocation6 + $0x65c] sm:$0xf]  ;;  %v12307_v53 = vor.u32 %v13792_v10, %v12304_v8 }
 0x90b   : > { %8820 = vmatpush.bf16.msrb.mxu2 %v11795_v11  ;;  %v11696_v13 = vld [vmem:[#allocation6 + $0x678] sm:$0xf0] }
 0x90c   : > { %8799 = vmatmul.bf16.vlgmr.msrb.gmra.mxu1 %v16590_v2  ;;  %v11987_v2 = vor.u32 %v13712_v45, %v11984_v17  ;;  %v13704_v29 = vld [vmem:[#allocation6 + $0x85c] sm:$0xf]  ;;  %v11699_v28 = vor.u32 %v13640_v4, %v11696_v13 }
 0x90d   : > { %8843 = vmatpush.bf16.msra.mxu1 %v12403_v51  ;;  %8833 = vmatpush.bf16.msrb.mxu3 %v12051_v23  ;;  %v11952_v33 = vld [vmem:[#allocation6 + $0x878] sm:$0xf0]  ;;  %v8581_v51 = vpop.f32.mrf.mxu3  ;;  %v8594_v23 = vpop.f32.mrf.mxu1 }
 0x90e   : > { %v13784_v18 = vld [vmem:[#allocation6 + $0xadc] sm:$0xf]  ;;  %v11955_v63 = vor.u32 %v13704_v29, %v11952_v33  ;;  %v13986_v23 = vld [vmem:[#allocation7 + $0x128] sm:$0xff] }
 0x90f   : > { %8821 = vmatpush.bf16.msrb.mxu2 %v11763_v30  ;;  %v12272_v47 = vld [vmem:[#allocation6 + $0xaf8] sm:$0xf0] }
 0x910   : > { %v13632_v0 = vld [vmem:[#allocation6 + $0x61c] sm:$0xf]  ;;  %v12275_v55 = vor.u32 %v13784_v18, %v12272_v47  ;;  %v13951_v18 = vld [vmem:[#allocation7 + $0x10] sm:$0xff] }
 0x911   : > { %8844 = vmatpush.bf16.msra.mxu1 %v12371_v26  ;;  %8834 = vmatpush.bf16.msrb.mxu3 %v12019_v60  ;;  %v11664_v62 = vld [vmem:[#allocation6 + $0x638] sm:$0xf0]  ;;  %v16763_v21 = vpop.f32.mrf.mxu0  ;;  %v13955_v26 = vld [vmem:[#allocation7 + $0x30] sm:$0xff] }
 0x912   : > { %v13696_v5 = vld [vmem:[#allocation6 + $0x81c] sm:$0xf]  ;;  %v11667_v25 = vor.u32 %v13632_v0, %v11664_v62 }
 0x913   : > { %8822 = vmatpush.bf16.msrb.mxu2 %v11731_v38  ;;  %v11920_v49 = vld [vmem:[#allocation6 + $0x838] sm:$0xf0] }
 0x914   : > { %v13944_v14 = vld [vmem:[#allocation6 + $0xfdc] sm:$0xf]  ;;  %v11923_v36 = vor.u32 %v13696_v5, %v11920_v49  ;;  %v13950_v5 = vld [vmem:[#allocation7 + $0x8] sm:$0xff] }
 0x915   : > { %8845 = vmatpush.bf16.msra.mxu1 %v12339_v44  ;;  %8835 = vmatpush.bf16.msrb.mxu3 %v11987_v2  ;;  %v12912_v58 = vld [vmem:[#allocation6 + $0xff8] sm:$0xf0] }
 0x916   : > { %v13776_v35 = vld [vmem:[#allocation6 + $0xa9c] sm:$0xf]  ;;  %v12915_v22 = vor.u32 %v13944_v14, %v12912_v58 }
 0x917   : > { %v12240_v7 = vld [vmem:[#allocation6 + $0xab8] sm:$0xf0]  ;;  %8823 = vmatpush.bf16.msrb.mxu2 %v11699_v28 }
 0x918   : > { %v13956_v24 = vld [vmem:[#allocation7 + $0x38] sm:$0xff]  ;;  %v12243_v19 = vor.u32 %v13776_v35, %v12240_v7  ;;  %v13949_v7 = vld [vmem:[#allocation7] sm:$0xff] }
 0x919   : > { %8846 = vmatpush.bf16.msra.mxu1 %v12307_v53  ;;  %8836 = vmatpush.bf16.msrb.mxu3 %v11955_v63  ;;  %v13936_v20 = vld [vmem:[#allocation6 + $0xf9c] sm:$0xf]  ;;  %v8815_v8 = vpop.f32.mrf.mxu0  ;;  %v13962_v53 = vld [vmem:[#allocation7 + $0x68] sm:$0xff] }
 0x91a   : > { %v12880_v1 = vld [vmem:[#allocation6 + $0xfb8] sm:$0xf0] }
 0x91b   : > { %v13768_v11 = vld [vmem:[#allocation6 + $0xa5c] sm:$0xf]  ;;  %8824 = vmatpush.bf16.msrb.mxu2 %v11667_v25  ;;  %v12883_v34 = vor.u32 %v13936_v20, %v12880_v1  ;;  %v13987_v1 = vld [vmem:[#allocation7 + $0x130] sm:$0xff] }
 0x91c   : > { %v12208_v52 = vld [vmem:[#allocation6 + $0xa78] sm:$0xf0]  ;;  %v16768_v33 = vpop.f32.mrf.mxu2 }
 0x91d   : > { %8847 = vmatpush.bf16.msra.mxu1 %v12275_v55  ;;  %8837 = vmatpush.bf16.msrb.mxu3 %v11923_v36  ;;  %v12211_v27 = vor.u32 %v13768_v11, %v12208_v52  ;;  %v13928_v43 = vld [vmem:[#allocation6 + $0xf5c] sm:$0xf]  ;;  %v13958_v11 = vld [vmem:[#allocation7 + $0x48] sm:$0xff] }
 0x91e   : > { %v12848_v39 = vld [vmem:[#allocation6 + $0xf78] sm:$0xf0]  ;;  %8825 = vmatmul.bf16.vlgmr.msrb.gmra.mxu2 %v16602_v15  ;;  %v16770_v63 = vpop.f32.mrf.mxu3  ;;  %v13978_v52 = vld [vmem:[#allocation7 + $0xe8] sm:$0xff] }
 0x91f   : > { %8869 = vmatpush.bf16.msra.mxu2 %v12915_v22  ;;  %v13760_v31 = vld [vmem:[#allocation6 + $0xa1c] sm:$0xf]  ;;  %v12851_v60 = vor.u32 %v13928_v43, %v12848_v39  ;;  %v13959_v22 = vld [vmem:[#allocation7 + $0x50] sm:$0xff] }
 0x920   : > { %v12176_v30 = vld [vmem:[#allocation6 + $0xa38] sm:$0xf0]  ;;  %8838 = vmatmul.bf16.vlgmr.msrb.gmra.mxu3 %v16604_v59 }
 0x921   : > { %9403 = vmatpush.bf16.msra.mxu3 %v13956_v24  ;;  %8848 = vmatpush.bf16.msra.mxu1 %v12243_v19  ;;  %v12179_v6 = vor.u32 %v13760_v31, %v12176_v30  ;;  %v13920_v44 = vld [vmem:[#allocation6 + $0xf1c] sm:$0xf]  ;;  %v13979_v24 = vld [vmem:[#allocation7 + $0xf0] sm:$0xff]  ;;  %v8882_v19 = vpack.c.bf16 %v16670_v57, %v16670_v57  ;;  %v13985_v31 = vld [vmem:[#allocation7 + $0x120] sm:$0xff] }
 0x922   : > { %v12816_v45 = vld [vmem:[#allocation6 + $0xf38] sm:$0xf0]  ;;  %v13995_v30 = vld [vmem:[#allocation7 + $0x170] sm:$0xff] }
 0x923   : > { %8870 = vmatpush.bf16.msra.mxu2 %v12883_v34  ;;  %v13964_v17 = vld [vmem:[#allocation7 + $0x78] sm:$0xff]  ;;  %v12819_v10 = vor.u32 %v13920_v44, %v12816_v45  ;;  %v13957_v34 = vld [vmem:[#allocation7 + $0x40] sm:$0xff]  ;;  %v13994_v44 = vld [vmem:[#allocation7 + $0x168] sm:$0xff] }
 0x924   : > { %v13912_v15 = vld [vmem:[#allocation6 + $0xedc] sm:$0xf]  ;;  %v16772_v62 = vpop.f32.mrf.mxu1  ;;  %v8620_v35 = vpop.f32.mrf.mxu2 }
 0x925   : > { %9404 = vmatpush.bf16.msra.mxu3 %v13955_v26  ;;  %8849 = vmatpush.bf16.msra.mxu1 %v12211_v27  ;;  %v12784_v38 = vld [vmem:[#allocation6 + $0xef8] sm:$0xf0]  ;;  %v13977_v27 = vld [vmem:[#allocation7 + $0xe0] sm:$0xff] }
 0x926   : > { %v12787_v59 = vor.u32 %v13912_v15, %v12784_v38  ;;  %v13952_v2 = vld [vmem:[#allocation7 + $0x18] sm:$0xff]  ;;  %v8633_v37 = vpop.f32.mrf.mxu3  ;;  %v13993_v15 = vld [vmem:[#allocation7 + $0x160] sm:$0xff] }
 0x927   : > { %8871 = vmatpush.bf16.msra.mxu2 %v12851_v60  ;;  %v13904_v4 = vld [vmem:[#allocation6 + $0xe9c] sm:$0xf]  ;;  %v13989_v35 = vld [vmem:[#allocation7 + $0x140] sm:$0xff] }
 0x928   : > { %v12752_v13 = vld [vmem:[#allocation6 + $0xeb8] sm:$0xf0]  ;;  %v13997_v37 = vld [vmem:[#allocation7 + $0x180] sm:$0xff] }
 0x929   : > { %9405 = vmatpush.bf16.msra.mxu3 %v13954_v12  ;;  %8850 = vmatpush.bf16.msra.mxu1 %v12179_v6  ;;  %v12755_v29 = vor.u32 %v13904_v4, %v12752_v13  ;;  %v13896_v47 = vld [vmem:[#allocation6 + $0xe5c] sm:$0xf]  ;;  %v14002_v13 = vld [vmem:[#allocation7 + $0x1a8] sm:$0xff] }
 0x92a   : > { %v12720_v28 = vld [vmem:[#allocation6 + $0xe78] sm:$0xf0] }
 0x92b   : > { %8872 = vmatpush.bf16.msra.mxu2 %v12819_v10  ;;  %v12723_v0 = vor.u32 %v13896_v47, %v12720_v28  ;;  %v13888_v55 = vld [vmem:[#allocation6 + $0xe1c] sm:$0xf]  ;;  %v13981_v47 = vld [vmem:[#allocation7 + $0x100] sm:$0xff]  ;;  %v13991_v28 = vld [vmem:[#allocation7 + $0x150] sm:$0xff] }
 0x92c   : > { %8851 = vmatmul.bf16.vlgmr.msra.gmra.mxu1 %v16613_v3  ;;  %v13961_v3 = vld [vmem:[#allocation7 + $0x60] sm:$0xff]  ;;  %v12688_v49 = vld [vmem:[#allocation6 + $0xe38] sm:$0xf0]  ;;  %v8646_v51 = vpop.f32.mrf.mxu1 }
 0x92d   : > { %9416 = vmatpush.bf16.msrb.mxu1 %v13964_v17  ;;  %9406 = vmatpush.bf16.msra.mxu3 %v13953_v40  ;;  %v13960_v14 = vld [vmem:[#allocation7 + $0x58] sm:$0xff]  ;;  %v12691_v58 = vor.u32 %v13888_v55, %v12688_v49  ;;  %v13975_v17 = vld [vmem:[#allocation7 + $0xd0] sm:$0xff]  ;;  %v8886_v55 = vpack.c.bf16 %v16757_v48, %v16757_v48  ;;  %v13990_v49 = vld [vmem:[#allocation7 + $0x148] sm:$0xff] }
 0x92e   : > { %v13980_v25 = vld [vmem:[#allocation7 + $0xf8] sm:$0xff]  ;;  %v13983_v40 = vld [vmem:[#allocation7 + $0x110] sm:$0xff] }
 0x92f   : > { %8873 = vmatpush.bf16.msra.mxu2 %v12787_v59  ;;  %v13988_v36 = vld [vmem:[#allocation7 + $0x138] sm:$0xff] }
 0x930   : > { %v13996_v26 = vld [vmem:[#allocation7 + $0x178] sm:$0xff] }
 0x931   : > { %9417 = vmatpush.bf16.msrb.mxu1 %v13963_v9  ;;  %9407 = vmatpush.bf16.msra.mxu3 %v13952_v2  ;;  %v16776_v20 = vpop.f32.mrf.mxu0  ;;  %v16779_v43 = vld [vmem:[#allocation34] sm:$0xff]  ;;  %v14003_v9 = vld [vmem:[#allocation7 + $0x1b0] sm:$0xff] }
 0x932   : > { %v8039_v57 = vperm.slane %v16779_v43, 5  ;;  %v13976_v60 = vld [vmem:[#allocation7 + $0xd8] sm:$0xff]  ;;  %v8040_v51 = vperm.slane %v16779_v43, 6 }
 0x933   : > { %8874 = vmatpush.bf16.msra.mxu2 %v12755_v29  ;;  %v13984_v6 = vld [vmem:[#allocation7 + $0x118] sm:$0xff] }
 0x934   : > { %v8580_v12 = vadd.f32 %v16759_v42, %v8039_v57  ;;  %v14004_v10 = vld [vmem:[#allocation7 + $0x1b8] sm:$0xff]  ;;  %v13974_v42 = vld [vmem:[#allocation7 + $0xc8] sm:$0xff] }
 0x935   : > { %9418 = vmatpush.bf16.msrb.mxu1 %v13962_v53  ;;  %9408 = vmatpush.bf16.msra.mxu3 %v13951_v18  ;;  %v13992_v4 = vld [vmem:[#allocation7 + $0x158] sm:$0xff]  ;;  %v13973_v53 = vld [vmem:[#allocation7 + $0xc0] sm:$0xff] }
 0x936   : > { %v8593_v45 = vadd.f32 %v16761_v50, %v8580_v12  ;;  %9481 = vmatpush.bf16.msrb.mxu0 %v14004_v10  ;;  %v13982_v50 = vld [vmem:[#allocation7 + $0x108] sm:$0xff] }
 0x937   : > { %8875 = vmatpush.bf16.msra.mxu2 %v12723_v0 }
 0x938   : > { %v8606_v38 = vadd.f32 %v16716_v61, %v8593_v45 }
 0x939   : > { %9419 = vmatpush.bf16.msrb.mxu1 %v13961_v3  ;;  %9409 = vmatpush.bf16.msra.mxu3 %v13950_v5  ;;  %v8867_v39 = vpop.f32.mrf.mxu0  ;;  %v14001_v3 = vld [vmem:[#allocation7 + $0x1a0] sm:$0xff] }
 0x93a   : > { %v8619_v59 = vadd.f32 %v16768_v33, %v8606_v38  ;;  %9482 = vmatpush.bf16.msrb.mxu0 %v14003_v9  ;;  %v8885_v33 = vpack.c.bf16 %v16737_v54, %v16737_v54  ;;  %v13999_v54 = vld [vmem:[#allocation7 + $0x190] sm:$0xff]  ;;  %v14012_v39 = vld [vmem:[#allocation7 + $0x1f8] sm:$0xff]  ;;  %v8041_v9 = vperm.slane %v16779_v43, 7 }
 0x93b   : > { %8876 = vmatpush.bf16.msra.mxu2 %v12691_v58 }
 0x93c   : > { %v8632_v29 = vadd.f32 %v16770_v63, %v8619_v59 }
 0x93d   : > { %9420 = vmatpush.bf16.msrb.mxu1 %v13960_v14  ;;  %9410 = vmatpush.bf16.msra.mxu3 %v13949_v7  ;;  %v14000_v14 = vld [vmem:[#allocation7 + $0x198] sm:$0xff] }
 0x93e   : > { %8877 = vmatmul.bf16.vlgmr.msra.gmra.mxu2 %v16623_v32  ;;  %v8883_v32 = vpack.c.bf16 %v16688_v16, %v16688_v16  ;;  %v8670_v8 = vpop.f32.mrf.mxu2  ;;  %9483 = vmatpush.bf16.msrb.mxu0 %v14002_v13  ;;  %v8645_v0 = vadd.f32 %v16772_v62, %v8632_v29 }
 0x93f   : > { %9442 = vmatpush.bf16.msrb.mxu2 %v13980_v25  ;;  %v8683_v16 = vpop.f32.mrf.mxu3  ;;  %v13998_v25 = vld [vmem:[#allocation7 + $0x188] sm:$0xff] }
 0x940   : > { %9411 = vmatmul.bf16.vlgmr.msra.gmra.mxu3 %v8882_v19  ;;  %v8658_v58 = vadd.f32 %v16726_v56, %v8645_v0  ;;  %v8684_v56 = vadd.f32 %v8683_v16, %v8040_v51  ;;  %v14005_v16 = vld [vmem:[#allocation7 + $0x1c0] sm:$0xff] }
 0x941   : > { %9455 = vmatpush.bf16.msrb.mxu3 %v13988_v36  ;;  %9421 = vmatpush.bf16.msrb.mxu1 %v13959_v22 }
 0x942   : > { %9484 = vmatpush.bf16.msrb.mxu0 %v14001_v3  ;;  %v8671_v62 = vadd.f32 %v8670_v8, %v8658_v58  ;;  %v14008_v8 = vld [vmem:[#allocation7 + $0x1d8] sm:$0xff]  ;;  %v9018_v3 = vld [vmem:[#allocation35] sm:$0x1] }
 0x943   : > { %9443 = vmatpush.bf16.msrb.mxu2 %v13979_v24 }
 0x944   : > { %v8696_v2 = vpop.f32.mrf.mxu1  ;;  %v8887_v48 = vpack.c.bf16 %v8671_v62, %v8671_v62 }
 0x945   : > { %9456 = vmatpush.bf16.msrb.mxu3 %v13987_v1  ;;  %9422 = vmatpush.bf16.msrb.mxu1 %v13958_v11  ;;  %v8697_v11 = vadd.f32 %v8696_v2, %v8684_v56 }
 0x946   : > { %v8672_v18 = vpop.f32.mrf.mxu2  ;;  %9485 = vmatpush.bf16.msrb.mxu0 %v14000_v14 }
 0x947   : > { %9444 = vmatpush.bf16.msrb.mxu2 %v13978_v52  ;;  %v8685_v61 = vpop.f32.mrf.mxu3 }
 0x949   : > { %9457 = vmatpush.bf16.msrb.mxu3 %v13986_v23  ;;  %9423 = vmatpush.bf16.msrb.mxu1 %v13957_v34  ;;  %v8710_v23 = vadd.f32 %v16741_v46, %v8697_v11  ;;  %v14009_v46 = vld [vmem:[#allocation7 + $0x1e0] sm:$0xff] }
 0x94a   : > { %9486 = vmatpush.bf16.msrb.mxu0 %v13999_v54 }
 0x94b   : > { %9445 = vmatpush.bf16.msrb.mxu2 %v13977_v27 }
 0x94c   : > { %9424 = vmatmul.bf16.vlgmr.msrb.gmra.mxu1 %v8883_v32  ;;  %v8698_v5 = vpop.f32.mrf.mxu1 }
 0x94d   : > { %9468 = vmatpush.bf16.msra.mxu1 %v13996_v26  ;;  %9458 = vmatpush.bf16.msrb.mxu3 %v13985_v31 }
 0x94e   : > { %9487 = vmatpush.bf16.msrb.mxu0 %v13998_v25 }
 0x94f   : > { %9446 = vmatpush.bf16.msrb.mxu2 %v13976_v60  ;;  %v14011_v60 = vld [vmem:[#allocation7 + $0x1f0] sm:$0xff] }
 0x951   : > { %9469 = vmatpush.bf16.msra.mxu1 %v13995_v30  ;;  %9459 = vmatpush.bf16.msrb.mxu3 %v13984_v6  ;;  %v16794_v63 = vpop.f32.mrf.mxu0 }
 0x952   : > { %9488 = vmatpush.bf16.msrb.mxu0 %v13997_v37 }
 0x953   : > { %9447 = vmatpush.bf16.msrb.mxu2 %v13975_v17 }
 0x955   : > { %9470 = vmatpush.bf16.msra.mxu1 %v13994_v44  ;;  %9460 = vmatpush.bf16.msrb.mxu3 %v13983_v40  ;;  %v14010_v44 = vld [vmem:[#allocation7 + $0x1e8] sm:$0xff] }
 0x956   : > { %v14006_v40 = vld [vmem:[#allocation7 + $0x1c8] sm:$0xff] }
 0x957   : > { %9448 = vmatpush.bf16.msrb.mxu2 %v13974_v42 }
 0x959   : > { %9471 = vmatpush.bf16.msra.mxu1 %v13993_v15  ;;  %9461 = vmatpush.bf16.msrb.mxu3 %v13982_v50  ;;  %v9440_v7 = vpop.f32.mrf.mxu0 }
 0x95b   : > { %9449 = vmatpush.bf16.msrb.mxu2 %v13973_v53 }
 0x95d   : > { %9472 = vmatpush.bf16.msra.mxu1 %v13992_v4  ;;  %9462 = vmatpush.bf16.msrb.mxu3 %v13981_v47 }
 0x95e   : > { %9450 = vmatmul.bf16.vlgmr.msrb.gmra.mxu2 %v8885_v33 }
 0x95f   : > { %9494 = vmatpush.bf16.msra.mxu2 %v14012_v39 }
 0x960   : > { %9463 = vmatmul.bf16.vlgmr.msrb.gmra.mxu3 %v8886_v55 }
 0x961   : > { %9473 = vmatpush.bf16.msra.mxu1 %v13991_v28  ;;  %v8722_v36 = vpop.f32.mrf.mxu2 }
 0x962   : > { %v8723_v34 = vadd.f32 %v8722_v36, %v8710_v23 }
 0x963   : > { %v8735_v22 = vpop.f32.mrf.mxu3  ;;  %9495 = vmatpush.bf16.msra.mxu2 %v14011_v60 }
 0x964   : > { %v8736_v26 = vadd.f32 %v8735_v22, %v8723_v34 }
 0x965   : > { %9474 = vmatpush.bf16.msra.mxu1 %v13990_v49 }
 0x967   : > { %9496 = vmatpush.bf16.msra.mxu2 %v14010_v44 }
 0x969   : > { %9475 = vmatpush.bf16.msra.mxu1 %v13989_v35  ;;  %v8748_v24 = vpop.f32.mrf.mxu1  ;;  %v8724_v19 = vpop.f32.mrf.mxu2 }
 0x96a   : > { %v8749_v27 = vadd.f32 %v8748_v24, %v8736_v26 }
 0x96b   : > { %v8737_v1 = vpop.f32.mrf.mxu3  ;;  %9497 = vmatpush.bf16.msra.mxu2 %v14009_v46 }
 0x96c   : > { %9476 = vmatmul.bf16.vlgmr.msra.gmra.mxu1 %v8887_v48  ;;  %v8762_v57 = vadd.f32 %v16750_v41, %v8749_v27  ;;  %v14007_v41 = vld [vmem:[#allocation7 + $0x1d0] sm:$0xff] }
 0x96f   : > { %9498 = vmatpush.bf16.msra.mxu2 %v14008_v8 }
 0x971   : > { %v8750_v52 = vpop.f32.mrf.mxu1 }
 0x973   : > { %9499 = vmatpush.bf16.msra.mxu2 %v14007_v41 }
 0x977   : > { %9500 = vmatpush.bf16.msra.mxu2 %v14006_v40 }
 0x97b   : > { %9501 = vmatpush.bf16.msra.mxu2 %v14005_v16 }
 0x981   : > { %v8774_v31 = vpop.f32.mrf.mxu2 }
 0x982   : > { %v8775_v32 = vadd.f32 %v8774_v31, %v8762_v57 }
 0x983   : > { %v8787_v30 = vpop.f32.mrf.mxu3 }
 0x984   : > { %v8888_v12 = vpack.c.bf16 %v8775_v32, %v8775_v32  ;;  %v8788_v59 = vadd.f32 %v8787_v30, %v8041_v9 }
 0x986   : > { %9489 = vmatmul.bf16.vlgmr.msrb.gmra.mxu0 %v8888_v12 }
 0x989   : > { %v8800_v6 = vpop.f32.mrf.mxu1  ;;  %v8776_v45 = vpop.f32.mrf.mxu2 }
 0x98a   : > { %v8801_v4 = vadd.f32 %v8800_v6, %v8788_v59 }
 0x98b   : > { %v8789_v17 = vpop.f32.mrf.mxu3 }
 0x98c   : > { %v8814_v53 = vadd.f32 %v16763_v21, %v8801_v4 }
 0x991   : > { %v8802_v10 = vpop.f32.mrf.mxu1 }
 0x9a1   : > { %v8826_v15 = vpop.f32.mrf.mxu2 }
 0x9a2   : > { %v8827_v29 = vadd.f32 %v8826_v15, %v8814_v53 }
 0x9a3   : > { %v8839_v38 = vpop.f32.mrf.mxu3 }
 0x9a4   : > { %v8840_v18 = vadd.f32 %v8839_v38, %v8827_v29 }
 0x9a9   : > { %v8852_v42 = vpop.f32.mrf.mxu1  ;;  %v8828_v2 = vpop.f32.mrf.mxu2 }
 0x9aa   : > { %v8853_v47 = vadd.f32 %v8852_v42, %v8840_v18 }
 0x9ab   : > { %v8841_v50 = vpop.f32.mrf.mxu3 }
 0x9ac   : > { %v8866_v61 = vadd.f32 %v16776_v20, %v8853_v47 }
 0x9b1   : > { %v8854_v13 = vpop.f32.mrf.mxu1 }
 0x9c1   : > { %v8878_v28 = vpop.f32.mrf.mxu2 }
 0x9c2   : > { %v8879_v33 = vadd.f32 %v8878_v28, %v8866_v61 }
 0x9c3   : > { %v9412_v0 = vpop.f32.mrf.mxu3 }
 0x9c4   : > { %v8889_v5 = vpack.c.bf16 %v8879_v33, %v8879_v33  ;;  %v9413_v55 = vadd.f32 %v9412_v0, %v9018_v3 }
 0x9c6   : > { %9502 = vmatmul.bf16.vlgmr.msra.gmra.mxu2 %v8889_v5 }
 0x9c9   : > { %v9425_v43 = vpop.f32.mrf.mxu1  ;;  %v8880_v14 = vpop.f32.mrf.mxu2 }
 0x9ca   : > { %v9426_v49 = vadd.f32 %v9425_v43, %v9413_v55 }
 0x9cb   : > { %v9414_v58 = vpop.f32.mrf.mxu3 }
 0x9cc   : > { %v9439_v54 = vadd.f32 %v16794_v63, %v9426_v49 }
 0x9d1   : > { %v9427_v35 = vpop.f32.mrf.mxu1 }
 0x9e1   : > { %v9451_v21 = vpop.f32.mrf.mxu2 }
 0x9e2   : > { %v9452_v62 = vadd.f32 %v9451_v21, %v9439_v54 }
 0x9e3   : > { %v9464_v7 = vpop.f32.mrf.mxu3 }
 0x9e4   : > { %v9465_v25 = vadd.f32 %v9464_v7, %v9452_v62 }
 0x9e9   : > { %v9477_v20 = vpop.f32.mrf.mxu1  ;;  %v9453_v37 = vpop.f32.mrf.mxu2 }
 0x9ea   : > { %v9478_v48 = vadd.f32 %v9477_v20, %v9465_v25 }
 0x9eb   : > { %v9466_v36 = vpop.f32.mrf.mxu3 }
 0x9f1   : > { %v9479_v22 = vpop.f32.mrf.mxu1 }
 0xa03   : > { %v9490_v51 = vpop.f32.mrf.mxu0 }
 0xa04   : > { %v9491_v56 = vadd.f32 %v9490_v51, %v9478_v48 }
 0xa0b   : > { %v9492_v24 = vpop.f32.mrf.mxu0 }
 0xa49   : > { %v9503_v19 = vpop.f32.mrf.mxu2 }
 0xa4a   : > { %v9504_v1 = vadd.f32 %v9503_v19, %v9491_v56 }
 0xa4c   : > { %9508 = vst.msk [vmem:[%s954_s9] sm:$0x1] %vm9507_vm15, %v9504_v1 }
 0xa51   : > { %v9505_v63 = vpop.f32.mrf.mxu2 }
 0xa52 PF: > { %s16913_s8 = sld [smem:[#allocation58_spill]] }
 0xa58   : > { %s45_s29 = sadd.s32 1, %s16913_s8  }
 0xa59   : > { %p42_p7 = scmp.ge.s32.totalorder %s45_s29, 4  }
 0xa5b   :  { %44 = sbr.rel (!%p42_p7) target bundleno = 25 (0x19), region = 258 }
 0xa60   :  { %9526 = vsyncpa [#allocation10], 1 }
 0xa61   :  { %9528 = vsyncpa [#allocation10 + $0x1], 1 }
 0xa62   :  { %9529 = vsyncpa [#allocation12], 1 }
 0xa63   :  { %9530 = vsyncpa [#allocation15], 1 }
 0xa64   :  { %9531 = vsyncpa [#allocation18], 1 }
 0xa65   :  { %9532 = vsyncpa [#allocation21], 1 }
 0xa66   :  { %9533 = vsyncpa [#allocation24], 1 }
 0xa67   :  { %9534 = vsyncpa [#allocation27], 1 }
 0xa68   :  { %9535 = vsyncpa [#allocation30], 1 }
 0xa69   :  { %9536 = vsyncpa [#allocation33], 1 }
 0xa6a   :  { %9537 = vsyncpa [#allocation36], 1 }
 0xa6b   :  { %9538 = vsyncmov [#allocation8] }
 0xa6e   :  { %s9539_s3 = vpop.sfrf %9538 }
 0xa6f   :  { %p13174_p8 = scmp.ne.s32.totalorder %s9539_s3, 0 }
 0xa71   :  { %9543 = shalt.err (%p13174_p8)  }
 0xa72   :  { %9545 = vsyncmov [#allocation8 + $0x1] }
 0xa75   :  { %s9546_s9 = vpop.sfrf %9545 }
 0xa76   :  { %p13175_p9 = scmp.ne.s32.totalorder %s9546_s9, 0 }
 0xa78   :  { %9550 = shalt.err (%p13175_p9)  }
 0xa79   :  { %9552 = vsyncmov [#allocation8 + $0x2] }
 0xa7c   :  { %s9553_s10 = vpop.sfrf %9552 }
 0xa7d   :  { %p13176_p10 = scmp.ne.s32.totalorder %s9553_s10, 0 }
 0xa7f   :  { %9557 = shalt.err (%p13176_p10)  }

</bundles_post_ra>
